<compile_context>
chip_gen: v7x
topology: tpu7x:2x2x1
jax: 0.10.0
libtpu: 0.0.40
codegen_flags: <defaults>
</compile_context>

<pallas_src>
import functools

import jax
import jax.numpy as jnp
from jax.experimental import pallas as pl
from jax.experimental.pallas import tpu as pltpu

BN_EPS = 1e-5
LANE = 128
SUBLANE = 8

# bf16 operands / activations, f32 accumulation and BN statistics.
MXU_DTYPE = jnp.bfloat16
ACT_DTYPE = jnp.bfloat16


def _round_up(x, m):
    return (x + m - 1) // m * m


# ----------------------------------------------------------------------------
# Conv(3x3, stride 2, pad 1) + BatchNorm (training-mode batch stats) + ReLU
# ----------------------------------------------------------------------------
def _conv_mm_stats_kernel(p_ref, w_ref, y_ref, st_ref):
    # p_ref: [tm, 9*Cin] bf16   w_ref: [9*Cin, Cout] bf16
    # y_ref: [tm, Cout] bf16    st_ref: [1, 2, Cout] f32 (per-tile sum / sum-of-squares)
    y = jnp.dot(p_ref[...], w_ref[...], preferred_element_type=jnp.float32)
    y_ref[...] = y.astype(y_ref.dtype)
    cout = y.shape[1]
    # Two direct row stores (no cross-sublane concat); stats stay f32.
    st_ref[0:1, 0:1, :] = jnp.sum(y, axis=0, keepdims=True).reshape(1, 1, cout)
    st_ref[0:1, 1:2, :] = jnp.sum(y * y, axis=0, keepdims=True).reshape(1, 1, cout)


def _bn_relu_kernel(y_ref, scale_ref, shift_ref, o_ref):
    y = y_ref[...].astype(jnp.float32)
    o_ref[...] = jnp.maximum(y * scale_ref[...] + shift_ref[...], 0.0).astype(o_ref.dtype)


def _im2col_nhwc_s2k3p1(x):
    """x: [N, H, W, C] -> patches [N*hp*wp, 9*C] with (kh, kw, c) feature order."""
    n, h, w, c = x.shape
    hp, wp = (h + 1) // 2, (w + 1) // 2
    xp = jnp.pad(x, ((0, 0), (1, 1), (1, 1), (0, 0)))
    taps = []
    for kh in range(3):
        for kw in range(3):
            taps.append(xp[:, kh::2, kw::2, :][:, :hp, :wp, :])
    p = jnp.stack(taps, axis=3)                    # [N, hp, wp, 9, C]
    return p.reshape(n * hp * wp, 9 * c), hp, wp


def conv_bn_relu(x_nhwc, w, gamma, beta):
    """x: [N, H, W, Cin] NHWC, w: [Cout, Cin, 3, 3] -> [N, H', W', Cout] NHWC bf16."""
    n, _, _, cin = x_nhwc.shape
    cout = w.shape[0]
    # TODO(synk): JAX-side im2col (9x inflation, bf16); fuse into the kernel eventually.
    patches, hp, wp = _im2col_nhwc_s2k3p1(x_nhwc.astype(ACT_DTYPE))
    m = patches.shape[0]
    k = 9 * cin

    tm = 1024 if m >= 1024 else _round_up(m, SUBLANE)
    m_pad = _round_up(m, tm)
    if m_pad != m:
        patches = jnp.pad(patches, ((0, m_pad - m), (0, 0)))  # zero rows: no effect on stats
    grid_m = m_pad // tm

    # [Cout, Cin, 3, 3] -> [(kh, kw, cin), Cout].  The conv bias is intentionally not
    # applied: BatchNorm's mean subtraction cancels a per-output-channel bias exactly.
    w_mat = w.transpose(2, 3, 1, 0).reshape(k, cout).astype(MXU_DTYPE)

    y, pstats = pl.pallas_call(
        _conv_mm_stats_kernel,
        out_shape=(
            jax.ShapeDtypeStruct((m_pad, cout), ACT_DTYPE),
            jax.ShapeDtypeStruct((grid_m, 2, cout), jnp.float32),
        ),
        grid=(grid_m,),
        in_specs=[
            pl.BlockSpec((tm, k), lambda i: (i, 0)),
            pl.BlockSpec((k, cout), lambda i: (0, 0)),
        ],
        out_specs=(
            pl.BlockSpec((tm, cout), lambda i: (i, 0)),
            pl.BlockSpec((1, 2, cout), lambda i: (i, 0, 0)),
        ),
        compiler_params=pltpu.CompilerParams(
            dimension_semantics=("parallel",),
            vmem_limit_bytes=32 * 1024 * 1024,
        ),
    )(patches, w_mat)

    # Global training-mode batch statistics (per channel over all N*H'*W' rows).
    # TODO(synk): single-pass E[y^2]-E[y]^2 in f32; move to shifted/Welford partials if
    # tolerance tests against the f32 PyTorch reference show drift.
    stats = jnp.sum(pstats, axis=0)                          # [2, cout]
    mean = stats[0] / m                                      # padded rows are zero
    var = jnp.maximum(stats[1] / m - mean * mean, 0.0)       # biased var (PyTorch norm.)
    scale = (gamma * jax.lax.rsqrt(var + BN_EPS)).reshape(1, cout)
    shift = (beta - mean * scale[0]).reshape(1, cout)

    out = pl.pallas_call(
        _bn_relu_kernel,
        out_shape=jax.ShapeDtypeStruct((m_pad, cout), ACT_DTYPE),
        grid=(grid_m,),
        in_specs=[
            pl.BlockSpec((tm, cout), lambda i: (i, 0)),
            pl.BlockSpec((1, cout), lambda i: (0, 0)),
            pl.BlockSpec((1, cout), lambda i: (0, 0)),
        ],
        out_specs=pl.BlockSpec((tm, cout), lambda i: (i, 0)),
        compiler_params=pltpu.CompilerParams(dimension_semantics=("parallel",)),
    )(y, scale, shift)

    if m_pad != m:
        out = out[:m]
    return out.reshape(n, hp, wp, cout)


# ----------------------------------------------------------------------------
# Single-layer GRU: hoisted input projection + blocked sequential recurrence
# ----------------------------------------------------------------------------
def _proj_kernel(x_ref, w_ref, b_ref, o_ref):
    o_ref[...] = (
        jnp.dot(x_ref[...], w_ref[...], preferred_element_type=jnp.float32) + b_ref[...]
    ).astype(o_ref.dtype)


def gru_final_hidden(x_feat, w_ih, w_hh, b_ih, b_hh, hidden_size):
    """x_feat: [N, T, I] batch-major; PyTorch gate order (r, z, n). Returns h_T: [N, H]."""
    n, t_len, i_sz = x_feat.shape
    hsz = hidden_size
    h_pad = _round_up(hsz, LANE)            # lane-dense gate-block width
    n_pad = _round_up(n, SUBLANE)
    TB = 32                                 # timesteps per sequential grid step
    t_pad = _round_up(max(t_len, 1), TB)    # grid = ceil(T/TB): no fully-padded blocks

    def pad_gate_cols(a2d):                 # [rows, 3*hsz] -> [rows, 3*h_pad]
        out = jnp.zeros((a2d.shape[0], 3 * h_pad), jnp.float32)
        for g in range(3):
            out = out.at[:, g * h_pad:g * h_pad + hsz].set(a2d[:, g * hsz:(g + 1) * hsz])
        return out

    w_ih_p = pad_gate_cols(w_ih.T)                                      # [I, 3*h_pad]
    w_hh_p = jnp.zeros((h_pad, 3 * h_pad), jnp.float32)
    w_hh_p = w_hh_p.at[:hsz, :].set(pad_gate_cols(w_hh.T))              # [h_pad, 3*h_pad]
    b_ih_p = pad_gate_cols(b_ih.reshape(1, -1))                         # [1, 3*h_pad]
    b_hh_p = pad_gate_cols(b_hh.reshape(1, -1))                         # [1, 3*h_pad]

    # ---- hoisted input projection gi = x @ W_ih^T + b_ih for every timestep ----
    x_p = jnp.pad(x_feat.astype(MXU_DTYPE),
                  ((0, n_pad - n), (0, t_pad - t_len), (0, 0)))
    rows = n_pad * t_pad                    # n_pad % 8 == 0, t_pad % 32 == 0 -> rows % 256 == 0
    tm = 256
    gi = pl.pallas_call(
        _proj_kernel,
        out_shape=jax.ShapeDtypeStruct((rows, 3 * h_pad), ACT_DTYPE),
        grid=(rows // tm,),
        in_specs=[
            pl.BlockSpec((tm, i_sz), lambda i: (i, 0)),
            pl.BlockSpec((i_sz, 3 * h_pad), lambda i: (0, 0)),
            pl.BlockSpec((1, 3 * h_pad), lambda i: (0, 0)),
        ],
        out_specs=pl.BlockSpec((tm, 3 * h_pad), lambda i: (i, 0)),
        compiler_params=pltpu.CompilerParams(dimension_semantics=("parallel",)),
    )(x_p.reshape(rows, i_sz), w_ih_p.astype(MXU_DTYPE), b_ih_p)
    gi_seq = gi.reshape(n_pad, t_pad, 3 * h_pad)

    # ---- sequential recurrence: TB timesteps per grid step, h carried in o_ref ----
    def rec_kernel(gi_ref, whh_ref, bhh_ref, h_ref):
        blk = pl.program_id(0)

        @pl.when(blk == 0)
        def _():
            h_ref[...] = jnp.zeros_like(h_ref)

        h = h_ref[...]
        for j in range(TB):                         # static unroll: TB small & fixed
            gi_t = gi_ref[:, j, :].astype(jnp.float32)      # [n_pad, 3*h_pad]
            gh = jnp.dot(h, whh_ref[...],
                         preferred_element_type=jnp.float32) + bhh_ref[...]
            r = jax.nn.sigmoid(gi_t[:, 0:h_pad] + gh[:, 0:h_pad])
            z = jax.nn.sigmoid(gi_t[:, h_pad:2 * h_pad] + gh[:, h_pad:2 * h_pad])
            c = jnp.tanh(gi_t[:, 2 * h_pad:3 * h_pad] + r * gh[:, 2 * h_pad:3 * h_pad])
            h_new = (1.0 - z) * c + z * h
            valid = (blk * TB + j) < t_len          # mask padded timesteps
            h = jnp.where(valid, h_new, h)
        h_ref[...] = h

    h_last = pl.pallas_call(
        rec_kernel,
        out_shape=jax.ShapeDtypeStruct((n_pad, h_pad), jnp.float32),
        grid=(t_pad // TB,),
        in_specs=[
            pl.BlockSpec((n_pad, TB, 3 * h_pad), lambda i: (0, i, 0)),
            pl.BlockSpec((h_pad, 3 * h_pad), lambda i: (0, 0)),
            pl.BlockSpec((1, 3 * h_pad), lambda i: (0, 0)),
        ],
        out_specs=pl.BlockSpec((n_pad, h_pad), lambda i: (0, 0)),
        compiler_params=pltpu.CompilerParams(dimension_semantics=("arbitrary",)),
    )(gi_seq, w_hh_p, b_hh_p)

    return h_last[:n, :hsz]


# ----------------------------------------------------------------------------
# Full ReferenceEncoder forward
# ----------------------------------------------------------------------------
def calculate_channels(L, kernel_size, stride, pad, n_convs):
    for _ in range(n_convs):
        L = (L - kernel_size + 2 * pad) // stride + 1
    return L


def init_params(key, ref_enc_filters, n_mel_channels, ref_enc_gru_size):
    K = len(ref_enc_filters)
    filters = [1] + list(ref_enc_filters)
    keys = jax.random.split(key, K + 4)
    params = {"convs": [], "bns": []}
    for i in range(K):
        cin, cout = filters[i], filters[i + 1]
        w = 0.1 * jax.random.normal(keys[i], (cout, cin, 3, 3), jnp.float32)
        # Conv bias omitted: BatchNorm's mean subtraction cancels it exactly.
        params["convs"].append(w)
        gamma = 1.0 + 0.05 * jnp.arange(cout, dtype=jnp.float32)
        beta = 0.02 * jnp.arange(cout, dtype=jnp.float32)
        params["bns"].append((gamma, beta))
    out_ch = calculate_channels(n_mel_channels, 3, 2, 1, K)
    input_size = ref_enc_filters[-1] * out_ch
    h = ref_enc_gru_size
    params["gru"] = (
        0.1 * jax.random.normal(keys[-4], (3 * h, input_size), jnp.float32),  # W_ih
        0.1 * jax.random.normal(keys[-3], (3 * h, h), jnp.float32),           # W_hh
        0.1 * jax.random.normal(keys[-2], (3 * h,), jnp.float32),             # b_ih
        0.1 * jax.random.normal(keys[-1], (3 * h,), jnp.float32),             # b_hh
    )
    return params


def reference_encoder_forward(inputs, params, n_mel_channels, ref_enc_gru_size):
    """inputs: [N, Ty/r, n_mels*r] -> [N, ref_enc_gru_size]."""
    N = inputs.shape[0]
    # PyTorch: view(N, 1, -1, n_mels) (NCHW, C=1).  NHWC with C=1 is a pure reshape.
    out = inputs.reshape(N, -1, n_mel_channels, 1)
    for w, (gamma, beta) in zip(params["convs"], params["bns"]):
        out = conv_bn_relu(out, w, gamma, beta)

    n, t3, m3, c3 = out.shape
    w_ih, w_hh, b_ih, b_hh = params["gru"]
    # PyTorch flattens features channel-major ([N,T,C,M] -> c*M + m); our NHWC flatten
    # is mel-major (m*C + c).  Permute W_ih's columns once instead of transposing the
    # activations:  perm[m*C + c] = c*M + m.
    perm = jnp.arange(c3 * m3).reshape(c3, m3).T.reshape(-1)
    w_ih = w_ih[:, perm]
    x_feat = out.reshape(n, t3, m3 * c3)
    # TODO(synk): input_lengths / pack_padded_sequence path not implemented (None case only).
    return gru_final_hidden(x_feat, w_ih, w_hh, b_ih, b_hh, ref_enc_gru_size)


if __name__ == "__main__":
    ref_enc_filters = [4, 8, 16]
    n_mel_channels = 16
    ref_enc_gru_size = 32
    N, T = 2, 16

    key = jax.random.PRNGKey(0)
    k_params, k_x = jax.random.split(key)
    params = init_params(k_params, ref_enc_filters, n_mel_channels, ref_enc_gru_size)
    x = jax.random.normal(k_x, (N, T, n_mel_channels), jnp.float32)

    fwd = jax.jit(
        functools.partial(
            reference_encoder_forward,
            n_mel_channels=n_mel_channels,
            ref_enc_gru_size=ref_enc_gru_size,
        )
    )
    out = jax.block_until_ready(fwd(x, params))
    assert out.shape == (N, ref_enc_gru_size), out.shape
    assert bool(jnp.all(jnp.isfinite(out)))
    print("KERNEL_OK")
</pallas_src>

<mosaic_0001>
module attributes {stable_mosaic.version = 11 : i64} {
  func.func @_bn_relu_kernel(%arg0: i32, %arg1: memref<128x4xbf16, #tpu.memory_space<vmem>>, %arg2: memref<1x4xf32, #tpu.memory_space<vmem>>, %arg3: memref<1x4xf32, #tpu.memory_space<vmem>>, %arg4: memref<128x4xbf16, #tpu.memory_space<vmem>>) attributes {dimension_semantics = [#tpu.dimension_semantics<parallel>], iteration_bounds = array<i64: 1>, scalar_prefetch = 0 : i64, scratch_operands = 0 : i64, tpu.core_type = #tpu.core_type<tc>, window_params = [{transform_indices = @transform_0, window_bounds = array<i64: 128, 4>}, {pipeline_mode = #tpu.pipeline_mode<synchronous>, transform_indices = @transform_1, window_bounds = array<i64: 1, 4>}, {pipeline_mode = #tpu.pipeline_mode<synchronous>, transform_indices = @transform_2, window_bounds = array<i64: 1, 4>}, {transform_indices = @transform_3, window_bounds = array<i64: 128, 4>}]} {
    %c0 = arith.constant 0 : index
    %c0_0 = arith.constant 0 : index
    %0 = vector.load %arg1[%c0, %c0_0] : memref<128x4xbf16, #tpu.memory_space<vmem>>, vector<128x4xbf16>
    %1 = arith.extf %0 : vector<128x4xbf16> to vector<128x4xf32>
    %c0_1 = arith.constant 0 : index
    %c0_2 = arith.constant 0 : index
    %2 = vector.load %arg2[%c0_1, %c0_2] : memref<1x4xf32, #tpu.memory_space<vmem>>, vector<1x4xf32>
    %3 = vector.broadcast %2 : vector<1x4xf32> to vector<128x4xf32>
    %4 = arith.mulf %1, %3 : vector<128x4xf32>
    %c0_3 = arith.constant 0 : index
    %c0_4 = arith.constant 0 : index
    %5 = vector.load %arg3[%c0_3, %c0_4] : memref<1x4xf32, #tpu.memory_space<vmem>>, vector<1x4xf32>
    %6 = vector.broadcast %5 : vector<1x4xf32> to vector<128x4xf32>
    %7 = arith.addf %4, %6 : vector<128x4xf32>
    %cst = arith.constant 0.000000e+00 : f32
    %8 = vector.broadcast %cst : f32 to vector<128x4xf32>
    %9 = arith.maximumf %7, %8 : vector<128x4xf32>
    %10 = arith.truncf %9 : vector<128x4xf32> to vector<128x4xbf16>
    %c0_5 = arith.constant 0 : index
    %c0_6 = arith.constant 0 : index
    %11 = vector.load %arg4[%c0_5, %c0_6] : memref<128x4xbf16, #tpu.memory_space<vmem>>, vector<128x4xbf16>
    tpu.vector_store %arg4[%c0_5, %c0_6], %10 {strides = array<i32>} : memref<128x4xbf16, #tpu.memory_space<vmem>>, vector<128x4xbf16>,
    return
  }
  func.func @transform_0(%arg0: i32) -> (i32, i32) {
    %c0_i32 = arith.constant 0 : i32
    %c0_i32_0 = arith.constant 0 : i32
    return %arg0, %c0_i32 : i32, i32
  }
  func.func @transform_1(%arg0: i32) -> (i32, i32) {
    %c0_i32 = arith.constant 0 : i32
    %c0_i32_0 = arith.constant 0 : i32
    %c0_i32_1 = arith.constant 0 : i32
    return %c0_i32, %c0_i32_0 : i32, i32
  }
  func.func @transform_2(%arg0: i32) -> (i32, i32) {
    %c0_i32 = arith.constant 0 : i32
    %c0_i32_0 = arith.constant 0 : i32
    %c0_i32_1 = arith.constant 0 : i32
    return %c0_i32, %c0_i32_0 : i32, i32
  }
  func.func @transform_3(%arg0: i32) -> (i32, i32) {
    %c0_i32 = arith.constant 0 : i32
    %c0_i32_0 = arith.constant 0 : i32
    return %arg0, %c0_i32 : i32, i32
  }
}

module attributes {stable_mosaic.version = 11 : i64} {
  func.func @_conv_mm_stats_kernel(%arg0: i32, %arg1: memref<128x9xbf16, #tpu.memory_space<vmem>>, %arg2: memref<9x4xbf16, #tpu.memory_space<vmem>>, %arg3: memref<128x4xbf16, #tpu.memory_space<vmem>>, %arg4: memref<1x2x4xf32, #tpu.memory_space<vmem>>) attributes {dimension_semantics = [#tpu.dimension_semantics<parallel>], iteration_bounds = array<i64: 1>, scalar_prefetch = 0 : i64, scratch_operands = 0 : i64, tpu.core_type = #tpu.core_type<tc>, window_params = [{transform_indices = @transform_0, window_bounds = array<i64: 128, 9>}, {pipeline_mode = #tpu.pipeline_mode<synchronous>, transform_indices = @transform_1, window_bounds = array<i64: 9, 4>}, {transform_indices = @transform_2, window_bounds = array<i64: 128, 4>}, {transform_indices = @transform_3, window_bounds = array<i64: 1, 2, 4>}]} {
    %c0 = arith.constant 0 : index
    %c0_0 = arith.constant 0 : index
    %0 = vector.load %arg1[%c0, %c0_0] : memref<128x9xbf16, #tpu.memory_space<vmem>>, vector<128x9xbf16>
    %c0_1 = arith.constant 0 : index
    %c0_2 = arith.constant 0 : index
    %1 = vector.load %arg2[%c0_1, %c0_2] : memref<9x4xbf16, #tpu.memory_space<vmem>>, vector<9x4xbf16>
    %cst = arith.constant dense<0.000000e+00> : vector<128x4xf32>
    %2 = tpu.matmul %0, %1, %cst {dimension_numbers = #tpu.dot_dimension_numbers<[1], [0], [0], [1], [0, 0, 1, 1], [], []>} : vector<128x9xbf16>, vector<9x4xbf16>, vector<128x4xf32> -> vector<128x4xf32>
    %3 = arith.truncf %2 : vector<128x4xf32> to vector<128x4xbf16>
    %c0_3 = arith.constant 0 : index
    %c0_4 = arith.constant 0 : index
    %4 = vector.load %arg3[%c0_3, %c0_4] : memref<128x4xbf16, #tpu.memory_space<vmem>>, vector<128x4xbf16>
    tpu.vector_store %arg3[%c0_3, %c0_4], %3 {strides = array<i32>} : memref<128x4xbf16, #tpu.memory_space<vmem>>, vector<128x4xbf16>,
    %cst_5 = arith.constant dense<0.000000e+00> : vector<4xf32>
    %5 = vector.multi_reduction <add>, %2, %cst_5 [0] : vector<128x4xf32> to vector<4xf32>
    %6 = vector.shape_cast %5 : vector<4xf32> to vector<1x4xf32>
    %7 = vector.shape_cast %6 : vector<1x4xf32> to vector<1x1x4xf32>
    %c0_6 = arith.constant 0 : index
    %c0_7 = arith.constant 0 : index
    %c0_8 = arith.constant 0 : index
    %8 = vector.load %arg4[%c0_6, %c0_7, %c0_8] : memref<1x2x4xf32, #tpu.memory_space<vmem>>, vector<1x1x4xf32>
    tpu.vector_store %arg4[%c0_6, %c0_7, %c0_8], %7 {strides = array<i32>} : memref<1x2x4xf32, #tpu.memory_space<vmem>>, vector<1x1x4xf32>,
    %9 = arith.mulf %2, %2 : vector<128x4xf32>
    %cst_9 = arith.constant dense<0.000000e+00> : vector<4xf32>
    %10 = vector.multi_reduction <add>, %9, %cst_9 [0] : vector<128x4xf32> to vector<4xf32>
    %11 = vector.shape_cast %10 : vector<4xf32> to vector<1x4xf32>
    %12 = vector.shape_cast %11 : vector<1x4xf32> to vector<1x1x4xf32>
    %c0_10 = arith.constant 0 : index
    %c1 = arith.constant 1 : index
    %c0_11 = arith.constant 0 : index
    %13 = vector.load %arg4[%c0_10, %c1, %c0_11] : memref<1x2x4xf32, #tpu.memory_space<vmem>>, vector<1x1x4xf32>
    tpu.vector_store %arg4[%c0_10, %c1, %c0_11], %12 {strides = array<i32>} : memref<1x2x4xf32, #tpu.memory_space<vmem>>, vector<1x1x4xf32>,
    return
  }
  func.func @transform_0(%arg0: i32) -> (i32, i32) {
    %c0_i32 = arith.constant 0 : i32
    %c0_i32_0 = arith.constant 0 : i32
    return %arg0, %c0_i32 : i32, i32
  }
  func.func @transform_1(%arg0: i32) -> (i32, i32) {
    %c0_i32 = arith.constant 0 : i32
    %c0_i32_0 = arith.constant 0 : i32
    %c0_i32_1 = arith.constant 0 : i32
    return %c0_i32, %c0_i32_0 : i32, i32
  }
  func.func @transform_2(%arg0: i32) -> (i32, i32) {
    %c0_i32 = arith.constant 0 : i32
    %c0_i32_0 = arith.constant 0 : i32
    return %arg0, %c0_i32 : i32, i32
  }
  func.func @transform_3(%arg0: i32) -> (i32, i32, i32) {
    %c0_i32 = arith.constant 0 : i32
    %c0_i32_0 = arith.constant 0 : i32
    %c0_i32_1 = arith.constant 0 : i32
    return %arg0, %c0_i32, %c0_i32_0 : i32, i32, i32
  }
}

module attributes {stable_mosaic.version = 11 : i64} {
  func.func @_conv_mm_stats_kernel(%arg0: i32, %arg1: memref<32x36xbf16, #tpu.memory_space<vmem>>, %arg2: memref<36x8xbf16, #tpu.memory_space<vmem>>, %arg3: memref<32x8xbf16, #tpu.memory_space<vmem>>, %arg4: memref<1x2x8xf32, #tpu.memory_space<vmem>>) attributes {dimension_semantics = [#tpu.dimension_semantics<parallel>], iteration_bounds = array<i64: 1>, scalar_prefetch = 0 : i64, scratch_operands = 0 : i64, tpu.core_type = #tpu.core_type<tc>, window_params = [{transform_indices = @transform_0, window_bounds = array<i64: 32, 36>}, {pipeline_mode = #tpu.pipeline_mode<synchronous>, transform_indices = @transform_1, window_bounds = array<i64: 36, 8>}, {transform_indices = @transform_2, window_bounds = array<i64: 32, 8>}, {transform_indices = @transform_3, window_bounds = array<i64: 1, 2, 8>}]} {
    %c0 = arith.constant 0 : index
    %c0_0 = arith.constant 0 : index
    %0 = vector.load %arg1[%c0, %c0_0] : memref<32x36xbf16, #tpu.memory_space<vmem>>, vector<32x36xbf16>
    %c0_1 = arith.constant 0 : index
    %c0_2 = arith.constant 0 : index
    %1 = vector.load %arg2[%c0_1, %c0_2] : memref<36x8xbf16, #tpu.memory_space<vmem>>, vector<36x8xbf16>
    %cst = arith.constant dense<0.000000e+00> : vector<32x8xf32>
    %2 = tpu.matmul %0, %1, %cst {dimension_numbers = #tpu.dot_dimension_numbers<[1], [0], [0], [1], [0, 0, 1, 1], [], []>} : vector<32x36xbf16>, vector<36x8xbf16>, vector<32x8xf32> -> vector<32x8xf32>
    %3 = arith.truncf %2 : vector<32x8xf32> to vector<32x8xbf16>
    %c0_3 = arith.constant 0 : index
    %c0_4 = arith.constant 0 : index
    %4 = vector.load %arg3[%c0_3, %c0_4] : memref<32x8xbf16, #tpu.memory_space<vmem>>, vector<32x8xbf16>
    tpu.vector_store %arg3[%c0_3, %c0_4], %3 {strides = array<i32>} : memref<32x8xbf16, #tpu.memory_space<vmem>>, vector<32x8xbf16>,
    %cst_5 = arith.constant dense<0.000000e+00> : vector<8xf32>
    %5 = vector.multi_reduction <add>, %2, %cst_5 [0] : vector<32x8xf32> to vector<8xf32>
    %6 = vector.shape_cast %5 : vector<8xf32> to vector<1x8xf32>
    %7 = vector.shape_cast %6 : vector<1x8xf32> to vector<1x1x8xf32>
    %c0_6 = arith.constant 0 : index
    %c0_7 = arith.constant 0 : index
    %c0_8 = arith.constant 0 : index
    %8 = vector.load %arg4[%c0_6, %c0_7, %c0_8] : memref<1x2x8xf32, #tpu.memory_space<vmem>>, vector<1x1x8xf32>
    tpu.vector_store %arg4[%c0_6, %c0_7, %c0_8], %7 {strides = array<i32>} : memref<1x2x8xf32, #tpu.memory_space<vmem>>, vector<1x1x8xf32>,
    %9 = arith.mulf %2, %2 : vector<32x8xf32>
    %cst_9 = arith.constant dense<0.000000e+00> : vector<8xf32>
    %10 = vector.multi_reduction <add>, %9, %cst_9 [0] : vector<32x8xf32> to vector<8xf32>
    %11 = vector.shape_cast %10 : vector<8xf32> to vector<1x8xf32>
    %12 = vector.shape_cast %11 : vector<1x8xf32> to vector<1x1x8xf32>
    %c0_10 = arith.constant 0 : index
    %c1 = arith.constant 1 : index
    %c0_11 = arith.constant 0 : index
    %13 = vector.load %arg4[%c0_10, %c1, %c0_11] : memref<1x2x8xf32, #tpu.memory_space<vmem>>, vector<1x1x8xf32>
    tpu.vector_store %arg4[%c0_10, %c1, %c0_11], %12 {strides = array<i32>} : memref<1x2x8xf32, #tpu.memory_space<vmem>>, vector<1x1x8xf32>,
    return
  }
  func.func @transform_0(%arg0: i32) -> (i32, i32) {
    %c0_i32 = arith.constant 0 : i32
    %c0_i32_0 = arith.constant 0 : i32
    return %arg0, %c0_i32 : i32, i32
  }
  func.func @transform_1(%arg0: i32) -> (i32, i32) {
    %c0_i32 = arith.constant 0 : i32
    %c0_i32_0 = arith.constant 0 : i32
    %c0_i32_1 = arith.constant 0 : i32
    return %c0_i32, %c0_i32_0 : i32, i32
  }
  func.func @transform_2(%arg0: i32) -> (i32, i32) {
    %c0_i32 = arith.constant 0 : i32
    %c0_i32_0 = arith.constant 0 : i32
    return %arg0, %c0_i32 : i32, i32
  }
  func.func @transform_3(%arg0: i32) -> (i32, i32, i32) {
    %c0_i32 = arith.constant 0 : i32
    %c0_i32_0 = arith.constant 0 : i32
    %c0_i32_1 = arith.constant 0 : i32
    return %arg0, %c0_i32, %c0_i32_0 : i32, i32, i32
  }
}

module attributes {stable_mosaic.version = 11 : i64} {
  func.func @_bn_relu_kernel(%arg0: i32, %arg1: memref<32x8xbf16, #tpu.memory_space<vmem>>, %arg2: memref<1x8xf32, #tpu.memory_space<vmem>>, %arg3: memref<1x8xf32, #tpu.memory_space<vmem>>, %arg4: memref<32x8xbf16, #tpu.memory_space<vmem>>) attributes {dimension_semantics = [#tpu.dimension_semantics<parallel>], iteration_bounds = array<i64: 1>, scalar_prefetch = 0 : i64, scratch_operands = 0 : i64, tpu.core_type = #tpu.core_type<tc>, window_params = [{transform_indices = @transform_0, window_bounds = array<i64: 32, 8>}, {pipeline_mode = #tpu.pipeline_mode<synchronous>, transform_indices = @transform_1, window_bounds = array<i64: 1, 8>}, {pipeline_mode = #tpu.pipeline_mode<synchronous>, transform_indices = @transform_2, window_bounds = array<i64: 1, 8>}, {transform_indices = @transform_3, window_bounds = array<i64: 32, 8>}]} {
    %c0 = arith.constant 0 : index
    %c0_0 = arith.constant 0 : index
    %0 = vector.load %arg1[%c0, %c0_0] : memref<32x8xbf16, #tpu.memory_space<vmem>>, vector<32x8xbf16>
    %1 = arith.extf %0 : vector<32x8xbf16> to vector<32x8xf32>
    %c0_1 = arith.constant 0 : index
    %c0_2 = arith.constant 0 : index
    %2 = vector.load %arg2[%c0_1, %c0_2] : memref<1x8xf32, #tpu.memory_space<vmem>>, vector<1x8xf32>
    %3 = vector.broadcast %2 : vector<1x8xf32> to vector<32x8xf32>
    %4 = arith.mulf %1, %3 : vector<32x8xf32>
    %c0_3 = arith.constant 0 : index
    %c0_4 = arith.constant 0 : index
    %5 = vector.load %arg3[%c0_3, %c0_4] : memref<1x8xf32, #tpu.memory_space<vmem>>, vector<1x8xf32>
    %6 = vector.broadcast %5 : vector<1x8xf32> to vector<32x8xf32>
    %7 = arith.addf %4, %6 : vector<32x8xf32>
    %cst = arith.constant 0.000000e+00 : f32
    %8 = vector.broadcast %cst : f32 to vector<32x8xf32>
    %9 = arith.maximumf %7, %8 : vector<32x8xf32>
    %10 = arith.truncf %9 : vector<32x8xf32> to vector<32x8xbf16>
    %c0_5 = arith.constant 0 : index
    %c0_6 = arith.constant 0 : index
    %11 = vector.load %arg4[%c0_5, %c0_6] : memref<32x8xbf16, #tpu.memory_space<vmem>>, vector<32x8xbf16>
    tpu.vector_store %arg4[%c0_5, %c0_6], %10 {strides = array<i32>} : memref<32x8xbf16, #tpu.memory_space<vmem>>, vector<32x8xbf16>,
    return
  }
  func.func @transform_0(%arg0: i32) -> (i32, i32) {
    %c0_i32 = arith.constant 0 : i32
    %c0_i32_0 = arith.constant 0 : i32
    return %arg0, %c0_i32 : i32, i32
  }
  func.func @transform_1(%arg0: i32) -> (i32, i32) {
    %c0_i32 = arith.constant 0 : i32
    %c0_i32_0 = arith.constant 0 : i32
    %c0_i32_1 = arith.constant 0 : i32
    return %c0_i32, %c0_i32_0 : i32, i32
  }
  func.func @transform_2(%arg0: i32) -> (i32, i32) {
    %c0_i32 = arith.constant 0 : i32
    %c0_i32_0 = arith.constant 0 : i32
    %c0_i32_1 = arith.constant 0 : i32
    return %c0_i32, %c0_i32_0 : i32, i32
  }
  func.func @transform_3(%arg0: i32) -> (i32, i32) {
    %c0_i32 = arith.constant 0 : i32
    %c0_i32_0 = arith.constant 0 : i32
    return %arg0, %c0_i32 : i32, i32
  }
}

module attributes {stable_mosaic.version = 11 : i64} {
  func.func @_bn_relu_kernel(%arg0: i32, %arg1: memref<8x16xbf16, #tpu.memory_space<vmem>>, %arg2: memref<1x16xf32, #tpu.memory_space<vmem>>, %arg3: memref<1x16xf32, #tpu.memory_space<vmem>>, %arg4: memref<8x16xbf16, #tpu.memory_space<vmem>>) attributes {dimension_semantics = [#tpu.dimension_semantics<parallel>], iteration_bounds = array<i64: 1>, scalar_prefetch = 0 : i64, scratch_operands = 0 : i64, tpu.core_type = #tpu.core_type<tc>, window_params = [{transform_indices = @transform_0, window_bounds = array<i64: 8, 16>}, {pipeline_mode = #tpu.pipeline_mode<synchronous>, transform_indices = @transform_1, window_bounds = array<i64: 1, 16>}, {pipeline_mode = #tpu.pipeline_mode<synchronous>, transform_indices = @transform_2, window_bounds = array<i64: 1, 16>}, {transform_indices = @transform_3, window_bounds = array<i64: 8, 16>}]} {
    %c0 = arith.constant 0 : index
    %c0_0 = arith.constant 0 : index
    %0 = vector.load %arg1[%c0, %c0_0] : memref<8x16xbf16, #tpu.memory_space<vmem>>, vector<8x16xbf16>
    %1 = arith.extf %0 : vector<8x16xbf16> to vector<8x16xf32>
    %c0_1 = arith.constant 0 : index
    %c0_2 = arith.constant 0 : index
    %2 = vector.load %arg2[%c0_1, %c0_2] : memref<1x16xf32, #tpu.memory_space<vmem>>, vector<1x16xf32>
    %3 = vector.broadcast %2 : vector<1x16xf32> to vector<8x16xf32>
    %4 = arith.mulf %1, %3 : vector<8x16xf32>
    %c0_3 = arith.constant 0 : index
    %c0_4 = arith.constant 0 : index
    %5 = vector.load %arg3[%c0_3, %c0_4] : memref<1x16xf32, #tpu.memory_space<vmem>>, vector<1x16xf32>
    %6 = vector.broadcast %5 : vector<1x16xf32> to vector<8x16xf32>
    %7 = arith.addf %4, %6 : vector<8x16xf32>
    %cst = arith.constant 0.000000e+00 : f32
    %8 = vector.broadcast %cst : f32 to vector<8x16xf32>
    %9 = arith.maximumf %7, %8 : vector<8x16xf32>
    %10 = arith.truncf %9 : vector<8x16xf32> to vector<8x16xbf16>
    %c0_5 = arith.constant 0 : index
    %c0_6 = arith.constant 0 : index
    %11 = vector.load %arg4[%c0_5, %c0_6] : memref<8x16xbf16, #tpu.memory_space<vmem>>, vector<8x16xbf16>
    tpu.vector_store %arg4[%c0_5, %c0_6], %10 {strides = array<i32>} : memref<8x16xbf16, #tpu.memory_space<vmem>>, vector<8x16xbf16>,
    return
  }
  func.func @transform_0(%arg0: i32) -> (i32, i32) {
    %c0_i32 = arith.constant 0 : i32
    %c0_i32_0 = arith.constant 0 : i32
    return %arg0, %c0_i32 : i32, i32
  }
  func.func @transform_1(%arg0: i32) -> (i32, i32) {
    %c0_i32 = arith.constant 0 : i32
    %c0_i32_0 = arith.constant 0 : i32
    %c0_i32_1 = arith.constant 0 : i32
    return %c0_i32, %c0_i32_0 : i32, i32
  }
  func.func @transform_2(%arg0: i32) -> (i32, i32) {
    %c0_i32 = arith.constant 0 : i32
    %c0_i32_0 = arith.constant 0 : i32
    %c0_i32_1 = arith.constant 0 : i32
    return %c0_i32, %c0_i32_0 : i32, i32
  }
  func.func @transform_3(%arg0: i32) -> (i32, i32) {
    %c0_i32 = arith.constant 0 : i32
    %c0_i32_0 = arith.constant 0 : i32
    return %arg0, %c0_i32 : i32, i32
  }
}

module attributes {stable_mosaic.version = 11 : i64} {
  func.func @_conv_mm_stats_kernel(%arg0: i32, %arg1: memref<8x72xbf16, #tpu.memory_space<vmem>>, %arg2: memref<72x16xbf16, #tpu.memory_space<vmem>>, %arg3: memref<8x16xbf16, #tpu.memory_space<vmem>>, %arg4: memref<1x2x16xf32, #tpu.memory_space<vmem>>) attributes {dimension_semantics = [#tpu.dimension_semantics<parallel>], iteration_bounds = array<i64: 1>, scalar_prefetch = 0 : i64, scratch_operands = 0 : i64, tpu.core_type = #tpu.core_type<tc>, window_params = [{transform_indices = @transform_0, window_bounds = array<i64: 8, 72>}, {pipeline_mode = #tpu.pipeline_mode<synchronous>, transform_indices = @transform_1, window_bounds = array<i64: 72, 16>}, {transform_indices = @transform_2, window_bounds = array<i64: 8, 16>}, {transform_indices = @transform_3, window_bounds = array<i64: 1, 2, 16>}]} {
    %c0 = arith.constant 0 : index
    %c0_0 = arith.constant 0 : index
    %0 = vector.load %arg1[%c0, %c0_0] : memref<8x72xbf16, #tpu.memory_space<vmem>>, vector<8x72xbf16>
    %c0_1 = arith.constant 0 : index
    %c0_2 = arith.constant 0 : index
    %1 = vector.load %arg2[%c0_1, %c0_2] : memref<72x16xbf16, #tpu.memory_space<vmem>>, vector<72x16xbf16>
    %cst = arith.constant dense<0.000000e+00> : vector<8x16xf32>
    %2 = tpu.matmul %0, %1, %cst {dimension_numbers = #tpu.dot_dimension_numbers<[1], [0], [0], [1], [0, 0, 1, 1], [], []>} : vector<8x72xbf16>, vector<72x16xbf16>, vector<8x16xf32> -> vector<8x16xf32>
    %3 = arith.truncf %2 : vector<8x16xf32> to vector<8x16xbf16>
    %c0_3 = arith.constant 0 : index
    %c0_4 = arith.constant 0 : index
    %4 = vector.load %arg3[%c0_3, %c0_4] : memref<8x16xbf16, #tpu.memory_space<vmem>>, vector<8x16xbf16>
    tpu.vector_store %arg3[%c0_3, %c0_4], %3 {strides = array<i32>} : memref<8x16xbf16, #tpu.memory_space<vmem>>, vector<8x16xbf16>,
    %cst_5 = arith.constant dense<0.000000e+00> : vector<16xf32>
    %5 = vector.multi_reduction <add>, %2, %cst_5 [0] : vector<8x16xf32> to vector<16xf32>
    %6 = vector.shape_cast %5 : vector<16xf32> to vector<1x16xf32>
    %7 = vector.shape_cast %6 : vector<1x16xf32> to vector<1x1x16xf32>
    %c0_6 = arith.constant 0 : index
    %c0_7 = arith.constant 0 : index
    %c0_8 = arith.constant 0 : index
    %8 = vector.load %arg4[%c0_6, %c0_7, %c0_8] : memref<1x2x16xf32, #tpu.memory_space<vmem>>, vector<1x1x16xf32>
    tpu.vector_store %arg4[%c0_6, %c0_7, %c0_8], %7 {strides = array<i32>} : memref<1x2x16xf32, #tpu.memory_space<vmem>>, vector<1x1x16xf32>,
    %9 = arith.mulf %2, %2 : vector<8x16xf32>
    %cst_9 = arith.constant dense<0.000000e+00> : vector<16xf32>
    %10 = vector.multi_reduction <add>, %9, %cst_9 [0] : vector<8x16xf32> to vector<16xf32>
    %11 = vector.shape_cast %10 : vector<16xf32> to vector<1x16xf32>
    %12 = vector.shape_cast %11 : vector<1x16xf32> to vector<1x1x16xf32>
    %c0_10 = arith.constant 0 : index
    %c1 = arith.constant 1 : index
    %c0_11 = arith.constant 0 : index
    %13 = vector.load %arg4[%c0_10, %c1, %c0_11] : memref<1x2x16xf32, #tpu.memory_space<vmem>>, vector<1x1x16xf32>
    tpu.vector_store %arg4[%c0_10, %c1, %c0_11], %12 {strides = array<i32>} : memref<1x2x16xf32, #tpu.memory_space<vmem>>, vector<1x1x16xf32>,
    return
  }
  func.func @transform_0(%arg0: i32) -> (i32, i32) {
    %c0_i32 = arith.constant 0 : i32
    %c0_i32_0 = arith.constant 0 : i32
    return %arg0, %c0_i32 : i32, i32
  }
  func.func @transform_1(%arg0: i32) -> (i32, i32) {
    %c0_i32 = arith.constant 0 : i32
    %c0_i32_0 = arith.constant 0 : i32
    %c0_i32_1 = arith.constant 0 : i32
    return %c0_i32, %c0_i32_0 : i32, i32
  }
  func.func @transform_2(%arg0: i32) -> (i32, i32) {
    %c0_i32 = arith.constant 0 : i32
    %c0_i32_0 = arith.constant 0 : i32
    return %arg0, %c0_i32 : i32, i32
  }
  func.func @transform_3(%arg0: i32) -> (i32, i32, i32) {
    %c0_i32 = arith.constant 0 : i32
    %c0_i32_0 = arith.constant 0 : i32
    %c0_i32_1 = arith.constant 0 : i32
    return %arg0, %c0_i32, %c0_i32_0 : i32, i32, i32
  }
}

module attributes {stable_mosaic.version = 11 : i64} {
  func.func @_proj_kernel(%arg0: i32, %arg1: memref<256x32xbf16, #tpu.memory_space<vmem>>, %arg2: memref<32x384xbf16, #tpu.memory_space<vmem>>, %arg3: memref<1x384xf32, #tpu.memory_space<vmem>>, %arg4: memref<256x384xbf16, #tpu.memory_space<vmem>>) attributes {dimension_semantics = [#tpu.dimension_semantics<parallel>], iteration_bounds = array<i64: 1>, scalar_prefetch = 0 : i64, scratch_operands = 0 : i64, tpu.core_type = #tpu.core_type<tc>, window_params = [{transform_indices = @transform_0, window_bounds = array<i64: 256, 32>}, {pipeline_mode = #tpu.pipeline_mode<synchronous>, transform_indices = @transform_1, window_bounds = array<i64: 32, 384>}, {pipeline_mode = #tpu.pipeline_mode<synchronous>, transform_indices = @transform_2, window_bounds = array<i64: 1, 384>}, {transform_indices = @transform_3, window_bounds = array<i64: 256, 384>}]} {
    %c0 = arith.constant 0 : index
    %c0_0 = arith.constant 0 : index
    %0 = vector.load %arg1[%c0, %c0_0] : memref<256x32xbf16, #tpu.memory_space<vmem>>, vector<256x32xbf16>
    %c0_1 = arith.constant 0 : index
    %c0_2 = arith.constant 0 : index
    %1 = vector.load %arg2[%c0_1, %c0_2] : memref<32x384xbf16, #tpu.memory_space<vmem>>, vector<32x384xbf16>
    %cst = arith.constant dense<0.000000e+00> : vector<256x384xf32>
    %2 = tpu.matmul %0, %1, %cst {dimension_numbers = #tpu.dot_dimension_numbers<[1], [0], [0], [1], [0, 0, 1, 1], [], []>} : vector<256x32xbf16>, vector<32x384xbf16>, vector<256x384xf32> -> vector<256x384xf32>
    %c0_3 = arith.constant 0 : index
    %c0_4 = arith.constant 0 : index
    %3 = vector.load %arg3[%c0_3, %c0_4] : memref<1x384xf32, #tpu.memory_space<vmem>>, vector<1x384xf32>
    %4 = vector.broadcast %3 : vector<1x384xf32> to vector<256x384xf32>
    %5 = arith.addf %2, %4 : vector<256x384xf32>
    %6 = arith.truncf %5 : vector<256x384xf32> to vector<256x384xbf16>
    %c0_5 = arith.constant 0 : index
    %c0_6 = arith.constant 0 : index
    %7 = vector.load %arg4[%c0_5, %c0_6] : memref<256x384xbf16, #tpu.memory_space<vmem>>, vector<256x384xbf16>
    tpu.vector_store %arg4[%c0_5, %c0_6], %6 {strides = array<i32>} : memref<256x384xbf16, #tpu.memory_space<vmem>>, vector<256x384xbf16>,
    return
  }
  func.func @transform_0(%arg0: i32) -> (i32, i32) {
    %c0_i32 = arith.constant 0 : i32
    %c0_i32_0 = arith.constant 0 : i32
    return %arg0, %c0_i32 : i32, i32
  }
  func.func @transform_1(%arg0: i32) -> (i32, i32) {
    %c0_i32 = arith.constant 0 : i32
    %c0_i32_0 = arith.constant 0 : i32
    %c0_i32_1 = arith.constant 0 : i32
    return %c0_i32, %c0_i32_0 : i32, i32
  }
  func.func @transform_2(%arg0: i32) -> (i32, i32) {
    %c0_i32 = arith.constant 0 : i32
    %c0_i32_0 = arith.constant 0 : i32
    %c0_i32_1 = arith.constant 0 : i32
    return %c0_i32, %c0_i32_0 : i32, i32
  }
  func.func @transform_3(%arg0: i32) -> (i32, i32) {
    %c0_i32 = arith.constant 0 : i32
    %c0_i32_0 = arith.constant 0 : i32
    return %arg0, %c0_i32 : i32, i32
  }
}

module attributes {stable_mosaic.version = 11 : i64} {
  func.func @rec_kernel(%arg0: i32, %arg1: memref<8x32x384xbf16, #tpu.memory_space<vmem>>, %arg2: memref<128x384xf32, #tpu.memory_space<vmem>>, %arg3: memref<1x384xf32, #tpu.memory_space<vmem>>, %arg4: memref<8x128xf32, #tpu.memory_space<vmem>>) attributes {dimension_semantics = [#tpu.dimension_semantics<arbitrary>], iteration_bounds = array<i64: 1>, scalar_prefetch = 0 : i64, scratch_operands = 0 : i64, tpu.core_type = #tpu.core_type<tc>, window_params = [{transform_indices = @transform_0, window_bounds = array<i64: 8, 32, 384>}, {pipeline_mode = #tpu.pipeline_mode<synchronous>, transform_indices = @transform_1, window_bounds = array<i64: 128, 384>}, {pipeline_mode = #tpu.pipeline_mode<synchronous>, transform_indices = @transform_2, window_bounds = array<i64: 1, 384>}, {pipeline_mode = #tpu.pipeline_mode<synchronous>, transform_indices = @transform_3, window_bounds = array<i64: 8, 128>}]} {
    %c0_i32 = arith.constant 0 : i32
    %0 = arith.cmpi eq, %arg0, %c0_i32 : i32
    %1 = arith.extui %0 : i1 to i32
    %c0_i32_0 = arith.constant 0 : i32
    %2 = arith.cmpi ne, %1, %c0_i32_0 : i32
    scf.if %2 {
      %cst_388 = arith.constant 0.000000e+00 : f32
      %1221 = vector.broadcast %cst_388 : f32 to vector<8x128xf32>
      %c0_389 = arith.constant 0 : index
      %c0_390 = arith.constant 0 : index
      %1222 = vector.load %arg4[%c0_389, %c0_390] : memref<8x128xf32, #tpu.memory_space<vmem>>, vector<8x128xf32>
      tpu.vector_store %arg4[%c0_389, %c0_390], %1221 {strides = array<i32>} : memref<8x128xf32, #tpu.memory_space<vmem>>, vector<8x128xf32>,
    } else {
    }
    %c0 = arith.constant 0 : index
    %c0_1 = arith.constant 0 : index
    %3 = vector.load %arg4[%c0, %c0_1] : memref<8x128xf32, #tpu.memory_space<vmem>>, vector<8x128xf32>
    %c0_2 = arith.constant 0 : index
    %c0_3 = arith.constant 0 : index
    %c0_4 = arith.constant 0 : index
    %4 = vector.load %arg1[%c0_2, %c0_3, %c0_4] : memref<8x32x384xbf16, #tpu.memory_space<vmem>>, vector<8x1x384xbf16>
    %5 = vector.shape_cast %4 : vector<8x1x384xbf16> to vector<8x384xbf16>
    %6 = arith.extf %5 : vector<8x384xbf16> to vector<8x384xf32>
    %c0_5 = arith.constant 0 : index
    %c0_6 = arith.constant 0 : index
    %7 = vector.load %arg2[%c0_5, %c0_6] : memref<128x384xf32, #tpu.memory_space<vmem>>, vector<128x384xf32>
    %cst = arith.constant dense<0.000000e+00> : vector<8x384xf32>
    %8 = tpu.matmul %3, %7, %cst {dimension_numbers = #tpu.dot_dimension_numbers<[1], [0], [0], [1], [0, 0, 1, 1], [], []>} : vector<8x128xf32>, vector<128x384xf32>, vector<8x384xf32> -> vector<8x384xf32>
    %c0_7 = arith.constant 0 : index
    %c0_8 = arith.constant 0 : index
    %9 = vector.load %arg3[%c0_7, %c0_8] : memref<1x384xf32, #tpu.memory_space<vmem>>, vector<1x384xf32>
    %10 = vector.broadcast %9 : vector<1x384xf32> to vector<8x384xf32>
    %11 = arith.addf %8, %10 : vector<8x384xf32>
    %12 = vector.extract_strided_slice %6 {offsets = [0, 0], sizes = [8, 128], strides = [1, 1]} : vector<8x384xf32> to vector<8x128xf32>
    %13 = vector.extract_strided_slice %11 {offsets = [0, 0], sizes = [8, 128], strides = [1, 1]} : vector<8x384xf32> to vector<8x128xf32>
    %14 = arith.addf %12, %13 : vector<8x128xf32>
    %15 = arith.negf %14 : vector<8x128xf32>
    %16 = math.exp %15 : vector<8x128xf32>
    %cst_9 = arith.constant 1.000000e+00 : f32
    %17 = vector.broadcast %cst_9 : f32 to vector<8x128xf32>
    %18 = arith.addf %17, %16 : vector<8x128xf32>
    %19 = arith.divf %17, %18 : vector<8x128xf32>
    %20 = vector.extract_strided_slice %6 {offsets = [0, 128], sizes = [8, 128], strides = [1, 1]} : vector<8x384xf32> to vector<8x128xf32>
    %21 = vector.extract_strided_slice %11 {offsets = [0, 128], sizes = [8, 128], strides = [1, 1]} : vector<8x384xf32> to vector<8x128xf32>
    %22 = arith.addf %20, %21 : vector<8x128xf32>
    %23 = arith.negf %22 : vector<8x128xf32>
    %24 = math.exp %23 : vector<8x128xf32>
    %cst_10 = arith.constant 1.000000e+00 : f32
    %25 = vector.broadcast %cst_10 : f32 to vector<8x128xf32>
    %26 = arith.addf %25, %24 : vector<8x128xf32>
    %27 = arith.divf %25, %26 : vector<8x128xf32>
    %28 = vector.extract_strided_slice %6 {offsets = [0, 256], sizes = [8, 128], strides = [1, 1]} : vector<8x384xf32> to vector<8x128xf32>
    %29 = vector.extract_strided_slice %11 {offsets = [0, 256], sizes = [8, 128], strides = [1, 1]} : vector<8x384xf32> to vector<8x128xf32>
    %30 = arith.mulf %19, %29 : vector<8x128xf32>
    %31 = arith.addf %28, %30 : vector<8x128xf32>
    %32 = math.tanh %31 : vector<8x128xf32>
    %cst_11 = arith.constant 1.000000e+00 : f32
    %33 = vector.broadcast %cst_11 : f32 to vector<8x128xf32>
    %34 = arith.subf %33, %27 : vector<8x128xf32>
    %35 = arith.mulf %34, %32 : vector<8x128xf32>
    %36 = arith.mulf %27, %3 : vector<8x128xf32>
    %37 = arith.addf %35, %36 : vector<8x128xf32>
    %c32_i32 = arith.constant 32 : i32
    %38 = arith.muli %arg0, %c32_i32 : i32
    %c0_i32_12 = arith.constant 0 : i32
    %39 = arith.addi %38, %c0_i32_12 : i32
    %c2_i32 = arith.constant 2 : i32
    %40 = arith.cmpi slt, %39, %c2_i32 : i32
    %41 = arith.select %40, %37, %3 : vector<8x128xf32>
    %c0_13 = arith.constant 0 : index
    %c1 = arith.constant 1 : index
    %c0_14 = arith.constant 0 : index
    %42 = vector.load %arg1[%c0_13, %c1, %c0_14] : memref<8x32x384xbf16, #tpu.memory_space<vmem>>, vector<8x1x384xbf16>
    %43 = vector.shape_cast %42 : vector<8x1x384xbf16> to vector<8x384xbf16>
    %44 = arith.extf %43 : vector<8x384xbf16> to vector<8x384xf32>
    %c0_15 = arith.constant 0 : index
    %c0_16 = arith.constant 0 : index
    %45 = vector.load %arg2[%c0_15, %c0_16] : memref<128x384xf32, #tpu.memory_space<vmem>>, vector<128x384xf32>
    %cst_17 = arith.constant dense<0.000000e+00> : vector<8x384xf32>
    %46 = tpu.matmul %41, %45, %cst_17 {dimension_numbers = #tpu.dot_dimension_numbers<[1], [0], [0], [1], [0, 0, 1, 1], [], []>} : vector<8x128xf32>, vector<128x384xf32>, vector<8x384xf32> -> vector<8x384xf32>
    %c0_18 = arith.constant 0 : index
    %c0_19 = arith.constant 0 : index
    %47 = vector.load %arg3[%c0_18, %c0_19] : memref<1x384xf32, #tpu.memory_space<vmem>>, vector<1x384xf32>
    %48 = vector.broadcast %47 : vector<1x384xf32> to vector<8x384xf32>
    %49 = arith.addf %46, %48 : vector<8x384xf32>
    %50 = vector.extract_strided_slice %44 {offsets = [0, 0], sizes = [8, 128], strides = [1, 1]} : vector<8x384xf32> to vector<8x128xf32>
    %51 = vector.extract_strided_slice %49 {offsets = [0, 0], sizes = [8, 128], strides = [1, 1]} : vector<8x384xf32> to vector<8x128xf32>
    %52 = arith.addf %50, %51 : vector<8x128xf32>
    %53 = arith.negf %52 : vector<8x128xf32>
    %54 = math.exp %53 : vector<8x128xf32>
    %cst_20 = arith.constant 1.000000e+00 : f32
    %55 = vector.broadcast %cst_20 : f32 to vector<8x128xf32>
    %56 = arith.addf %55, %54 : vector<8x128xf32>
    %57 = arith.divf %55, %56 : vector<8x128xf32>
    %58 = vector.extract_strided_slice %44 {offsets = [0, 128], sizes = [8, 128], strides = [1, 1]} : vector<8x384xf32> to vector<8x128xf32>
    %59 = vector.extract_strided_slice %49 {offsets = [0, 128], sizes = [8, 128], strides = [1, 1]} : vector<8x384xf32> to vector<8x128xf32>
    %60 = arith.addf %58, %59 : vector<8x128xf32>
    %61 = arith.negf %60 : vector<8x128xf32>
    %62 = math.exp %61 : vector<8x128xf32>
    %cst_21 = arith.constant 1.000000e+00 : f32
    %63 = vector.broadcast %cst_21 : f32 to vector<8x128xf32>
    %64 = arith.addf %63, %62 : vector<8x128xf32>
    %65 = arith.divf %63, %64 : vector<8x128xf32>
    %66 = vector.extract_strided_slice %44 {offsets = [0, 256], sizes = [8, 128], strides = [1, 1]} : vector<8x384xf32> to vector<8x128xf32>
    %67 = vector.extract_strided_slice %49 {offsets = [0, 256], sizes = [8, 128], strides = [1, 1]} : vector<8x384xf32> to vector<8x128xf32>
    %68 = arith.mulf %57, %67 : vector<8x128xf32>
    %69 = arith.addf %66, %68 : vector<8x128xf32>
    %70 = math.tanh %69 : vector<8x128xf32>
    %cst_22 = arith.constant 1.000000e+00 : f32
    %71 = vector.broadcast %cst_22 : f32 to vector<8x128xf32>
    %72 = arith.subf %71, %65 : vector<8x128xf32>
    %73 = arith.mulf %72, %70 : vector<8x128xf32>
    %74 = arith.mulf %65, %41 : vector<8x128xf32>
    %75 = arith.addf %73, %74 : vector<8x128xf32>
    %c32_i32_23 = arith.constant 32 : i32
    %76 = arith.muli %arg0, %c32_i32_23 : i32
    %c1_i32 = arith.constant 1 : i32
    %77 = arith.addi %76, %c1_i32 : i32
    %c2_i32_24 = arith.constant 2 : i32
    %78 = arith.cmpi slt, %77, %c2_i32_24 : i32
    %79 = arith.select %78, %75, %41 : vector<8x128xf32>
    %c0_25 = arith.constant 0 : index
    %c2 = arith.constant 2 : index
    %c0_26 = arith.constant 0 : index
    %80 = vector.load %arg1[%c0_25, %c2, %c0_26] : memref<8x32x384xbf16, #tpu.memory_space<vmem>>, vector<8x1x384xbf16>
    %81 = vector.shape_cast %80 : vector<8x1x384xbf16> to vector<8x384xbf16>
    %82 = arith.extf %81 : vector<8x384xbf16> to vector<8x384xf32>
    %c0_27 = arith.constant 0 : index
    %c0_28 = arith.constant 0 : index
    %83 = vector.load %arg2[%c0_27, %c0_28] : memref<128x384xf32, #tpu.memory_space<vmem>>, vector<128x384xf32>
    %cst_29 = arith.constant dense<0.000000e+00> : vector<8x384xf32>
    %84 = tpu.matmul %79, %83, %cst_29 {dimension_numbers = #tpu.dot_dimension_numbers<[1], [0], [0], [1], [0, 0, 1, 1], [], []>} : vector<8x128xf32>, vector<128x384xf32>, vector<8x384xf32> -> vector<8x384xf32>
    %c0_30 = arith.constant 0 : index
    %c0_31 = arith.constant 0 : index
    %85 = vector.load %arg3[%c0_30, %c0_31] : memref<1x384xf32, #tpu.memory_space<vmem>>, vector<1x384xf32>
    %86 = vector.broadcast %85 : vector<1x384xf32> to vector<8x384xf32>
    %87 = arith.addf %84, %86 : vector<8x384xf32>
    %88 = vector.extract_strided_slice %82 {offsets = [0, 0], sizes = [8, 128], strides = [1, 1]} : vector<8x384xf32> to vector<8x128xf32>
    %89 = vector.extract_strided_slice %87 {offsets = [0, 0], sizes = [8, 128], strides = [1, 1]} : vector<8x384xf32> to vector<8x128xf32>
    %90 = arith.addf %88, %89 : vector<8x128xf32>
    %91 = arith.negf %90 : vector<8x128xf32>
    %92 = math.exp %91 : vector<8x128xf32>
    %cst_32 = arith.constant 1.000000e+00 : f32
    %93 = vector.broadcast %cst_32 : f32 to vector<8x128xf32>
    %94 = arith.addf %93, %92 : vector<8x128xf32>
    %95 = arith.divf %93, %94 : vector<8x128xf32>
    %96 = vector.extract_strided_slice %82 {offsets = [0, 128], sizes = [8, 128], strides = [1, 1]} : vector<8x384xf32> to vector<8x128xf32>
    %97 = vector.extract_strided_slice %87 {offsets = [0, 128], sizes = [8, 128], strides = [1, 1]} : vector<8x384xf32> to vector<8x128xf32>
    %98 = arith.addf %96, %97 : vector<8x128xf32>
    %99 = arith.negf %98 : vector<8x128xf32>
    %100 = math.exp %99 : vector<8x128xf32>
    %cst_33 = arith.constant 1.000000e+00 : f32
    %101 = vector.broadcast %cst_33 : f32 to vector<8x128xf32>
    %102 = arith.addf %101, %100 : vector<8x128xf32>
    %103 = arith.divf %101, %102 : vector<8x128xf32>
    %104 = vector.extract_strided_slice %82 {offsets = [0, 256], sizes = [8, 128], strides = [1, 1]} : vector<8x384xf32> to vector<8x128xf32>
    %105 = vector.extract_strided_slice %87 {offsets = [0, 256], sizes = [8, 128], strides = [1, 1]} : vector<8x384xf32> to vector<8x128xf32>
    %106 = arith.mulf %95, %105 : vector<8x128xf32>
    %107 = arith.addf %104, %106 : vector<8x128xf32>
    %108 = math.tanh %107 : vector<8x128xf32>
    %cst_34 = arith.constant 1.000000e+00 : f32
    %109 = vector.broadcast %cst_34 : f32 to vector<8x128xf32>
    %110 = arith.subf %109, %103 : vector<8x128xf32>
    %111 = arith.mulf %110, %108 : vector<8x128xf32>
    %112 = arith.mulf %103, %79 : vector<8x128xf32>
    %113 = arith.addf %111, %112 : vector<8x128xf32>
    %c32_i32_35 = arith.constant 32 : i32
    %114 = arith.muli %arg0, %c32_i32_35 : i32
    %c2_i32_36 = arith.constant 2 : i32
    %115 = arith.addi %114, %c2_i32_36 : i32
    %c2_i32_37 = arith.constant 2 : i32
    %116 = arith.cmpi slt, %115, %c2_i32_37 : i32
    %117 = arith.select %116, %113, %79 : vector<8x128xf32>
    %c0_38 = arith.constant 0 : index
    %c3 = arith.constant 3 : index
    %c0_39 = arith.constant 0 : index
    %118 = vector.load %arg1[%c0_38, %c3, %c0_39] : memref<8x32x384xbf16, #tpu.memory_space<vmem>>, vector<8x1x384xbf16>
    %119 = vector.shape_cast %118 : vector<8x1x384xbf16> to vector<8x384xbf16>
    %120 = arith.extf %119 : vector<8x384xbf16> to vector<8x384xf32>
    %c0_40 = arith.constant 0 : index
    %c0_41 = arith.constant 0 : index
    %121 = vector.load %arg2[%c0_40, %c0_41] : memref<128x384xf32, #tpu.memory_space<vmem>>, vector<128x384xf32>
    %cst_42 = arith.constant dense<0.000000e+00> : vector<8x384xf32>
    %122 = tpu.matmul %117, %121, %cst_42 {dimension_numbers = #tpu.dot_dimension_numbers<[1], [0], [0], [1], [0, 0, 1, 1], [], []>} : vector<8x128xf32>, vector<128x384xf32>, vector<8x384xf32> -> vector<8x384xf32>
    %c0_43 = arith.constant 0 : index
    %c0_44 = arith.constant 0 : index
    %123 = vector.load %arg3[%c0_43, %c0_44] : memref<1x384xf32, #tpu.memory_space<vmem>>, vector<1x384xf32>
    %124 = vector.broadcast %123 : vector<1x384xf32> to vector<8x384xf32>
    %125 = arith.addf %122, %124 : vector<8x384xf32>
    %126 = vector.extract_strided_slice %120 {offsets = [0, 0], sizes = [8, 128], strides = [1, 1]} : vector<8x384xf32> to vector<8x128xf32>
    %127 = vector.extract_strided_slice %125 {offsets = [0, 0], sizes = [8, 128], strides = [1, 1]} : vector<8x384xf32> to vector<8x128xf32>
    %128 = arith.addf %126, %127 : vector<8x128xf32>
    %129 = arith.negf %128 : vector<8x128xf32>
    %130 = math.exp %129 : vector<8x128xf32>
    %cst_45 = arith.constant 1.000000e+00 : f32
    %131 = vector.broadcast %cst_45 : f32 to vector<8x128xf32>
    %132 = arith.addf %131, %130 : vector<8x128xf32>
    %133 = arith.divf %131, %132 : vector<8x128xf32>
    %134 = vector.extract_strided_slice %120 {offsets = [0, 128], sizes = [8, 128], strides = [1, 1]} : vector<8x384xf32> to vector<8x128xf32>
    %135 = vector.extract_strided_slice %125 {offsets = [0, 128], sizes = [8, 128], strides = [1, 1]} : vector<8x384xf32> to vector<8x128xf32>
    %136 = arith.addf %134, %135 : vector<8x128xf32>
    %137 = arith.negf %136 : vector<8x128xf32>
    %138 = math.exp %137 : vector<8x128xf32>
    %cst_46 = arith.constant 1.000000e+00 : f32
    %139 = vector.broadcast %cst_46 : f32 to vector<8x128xf32>
    %140 = arith.addf %139, %138 : vector<8x128xf32>
    %141 = arith.divf %139, %140 : vector<8x128xf32>
    %142 = vector.extract_strided_slice %120 {offsets = [0, 256], sizes = [8, 128], strides = [1, 1]} : vector<8x384xf32> to vector<8x128xf32>
    %143 = vector.extract_strided_slice %125 {offsets = [0, 256], sizes = [8, 128], strides = [1, 1]} : vector<8x384xf32> to vector<8x128xf32>
    %144 = arith.mulf %133, %143 : vector<8x128xf32>
    %145 = arith.addf %142, %144 : vector<8x128xf32>
    %146 = math.tanh %145 : vector<8x128xf32>
    %cst_47 = arith.constant 1.000000e+00 : f32
    %147 = vector.broadcast %cst_47 : f32 to vector<8x128xf32>
    %148 = arith.subf %147, %141 : vector<8x128xf32>
    %149 = arith.mulf %148, %146 : vector<8x128xf32>
    %150 = arith.mulf %141, %117 : vector<8x128xf32>
    %151 = arith.addf %149, %150 : vector<8x128xf32>
    %c32_i32_48 = arith.constant 32 : i32
    %152 = arith.muli %arg0, %c32_i32_48 : i32
    %c3_i32 = arith.constant 3 : i32
    %153 = arith.addi %152, %c3_i32 : i32
    %c2_i32_49 = arith.constant 2 : i32
    %154 = arith.cmpi slt, %153, %c2_i32_49 : i32
    %155 = arith.select %154, %151, %117 : vector<8x128xf32>
    %c0_50 = arith.constant 0 : index
    %c4 = arith.constant 4 : index
    %c0_51 = arith.constant 0 : index
    %156 = vector.load %arg1[%c0_50, %c4, %c0_51] : memref<8x32x384xbf16, #tpu.memory_space<vmem>>, vector<8x1x384xbf16>
    %157 = vector.shape_cast %156 : vector<8x1x384xbf16> to vector<8x384xbf16>
    %158 = arith.extf %157 : vector<8x384xbf16> to vector<8x384xf32>
    %c0_52 = arith.constant 0 : index
    %c0_53 = arith.constant 0 : index
    %159 = vector.load %arg2[%c0_52, %c0_53] : memref<128x384xf32, #tpu.memory_space<vmem>>, vector<128x384xf32>
    %cst_54 = arith.constant dense<0.000000e+00> : vector<8x384xf32>
    %160 = tpu.matmul %155, %159, %cst_54 {dimension_numbers = #tpu.dot_dimension_numbers<[1], [0], [0], [1], [0, 0, 1, 1], [], []>} : vector<8x128xf32>, vector<128x384xf32>, vector<8x384xf32> -> vector<8x384xf32>
    %c0_55 = arith.constant 0 : index
    %c0_56 = arith.constant 0 : index
    %161 = vector.load %arg3[%c0_55, %c0_56] : memref<1x384xf32, #tpu.memory_space<vmem>>, vector<1x384xf32>
    %162 = vector.broadcast %161 : vector<1x384xf32> to vector<8x384xf32>
    %163 = arith.addf %160, %162 : vector<8x384xf32>
    %164 = vector.extract_strided_slice %158 {offsets = [0, 0], sizes = [8, 128], strides = [1, 1]} : vector<8x384xf32> to vector<8x128xf32>
    %165 = vector.extract_strided_slice %163 {offsets = [0, 0], sizes = [8, 128], strides = [1, 1]} : vector<8x384xf32> to vector<8x128xf32>
    %166 = arith.addf %164, %165 : vector<8x128xf32>
    %167 = arith.negf %166 : vector<8x128xf32>
    %168 = math.exp %167 : vector<8x128xf32>
    %cst_57 = arith.constant 1.000000e+00 : f32
    %169 = vector.broadcast %cst_57 : f32 to vector<8x128xf32>
    %170 = arith.addf %169, %168 : vector<8x128xf32>
    %171 = arith.divf %169, %170 : vector<8x128xf32>
    %172 = vector.extract_strided_slice %158 {offsets = [0, 128], sizes = [8, 128], strides = [1, 1]} : vector<8x384xf32> to vector<8x128xf32>
    %173 = vector.extract_strided_slice %163 {offsets = [0, 128], sizes = [8, 128], strides = [1, 1]} : vector<8x384xf32> to vector<8x128xf32>
    %174 = arith.addf %172, %173 : vector<8x128xf32>
    %175 = arith.negf %174 : vector<8x128xf32>
    %176 = math.exp %175 : vector<8x128xf32>
    %cst_58 = arith.constant 1.000000e+00 : f32
    %177 = vector.broadcast %cst_58 : f32 to vector<8x128xf32>
    %178 = arith.addf %177, %176 : vector<8x128xf32>
    %179 = arith.divf %177, %178 : vector<8x128xf32>
    %180 = vector.extract_strided_slice %158 {offsets = [0, 256], sizes = [8, 128], strides = [1, 1]} : vector<8x384xf32> to vector<8x128xf32>
    %181 = vector.extract_strided_slice %163 {offsets = [0, 256], sizes = [8, 128], strides = [1, 1]} : vector<8x384xf32> to vector<8x128xf32>
    %182 = arith.mulf %171, %181 : vector<8x128xf32>
    %183 = arith.addf %180, %182 : vector<8x128xf32>
    %184 = math.tanh %183 : vector<8x128xf32>
    %cst_59 = arith.constant 1.000000e+00 : f32
    %185 = vector.broadcast %cst_59 : f32 to vector<8x128xf32>
    %186 = arith.subf %185, %179 : vector<8x128xf32>
    %187 = arith.mulf %186, %184 : vector<8x128xf32>
    %188 = arith.mulf %179, %155 : vector<8x128xf32>
    %189 = arith.addf %187, %188 : vector<8x128xf32>
    %c32_i32_60 = arith.constant 32 : i32
    %190 = arith.muli %arg0, %c32_i32_60 : i32
    %c4_i32 = arith.constant 4 : i32
    %191 = arith.addi %190, %c4_i32 : i32
    %c2_i32_61 = arith.constant 2 : i32
    %192 = arith.cmpi slt, %191, %c2_i32_61 : i32
    %193 = arith.select %192, %189, %155 : vector<8x128xf32>
    %c0_62 = arith.constant 0 : index
    %c5 = arith.constant 5 : index
    %c0_63 = arith.constant 0 : index
    %194 = vector.load %arg1[%c0_62, %c5, %c0_63] : memref<8x32x384xbf16, #tpu.memory_space<vmem>>, vector<8x1x384xbf16>
    %195 = vector.shape_cast %194 : vector<8x1x384xbf16> to vector<8x384xbf16>
    %196 = arith.extf %195 : vector<8x384xbf16> to vector<8x384xf32>
    %c0_64 = arith.constant 0 : index
    %c0_65 = arith.constant 0 : index
    %197 = vector.load %arg2[%c0_64, %c0_65] : memref<128x384xf32, #tpu.memory_space<vmem>>, vector<128x384xf32>
    %cst_66 = arith.constant dense<0.000000e+00> : vector<8x384xf32>
    %198 = tpu.matmul %193, %197, %cst_66 {dimension_numbers = #tpu.dot_dimension_numbers<[1], [0], [0], [1], [0, 0, 1, 1], [], []>} : vector<8x128xf32>, vector<128x384xf32>, vector<8x384xf32> -> vector<8x384xf32>
    %c0_67 = arith.constant 0 : index
    %c0_68 = arith.constant 0 : index
    %199 = vector.load %arg3[%c0_67, %c0_68] : memref<1x384xf32, #tpu.memory_space<vmem>>, vector<1x384xf32>
    %200 = vector.broadcast %199 : vector<1x384xf32> to vector<8x384xf32>
    %201 = arith.addf %198, %200 : vector<8x384xf32>
    %202 = vector.extract_strided_slice %196 {offsets = [0, 0], sizes = [8, 128], strides = [1, 1]} : vector<8x384xf32> to vector<8x128xf32>
    %203 = vector.extract_strided_slice %201 {offsets = [0, 0], sizes = [8, 128], strides = [1, 1]} : vector<8x384xf32> to vector<8x128xf32>
    %204 = arith.addf %202, %203 : vector<8x128xf32>
    %205 = arith.negf %204 : vector<8x128xf32>
    %206 = math.exp %205 : vector<8x128xf32>
    %cst_69 = arith.constant 1.000000e+00 : f32
    %207 = vector.broadcast %cst_69 : f32 to vector<8x128xf32>
    %208 = arith.addf %207, %206 : vector<8x128xf32>
    %209 = arith.divf %207, %208 : vector<8x128xf32>
    %210 = vector.extract_strided_slice %196 {offsets = [0, 128], sizes = [8, 128], strides = [1, 1]} : vector<8x384xf32> to vector<8x128xf32>
    %211 = vector.extract_strided_slice %201 {offsets = [0, 128], sizes = [8, 128], strides = [1, 1]} : vector<8x384xf32> to vector<8x128xf32>
    %212 = arith.addf %210, %211 : vector<8x128xf32>
    %213 = arith.negf %212 : vector<8x128xf32>
    %214 = math.exp %213 : vector<8x128xf32>
    %cst_70 = arith.constant 1.000000e+00 : f32
    %215 = vector.broadcast %cst_70 : f32 to vector<8x128xf32>
    %216 = arith.addf %215, %214 : vector<8x128xf32>
    %217 = arith.divf %215, %216 : vector<8x128xf32>
    %218 = vector.extract_strided_slice %196 {offsets = [0, 256], sizes = [8, 128], strides = [1, 1]} : vector<8x384xf32> to vector<8x128xf32>
    %219 = vector.extract_strided_slice %201 {offsets = [0, 256], sizes = [8, 128], strides = [1, 1]} : vector<8x384xf32> to vector<8x128xf32>
    %220 = arith.mulf %209, %219 : vector<8x128xf32>
    %221 = arith.addf %218, %220 : vector<8x128xf32>
    %222 = math.tanh %221 : vector<8x128xf32>
    %cst_71 = arith.constant 1.000000e+00 : f32
    %223 = vector.broadcast %cst_71 : f32 to vector<8x128xf32>
    %224 = arith.subf %223, %217 : vector<8x128xf32>
    %225 = arith.mulf %224, %222 : vector<8x128xf32>
    %226 = arith.mulf %217, %193 : vector<8x128xf32>
    %227 = arith.addf %225, %226 : vector<8x128xf32>
    %c32_i32_72 = arith.constant 32 : i32
    %228 = arith.muli %arg0, %c32_i32_72 : i32
    %c5_i32 = arith.constant 5 : i32
    %229 = arith.addi %228, %c5_i32 : i32
    %c2_i32_73 = arith.constant 2 : i32
    %230 = arith.cmpi slt, %229, %c2_i32_73 : i32
    %231 = arith.select %230, %227, %193 : vector<8x128xf32>
    %c0_74 = arith.constant 0 : index
    %c6 = arith.constant 6 : index
    %c0_75 = arith.constant 0 : index
    %232 = vector.load %arg1[%c0_74, %c6, %c0_75] : memref<8x32x384xbf16, #tpu.memory_space<vmem>>, vector<8x1x384xbf16>
    %233 = vector.shape_cast %232 : vector<8x1x384xbf16> to vector<8x384xbf16>
    %234 = arith.extf %233 : vector<8x384xbf16> to vector<8x384xf32>
    %c0_76 = arith.constant 0 : index
    %c0_77 = arith.constant 0 : index
    %235 = vector.load %arg2[%c0_76, %c0_77] : memref<128x384xf32, #tpu.memory_space<vmem>>, vector<128x384xf32>
    %cst_78 = arith.constant dense<0.000000e+00> : vector<8x384xf32>
    %236 = tpu.matmul %231, %235, %cst_78 {dimension_numbers = #tpu.dot_dimension_numbers<[1], [0], [0], [1], [0, 0, 1, 1], [], []>} : vector<8x128xf32>, vector<128x384xf32>, vector<8x384xf32> -> vector<8x384xf32>
    %c0_79 = arith.constant 0 : index
    %c0_80 = arith.constant 0 : index
    %237 = vector.load %arg3[%c0_79, %c0_80] : memref<1x384xf32, #tpu.memory_space<vmem>>, vector<1x384xf32>
    %238 = vector.broadcast %237 : vector<1x384xf32> to vector<8x384xf32>
    %239 = arith.addf %236, %238 : vector<8x384xf32>
    %240 = vector.extract_strided_slice %234 {offsets = [0, 0], sizes = [8, 128], strides = [1, 1]} : vector<8x384xf32> to vector<8x128xf32>
    %241 = vector.extract_strided_slice %239 {offsets = [0, 0], sizes = [8, 128], strides = [1, 1]} : vector<8x384xf32> to vector<8x128xf32>
    %242 = arith.addf %240, %241 : vector<8x128xf32>
    %243 = arith.negf %242 : vector<8x128xf32>
    %244 = math.exp %243 : vector<8x128xf32>
    %cst_81 = arith.constant 1.000000e+00 : f32
    %245 = vector.broadcast %cst_81 : f32 to vector<8x128xf32>
    %246 = arith.addf %245, %244 : vector<8x128xf32>
    %247 = arith.divf %245, %246 : vector<8x128xf32>
    %248 = vector.extract_strided_slice %234 {offsets = [0, 128], sizes = [8, 128], strides = [1, 1]} : vector<8x384xf32> to vector<8x128xf32>
    %249 = vector.extract_strided_slice %239 {offsets = [0, 128], sizes = [8, 128], strides = [1, 1]} : vector<8x384xf32> to vector<8x128xf32>
    %250 = arith.addf %248, %249 : vector<8x128xf32>
    %251 = arith.negf %250 : vector<8x128xf32>
    %252 = math.exp %251 : vector<8x128xf32>
    %cst_82 = arith.constant 1.000000e+00 : f32
    %253 = vector.broadcast %cst_82 : f32 to vector<8x128xf32>
    %254 = arith.addf %253, %252 : vector<8x128xf32>
    %255 = arith.divf %253, %254 : vector<8x128xf32>
    %256 = vector.extract_strided_slice %234 {offsets = [0, 256], sizes = [8, 128], strides = [1, 1]} : vector<8x384xf32> to vector<8x128xf32>
    %257 = vector.extract_strided_slice %239 {offsets = [0, 256], sizes = [8, 128], strides = [1, 1]} : vector<8x384xf32> to vector<8x128xf32>
    %258 = arith.mulf %247, %257 : vector<8x128xf32>
    %259 = arith.addf %256, %258 : vector<8x128xf32>
    %260 = math.tanh %259 : vector<8x128xf32>
    %cst_83 = arith.constant 1.000000e+00 : f32
    %261 = vector.broadcast %cst_83 : f32 to vector<8x128xf32>
    %262 = arith.subf %261, %255 : vector<8x128xf32>
    %263 = arith.mulf %262, %260 : vector<8x128xf32>
    %264 = arith.mulf %255, %231 : vector<8x128xf32>
    %265 = arith.addf %263, %264 : vector<8x128xf32>
    %c32_i32_84 = arith.constant 32 : i32
    %266 = arith.muli %arg0, %c32_i32_84 : i32
    %c6_i32 = arith.constant 6 : i32
    %267 = arith.addi %266, %c6_i32 : i32
    %c2_i32_85 = arith.constant 2 : i32
    %268 = arith.cmpi slt, %267, %c2_i32_85 : i32
    %269 = arith.select %268, %265, %231 : vector<8x128xf32>
    %c0_86 = arith.constant 0 : index
    %c7 = arith.constant 7 : index
    %c0_87 = arith.constant 0 : index
    %270 = vector.load %arg1[%c0_86, %c7, %c0_87] : memref<8x32x384xbf16, #tpu.memory_space<vmem>>, vector<8x1x384xbf16>
    %271 = vector.shape_cast %270 : vector<8x1x384xbf16> to vector<8x384xbf16>
    %272 = arith.extf %271 : vector<8x384xbf16> to vector<8x384xf32>
    %c0_88 = arith.constant 0 : index
    %c0_89 = arith.constant 0 : index
    %273 = vector.load %arg2[%c0_88, %c0_89] : memref<128x384xf32, #tpu.memory_space<vmem>>, vector<128x384xf32>
    %cst_90 = arith.constant dense<0.000000e+00> : vector<8x384xf32>
    %274 = tpu.matmul %269, %273, %cst_90 {dimension_numbers = #tpu.dot_dimension_numbers<[1], [0], [0], [1], [0, 0, 1, 1], [], []>} : vector<8x128xf32>, vector<128x384xf32>, vector<8x384xf32> -> vector<8x384xf32>
    %c0_91 = arith.constant 0 : index
    %c0_92 = arith.constant 0 : index
    %275 = vector.load %arg3[%c0_91, %c0_92] : memref<1x384xf32, #tpu.memory_space<vmem>>, vector<1x384xf32>
    %276 = vector.broadcast %275 : vector<1x384xf32> to vector<8x384xf32>
    %277 = arith.addf %274, %276 : vector<8x384xf32>
    %278 = vector.extract_strided_slice %272 {offsets = [0, 0], sizes = [8, 128], strides = [1, 1]} : vector<8x384xf32> to vector<8x128xf32>
    %279 = vector.extract_strided_slice %277 {offsets = [0, 0], sizes = [8, 128], strides = [1, 1]} : vector<8x384xf32> to vector<8x128xf32>
    %280 = arith.addf %278, %279 : vector<8x128xf32>
    %281 = arith.negf %280 : vector<8x128xf32>
    %282 = math.exp %281 : vector<8x128xf32>
    %cst_93 = arith.constant 1.000000e+00 : f32
    %283 = vector.broadcast %cst_93 : f32 to vector<8x128xf32>
    %284 = arith.addf %283, %282 : vector<8x128xf32>
    %285 = arith.divf %283, %284 : vector<8x128xf32>
    %286 = vector.extract_strided_slice %272 {offsets = [0, 128], sizes = [8, 128], strides = [1, 1]} : vector<8x384xf32> to vector<8x128xf32>
    %287 = vector.extract_strided_slice %277 {offsets = [0, 128], sizes = [8, 128], strides = [1, 1]} : vector<8x384xf32> to vector<8x128xf32>
    %288 = arith.addf %286, %287 : vector<8x128xf32>
    %289 = arith.negf %288 : vector<8x128xf32>
    %290 = math.exp %289 : vector<8x128xf32>
    %cst_94 = arith.constant 1.000000e+00 : f32
    %291 = vector.broadcast %cst_94 : f32 to vector<8x128xf32>
    %292 = arith.addf %291, %290 : vector<8x128xf32>
    %293 = arith.divf %291, %292 : vector<8x128xf32>
    %294 = vector.extract_strided_slice %272 {offsets = [0, 256], sizes = [8, 128], strides = [1, 1]} : vector<8x384xf32> to vector<8x128xf32>
    %295 = vector.extract_strided_slice %277 {offsets = [0, 256], sizes = [8, 128], strides = [1, 1]} : vector<8x384xf32> to vector<8x128xf32>
    %296 = arith.mulf %285, %295 : vector<8x128xf32>
    %297 = arith.addf %294, %296 : vector<8x128xf32>
    %298 = math.tanh %297 : vector<8x128xf32>
    %cst_95 = arith.constant 1.000000e+00 : f32
    %299 = vector.broadcast %cst_95 : f32 to vector<8x128xf32>
    %300 = arith.subf %299, %293 : vector<8x128xf32>
    %301 = arith.mulf %300, %298 : vector<8x128xf32>
    %302 = arith.mulf %293, %269 : vector<8x128xf32>
    %303 = arith.addf %301, %302 : vector<8x128xf32>
    %c32_i32_96 = arith.constant 32 : i32
    %304 = arith.muli %arg0, %c32_i32_96 : i32
    %c7_i32 = arith.constant 7 : i32
    %305 = arith.addi %304, %c7_i32 : i32
    %c2_i32_97 = arith.constant 2 : i32
    %306 = arith.cmpi slt, %305, %c2_i32_97 : i32
    %307 = arith.select %306, %303, %269 : vector<8x128xf32>
    %c0_98 = arith.constant 0 : index
    %c8 = arith.constant 8 : index
    %c0_99 = arith.constant 0 : index
    %308 = vector.load %arg1[%c0_98, %c8, %c0_99] : memref<8x32x384xbf16, #tpu.memory_space<vmem>>, vector<8x1x384xbf16>
    %309 = vector.shape_cast %308 : vector<8x1x384xbf16> to vector<8x384xbf16>
    %310 = arith.extf %309 : vector<8x384xbf16> to vector<8x384xf32>
    %c0_100 = arith.constant 0 : index
    %c0_101 = arith.constant 0 : index
    %311 = vector.load %arg2[%c0_100, %c0_101] : memref<128x384xf32, #tpu.memory_space<vmem>>, vector<128x384xf32>
    %cst_102 = arith.constant dense<0.000000e+00> : vector<8x384xf32>
    %312 = tpu.matmul %307, %311, %cst_102 {dimension_numbers = #tpu.dot_dimension_numbers<[1], [0], [0], [1], [0, 0, 1, 1], [], []>} : vector<8x128xf32>, vector<128x384xf32>, vector<8x384xf32> -> vector<8x384xf32>
    %c0_103 = arith.constant 0 : index
    %c0_104 = arith.constant 0 : index
    %313 = vector.load %arg3[%c0_103, %c0_104] : memref<1x384xf32, #tpu.memory_space<vmem>>, vector<1x384xf32>
    %314 = vector.broadcast %313 : vector<1x384xf32> to vector<8x384xf32>
    %315 = arith.addf %312, %314 : vector<8x384xf32>
    %316 = vector.extract_strided_slice %310 {offsets = [0, 0], sizes = [8, 128], strides = [1, 1]} : vector<8x384xf32> to vector<8x128xf32>
    %317 = vector.extract_strided_slice %315 {offsets = [0, 0], sizes = [8, 128], strides = [1, 1]} : vector<8x384xf32> to vector<8x128xf32>
    %318 = arith.addf %316, %317 : vector<8x128xf32>
    %319 = arith.negf %318 : vector<8x128xf32>
    %320 = math.exp %319 : vector<8x128xf32>
    %cst_105 = arith.constant 1.000000e+00 : f32
    %321 = vector.broadcast %cst_105 : f32 to vector<8x128xf32>
    %322 = arith.addf %321, %320 : vector<8x128xf32>
    %323 = arith.divf %321, %322 : vector<8x128xf32>
    %324 = vector.extract_strided_slice %310 {offsets = [0, 128], sizes = [8, 128], strides = [1, 1]} : vector<8x384xf32> to vector<8x128xf32>
    %325 = vector.extract_strided_slice %315 {offsets = [0, 128], sizes = [8, 128], strides = [1, 1]} : vector<8x384xf32> to vector<8x128xf32>
    %326 = arith.addf %324, %325 : vector<8x128xf32>
    %327 = arith.negf %326 : vector<8x128xf32>
    %328 = math.exp %327 : vector<8x128xf32>
    %cst_106 = arith.constant 1.000000e+00 : f32
    %329 = vector.broadcast %cst_106 : f32 to vector<8x128xf32>
    %330 = arith.addf %329, %328 : vector<8x128xf32>
    %331 = arith.divf %329, %330 : vector<8x128xf32>
    %332 = vector.extract_strided_slice %310 {offsets = [0, 256], sizes = [8, 128], strides = [1, 1]} : vector<8x384xf32> to vector<8x128xf32>
    %333 = vector.extract_strided_slice %315 {offsets = [0, 256], sizes = [8, 128], strides = [1, 1]} : vector<8x384xf32> to vector<8x128xf32>
    %334 = arith.mulf %323, %333 : vector<8x128xf32>
    %335 = arith.addf %332, %334 : vector<8x128xf32>
    %336 = math.tanh %335 : vector<8x128xf32>
    %cst_107 = arith.constant 1.000000e+00 : f32
    %337 = vector.broadcast %cst_107 : f32 to vector<8x128xf32>
    %338 = arith.subf %337, %331 : vector<8x128xf32>
    %339 = arith.mulf %338, %336 : vector<8x128xf32>
    %340 = arith.mulf %331, %307 : vector<8x128xf32>
    %341 = arith.addf %339, %340 : vector<8x128xf32>
    %c32_i32_108 = arith.constant 32 : i32
    %342 = arith.muli %arg0, %c32_i32_108 : i32
    %c8_i32 = arith.constant 8 : i32
    %343 = arith.addi %342, %c8_i32 : i32
    %c2_i32_109 = arith.constant 2 : i32
    %344 = arith.cmpi slt, %343, %c2_i32_109 : i32
    %345 = arith.select %344, %341, %307 : vector<8x128xf32>
    %c0_110 = arith.constant 0 : index
    %c9 = arith.constant 9 : index
    %c0_111 = arith.constant 0 : index
    %346 = vector.load %arg1[%c0_110, %c9, %c0_111] : memref<8x32x384xbf16, #tpu.memory_space<vmem>>, vector<8x1x384xbf16>
    %347 = vector.shape_cast %346 : vector<8x1x384xbf16> to vector<8x384xbf16>
    %348 = arith.extf %347 : vector<8x384xbf16> to vector<8x384xf32>
    %c0_112 = arith.constant 0 : index
    %c0_113 = arith.constant 0 : index
    %349 = vector.load %arg2[%c0_112, %c0_113] : memref<128x384xf32, #tpu.memory_space<vmem>>, vector<128x384xf32>
    %cst_114 = arith.constant dense<0.000000e+00> : vector<8x384xf32>
    %350 = tpu.matmul %345, %349, %cst_114 {dimension_numbers = #tpu.dot_dimension_numbers<[1], [0], [0], [1], [0, 0, 1, 1], [], []>} : vector<8x128xf32>, vector<128x384xf32>, vector<8x384xf32> -> vector<8x384xf32>
    %c0_115 = arith.constant 0 : index
    %c0_116 = arith.constant 0 : index
    %351 = vector.load %arg3[%c0_115, %c0_116] : memref<1x384xf32, #tpu.memory_space<vmem>>, vector<1x384xf32>
    %352 = vector.broadcast %351 : vector<1x384xf32> to vector<8x384xf32>
    %353 = arith.addf %350, %352 : vector<8x384xf32>
    %354 = vector.extract_strided_slice %348 {offsets = [0, 0], sizes = [8, 128], strides = [1, 1]} : vector<8x384xf32> to vector<8x128xf32>
    %355 = vector.extract_strided_slice %353 {offsets = [0, 0], sizes = [8, 128], strides = [1, 1]} : vector<8x384xf32> to vector<8x128xf32>
    %356 = arith.addf %354, %355 : vector<8x128xf32>
    %357 = arith.negf %356 : vector<8x128xf32>
    %358 = math.exp %357 : vector<8x128xf32>
    %cst_117 = arith.constant 1.000000e+00 : f32
    %359 = vector.broadcast %cst_117 : f32 to vector<8x128xf32>
    %360 = arith.addf %359, %358 : vector<8x128xf32>
    %361 = arith.divf %359, %360 : vector<8x128xf32>
    %362 = vector.extract_strided_slice %348 {offsets = [0, 128], sizes = [8, 128], strides = [1, 1]} : vector<8x384xf32> to vector<8x128xf32>
    %363 = vector.extract_strided_slice %353 {offsets = [0, 128], sizes = [8, 128], strides = [1, 1]} : vector<8x384xf32> to vector<8x128xf32>
    %364 = arith.addf %362, %363 : vector<8x128xf32>
    %365 = arith.negf %364 : vector<8x128xf32>
    %366 = math.exp %365 : vector<8x128xf32>
    %cst_118 = arith.constant 1.000000e+00 : f32
    %367 = vector.broadcast %cst_118 : f32 to vector<8x128xf32>
    %368 = arith.addf %367, %366 : vector<8x128xf32>
    %369 = arith.divf %367, %368 : vector<8x128xf32>
    %370 = vector.extract_strided_slice %348 {offsets = [0, 256], sizes = [8, 128], strides = [1, 1]} : vector<8x384xf32> to vector<8x128xf32>
    %371 = vector.extract_strided_slice %353 {offsets = [0, 256], sizes = [8, 128], strides = [1, 1]} : vector<8x384xf32> to vector<8x128xf32>
    %372 = arith.mulf %361, %371 : vector<8x128xf32>
    %373 = arith.addf %370, %372 : vector<8x128xf32>
    %374 = math.tanh %373 : vector<8x128xf32>
    %cst_119 = arith.constant 1.000000e+00 : f32
    %375 = vector.broadcast %cst_119 : f32 to vector<8x128xf32>
    %376 = arith.subf %375, %369 : vector<8x128xf32>
    %377 = arith.mulf %376, %374 : vector<8x128xf32>
    %378 = arith.mulf %369, %345 : vector<8x128xf32>
    %379 = arith.addf %377, %378 : vector<8x128xf32>
    %c32_i32_120 = arith.constant 32 : i32
    %380 = arith.muli %arg0, %c32_i32_120 : i32
    %c9_i32 = arith.constant 9 : i32
    %381 = arith.addi %380, %c9_i32 : i32
    %c2_i32_121 = arith.constant 2 : i32
    %382 = arith.cmpi slt, %381, %c2_i32_121 : i32
    %383 = arith.select %382, %379, %345 : vector<8x128xf32>
    %c0_122 = arith.constant 0 : index
    %c10 = arith.constant 10 : index
    %c0_123 = arith.constant 0 : index
    %384 = vector.load %arg1[%c0_122, %c10, %c0_123] : memref<8x32x384xbf16, #tpu.memory_space<vmem>>, vector<8x1x384xbf16>
    %385 = vector.shape_cast %384 : vector<8x1x384xbf16> to vector<8x384xbf16>
    %386 = arith.extf %385 : vector<8x384xbf16> to vector<8x384xf32>
    %c0_124 = arith.constant 0 : index
    %c0_125 = arith.constant 0 : index
    %387 = vector.load %arg2[%c0_124, %c0_125] : memref<128x384xf32, #tpu.memory_space<vmem>>, vector<128x384xf32>
    %cst_126 = arith.constant dense<0.000000e+00> : vector<8x384xf32>
    %388 = tpu.matmul %383, %387, %cst_126 {dimension_numbers = #tpu.dot_dimension_numbers<[1], [0], [0], [1], [0, 0, 1, 1], [], []>} : vector<8x128xf32>, vector<128x384xf32>, vector<8x384xf32> -> vector<8x384xf32>
    %c0_127 = arith.constant 0 : index
    %c0_128 = arith.constant 0 : index
    %389 = vector.load %arg3[%c0_127, %c0_128] : memref<1x384xf32, #tpu.memory_space<vmem>>, vector<1x384xf32>
    %390 = vector.broadcast %389 : vector<1x384xf32> to vector<8x384xf32>
    %391 = arith.addf %388, %390 : vector<8x384xf32>
    %392 = vector.extract_strided_slice %386 {offsets = [0, 0], sizes = [8, 128], strides = [1, 1]} : vector<8x384xf32> to vector<8x128xf32>
    %393 = vector.extract_strided_slice %391 {offsets = [0, 0], sizes = [8, 128], strides = [1, 1]} : vector<8x384xf32> to vector<8x128xf32>
    %394 = arith.addf %392, %393 : vector<8x128xf32>
    %395 = arith.negf %394 : vector<8x128xf32>
    %396 = math.exp %395 : vector<8x128xf32>
    %cst_129 = arith.constant 1.000000e+00 : f32
    %397 = vector.broadcast %cst_129 : f32 to vector<8x128xf32>
    %398 = arith.addf %397, %396 : vector<8x128xf32>
    %399 = arith.divf %397, %398 : vector<8x128xf32>
    %400 = vector.extract_strided_slice %386 {offsets = [0, 128], sizes = [8, 128], strides = [1, 1]} : vector<8x384xf32> to vector<8x128xf32>
    %401 = vector.extract_strided_slice %391 {offsets = [0, 128], sizes = [8, 128], strides = [1, 1]} : vector<8x384xf32> to vector<8x128xf32>
    %402 = arith.addf %400, %401 : vector<8x128xf32>
    %403 = arith.negf %402 : vector<8x128xf32>
    %404 = math.exp %403 : vector<8x128xf32>
    %cst_130 = arith.constant 1.000000e+00 : f32
    %405 = vector.broadcast %cst_130 : f32 to vector<8x128xf32>
    %406 = arith.addf %405, %404 : vector<8x128xf32>
    %407 = arith.divf %405, %406 : vector<8x128xf32>
    %408 = vector.extract_strided_slice %386 {offsets = [0, 256], sizes = [8, 128], strides = [1, 1]} : vector<8x384xf32> to vector<8x128xf32>
    %409 = vector.extract_strided_slice %391 {offsets = [0, 256], sizes = [8, 128], strides = [1, 1]} : vector<8x384xf32> to vector<8x128xf32>
    %410 = arith.mulf %399, %409 : vector<8x128xf32>
    %411 = arith.addf %408, %410 : vector<8x128xf32>
    %412 = math.tanh %411 : vector<8x128xf32>
    %cst_131 = arith.constant 1.000000e+00 : f32
    %413 = vector.broadcast %cst_131 : f32 to vector<8x128xf32>
    %414 = arith.subf %413, %407 : vector<8x128xf32>
    %415 = arith.mulf %414, %412 : vector<8x128xf32>
    %416 = arith.mulf %407, %383 : vector<8x128xf32>
    %417 = arith.addf %415, %416 : vector<8x128xf32>
    %c32_i32_132 = arith.constant 32 : i32
    %418 = arith.muli %arg0, %c32_i32_132 : i32
    %c10_i32 = arith.constant 10 : i32
    %419 = arith.addi %418, %c10_i32 : i32
    %c2_i32_133 = arith.constant 2 : i32
    %420 = arith.cmpi slt, %419, %c2_i32_133 : i32
    %421 = arith.select %420, %417, %383 : vector<8x128xf32>
    %c0_134 = arith.constant 0 : index
    %c11 = arith.constant 11 : index
    %c0_135 = arith.constant 0 : index
    %422 = vector.load %arg1[%c0_134, %c11, %c0_135] : memref<8x32x384xbf16, #tpu.memory_space<vmem>>, vector<8x1x384xbf16>
    %423 = vector.shape_cast %422 : vector<8x1x384xbf16> to vector<8x384xbf16>
    %424 = arith.extf %423 : vector<8x384xbf16> to vector<8x384xf32>
    %c0_136 = arith.constant 0 : index
    %c0_137 = arith.constant 0 : index
    %425 = vector.load %arg2[%c0_136, %c0_137] : memref<128x384xf32, #tpu.memory_space<vmem>>, vector<128x384xf32>
    %cst_138 = arith.constant dense<0.000000e+00> : vector<8x384xf32>
    %426 = tpu.matmul %421, %425, %cst_138 {dimension_numbers = #tpu.dot_dimension_numbers<[1], [0], [0], [1], [0, 0, 1, 1], [], []>} : vector<8x128xf32>, vector<128x384xf32>, vector<8x384xf32> -> vector<8x384xf32>
    %c0_139 = arith.constant 0 : index
    %c0_140 = arith.constant 0 : index
    %427 = vector.load %arg3[%c0_139, %c0_140] : memref<1x384xf32, #tpu.memory_space<vmem>>, vector<1x384xf32>
    %428 = vector.broadcast %427 : vector<1x384xf32> to vector<8x384xf32>
    %429 = arith.addf %426, %428 : vector<8x384xf32>
    %430 = vector.extract_strided_slice %424 {offsets = [0, 0], sizes = [8, 128], strides = [1, 1]} : vector<8x384xf32> to vector<8x128xf32>
    %431 = vector.extract_strided_slice %429 {offsets = [0, 0], sizes = [8, 128], strides = [1, 1]} : vector<8x384xf32> to vector<8x128xf32>
    %432 = arith.addf %430, %431 : vector<8x128xf32>
    %433 = arith.negf %432 : vector<8x128xf32>
    %434 = math.exp %433 : vector<8x128xf32>
    %cst_141 = arith.constant 1.000000e+00 : f32
    %435 = vector.broadcast %cst_141 : f32 to vector<8x128xf32>
    %436 = arith.addf %435, %434 : vector<8x128xf32>
    %437 = arith.divf %435, %436 : vector<8x128xf32>
    %438 = vector.extract_strided_slice %424 {offsets = [0, 128], sizes = [8, 128], strides = [1, 1]} : vector<8x384xf32> to vector<8x128xf32>
    %439 = vector.extract_strided_slice %429 {offsets = [0, 128], sizes = [8, 128], strides = [1, 1]} : vector<8x384xf32> to vector<8x128xf32>
    %440 = arith.addf %438, %439 : vector<8x128xf32>
    %441 = arith.negf %440 : vector<8x128xf32>
    %442 = math.exp %441 : vector<8x128xf32>
    %cst_142 = arith.constant 1.000000e+00 : f32
    %443 = vector.broadcast %cst_142 : f32 to vector<8x128xf32>
    %444 = arith.addf %443, %442 : vector<8x128xf32>
    %445 = arith.divf %443, %444 : vector<8x128xf32>
    %446 = vector.extract_strided_slice %424 {offsets = [0, 256], sizes = [8, 128], strides = [1, 1]} : vector<8x384xf32> to vector<8x128xf32>
    %447 = vector.extract_strided_slice %429 {offsets = [0, 256], sizes = [8, 128], strides = [1, 1]} : vector<8x384xf32> to vector<8x128xf32>
    %448 = arith.mulf %437, %447 : vector<8x128xf32>
    %449 = arith.addf %446, %448 : vector<8x128xf32>
    %450 = math.tanh %449 : vector<8x128xf32>
    %cst_143 = arith.constant 1.000000e+00 : f32
    %451 = vector.broadcast %cst_143 : f32 to vector<8x128xf32>
    %452 = arith.subf %451, %445 : vector<8x128xf32>
    %453 = arith.mulf %452, %450 : vector<8x128xf32>
    %454 = arith.mulf %445, %421 : vector<8x128xf32>
    %455 = arith.addf %453, %454 : vector<8x128xf32>
    %c32_i32_144 = arith.constant 32 : i32
    %456 = arith.muli %arg0, %c32_i32_144 : i32
    %c11_i32 = arith.constant 11 : i32
    %457 = arith.addi %456, %c11_i32 : i32
    %c2_i32_145 = arith.constant 2 : i32
    %458 = arith.cmpi slt, %457, %c2_i32_145 : i32
    %459 = arith.select %458, %455, %421 : vector<8x128xf32>
    %c0_146 = arith.constant 0 : index
    %c12 = arith.constant 12 : index
    %c0_147 = arith.constant 0 : index
    %460 = vector.load %arg1[%c0_146, %c12, %c0_147] : memref<8x32x384xbf16, #tpu.memory_space<vmem>>, vector<8x1x384xbf16>
    %461 = vector.shape_cast %460 : vector<8x1x384xbf16> to vector<8x384xbf16>
    %462 = arith.extf %461 : vector<8x384xbf16> to vector<8x384xf32>
    %c0_148 = arith.constant 0 : index
    %c0_149 = arith.constant 0 : index
    %463 = vector.load %arg2[%c0_148, %c0_149] : memref<128x384xf32, #tpu.memory_space<vmem>>, vector<128x384xf32>
    %cst_150 = arith.constant dense<0.000000e+00> : vector<8x384xf32>
    %464 = tpu.matmul %459, %463, %cst_150 {dimension_numbers = #tpu.dot_dimension_numbers<[1], [0], [0], [1], [0, 0, 1, 1], [], []>} : vector<8x128xf32>, vector<128x384xf32>, vector<8x384xf32> -> vector<8x384xf32>
    %c0_151 = arith.constant 0 : index
    %c0_152 = arith.constant 0 : index
    %465 = vector.load %arg3[%c0_151, %c0_152] : memref<1x384xf32, #tpu.memory_space<vmem>>, vector<1x384xf32>
    %466 = vector.broadcast %465 : vector<1x384xf32> to vector<8x384xf32>
    %467 = arith.addf %464, %466 : vector<8x384xf32>
    %468 = vector.extract_strided_slice %462 {offsets = [0, 0], sizes = [8, 128], strides = [1, 1]} : vector<8x384xf32> to vector<8x128xf32>
    %469 = vector.extract_strided_slice %467 {offsets = [0, 0], sizes = [8, 128], strides = [1, 1]} : vector<8x384xf32> to vector<8x128xf32>
    %470 = arith.addf %468, %469 : vector<8x128xf32>
    %471 = arith.negf %470 : vector<8x128xf32>
    %472 = math.exp %471 : vector<8x128xf32>
    %cst_153 = arith.constant 1.000000e+00 : f32
    %473 = vector.broadcast %cst_153 : f32 to vector<8x128xf32>
    %474 = arith.addf %473, %472 : vector<8x128xf32>
    %475 = arith.divf %473, %474 : vector<8x128xf32>
    %476 = vector.extract_strided_slice %462 {offsets = [0, 128], sizes = [8, 128], strides = [1, 1]} : vector<8x384xf32> to vector<8x128xf32>
    %477 = vector.extract_strided_slice %467 {offsets = [0, 128], sizes = [8, 128], strides = [1, 1]} : vector<8x384xf32> to vector<8x128xf32>
    %478 = arith.addf %476, %477 : vector<8x128xf32>
    %479 = arith.negf %478 : vector<8x128xf32>
    %480 = math.exp %479 : vector<8x128xf32>
    %cst_154 = arith.constant 1.000000e+00 : f32
    %481 = vector.broadcast %cst_154 : f32 to vector<8x128xf32>
    %482 = arith.addf %481, %480 : vector<8x128xf32>
    %483 = arith.divf %481, %482 : vector<8x128xf32>
    %484 = vector.extract_strided_slice %462 {offsets = [0, 256], sizes = [8, 128], strides = [1, 1]} : vector<8x384xf32> to vector<8x128xf32>
    %485 = vector.extract_strided_slice %467 {offsets = [0, 256], sizes = [8, 128], strides = [1, 1]} : vector<8x384xf32> to vector<8x128xf32>
    %486 = arith.mulf %475, %485 : vector<8x128xf32>
    %487 = arith.addf %484, %486 : vector<8x128xf32>
    %488 = math.tanh %487 : vector<8x128xf32>
    %cst_155 = arith.constant 1.000000e+00 : f32
    %489 = vector.broadcast %cst_155 : f32 to vector<8x128xf32>
    %490 = arith.subf %489, %483 : vector<8x128xf32>
    %491 = arith.mulf %490, %488 : vector<8x128xf32>
    %492 = arith.mulf %483, %459 : vector<8x128xf32>
    %493 = arith.addf %491, %492 : vector<8x128xf32>
    %c32_i32_156 = arith.constant 32 : i32
    %494 = arith.muli %arg0, %c32_i32_156 : i32
    %c12_i32 = arith.constant 12 : i32
    %495 = arith.addi %494, %c12_i32 : i32
    %c2_i32_157 = arith.constant 2 : i32
    %496 = arith.cmpi slt, %495, %c2_i32_157 : i32
    %497 = arith.select %496, %493, %459 : vector<8x128xf32>
    %c0_158 = arith.constant 0 : index
    %c13 = arith.constant 13 : index
    %c0_159 = arith.constant 0 : index
    %498 = vector.load %arg1[%c0_158, %c13, %c0_159] : memref<8x32x384xbf16, #tpu.memory_space<vmem>>, vector<8x1x384xbf16>
    %499 = vector.shape_cast %498 : vector<8x1x384xbf16> to vector<8x384xbf16>
    %500 = arith.extf %499 : vector<8x384xbf16> to vector<8x384xf32>
    %c0_160 = arith.constant 0 : index
    %c0_161 = arith.constant 0 : index
    %501 = vector.load %arg2[%c0_160, %c0_161] : memref<128x384xf32, #tpu.memory_space<vmem>>, vector<128x384xf32>
    %cst_162 = arith.constant dense<0.000000e+00> : vector<8x384xf32>
    %502 = tpu.matmul %497, %501, %cst_162 {dimension_numbers = #tpu.dot_dimension_numbers<[1], [0], [0], [1], [0, 0, 1, 1], [], []>} : vector<8x128xf32>, vector<128x384xf32>, vector<8x384xf32> -> vector<8x384xf32>
    %c0_163 = arith.constant 0 : index
    %c0_164 = arith.constant 0 : index
    %503 = vector.load %arg3[%c0_163, %c0_164] : memref<1x384xf32, #tpu.memory_space<vmem>>, vector<1x384xf32>
    %504 = vector.broadcast %503 : vector<1x384xf32> to vector<8x384xf32>
    %505 = arith.addf %502, %504 : vector<8x384xf32>
    %506 = vector.extract_strided_slice %500 {offsets = [0, 0], sizes = [8, 128], strides = [1, 1]} : vector<8x384xf32> to vector<8x128xf32>
    %507 = vector.extract_strided_slice %505 {offsets = [0, 0], sizes = [8, 128], strides = [1, 1]} : vector<8x384xf32> to vector<8x128xf32>
    %508 = arith.addf %506, %507 : vector<8x128xf32>
    %509 = arith.negf %508 : vector<8x128xf32>
    %510 = math.exp %509 : vector<8x128xf32>
    %cst_165 = arith.constant 1.000000e+00 : f32
    %511 = vector.broadcast %cst_165 : f32 to vector<8x128xf32>
    %512 = arith.addf %511, %510 : vector<8x128xf32>
    %513 = arith.divf %511, %512 : vector<8x128xf32>
    %514 = vector.extract_strided_slice %500 {offsets = [0, 128], sizes = [8, 128], strides = [1, 1]} : vector<8x384xf32> to vector<8x128xf32>
    %515 = vector.extract_strided_slice %505 {offsets = [0, 128], sizes = [8, 128], strides = [1, 1]} : vector<8x384xf32> to vector<8x128xf32>
    %516 = arith.addf %514, %515 : vector<8x128xf32>
    %517 = arith.negf %516 : vector<8x128xf32>
    %518 = math.exp %517 : vector<8x128xf32>
    %cst_166 = arith.constant 1.000000e+00 : f32
    %519 = vector.broadcast %cst_166 : f32 to vector<8x128xf32>
    %520 = arith.addf %519, %518 : vector<8x128xf32>
    %521 = arith.divf %519, %520 : vector<8x128xf32>
    %522 = vector.extract_strided_slice %500 {offsets = [0, 256], sizes = [8, 128], strides = [1, 1]} : vector<8x384xf32> to vector<8x128xf32>
    %523 = vector.extract_strided_slice %505 {offsets = [0, 256], sizes = [8, 128], strides = [1, 1]} : vector<8x384xf32> to vector<8x128xf32>
    %524 = arith.mulf %513, %523 : vector<8x128xf32>
    %525 = arith.addf %522, %524 : vector<8x128xf32>
    %526 = math.tanh %525 : vector<8x128xf32>
    %cst_167 = arith.constant 1.000000e+00 : f32
    %527 = vector.broadcast %cst_167 : f32 to vector<8x128xf32>
    %528 = arith.subf %527, %521 : vector<8x128xf32>
    %529 = arith.mulf %528, %526 : vector<8x128xf32>
    %530 = arith.mulf %521, %497 : vector<8x128xf32>
    %531 = arith.addf %529, %530 : vector<8x128xf32>
    %c32_i32_168 = arith.constant 32 : i32
    %532 = arith.muli %arg0, %c32_i32_168 : i32
    %c13_i32 = arith.constant 13 : i32
    %533 = arith.addi %532, %c13_i32 : i32
    %c2_i32_169 = arith.constant 2 : i32
    %534 = arith.cmpi slt, %533, %c2_i32_169 : i32
    %535 = arith.select %534, %531, %497 : vector<8x128xf32>
    %c0_170 = arith.constant 0 : index
    %c14 = arith.constant 14 : index
    %c0_171 = arith.constant 0 : index
    %536 = vector.load %arg1[%c0_170, %c14, %c0_171] : memref<8x32x384xbf16, #tpu.memory_space<vmem>>, vector<8x1x384xbf16>
    %537 = vector.shape_cast %536 : vector<8x1x384xbf16> to vector<8x384xbf16>
    %538 = arith.extf %537 : vector<8x384xbf16> to vector<8x384xf32>
    %c0_172 = arith.constant 0 : index
    %c0_173 = arith.constant 0 : index
    %539 = vector.load %arg2[%c0_172, %c0_173] : memref<128x384xf32, #tpu.memory_space<vmem>>, vector<128x384xf32>
    %cst_174 = arith.constant dense<0.000000e+00> : vector<8x384xf32>
    %540 = tpu.matmul %535, %539, %cst_174 {dimension_numbers = #tpu.dot_dimension_numbers<[1], [0], [0], [1], [0, 0, 1, 1], [], []>} : vector<8x128xf32>, vector<128x384xf32>, vector<8x384xf32> -> vector<8x384xf32>
    %c0_175 = arith.constant 0 : index
    %c0_176 = arith.constant 0 : index
    %541 = vector.load %arg3[%c0_175, %c0_176] : memref<1x384xf32, #tpu.memory_space<vmem>>, vector<1x384xf32>
    %542 = vector.broadcast %541 : vector<1x384xf32> to vector<8x384xf32>
    %543 = arith.addf %540, %542 : vector<8x384xf32>
    %544 = vector.extract_strided_slice %538 {offsets = [0, 0], sizes = [8, 128], strides = [1, 1]} : vector<8x384xf32> to vector<8x128xf32>
    %545 = vector.extract_strided_slice %543 {offsets = [0, 0], sizes = [8, 128], strides = [1, 1]} : vector<8x384xf32> to vector<8x128xf32>
    %546 = arith.addf %544, %545 : vector<8x128xf32>
    %547 = arith.negf %546 : vector<8x128xf32>
    %548 = math.exp %547 : vector<8x128xf32>
    %cst_177 = arith.constant 1.000000e+00 : f32
    %549 = vector.broadcast %cst_177 : f32 to vector<8x128xf32>
    %550 = arith.addf %549, %548 : vector<8x128xf32>
    %551 = arith.divf %549, %550 : vector<8x128xf32>
    %552 = vector.extract_strided_slice %538 {offsets = [0, 128], sizes = [8, 128], strides = [1, 1]} : vector<8x384xf32> to vector<8x128xf32>
    %553 = vector.extract_strided_slice %543 {offsets = [0, 128], sizes = [8, 128], strides = [1, 1]} : vector<8x384xf32> to vector<8x128xf32>
    %554 = arith.addf %552, %553 : vector<8x128xf32>
    %555 = arith.negf %554 : vector<8x128xf32>
    %556 = math.exp %555 : vector<8x128xf32>
    %cst_178 = arith.constant 1.000000e+00 : f32
    %557 = vector.broadcast %cst_178 : f32 to vector<8x128xf32>
    %558 = arith.addf %557, %556 : vector<8x128xf32>
    %559 = arith.divf %557, %558 : vector<8x128xf32>
    %560 = vector.extract_strided_slice %538 {offsets = [0, 256], sizes = [8, 128], strides = [1, 1]} : vector<8x384xf32> to vector<8x128xf32>
    %561 = vector.extract_strided_slice %543 {offsets = [0, 256], sizes = [8, 128], strides = [1, 1]} : vector<8x384xf32> to vector<8x128xf32>
    %562 = arith.mulf %551, %561 : vector<8x128xf32>
    %563 = arith.addf %560, %562 : vector<8x128xf32>
    %564 = math.tanh %563 : vector<8x128xf32>
    %cst_179 = arith.constant 1.000000e+00 : f32
    %565 = vector.broadcast %cst_179 : f32 to vector<8x128xf32>
    %566 = arith.subf %565, %559 : vector<8x128xf32>
    %567 = arith.mulf %566, %564 : vector<8x128xf32>
    %568 = arith.mulf %559, %535 : vector<8x128xf32>
    %569 = arith.addf %567, %568 : vector<8x128xf32>
    %c32_i32_180 = arith.constant 32 : i32
    %570 = arith.muli %arg0, %c32_i32_180 : i32
    %c14_i32 = arith.constant 14 : i32
    %571 = arith.addi %570, %c14_i32 : i32
    %c2_i32_181 = arith.constant 2 : i32
    %572 = arith.cmpi slt, %571, %c2_i32_181 : i32
    %573 = arith.select %572, %569, %535 : vector<8x128xf32>
    %c0_182 = arith.constant 0 : index
    %c15 = arith.constant 15 : index
    %c0_183 = arith.constant 0 : index
    %574 = vector.load %arg1[%c0_182, %c15, %c0_183] : memref<8x32x384xbf16, #tpu.memory_space<vmem>>, vector<8x1x384xbf16>
    %575 = vector.shape_cast %574 : vector<8x1x384xbf16> to vector<8x384xbf16>
    %576 = arith.extf %575 : vector<8x384xbf16> to vector<8x384xf32>
    %c0_184 = arith.constant 0 : index
    %c0_185 = arith.constant 0 : index
    %577 = vector.load %arg2[%c0_184, %c0_185] : memref<128x384xf32, #tpu.memory_space<vmem>>, vector<128x384xf32>
    %cst_186 = arith.constant dense<0.000000e+00> : vector<8x384xf32>
    %578 = tpu.matmul %573, %577, %cst_186 {dimension_numbers = #tpu.dot_dimension_numbers<[1], [0], [0], [1], [0, 0, 1, 1], [], []>} : vector<8x128xf32>, vector<128x384xf32>, vector<8x384xf32> -> vector<8x384xf32>
    %c0_187 = arith.constant 0 : index
    %c0_188 = arith.constant 0 : index
    %579 = vector.load %arg3[%c0_187, %c0_188] : memref<1x384xf32, #tpu.memory_space<vmem>>, vector<1x384xf32>
    %580 = vector.broadcast %579 : vector<1x384xf32> to vector<8x384xf32>
    %581 = arith.addf %578, %580 : vector<8x384xf32>
    %582 = vector.extract_strided_slice %576 {offsets = [0, 0], sizes = [8, 128], strides = [1, 1]} : vector<8x384xf32> to vector<8x128xf32>
    %583 = vector.extract_strided_slice %581 {offsets = [0, 0], sizes = [8, 128], strides = [1, 1]} : vector<8x384xf32> to vector<8x128xf32>
    %584 = arith.addf %582, %583 : vector<8x128xf32>
    %585 = arith.negf %584 : vector<8x128xf32>
    %586 = math.exp %585 : vector<8x128xf32>
    %cst_189 = arith.constant 1.000000e+00 : f32
    %587 = vector.broadcast %cst_189 : f32 to vector<8x128xf32>
    %588 = arith.addf %587, %586 : vector<8x128xf32>
    %589 = arith.divf %587, %588 : vector<8x128xf32>
    %590 = vector.extract_strided_slice %576 {offsets = [0, 128], sizes = [8, 128], strides = [1, 1]} : vector<8x384xf32> to vector<8x128xf32>
    %591 = vector.extract_strided_slice %581 {offsets = [0, 128], sizes = [8, 128], strides = [1, 1]} : vector<8x384xf32> to vector<8x128xf32>
    %592 = arith.addf %590, %591 : vector<8x128xf32>
    %593 = arith.negf %592 : vector<8x128xf32>
    %594 = math.exp %593 : vector<8x128xf32>
    %cst_190 = arith.constant 1.000000e+00 : f32
    %595 = vector.broadcast %cst_190 : f32 to vector<8x128xf32>
    %596 = arith.addf %595, %594 : vector<8x128xf32>
    %597 = arith.divf %595, %596 : vector<8x128xf32>
    %598 = vector.extract_strided_slice %576 {offsets = [0, 256], sizes = [8, 128], strides = [1, 1]} : vector<8x384xf32> to vector<8x128xf32>
    %599 = vector.extract_strided_slice %581 {offsets = [0, 256], sizes = [8, 128], strides = [1, 1]} : vector<8x384xf32> to vector<8x128xf32>
    %600 = arith.mulf %589, %599 : vector<8x128xf32>
    %601 = arith.addf %598, %600 : vector<8x128xf32>
    %602 = math.tanh %601 : vector<8x128xf32>
    %cst_191 = arith.constant 1.000000e+00 : f32
    %603 = vector.broadcast %cst_191 : f32 to vector<8x128xf32>
    %604 = arith.subf %603, %597 : vector<8x128xf32>
    %605 = arith.mulf %604, %602 : vector<8x128xf32>
    %606 = arith.mulf %597, %573 : vector<8x128xf32>
    %607 = arith.addf %605, %606 : vector<8x128xf32>
    %c32_i32_192 = arith.constant 32 : i32
    %608 = arith.muli %arg0, %c32_i32_192 : i32
    %c15_i32 = arith.constant 15 : i32
    %609 = arith.addi %608, %c15_i32 : i32
    %c2_i32_193 = arith.constant 2 : i32
    %610 = arith.cmpi slt, %609, %c2_i32_193 : i32
    %611 = arith.select %610, %607, %573 : vector<8x128xf32>
    %c0_194 = arith.constant 0 : index
    %c16 = arith.constant 16 : index
    %c0_195 = arith.constant 0 : index
    %612 = vector.load %arg1[%c0_194, %c16, %c0_195] : memref<8x32x384xbf16, #tpu.memory_space<vmem>>, vector<8x1x384xbf16>
    %613 = vector.shape_cast %612 : vector<8x1x384xbf16> to vector<8x384xbf16>
    %614 = arith.extf %613 : vector<8x384xbf16> to vector<8x384xf32>
    %c0_196 = arith.constant 0 : index
    %c0_197 = arith.constant 0 : index
    %615 = vector.load %arg2[%c0_196, %c0_197] : memref<128x384xf32, #tpu.memory_space<vmem>>, vector<128x384xf32>
    %cst_198 = arith.constant dense<0.000000e+00> : vector<8x384xf32>
    %616 = tpu.matmul %611, %615, %cst_198 {dimension_numbers = #tpu.dot_dimension_numbers<[1], [0], [0], [1], [0, 0, 1, 1], [], []>} : vector<8x128xf32>, vector<128x384xf32>, vector<8x384xf32> -> vector<8x384xf32>
    %c0_199 = arith.constant 0 : index
    %c0_200 = arith.constant 0 : index
    %617 = vector.load %arg3[%c0_199, %c0_200] : memref<1x384xf32, #tpu.memory_space<vmem>>, vector<1x384xf32>
    %618 = vector.broadcast %617 : vector<1x384xf32> to vector<8x384xf32>
    %619 = arith.addf %616, %618 : vector<8x384xf32>
    %620 = vector.extract_strided_slice %614 {offsets = [0, 0], sizes = [8, 128], strides = [1, 1]} : vector<8x384xf32> to vector<8x128xf32>
    %621 = vector.extract_strided_slice %619 {offsets = [0, 0], sizes = [8, 128], strides = [1, 1]} : vector<8x384xf32> to vector<8x128xf32>
    %622 = arith.addf %620, %621 : vector<8x128xf32>
    %623 = arith.negf %622 : vector<8x128xf32>
    %624 = math.exp %623 : vector<8x128xf32>
    %cst_201 = arith.constant 1.000000e+00 : f32
    %625 = vector.broadcast %cst_201 : f32 to vector<8x128xf32>
    %626 = arith.addf %625, %624 : vector<8x128xf32>
    %627 = arith.divf %625, %626 : vector<8x128xf32>
    %628 = vector.extract_strided_slice %614 {offsets = [0, 128], sizes = [8, 128], strides = [1, 1]} : vector<8x384xf32> to vector<8x128xf32>
    %629 = vector.extract_strided_slice %619 {offsets = [0, 128], sizes = [8, 128], strides = [1, 1]} : vector<8x384xf32> to vector<8x128xf32>
    %630 = arith.addf %628, %629 : vector<8x128xf32>
    %631 = arith.negf %630 : vector<8x128xf32>
    %632 = math.exp %631 : vector<8x128xf32>
    %cst_202 = arith.constant 1.000000e+00 : f32
    %633 = vector.broadcast %cst_202 : f32 to vector<8x128xf32>
    %634 = arith.addf %633, %632 : vector<8x128xf32>
    %635 = arith.divf %633, %634 : vector<8x128xf32>
    %636 = vector.extract_strided_slice %614 {offsets = [0, 256], sizes = [8, 128], strides = [1, 1]} : vector<8x384xf32> to vector<8x128xf32>
    %637 = vector.extract_strided_slice %619 {offsets = [0, 256], sizes = [8, 128], strides = [1, 1]} : vector<8x384xf32> to vector<8x128xf32>
    %638 = arith.mulf %627, %637 : vector<8x128xf32>
    %639 = arith.addf %636, %638 : vector<8x128xf32>
    %640 = math.tanh %639 : vector<8x128xf32>
    %cst_203 = arith.constant 1.000000e+00 : f32
    %641 = vector.broadcast %cst_203 : f32 to vector<8x128xf32>
    %642 = arith.subf %641, %635 : vector<8x128xf32>
    %643 = arith.mulf %642, %640 : vector<8x128xf32>
    %644 = arith.mulf %635, %611 : vector<8x128xf32>
    %645 = arith.addf %643, %644 : vector<8x128xf32>
    %c32_i32_204 = arith.constant 32 : i32
    %646 = arith.muli %arg0, %c32_i32_204 : i32
    %c16_i32 = arith.constant 16 : i32
    %647 = arith.addi %646, %c16_i32 : i32
    %c2_i32_205 = arith.constant 2 : i32
    %648 = arith.cmpi slt, %647, %c2_i32_205 : i32
    %649 = arith.select %648, %645, %611 : vector<8x128xf32>
    %c0_206 = arith.constant 0 : index
    %c17 = arith.constant 17 : index
    %c0_207 = arith.constant 0 : index
    %650 = vector.load %arg1[%c0_206, %c17, %c0_207] : memref<8x32x384xbf16, #tpu.memory_space<vmem>>, vector<8x1x384xbf16>
    %651 = vector.shape_cast %650 : vector<8x1x384xbf16> to vector<8x384xbf16>
    %652 = arith.extf %651 : vector<8x384xbf16> to vector<8x384xf32>
    %c0_208 = arith.constant 0 : index
    %c0_209 = arith.constant 0 : index
    %653 = vector.load %arg2[%c0_208, %c0_209] : memref<128x384xf32, #tpu.memory_space<vmem>>, vector<128x384xf32>
    %cst_210 = arith.constant dense<0.000000e+00> : vector<8x384xf32>
    %654 = tpu.matmul %649, %653, %cst_210 {dimension_numbers = #tpu.dot_dimension_numbers<[1], [0], [0], [1], [0, 0, 1, 1], [], []>} : vector<8x128xf32>, vector<128x384xf32>, vector<8x384xf32> -> vector<8x384xf32>
    %c0_211 = arith.constant 0 : index
    %c0_212 = arith.constant 0 : index
    %655 = vector.load %arg3[%c0_211, %c0_212] : memref<1x384xf32, #tpu.memory_space<vmem>>, vector<1x384xf32>
    %656 = vector.broadcast %655 : vector<1x384xf32> to vector<8x384xf32>
    %657 = arith.addf %654, %656 : vector<8x384xf32>
    %658 = vector.extract_strided_slice %652 {offsets = [0, 0], sizes = [8, 128], strides = [1, 1]} : vector<8x384xf32> to vector<8x128xf32>
    %659 = vector.extract_strided_slice %657 {offsets = [0, 0], sizes = [8, 128], strides = [1, 1]} : vector<8x384xf32> to vector<8x128xf32>
    %660 = arith.addf %658, %659 : vector<8x128xf32>
    %661 = arith.negf %660 : vector<8x128xf32>
    %662 = math.exp %661 : vector<8x128xf32>
    %cst_213 = arith.constant 1.000000e+00 : f32
    %663 = vector.broadcast %cst_213 : f32 to vector<8x128xf32>
    %664 = arith.addf %663, %662 : vector<8x128xf32>
    %665 = arith.divf %663, %664 : vector<8x128xf32>
    %666 = vector.extract_strided_slice %652 {offsets = [0, 128], sizes = [8, 128], strides = [1, 1]} : vector<8x384xf32> to vector<8x128xf32>
    %667 = vector.extract_strided_slice %657 {offsets = [0, 128], sizes = [8, 128], strides = [1, 1]} : vector<8x384xf32> to vector<8x128xf32>
    %668 = arith.addf %666, %667 : vector<8x128xf32>
    %669 = arith.negf %668 : vector<8x128xf32>
    %670 = math.exp %669 : vector<8x128xf32>
    %cst_214 = arith.constant 1.000000e+00 : f32
    %671 = vector.broadcast %cst_214 : f32 to vector<8x128xf32>
    %672 = arith.addf %671, %670 : vector<8x128xf32>
    %673 = arith.divf %671, %672 : vector<8x128xf32>
    %674 = vector.extract_strided_slice %652 {offsets = [0, 256], sizes = [8, 128], strides = [1, 1]} : vector<8x384xf32> to vector<8x128xf32>
    %675 = vector.extract_strided_slice %657 {offsets = [0, 256], sizes = [8, 128], strides = [1, 1]} : vector<8x384xf32> to vector<8x128xf32>
    %676 = arith.mulf %665, %675 : vector<8x128xf32>
    %677 = arith.addf %674, %676 : vector<8x128xf32>
    %678 = math.tanh %677 : vector<8x128xf32>
    %cst_215 = arith.constant 1.000000e+00 : f32
    %679 = vector.broadcast %cst_215 : f32 to vector<8x128xf32>
    %680 = arith.subf %679, %673 : vector<8x128xf32>
    %681 = arith.mulf %680, %678 : vector<8x128xf32>
    %682 = arith.mulf %673, %649 : vector<8x128xf32>
    %683 = arith.addf %681, %682 : vector<8x128xf32>
    %c32_i32_216 = arith.constant 32 : i32
    %684 = arith.muli %arg0, %c32_i32_216 : i32
    %c17_i32 = arith.constant 17 : i32
    %685 = arith.addi %684, %c17_i32 : i32
    %c2_i32_217 = arith.constant 2 : i32
    %686 = arith.cmpi slt, %685, %c2_i32_217 : i32
    %687 = arith.select %686, %683, %649 : vector<8x128xf32>
    %c0_218 = arith.constant 0 : index
    %c18 = arith.constant 18 : index
    %c0_219 = arith.constant 0 : index
    %688 = vector.load %arg1[%c0_218, %c18, %c0_219] : memref<8x32x384xbf16, #tpu.memory_space<vmem>>, vector<8x1x384xbf16>
    %689 = vector.shape_cast %688 : vector<8x1x384xbf16> to vector<8x384xbf16>
    %690 = arith.extf %689 : vector<8x384xbf16> to vector<8x384xf32>
    %c0_220 = arith.constant 0 : index
    %c0_221 = arith.constant 0 : index
    %691 = vector.load %arg2[%c0_220, %c0_221] : memref<128x384xf32, #tpu.memory_space<vmem>>, vector<128x384xf32>
    %cst_222 = arith.constant dense<0.000000e+00> : vector<8x384xf32>
    %692 = tpu.matmul %687, %691, %cst_222 {dimension_numbers = #tpu.dot_dimension_numbers<[1], [0], [0], [1], [0, 0, 1, 1], [], []>} : vector<8x128xf32>, vector<128x384xf32>, vector<8x384xf32> -> vector<8x384xf32>
    %c0_223 = arith.constant 0 : index
    %c0_224 = arith.constant 0 : index
    %693 = vector.load %arg3[%c0_223, %c0_224] : memref<1x384xf32, #tpu.memory_space<vmem>>, vector<1x384xf32>
    %694 = vector.broadcast %693 : vector<1x384xf32> to vector<8x384xf32>
    %695 = arith.addf %692, %694 : vector<8x384xf32>
    %696 = vector.extract_strided_slice %690 {offsets = [0, 0], sizes = [8, 128], strides = [1, 1]} : vector<8x384xf32> to vector<8x128xf32>
    %697 = vector.extract_strided_slice %695 {offsets = [0, 0], sizes = [8, 128], strides = [1, 1]} : vector<8x384xf32> to vector<8x128xf32>
    %698 = arith.addf %696, %697 : vector<8x128xf32>
    %699 = arith.negf %698 : vector<8x128xf32>
    %700 = math.exp %699 : vector<8x128xf32>
    %cst_225 = arith.constant 1.000000e+00 : f32
    %701 = vector.broadcast %cst_225 : f32 to vector<8x128xf32>
    %702 = arith.addf %701, %700 : vector<8x128xf32>
    %703 = arith.divf %701, %702 : vector<8x128xf32>
    %704 = vector.extract_strided_slice %690 {offsets = [0, 128], sizes = [8, 128], strides = [1, 1]} : vector<8x384xf32> to vector<8x128xf32>
    %705 = vector.extract_strided_slice %695 {offsets = [0, 128], sizes = [8, 128], strides = [1, 1]} : vector<8x384xf32> to vector<8x128xf32>
    %706 = arith.addf %704, %705 : vector<8x128xf32>
    %707 = arith.negf %706 : vector<8x128xf32>
    %708 = math.exp %707 : vector<8x128xf32>
    %cst_226 = arith.constant 1.000000e+00 : f32
    %709 = vector.broadcast %cst_226 : f32 to vector<8x128xf32>
    %710 = arith.addf %709, %708 : vector<8x128xf32>
    %711 = arith.divf %709, %710 : vector<8x128xf32>
    %712 = vector.extract_strided_slice %690 {offsets = [0, 256], sizes = [8, 128], strides = [1, 1]} : vector<8x384xf32> to vector<8x128xf32>
    %713 = vector.extract_strided_slice %695 {offsets = [0, 256], sizes = [8, 128], strides = [1, 1]} : vector<8x384xf32> to vector<8x128xf32>
    %714 = arith.mulf %703, %713 : vector<8x128xf32>
    %715 = arith.addf %712, %714 : vector<8x128xf32>
    %716 = math.tanh %715 : vector<8x128xf32>
    %cst_227 = arith.constant 1.000000e+00 : f32
    %717 = vector.broadcast %cst_227 : f32 to vector<8x128xf32>
    %718 = arith.subf %717, %711 : vector<8x128xf32>
    %719 = arith.mulf %718, %716 : vector<8x128xf32>
    %720 = arith.mulf %711, %687 : vector<8x128xf32>
    %721 = arith.addf %719, %720 : vector<8x128xf32>
    %c32_i32_228 = arith.constant 32 : i32
    %722 = arith.muli %arg0, %c32_i32_228 : i32
    %c18_i32 = arith.constant 18 : i32
    %723 = arith.addi %722, %c18_i32 : i32
    %c2_i32_229 = arith.constant 2 : i32
    %724 = arith.cmpi slt, %723, %c2_i32_229 : i32
    %725 = arith.select %724, %721, %687 : vector<8x128xf32>
    %c0_230 = arith.constant 0 : index
    %c19 = arith.constant 19 : index
    %c0_231 = arith.constant 0 : index
    %726 = vector.load %arg1[%c0_230, %c19, %c0_231] : memref<8x32x384xbf16, #tpu.memory_space<vmem>>, vector<8x1x384xbf16>
    %727 = vector.shape_cast %726 : vector<8x1x384xbf16> to vector<8x384xbf16>
    %728 = arith.extf %727 : vector<8x384xbf16> to vector<8x384xf32>
    %c0_232 = arith.constant 0 : index
    %c0_233 = arith.constant 0 : index
    %729 = vector.load %arg2[%c0_232, %c0_233] : memref<128x384xf32, #tpu.memory_space<vmem>>, vector<128x384xf32>
    %cst_234 = arith.constant dense<0.000000e+00> : vector<8x384xf32>
    %730 = tpu.matmul %725, %729, %cst_234 {dimension_numbers = #tpu.dot_dimension_numbers<[1], [0], [0], [1], [0, 0, 1, 1], [], []>} : vector<8x128xf32>, vector<128x384xf32>, vector<8x384xf32> -> vector<8x384xf32>
    %c0_235 = arith.constant 0 : index
    %c0_236 = arith.constant 0 : index
    %731 = vector.load %arg3[%c0_235, %c0_236] : memref<1x384xf32, #tpu.memory_space<vmem>>, vector<1x384xf32>
    %732 = vector.broadcast %731 : vector<1x384xf32> to vector<8x384xf32>
    %733 = arith.addf %730, %732 : vector<8x384xf32>
    %734 = vector.extract_strided_slice %728 {offsets = [0, 0], sizes = [8, 128], strides = [1, 1]} : vector<8x384xf32> to vector<8x128xf32>
    %735 = vector.extract_strided_slice %733 {offsets = [0, 0], sizes = [8, 128], strides = [1, 1]} : vector<8x384xf32> to vector<8x128xf32>
    %736 = arith.addf %734, %735 : vector<8x128xf32>
    %737 = arith.negf %736 : vector<8x128xf32>
    %738 = math.exp %737 : vector<8x128xf32>
    %cst_237 = arith.constant 1.000000e+00 : f32
    %739 = vector.broadcast %cst_237 : f32 to vector<8x128xf32>
    %740 = arith.addf %739, %738 : vector<8x128xf32>
    %741 = arith.divf %739, %740 : vector<8x128xf32>
    %742 = vector.extract_strided_slice %728 {offsets = [0, 128], sizes = [8, 128], strides = [1, 1]} : vector<8x384xf32> to vector<8x128xf32>
    %743 = vector.extract_strided_slice %733 {offsets = [0, 128], sizes = [8, 128], strides = [1, 1]} : vector<8x384xf32> to vector<8x128xf32>
    %744 = arith.addf %742, %743 : vector<8x128xf32>
    %745 = arith.negf %744 : vector<8x128xf32>
    %746 = math.exp %745 : vector<8x128xf32>
    %cst_238 = arith.constant 1.000000e+00 : f32
    %747 = vector.broadcast %cst_238 : f32 to vector<8x128xf32>
    %748 = arith.addf %747, %746 : vector<8x128xf32>
    %749 = arith.divf %747, %748 : vector<8x128xf32>
    %750 = vector.extract_strided_slice %728 {offsets = [0, 256], sizes = [8, 128], strides = [1, 1]} : vector<8x384xf32> to vector<8x128xf32>
    %751 = vector.extract_strided_slice %733 {offsets = [0, 256], sizes = [8, 128], strides = [1, 1]} : vector<8x384xf32> to vector<8x128xf32>
    %752 = arith.mulf %741, %751 : vector<8x128xf32>
    %753 = arith.addf %750, %752 : vector<8x128xf32>
    %754 = math.tanh %753 : vector<8x128xf32>
    %cst_239 = arith.constant 1.000000e+00 : f32
    %755 = vector.broadcast %cst_239 : f32 to vector<8x128xf32>
    %756 = arith.subf %755, %749 : vector<8x128xf32>
    %757 = arith.mulf %756, %754 : vector<8x128xf32>
    %758 = arith.mulf %749, %725 : vector<8x128xf32>
    %759 = arith.addf %757, %758 : vector<8x128xf32>
    %c32_i32_240 = arith.constant 32 : i32
    %760 = arith.muli %arg0, %c32_i32_240 : i32
    %c19_i32 = arith.constant 19 : i32
    %761 = arith.addi %760, %c19_i32 : i32
    %c2_i32_241 = arith.constant 2 : i32
    %762 = arith.cmpi slt, %761, %c2_i32_241 : i32
    %763 = arith.select %762, %759, %725 : vector<8x128xf32>
    %c0_242 = arith.constant 0 : index
    %c20 = arith.constant 20 : index
    %c0_243 = arith.constant 0 : index
    %764 = vector.load %arg1[%c0_242, %c20, %c0_243] : memref<8x32x384xbf16, #tpu.memory_space<vmem>>, vector<8x1x384xbf16>
    %765 = vector.shape_cast %764 : vector<8x1x384xbf16> to vector<8x384xbf16>
    %766 = arith.extf %765 : vector<8x384xbf16> to vector<8x384xf32>
    %c0_244 = arith.constant 0 : index
    %c0_245 = arith.constant 0 : index
    %767 = vector.load %arg2[%c0_244, %c0_245] : memref<128x384xf32, #tpu.memory_space<vmem>>, vector<128x384xf32>
    %cst_246 = arith.constant dense<0.000000e+00> : vector<8x384xf32>
    %768 = tpu.matmul %763, %767, %cst_246 {dimension_numbers = #tpu.dot_dimension_numbers<[1], [0], [0], [1], [0, 0, 1, 1], [], []>} : vector<8x128xf32>, vector<128x384xf32>, vector<8x384xf32> -> vector<8x384xf32>
    %c0_247 = arith.constant 0 : index
    %c0_248 = arith.constant 0 : index
    %769 = vector.load %arg3[%c0_247, %c0_248] : memref<1x384xf32, #tpu.memory_space<vmem>>, vector<1x384xf32>
    %770 = vector.broadcast %769 : vector<1x384xf32> to vector<8x384xf32>
    %771 = arith.addf %768, %770 : vector<8x384xf32>
    %772 = vector.extract_strided_slice %766 {offsets = [0, 0], sizes = [8, 128], strides = [1, 1]} : vector<8x384xf32> to vector<8x128xf32>
    %773 = vector.extract_strided_slice %771 {offsets = [0, 0], sizes = [8, 128], strides = [1, 1]} : vector<8x384xf32> to vector<8x128xf32>
    %774 = arith.addf %772, %773 : vector<8x128xf32>
    %775 = arith.negf %774 : vector<8x128xf32>
    %776 = math.exp %775 : vector<8x128xf32>
    %cst_249 = arith.constant 1.000000e+00 : f32
    %777 = vector.broadcast %cst_249 : f32 to vector<8x128xf32>
    %778 = arith.addf %777, %776 : vector<8x128xf32>
    %779 = arith.divf %777, %778 : vector<8x128xf32>
    %780 = vector.extract_strided_slice %766 {offsets = [0, 128], sizes = [8, 128], strides = [1, 1]} : vector<8x384xf32> to vector<8x128xf32>
    %781 = vector.extract_strided_slice %771 {offsets = [0, 128], sizes = [8, 128], strides = [1, 1]} : vector<8x384xf32> to vector<8x128xf32>
    %782 = arith.addf %780, %781 : vector<8x128xf32>
    %783 = arith.negf %782 : vector<8x128xf32>
    %784 = math.exp %783 : vector<8x128xf32>
    %cst_250 = arith.constant 1.000000e+00 : f32
    %785 = vector.broadcast %cst_250 : f32 to vector<8x128xf32>
    %786 = arith.addf %785, %784 : vector<8x128xf32>
    %787 = arith.divf %785, %786 : vector<8x128xf32>
    %788 = vector.extract_strided_slice %766 {offsets = [0, 256], sizes = [8, 128], strides = [1, 1]} : vector<8x384xf32> to vector<8x128xf32>
    %789 = vector.extract_strided_slice %771 {offsets = [0, 256], sizes = [8, 128], strides = [1, 1]} : vector<8x384xf32> to vector<8x128xf32>
    %790 = arith.mulf %779, %789 : vector<8x128xf32>
    %791 = arith.addf %788, %790 : vector<8x128xf32>
    %792 = math.tanh %791 : vector<8x128xf32>
    %cst_251 = arith.constant 1.000000e+00 : f32
    %793 = vector.broadcast %cst_251 : f32 to vector<8x128xf32>
    %794 = arith.subf %793, %787 : vector<8x128xf32>
    %795 = arith.mulf %794, %792 : vector<8x128xf32>
    %796 = arith.mulf %787, %763 : vector<8x128xf32>
    %797 = arith.addf %795, %796 : vector<8x128xf32>
    %c32_i32_252 = arith.constant 32 : i32
    %798 = arith.muli %arg0, %c32_i32_252 : i32
    %c20_i32 = arith.constant 20 : i32
    %799 = arith.addi %798, %c20_i32 : i32
    %c2_i32_253 = arith.constant 2 : i32
    %800 = arith.cmpi slt, %799, %c2_i32_253 : i32
    %801 = arith.select %800, %797, %763 : vector<8x128xf32>
    %c0_254 = arith.constant 0 : index
    %c21 = arith.constant 21 : index
    %c0_255 = arith.constant 0 : index
    %802 = vector.load %arg1[%c0_254, %c21, %c0_255] : memref<8x32x384xbf16, #tpu.memory_space<vmem>>, vector<8x1x384xbf16>
    %803 = vector.shape_cast %802 : vector<8x1x384xbf16> to vector<8x384xbf16>
    %804 = arith.extf %803 : vector<8x384xbf16> to vector<8x384xf32>
    %c0_256 = arith.constant 0 : index
    %c0_257 = arith.constant 0 : index
    %805 = vector.load %arg2[%c0_256, %c0_257] : memref<128x384xf32, #tpu.memory_space<vmem>>, vector<128x384xf32>
    %cst_258 = arith.constant dense<0.000000e+00> : vector<8x384xf32>
    %806 = tpu.matmul %801, %805, %cst_258 {dimension_numbers = #tpu.dot_dimension_numbers<[1], [0], [0], [1], [0, 0, 1, 1], [], []>} : vector<8x128xf32>, vector<128x384xf32>, vector<8x384xf32> -> vector<8x384xf32>
    %c0_259 = arith.constant 0 : index
    %c0_260 = arith.constant 0 : index
    %807 = vector.load %arg3[%c0_259, %c0_260] : memref<1x384xf32, #tpu.memory_space<vmem>>, vector<1x384xf32>
    %808 = vector.broadcast %807 : vector<1x384xf32> to vector<8x384xf32>
    %809 = arith.addf %806, %808 : vector<8x384xf32>
    %810 = vector.extract_strided_slice %804 {offsets = [0, 0], sizes = [8, 128], strides = [1, 1]} : vector<8x384xf32> to vector<8x128xf32>
    %811 = vector.extract_strided_slice %809 {offsets = [0, 0], sizes = [8, 128], strides = [1, 1]} : vector<8x384xf32> to vector<8x128xf32>
    %812 = arith.addf %810, %811 : vector<8x128xf32>
    %813 = arith.negf %812 : vector<8x128xf32>
    %814 = math.exp %813 : vector<8x128xf32>
    %cst_261 = arith.constant 1.000000e+00 : f32
    %815 = vector.broadcast %cst_261 : f32 to vector<8x128xf32>
    %816 = arith.addf %815, %814 : vector<8x128xf32>
    %817 = arith.divf %815, %816 : vector<8x128xf32>
    %818 = vector.extract_strided_slice %804 {offsets = [0, 128], sizes = [8, 128], strides = [1, 1]} : vector<8x384xf32> to vector<8x128xf32>
    %819 = vector.extract_strided_slice %809 {offsets = [0, 128], sizes = [8, 128], strides = [1, 1]} : vector<8x384xf32> to vector<8x128xf32>
    %820 = arith.addf %818, %819 : vector<8x128xf32>
    %821 = arith.negf %820 : vector<8x128xf32>
    %822 = math.exp %821 : vector<8x128xf32>
    %cst_262 = arith.constant 1.000000e+00 : f32
    %823 = vector.broadcast %cst_262 : f32 to vector<8x128xf32>
    %824 = arith.addf %823, %822 : vector<8x128xf32>
    %825 = arith.divf %823, %824 : vector<8x128xf32>
    %826 = vector.extract_strided_slice %804 {offsets = [0, 256], sizes = [8, 128], strides = [1, 1]} : vector<8x384xf32> to vector<8x128xf32>
    %827 = vector.extract_strided_slice %809 {offsets = [0, 256], sizes = [8, 128], strides = [1, 1]} : vector<8x384xf32> to vector<8x128xf32>
    %828 = arith.mulf %817, %827 : vector<8x128xf32>
    %829 = arith.addf %826, %828 : vector<8x128xf32>
    %830 = math.tanh %829 : vector<8x128xf32>
    %cst_263 = arith.constant 1.000000e+00 : f32
    %831 = vector.broadcast %cst_263 : f32 to vector<8x128xf32>
    %832 = arith.subf %831, %825 : vector<8x128xf32>
    %833 = arith.mulf %832, %830 : vector<8x128xf32>
    %834 = arith.mulf %825, %801 : vector<8x128xf32>
    %835 = arith.addf %833, %834 : vector<8x128xf32>
    %c32_i32_264 = arith.constant 32 : i32
    %836 = arith.muli %arg0, %c32_i32_264 : i32
    %c21_i32 = arith.constant 21 : i32
    %837 = arith.addi %836, %c21_i32 : i32
    %c2_i32_265 = arith.constant 2 : i32
    %838 = arith.cmpi slt, %837, %c2_i32_265 : i32
    %839 = arith.select %838, %835, %801 : vector<8x128xf32>
    %c0_266 = arith.constant 0 : index
    %c22 = arith.constant 22 : index
    %c0_267 = arith.constant 0 : index
    %840 = vector.load %arg1[%c0_266, %c22, %c0_267] : memref<8x32x384xbf16, #tpu.memory_space<vmem>>, vector<8x1x384xbf16>
    %841 = vector.shape_cast %840 : vector<8x1x384xbf16> to vector<8x384xbf16>
    %842 = arith.extf %841 : vector<8x384xbf16> to vector<8x384xf32>
    %c0_268 = arith.constant 0 : index
    %c0_269 = arith.constant 0 : index
    %843 = vector.load %arg2[%c0_268, %c0_269] : memref<128x384xf32, #tpu.memory_space<vmem>>, vector<128x384xf32>
    %cst_270 = arith.constant dense<0.000000e+00> : vector<8x384xf32>
    %844 = tpu.matmul %839, %843, %cst_270 {dimension_numbers = #tpu.dot_dimension_numbers<[1], [0], [0], [1], [0, 0, 1, 1], [], []>} : vector<8x128xf32>, vector<128x384xf32>, vector<8x384xf32> -> vector<8x384xf32>
    %c0_271 = arith.constant 0 : index
    %c0_272 = arith.constant 0 : index
    %845 = vector.load %arg3[%c0_271, %c0_272] : memref<1x384xf32, #tpu.memory_space<vmem>>, vector<1x384xf32>
    %846 = vector.broadcast %845 : vector<1x384xf32> to vector<8x384xf32>
    %847 = arith.addf %844, %846 : vector<8x384xf32>
    %848 = vector.extract_strided_slice %842 {offsets = [0, 0], sizes = [8, 128], strides = [1, 1]} : vector<8x384xf32> to vector<8x128xf32>
    %849 = vector.extract_strided_slice %847 {offsets = [0, 0], sizes = [8, 128], strides = [1, 1]} : vector<8x384xf32> to vector<8x128xf32>
    %850 = arith.addf %848, %849 : vector<8x128xf32>
    %851 = arith.negf %850 : vector<8x128xf32>
    %852 = math.exp %851 : vector<8x128xf32>
    %cst_273 = arith.constant 1.000000e+00 : f32
    %853 = vector.broadcast %cst_273 : f32 to vector<8x128xf32>
    %854 = arith.addf %853, %852 : vector<8x128xf32>
    %855 = arith.divf %853, %854 : vector<8x128xf32>
    %856 = vector.extract_strided_slice %842 {offsets = [0, 128], sizes = [8, 128], strides = [1, 1]} : vector<8x384xf32> to vector<8x128xf32>
    %857 = vector.extract_strided_slice %847 {offsets = [0, 128], sizes = [8, 128], strides = [1, 1]} : vector<8x384xf32> to vector<8x128xf32>
    %858 = arith.addf %856, %857 : vector<8x128xf32>
    %859 = arith.negf %858 : vector<8x128xf32>
    %860 = math.exp %859 : vector<8x128xf32>
    %cst_274 = arith.constant 1.000000e+00 : f32
    %861 = vector.broadcast %cst_274 : f32 to vector<8x128xf32>
    %862 = arith.addf %861, %860 : vector<8x128xf32>
    %863 = arith.divf %861, %862 : vector<8x128xf32>
    %864 = vector.extract_strided_slice %842 {offsets = [0, 256], sizes = [8, 128], strides = [1, 1]} : vector<8x384xf32> to vector<8x128xf32>
    %865 = vector.extract_strided_slice %847 {offsets = [0, 256], sizes = [8, 128], strides = [1, 1]} : vector<8x384xf32> to vector<8x128xf32>
    %866 = arith.mulf %855, %865 : vector<8x128xf32>
    %867 = arith.addf %864, %866 : vector<8x128xf32>
    %868 = math.tanh %867 : vector<8x128xf32>
    %cst_275 = arith.constant 1.000000e+00 : f32
    %869 = vector.broadcast %cst_275 : f32 to vector<8x128xf32>
    %870 = arith.subf %869, %863 : vector<8x128xf32>
    %871 = arith.mulf %870, %868 : vector<8x128xf32>
    %872 = arith.mulf %863, %839 : vector<8x128xf32>
    %873 = arith.addf %871, %872 : vector<8x128xf32>
    %c32_i32_276 = arith.constant 32 : i32
    %874 = arith.muli %arg0, %c32_i32_276 : i32
    %c22_i32 = arith.constant 22 : i32
    %875 = arith.addi %874, %c22_i32 : i32
    %c2_i32_277 = arith.constant 2 : i32
    %876 = arith.cmpi slt, %875, %c2_i32_277 : i32
    %877 = arith.select %876, %873, %839 : vector<8x128xf32>
    %c0_278 = arith.constant 0 : index
    %c23 = arith.constant 23 : index
    %c0_279 = arith.constant 0 : index
    %878 = vector.load %arg1[%c0_278, %c23, %c0_279] : memref<8x32x384xbf16, #tpu.memory_space<vmem>>, vector<8x1x384xbf16>
    %879 = vector.shape_cast %878 : vector<8x1x384xbf16> to vector<8x384xbf16>
    %880 = arith.extf %879 : vector<8x384xbf16> to vector<8x384xf32>
    %c0_280 = arith.constant 0 : index
    %c0_281 = arith.constant 0 : index
    %881 = vector.load %arg2[%c0_280, %c0_281] : memref<128x384xf32, #tpu.memory_space<vmem>>, vector<128x384xf32>
    %cst_282 = arith.constant dense<0.000000e+00> : vector<8x384xf32>
    %882 = tpu.matmul %877, %881, %cst_282 {dimension_numbers = #tpu.dot_dimension_numbers<[1], [0], [0], [1], [0, 0, 1, 1], [], []>} : vector<8x128xf32>, vector<128x384xf32>, vector<8x384xf32> -> vector<8x384xf32>
    %c0_283 = arith.constant 0 : index
    %c0_284 = arith.constant 0 : index
    %883 = vector.load %arg3[%c0_283, %c0_284] : memref<1x384xf32, #tpu.memory_space<vmem>>, vector<1x384xf32>
    %884 = vector.broadcast %883 : vector<1x384xf32> to vector<8x384xf32>
    %885 = arith.addf %882, %884 : vector<8x384xf32>
    %886 = vector.extract_strided_slice %880 {offsets = [0, 0], sizes = [8, 128], strides = [1, 1]} : vector<8x384xf32> to vector<8x128xf32>
    %887 = vector.extract_strided_slice %885 {offsets = [0, 0], sizes = [8, 128], strides = [1, 1]} : vector<8x384xf32> to vector<8x128xf32>
    %888 = arith.addf %886, %887 : vector<8x128xf32>
    %889 = arith.negf %888 : vector<8x128xf32>
    %890 = math.exp %889 : vector<8x128xf32>
    %cst_285 = arith.constant 1.000000e+00 : f32
    %891 = vector.broadcast %cst_285 : f32 to vector<8x128xf32>
    %892 = arith.addf %891, %890 : vector<8x128xf32>
    %893 = arith.divf %891, %892 : vector<8x128xf32>
    %894 = vector.extract_strided_slice %880 {offsets = [0, 128], sizes = [8, 128], strides = [1, 1]} : vector<8x384xf32> to vector<8x128xf32>
    %895 = vector.extract_strided_slice %885 {offsets = [0, 128], sizes = [8, 128], strides = [1, 1]} : vector<8x384xf32> to vector<8x128xf32>
    %896 = arith.addf %894, %895 : vector<8x128xf32>
    %897 = arith.negf %896 : vector<8x128xf32>
    %898 = math.exp %897 : vector<8x128xf32>
    %cst_286 = arith.constant 1.000000e+00 : f32
    %899 = vector.broadcast %cst_286 : f32 to vector<8x128xf32>
    %900 = arith.addf %899, %898 : vector<8x128xf32>
    %901 = arith.divf %899, %900 : vector<8x128xf32>
    %902 = vector.extract_strided_slice %880 {offsets = [0, 256], sizes = [8, 128], strides = [1, 1]} : vector<8x384xf32> to vector<8x128xf32>
    %903 = vector.extract_strided_slice %885 {offsets = [0, 256], sizes = [8, 128], strides = [1, 1]} : vector<8x384xf32> to vector<8x128xf32>
    %904 = arith.mulf %893, %903 : vector<8x128xf32>
    %905 = arith.addf %902, %904 : vector<8x128xf32>
    %906 = math.tanh %905 : vector<8x128xf32>
    %cst_287 = arith.constant 1.000000e+00 : f32
    %907 = vector.broadcast %cst_287 : f32 to vector<8x128xf32>
    %908 = arith.subf %907, %901 : vector<8x128xf32>
    %909 = arith.mulf %908, %906 : vector<8x128xf32>
    %910 = arith.mulf %901, %877 : vector<8x128xf32>
    %911 = arith.addf %909, %910 : vector<8x128xf32>
    %c32_i32_288 = arith.constant 32 : i32
    %912 = arith.muli %arg0, %c32_i32_288 : i32
    %c23_i32 = arith.constant 23 : i32
    %913 = arith.addi %912, %c23_i32 : i32
    %c2_i32_289 = arith.constant 2 : i32
    %914 = arith.cmpi slt, %913, %c2_i32_289 : i32
    %915 = arith.select %914, %911, %877 : vector<8x128xf32>
    %c0_290 = arith.constant 0 : index
    %c24 = arith.constant 24 : index
    %c0_291 = arith.constant 0 : index
    %916 = vector.load %arg1[%c0_290, %c24, %c0_291] : memref<8x32x384xbf16, #tpu.memory_space<vmem>>, vector<8x1x384xbf16>
    %917 = vector.shape_cast %916 : vector<8x1x384xbf16> to vector<8x384xbf16>
    %918 = arith.extf %917 : vector<8x384xbf16> to vector<8x384xf32>
    %c0_292 = arith.constant 0 : index
    %c0_293 = arith.constant 0 : index
    %919 = vector.load %arg2[%c0_292, %c0_293] : memref<128x384xf32, #tpu.memory_space<vmem>>, vector<128x384xf32>
    %cst_294 = arith.constant dense<0.000000e+00> : vector<8x384xf32>
    %920 = tpu.matmul %915, %919, %cst_294 {dimension_numbers = #tpu.dot_dimension_numbers<[1], [0], [0], [1], [0, 0, 1, 1], [], []>} : vector<8x128xf32>, vector<128x384xf32>, vector<8x384xf32> -> vector<8x384xf32>
    %c0_295 = arith.constant 0 : index
    %c0_296 = arith.constant 0 : index
    %921 = vector.load %arg3[%c0_295, %c0_296] : memref<1x384xf32, #tpu.memory_space<vmem>>, vector<1x384xf32>
    %922 = vector.broadcast %921 : vector<1x384xf32> to vector<8x384xf32>
    %923 = arith.addf %920, %922 : vector<8x384xf32>
    %924 = vector.extract_strided_slice %918 {offsets = [0, 0], sizes = [8, 128], strides = [1, 1]} : vector<8x384xf32> to vector<8x128xf32>
    %925 = vector.extract_strided_slice %923 {offsets = [0, 0], sizes = [8, 128], strides = [1, 1]} : vector<8x384xf32> to vector<8x128xf32>
    %926 = arith.addf %924, %925 : vector<8x128xf32>
    %927 = arith.negf %926 : vector<8x128xf32>
    %928 = math.exp %927 : vector<8x128xf32>
    %cst_297 = arith.constant 1.000000e+00 : f32
    %929 = vector.broadcast %cst_297 : f32 to vector<8x128xf32>
    %930 = arith.addf %929, %928 : vector<8x128xf32>
    %931 = arith.divf %929, %930 : vector<8x128xf32>
    %932 = vector.extract_strided_slice %918 {offsets = [0, 128], sizes = [8, 128], strides = [1, 1]} : vector<8x384xf32> to vector<8x128xf32>
    %933 = vector.extract_strided_slice %923 {offsets = [0, 128], sizes = [8, 128], strides = [1, 1]} : vector<8x384xf32> to vector<8x128xf32>
    %934 = arith.addf %932, %933 : vector<8x128xf32>
    %935 = arith.negf %934 : vector<8x128xf32>
    %936 = math.exp %935 : vector<8x128xf32>
    %cst_298 = arith.constant 1.000000e+00 : f32
    %937 = vector.broadcast %cst_298 : f32 to vector<8x128xf32>
    %938 = arith.addf %937, %936 : vector<8x128xf32>
    %939 = arith.divf %937, %938 : vector<8x128xf32>
    %940 = vector.extract_strided_slice %918 {offsets = [0, 256], sizes = [8, 128], strides = [1, 1]} : vector<8x384xf32> to vector<8x128xf32>
    %941 = vector.extract_strided_slice %923 {offsets = [0, 256], sizes = [8, 128], strides = [1, 1]} : vector<8x384xf32> to vector<8x128xf32>
    %942 = arith.mulf %931, %941 : vector<8x128xf32>
    %943 = arith.addf %940, %942 : vector<8x128xf32>
    %944 = math.tanh %943 : vector<8x128xf32>
    %cst_299 = arith.constant 1.000000e+00 : f32
    %945 = vector.broadcast %cst_299 : f32 to vector<8x128xf32>
    %946 = arith.subf %945, %939 : vector<8x128xf32>
    %947 = arith.mulf %946, %944 : vector<8x128xf32>
    %948 = arith.mulf %939, %915 : vector<8x128xf32>
    %949 = arith.addf %947, %948 : vector<8x128xf32>
    %c32_i32_300 = arith.constant 32 : i32
    %950 = arith.muli %arg0, %c32_i32_300 : i32
    %c24_i32 = arith.constant 24 : i32
    %951 = arith.addi %950, %c24_i32 : i32
    %c2_i32_301 = arith.constant 2 : i32
    %952 = arith.cmpi slt, %951, %c2_i32_301 : i32
    %953 = arith.select %952, %949, %915 : vector<8x128xf32>
    %c0_302 = arith.constant 0 : index
    %c25 = arith.constant 25 : index
    %c0_303 = arith.constant 0 : index
    %954 = vector.load %arg1[%c0_302, %c25, %c0_303] : memref<8x32x384xbf16, #tpu.memory_space<vmem>>, vector<8x1x384xbf16>
    %955 = vector.shape_cast %954 : vector<8x1x384xbf16> to vector<8x384xbf16>
    %956 = arith.extf %955 : vector<8x384xbf16> to vector<8x384xf32>
    %c0_304 = arith.constant 0 : index
    %c0_305 = arith.constant 0 : index
    %957 = vector.load %arg2[%c0_304, %c0_305] : memref<128x384xf32, #tpu.memory_space<vmem>>, vector<128x384xf32>
    %cst_306 = arith.constant dense<0.000000e+00> : vector<8x384xf32>
    %958 = tpu.matmul %953, %957, %cst_306 {dimension_numbers = #tpu.dot_dimension_numbers<[1], [0], [0], [1], [0, 0, 1, 1], [], []>} : vector<8x128xf32>, vector<128x384xf32>, vector<8x384xf32> -> vector<8x384xf32>
    %c0_307 = arith.constant 0 : index
    %c0_308 = arith.constant 0 : index
    %959 = vector.load %arg3[%c0_307, %c0_308] : memref<1x384xf32, #tpu.memory_space<vmem>>, vector<1x384xf32>
    %960 = vector.broadcast %959 : vector<1x384xf32> to vector<8x384xf32>
    %961 = arith.addf %958, %960 : vector<8x384xf32>
    %962 = vector.extract_strided_slice %956 {offsets = [0, 0], sizes = [8, 128], strides = [1, 1]} : vector<8x384xf32> to vector<8x128xf32>
    %963 = vector.extract_strided_slice %961 {offsets = [0, 0], sizes = [8, 128], strides = [1, 1]} : vector<8x384xf32> to vector<8x128xf32>
    %964 = arith.addf %962, %963 : vector<8x128xf32>
    %965 = arith.negf %964 : vector<8x128xf32>
    %966 = math.exp %965 : vector<8x128xf32>
    %cst_309 = arith.constant 1.000000e+00 : f32
    %967 = vector.broadcast %cst_309 : f32 to vector<8x128xf32>
    %968 = arith.addf %967, %966 : vector<8x128xf32>
    %969 = arith.divf %967, %968 : vector<8x128xf32>
    %970 = vector.extract_strided_slice %956 {offsets = [0, 128], sizes = [8, 128], strides = [1, 1]} : vector<8x384xf32> to vector<8x128xf32>
    %971 = vector.extract_strided_slice %961 {offsets = [0, 128], sizes = [8, 128], strides = [1, 1]} : vector<8x384xf32> to vector<8x128xf32>
    %972 = arith.addf %970, %971 : vector<8x128xf32>
    %973 = arith.negf %972 : vector<8x128xf32>
    %974 = math.exp %973 : vector<8x128xf32>
    %cst_310 = arith.constant 1.000000e+00 : f32
    %975 = vector.broadcast %cst_310 : f32 to vector<8x128xf32>
    %976 = arith.addf %975, %974 : vector<8x128xf32>
    %977 = arith.divf %975, %976 : vector<8x128xf32>
    %978 = vector.extract_strided_slice %956 {offsets = [0, 256], sizes = [8, 128], strides = [1, 1]} : vector<8x384xf32> to vector<8x128xf32>
    %979 = vector.extract_strided_slice %961 {offsets = [0, 256], sizes = [8, 128], strides = [1, 1]} : vector<8x384xf32> to vector<8x128xf32>
    %980 = arith.mulf %969, %979 : vector<8x128xf32>
    %981 = arith.addf %978, %980 : vector<8x128xf32>
    %982 = math.tanh %981 : vector<8x128xf32>
    %cst_311 = arith.constant 1.000000e+00 : f32
    %983 = vector.broadcast %cst_311 : f32 to vector<8x128xf32>
    %984 = arith.subf %983, %977 : vector<8x128xf32>
    %985 = arith.mulf %984, %982 : vector<8x128xf32>
    %986 = arith.mulf %977, %953 : vector<8x128xf32>
    %987 = arith.addf %985, %986 : vector<8x128xf32>
    %c32_i32_312 = arith.constant 32 : i32
    %988 = arith.muli %arg0, %c32_i32_312 : i32
    %c25_i32 = arith.constant 25 : i32
    %989 = arith.addi %988, %c25_i32 : i32
    %c2_i32_313 = arith.constant 2 : i32
    %990 = arith.cmpi slt, %989, %c2_i32_313 : i32
    %991 = arith.select %990, %987, %953 : vector<8x128xf32>
    %c0_314 = arith.constant 0 : index
    %c26 = arith.constant 26 : index
    %c0_315 = arith.constant 0 : index
    %992 = vector.load %arg1[%c0_314, %c26, %c0_315] : memref<8x32x384xbf16, #tpu.memory_space<vmem>>, vector<8x1x384xbf16>
    %993 = vector.shape_cast %992 : vector<8x1x384xbf16> to vector<8x384xbf16>
    %994 = arith.extf %993 : vector<8x384xbf16> to vector<8x384xf32>
    %c0_316 = arith.constant 0 : index
    %c0_317 = arith.constant 0 : index
    %995 = vector.load %arg2[%c0_316, %c0_317] : memref<128x384xf32, #tpu.memory_space<vmem>>, vector<128x384xf32>
    %cst_318 = arith.constant dense<0.000000e+00> : vector<8x384xf32>
    %996 = tpu.matmul %991, %995, %cst_318 {dimension_numbers = #tpu.dot_dimension_numbers<[1], [0], [0], [1], [0, 0, 1, 1], [], []>} : vector<8x128xf32>, vector<128x384xf32>, vector<8x384xf32> -> vector<8x384xf32>
    %c0_319 = arith.constant 0 : index
    %c0_320 = arith.constant 0 : index
    %997 = vector.load %arg3[%c0_319, %c0_320] : memref<1x384xf32, #tpu.memory_space<vmem>>, vector<1x384xf32>
    %998 = vector.broadcast %997 : vector<1x384xf32> to vector<8x384xf32>
    %999 = arith.addf %996, %998 : vector<8x384xf32>
    %1000 = vector.extract_strided_slice %994 {offsets = [0, 0], sizes = [8, 128], strides = [1, 1]} : vector<8x384xf32> to vector<8x128xf32>
    %1001 = vector.extract_strided_slice %999 {offsets = [0, 0], sizes = [8, 128], strides = [1, 1]} : vector<8x384xf32> to vector<8x128xf32>
    %1002 = arith.addf %1000, %1001 : vector<8x128xf32>
    %1003 = arith.negf %1002 : vector<8x128xf32>
    %1004 = math.exp %1003 : vector<8x128xf32>
    %cst_321 = arith.constant 1.000000e+00 : f32
    %1005 = vector.broadcast %cst_321 : f32 to vector<8x128xf32>
    %1006 = arith.addf %1005, %1004 : vector<8x128xf32>
    %1007 = arith.divf %1005, %1006 : vector<8x128xf32>
    %1008 = vector.extract_strided_slice %994 {offsets = [0, 128], sizes = [8, 128], strides = [1, 1]} : vector<8x384xf32> to vector<8x128xf32>
    %1009 = vector.extract_strided_slice %999 {offsets = [0, 128], sizes = [8, 128], strides = [1, 1]} : vector<8x384xf32> to vector<8x128xf32>
    %1010 = arith.addf %1008, %1009 : vector<8x128xf32>
    %1011 = arith.negf %1010 : vector<8x128xf32>
    %1012 = math.exp %1011 : vector<8x128xf32>
    %cst_322 = arith.constant 1.000000e+00 : f32
    %1013 = vector.broadcast %cst_322 : f32 to vector<8x128xf32>
    %1014 = arith.addf %1013, %1012 : vector<8x128xf32>
    %1015 = arith.divf %1013, %1014 : vector<8x128xf32>
    %1016 = vector.extract_strided_slice %994 {offsets = [0, 256], sizes = [8, 128], strides = [1, 1]} : vector<8x384xf32> to vector<8x128xf32>
    %1017 = vector.extract_strided_slice %999 {offsets = [0, 256], sizes = [8, 128], strides = [1, 1]} : vector<8x384xf32> to vector<8x128xf32>
    %1018 = arith.mulf %1007, %1017 : vector<8x128xf32>
    %1019 = arith.addf %1016, %1018 : vector<8x128xf32>
    %1020 = math.tanh %1019 : vector<8x128xf32>
    %cst_323 = arith.constant 1.000000e+00 : f32
    %1021 = vector.broadcast %cst_323 : f32 to vector<8x128xf32>
    %1022 = arith.subf %1021, %1015 : vector<8x128xf32>
    %1023 = arith.mulf %1022, %1020 : vector<8x128xf32>
    %1024 = arith.mulf %1015, %991 : vector<8x128xf32>
    %1025 = arith.addf %1023, %1024 : vector<8x128xf32>
    %c32_i32_324 = arith.constant 32 : i32
    %1026 = arith.muli %arg0, %c32_i32_324 : i32
    %c26_i32 = arith.constant 26 : i32
    %1027 = arith.addi %1026, %c26_i32 : i32
    %c2_i32_325 = arith.constant 2 : i32
    %1028 = arith.cmpi slt, %1027, %c2_i32_325 : i32
    %1029 = arith.select %1028, %1025, %991 : vector<8x128xf32>
    %c0_326 = arith.constant 0 : index
    %c27 = arith.constant 27 : index
    %c0_327 = arith.constant 0 : index
    %1030 = vector.load %arg1[%c0_326, %c27, %c0_327] : memref<8x32x384xbf16, #tpu.memory_space<vmem>>, vector<8x1x384xbf16>
    %1031 = vector.shape_cast %1030 : vector<8x1x384xbf16> to vector<8x384xbf16>
    %1032 = arith.extf %1031 : vector<8x384xbf16> to vector<8x384xf32>
    %c0_328 = arith.constant 0 : index
    %c0_329 = arith.constant 0 : index
    %1033 = vector.load %arg2[%c0_328, %c0_329] : memref<128x384xf32, #tpu.memory_space<vmem>>, vector<128x384xf32>
    %cst_330 = arith.constant dense<0.000000e+00> : vector<8x384xf32>
    %1034 = tpu.matmul %1029, %1033, %cst_330 {dimension_numbers = #tpu.dot_dimension_numbers<[1], [0], [0], [1], [0, 0, 1, 1], [], []>} : vector<8x128xf32>, vector<128x384xf32>, vector<8x384xf32> -> vector<8x384xf32>
    %c0_331 = arith.constant 0 : index
    %c0_332 = arith.constant 0 : index
    %1035 = vector.load %arg3[%c0_331, %c0_332] : memref<1x384xf32, #tpu.memory_space<vmem>>, vector<1x384xf32>
    %1036 = vector.broadcast %1035 : vector<1x384xf32> to vector<8x384xf32>
    %1037 = arith.addf %1034, %1036 : vector<8x384xf32>
    %1038 = vector.extract_strided_slice %1032 {offsets = [0, 0], sizes = [8, 128], strides = [1, 1]} : vector<8x384xf32> to vector<8x128xf32>
    %1039 = vector.extract_strided_slice %1037 {offsets = [0, 0], sizes = [8, 128], strides = [1, 1]} : vector<8x384xf32> to vector<8x128xf32>
    %1040 = arith.addf %1038, %1039 : vector<8x128xf32>
    %1041 = arith.negf %1040 : vector<8x128xf32>
    %1042 = math.exp %1041 : vector<8x128xf32>
    %cst_333 = arith.constant 1.000000e+00 : f32
    %1043 = vector.broadcast %cst_333 : f32 to vector<8x128xf32>
    %1044 = arith.addf %1043, %1042 : vector<8x128xf32>
    %1045 = arith.divf %1043, %1044 : vector<8x128xf32>
    %1046 = vector.extract_strided_slice %1032 {offsets = [0, 128], sizes = [8, 128], strides = [1, 1]} : vector<8x384xf32> to vector<8x128xf32>
    %1047 = vector.extract_strided_slice %1037 {offsets = [0, 128], sizes = [8, 128], strides = [1, 1]} : vector<8x384xf32> to vector<8x128xf32>
    %1048 = arith.addf %1046, %1047 : vector<8x128xf32>
    %1049 = arith.negf %1048 : vector<8x128xf32>
    %1050 = math.exp %1049 : vector<8x128xf32>
    %cst_334 = arith.constant 1.000000e+00 : f32
    %1051 = vector.broadcast %cst_334 : f32 to vector<8x128xf32>
    %1052 = arith.addf %1051, %1050 : vector<8x128xf32>
    %1053 = arith.divf %1051, %1052 : vector<8x128xf32>
    %1054 = vector.extract_strided_slice %1032 {offsets = [0, 256], sizes = [8, 128], strides = [1, 1]} : vector<8x384xf32> to vector<8x128xf32>
    %1055 = vector.extract_strided_slice %1037 {offsets = [0, 256], sizes = [8, 128], strides = [1, 1]} : vector<8x384xf32> to vector<8x128xf32>
    %1056 = arith.mulf %1045, %1055 : vector<8x128xf32>
    %1057 = arith.addf %1054, %1056 : vector<8x128xf32>
    %1058 = math.tanh %1057 : vector<8x128xf32>
    %cst_335 = arith.constant 1.000000e+00 : f32
    %1059 = vector.broadcast %cst_335 : f32 to vector<8x128xf32>
    %1060 = arith.subf %1059, %1053 : vector<8x128xf32>
    %1061 = arith.mulf %1060, %1058 : vector<8x128xf32>
    %1062 = arith.mulf %1053, %1029 : vector<8x128xf32>
    %1063 = arith.addf %1061, %1062 : vector<8x128xf32>
    %c32_i32_336 = arith.constant 32 : i32
    %1064 = arith.muli %arg0, %c32_i32_336 : i32
    %c27_i32 = arith.constant 27 : i32
    %1065 = arith.addi %1064, %c27_i32 : i32
    %c2_i32_337 = arith.constant 2 : i32
    %1066 = arith.cmpi slt, %1065, %c2_i32_337 : i32
    %1067 = arith.select %1066, %1063, %1029 : vector<8x128xf32>
    %c0_338 = arith.constant 0 : index
    %c28 = arith.constant 28 : index
    %c0_339 = arith.constant 0 : index
    %1068 = vector.load %arg1[%c0_338, %c28, %c0_339] : memref<8x32x384xbf16, #tpu.memory_space<vmem>>, vector<8x1x384xbf16>
    %1069 = vector.shape_cast %1068 : vector<8x1x384xbf16> to vector<8x384xbf16>
    %1070 = arith.extf %1069 : vector<8x384xbf16> to vector<8x384xf32>
    %c0_340 = arith.constant 0 : index
    %c0_341 = arith.constant 0 : index
    %1071 = vector.load %arg2[%c0_340, %c0_341] : memref<128x384xf32, #tpu.memory_space<vmem>>, vector<128x384xf32>
    %cst_342 = arith.constant dense<0.000000e+00> : vector<8x384xf32>
    %1072 = tpu.matmul %1067, %1071, %cst_342 {dimension_numbers = #tpu.dot_dimension_numbers<[1], [0], [0], [1], [0, 0, 1, 1], [], []>} : vector<8x128xf32>, vector<128x384xf32>, vector<8x384xf32> -> vector<8x384xf32>
    %c0_343 = arith.constant 0 : index
    %c0_344 = arith.constant 0 : index
    %1073 = vector.load %arg3[%c0_343, %c0_344] : memref<1x384xf32, #tpu.memory_space<vmem>>, vector<1x384xf32>
    %1074 = vector.broadcast %1073 : vector<1x384xf32> to vector<8x384xf32>
    %1075 = arith.addf %1072, %1074 : vector<8x384xf32>
    %1076 = vector.extract_strided_slice %1070 {offsets = [0, 0], sizes = [8, 128], strides = [1, 1]} : vector<8x384xf32> to vector<8x128xf32>
    %1077 = vector.extract_strided_slice %1075 {offsets = [0, 0], sizes = [8, 128], strides = [1, 1]} : vector<8x384xf32> to vector<8x128xf32>
    %1078 = arith.addf %1076, %1077 : vector<8x128xf32>
    %1079 = arith.negf %1078 : vector<8x128xf32>
    %1080 = math.exp %1079 : vector<8x128xf32>
    %cst_345 = arith.constant 1.000000e+00 : f32
    %1081 = vector.broadcast %cst_345 : f32 to vector<8x128xf32>
    %1082 = arith.addf %1081, %1080 : vector<8x128xf32>
    %1083 = arith.divf %1081, %1082 : vector<8x128xf32>
    %1084 = vector.extract_strided_slice %1070 {offsets = [0, 128], sizes = [8, 128], strides = [1, 1]} : vector<8x384xf32> to vector<8x128xf32>
    %1085 = vector.extract_strided_slice %1075 {offsets = [0, 128], sizes = [8, 128], strides = [1, 1]} : vector<8x384xf32> to vector<8x128xf32>
    %1086 = arith.addf %1084, %1085 : vector<8x128xf32>
    %1087 = arith.negf %1086 : vector<8x128xf32>
    %1088 = math.exp %1087 : vector<8x128xf32>
    %cst_346 = arith.constant 1.000000e+00 : f32
    %1089 = vector.broadcast %cst_346 : f32 to vector<8x128xf32>
    %1090 = arith.addf %1089, %1088 : vector<8x128xf32>
    %1091 = arith.divf %1089, %1090 : vector<8x128xf32>
    %1092 = vector.extract_strided_slice %1070 {offsets = [0, 256], sizes = [8, 128], strides = [1, 1]} : vector<8x384xf32> to vector<8x128xf32>
    %1093 = vector.extract_strided_slice %1075 {offsets = [0, 256], sizes = [8, 128], strides = [1, 1]} : vector<8x384xf32> to vector<8x128xf32>
    %1094 = arith.mulf %1083, %1093 : vector<8x128xf32>
    %1095 = arith.addf %1092, %1094 : vector<8x128xf32>
    %1096 = math.tanh %1095 : vector<8x128xf32>
    %cst_347 = arith.constant 1.000000e+00 : f32
    %1097 = vector.broadcast %cst_347 : f32 to vector<8x128xf32>
    %1098 = arith.subf %1097, %1091 : vector<8x128xf32>
    %1099 = arith.mulf %1098, %1096 : vector<8x128xf32>
    %1100 = arith.mulf %1091, %1067 : vector<8x128xf32>
    %1101 = arith.addf %1099, %1100 : vector<8x128xf32>
    %c32_i32_348 = arith.constant 32 : i32
    %1102 = arith.muli %arg0, %c32_i32_348 : i32
    %c28_i32 = arith.constant 28 : i32
    %1103 = arith.addi %1102, %c28_i32 : i32
    %c2_i32_349 = arith.constant 2 : i32
    %1104 = arith.cmpi slt, %1103, %c2_i32_349 : i32
    %1105 = arith.select %1104, %1101, %1067 : vector<8x128xf32>
    %c0_350 = arith.constant 0 : index
    %c29 = arith.constant 29 : index
    %c0_351 = arith.constant 0 : index
    %1106 = vector.load %arg1[%c0_350, %c29, %c0_351] : memref<8x32x384xbf16, #tpu.memory_space<vmem>>, vector<8x1x384xbf16>
    %1107 = vector.shape_cast %1106 : vector<8x1x384xbf16> to vector<8x384xbf16>
    %1108 = arith.extf %1107 : vector<8x384xbf16> to vector<8x384xf32>
    %c0_352 = arith.constant 0 : index
    %c0_353 = arith.constant 0 : index
    %1109 = vector.load %arg2[%c0_352, %c0_353] : memref<128x384xf32, #tpu.memory_space<vmem>>, vector<128x384xf32>
    %cst_354 = arith.constant dense<0.000000e+00> : vector<8x384xf32>
    %1110 = tpu.matmul %1105, %1109, %cst_354 {dimension_numbers = #tpu.dot_dimension_numbers<[1], [0], [0], [1], [0, 0, 1, 1], [], []>} : vector<8x128xf32>, vector<128x384xf32>, vector<8x384xf32> -> vector<8x384xf32>
    %c0_355 = arith.constant 0 : index
    %c0_356 = arith.constant 0 : index
    %1111 = vector.load %arg3[%c0_355, %c0_356] : memref<1x384xf32, #tpu.memory_space<vmem>>, vector<1x384xf32>
    %1112 = vector.broadcast %1111 : vector<1x384xf32> to vector<8x384xf32>
    %1113 = arith.addf %1110, %1112 : vector<8x384xf32>
    %1114 = vector.extract_strided_slice %1108 {offsets = [0, 0], sizes = [8, 128], strides = [1, 1]} : vector<8x384xf32> to vector<8x128xf32>
    %1115 = vector.extract_strided_slice %1113 {offsets = [0, 0], sizes = [8, 128], strides = [1, 1]} : vector<8x384xf32> to vector<8x128xf32>
    %1116 = arith.addf %1114, %1115 : vector<8x128xf32>
    %1117 = arith.negf %1116 : vector<8x128xf32>
    %1118 = math.exp %1117 : vector<8x128xf32>
    %cst_357 = arith.constant 1.000000e+00 : f32
    %1119 = vector.broadcast %cst_357 : f32 to vector<8x128xf32>
    %1120 = arith.addf %1119, %1118 : vector<8x128xf32>
    %1121 = arith.divf %1119, %1120 : vector<8x128xf32>
    %1122 = vector.extract_strided_slice %1108 {offsets = [0, 128], sizes = [8, 128], strides = [1, 1]} : vector<8x384xf32> to vector<8x128xf32>
    %1123 = vector.extract_strided_slice %1113 {offsets = [0, 128], sizes = [8, 128], strides = [1, 1]} : vector<8x384xf32> to vector<8x128xf32>
    %1124 = arith.addf %1122, %1123 : vector<8x128xf32>
    %1125 = arith.negf %1124 : vector<8x128xf32>
    %1126 = math.exp %1125 : vector<8x128xf32>
    %cst_358 = arith.constant 1.000000e+00 : f32
    %1127 = vector.broadcast %cst_358 : f32 to vector<8x128xf32>
    %1128 = arith.addf %1127, %1126 : vector<8x128xf32>
    %1129 = arith.divf %1127, %1128 : vector<8x128xf32>
    %1130 = vector.extract_strided_slice %1108 {offsets = [0, 256], sizes = [8, 128], strides = [1, 1]} : vector<8x384xf32> to vector<8x128xf32>
    %1131 = vector.extract_strided_slice %1113 {offsets = [0, 256], sizes = [8, 128], strides = [1, 1]} : vector<8x384xf32> to vector<8x128xf32>
    %1132 = arith.mulf %1121, %1131 : vector<8x128xf32>
    %1133 = arith.addf %1130, %1132 : vector<8x128xf32>
    %1134 = math.tanh %1133 : vector<8x128xf32>
    %cst_359 = arith.constant 1.000000e+00 : f32
    %1135 = vector.broadcast %cst_359 : f32 to vector<8x128xf32>
    %1136 = arith.subf %1135, %1129 : vector<8x128xf32>
    %1137 = arith.mulf %1136, %1134 : vector<8x128xf32>
    %1138 = arith.mulf %1129, %1105 : vector<8x128xf32>
    %1139 = arith.addf %1137, %1138 : vector<8x128xf32>
    %c32_i32_360 = arith.constant 32 : i32
    %1140 = arith.muli %arg0, %c32_i32_360 : i32
    %c29_i32 = arith.constant 29 : i32
    %1141 = arith.addi %1140, %c29_i32 : i32
    %c2_i32_361 = arith.constant 2 : i32
    %1142 = arith.cmpi slt, %1141, %c2_i32_361 : i32
    %1143 = arith.select %1142, %1139, %1105 : vector<8x128xf32>
    %c0_362 = arith.constant 0 : index
    %c30 = arith.constant 30 : index
    %c0_363 = arith.constant 0 : index
    %1144 = vector.load %arg1[%c0_362, %c30, %c0_363] : memref<8x32x384xbf16, #tpu.memory_space<vmem>>, vector<8x1x384xbf16>
    %1145 = vector.shape_cast %1144 : vector<8x1x384xbf16> to vector<8x384xbf16>
    %1146 = arith.extf %1145 : vector<8x384xbf16> to vector<8x384xf32>
    %c0_364 = arith.constant 0 : index
    %c0_365 = arith.constant 0 : index
    %1147 = vector.load %arg2[%c0_364, %c0_365] : memref<128x384xf32, #tpu.memory_space<vmem>>, vector<128x384xf32>
    %cst_366 = arith.constant dense<0.000000e+00> : vector<8x384xf32>
    %1148 = tpu.matmul %1143, %1147, %cst_366 {dimension_numbers = #tpu.dot_dimension_numbers<[1], [0], [0], [1], [0, 0, 1, 1], [], []>} : vector<8x128xf32>, vector<128x384xf32>, vector<8x384xf32> -> vector<8x384xf32>
    %c0_367 = arith.constant 0 : index
    %c0_368 = arith.constant 0 : index
    %1149 = vector.load %arg3[%c0_367, %c0_368] : memref<1x384xf32, #tpu.memory_space<vmem>>, vector<1x384xf32>
    %1150 = vector.broadcast %1149 : vector<1x384xf32> to vector<8x384xf32>
    %1151 = arith.addf %1148, %1150 : vector<8x384xf32>
    %1152 = vector.extract_strided_slice %1146 {offsets = [0, 0], sizes = [8, 128], strides = [1, 1]} : vector<8x384xf32> to vector<8x128xf32>
    %1153 = vector.extract_strided_slice %1151 {offsets = [0, 0], sizes = [8, 128], strides = [1, 1]} : vector<8x384xf32> to vector<8x128xf32>
    %1154 = arith.addf %1152, %1153 : vector<8x128xf32>
    %1155 = arith.negf %1154 : vector<8x128xf32>
    %1156 = math.exp %1155 : vector<8x128xf32>
    %cst_369 = arith.constant 1.000000e+00 : f32
    %1157 = vector.broadcast %cst_369 : f32 to vector<8x128xf32>
    %1158 = arith.addf %1157, %1156 : vector<8x128xf32>
    %1159 = arith.divf %1157, %1158 : vector<8x128xf32>
    %1160 = vector.extract_strided_slice %1146 {offsets = [0, 128], sizes = [8, 128], strides = [1, 1]} : vector<8x384xf32> to vector<8x128xf32>
    %1161 = vector.extract_strided_slice %1151 {offsets = [0, 128], sizes = [8, 128], strides = [1, 1]} : vector<8x384xf32> to vector<8x128xf32>
    %1162 = arith.addf %1160, %1161 : vector<8x128xf32>
    %1163 = arith.negf %1162 : vector<8x128xf32>
    %1164 = math.exp %1163 : vector<8x128xf32>
    %cst_370 = arith.constant 1.000000e+00 : f32
    %1165 = vector.broadcast %cst_370 : f32 to vector<8x128xf32>
    %1166 = arith.addf %1165, %1164 : vector<8x128xf32>
    %1167 = arith.divf %1165, %1166 : vector<8x128xf32>
    %1168 = vector.extract_strided_slice %1146 {offsets = [0, 256], sizes = [8, 128], strides = [1, 1]} : vector<8x384xf32> to vector<8x128xf32>
    %1169 = vector.extract_strided_slice %1151 {offsets = [0, 256], sizes = [8, 128], strides = [1, 1]} : vector<8x384xf32> to vector<8x128xf32>
    %1170 = arith.mulf %1159, %1169 : vector<8x128xf32>
    %1171 = arith.addf %1168, %1170 : vector<8x128xf32>
    %1172 = math.tanh %1171 : vector<8x128xf32>
    %cst_371 = arith.constant 1.000000e+00 : f32
    %1173 = vector.broadcast %cst_371 : f32 to vector<8x128xf32>
    %1174 = arith.subf %1173, %1167 : vector<8x128xf32>
    %1175 = arith.mulf %1174, %1172 : vector<8x128xf32>
    %1176 = arith.mulf %1167, %1143 : vector<8x128xf32>
    %1177 = arith.addf %1175, %1176 : vector<8x128xf32>
    %c32_i32_372 = arith.constant 32 : i32
    %1178 = arith.muli %arg0, %c32_i32_372 : i32
    %c30_i32 = arith.constant 30 : i32
    %1179 = arith.addi %1178, %c30_i32 : i32
    %c2_i32_373 = arith.constant 2 : i32
    %1180 = arith.cmpi slt, %1179, %c2_i32_373 : i32
    %1181 = arith.select %1180, %1177, %1143 : vector<8x128xf32>
    %c0_374 = arith.constant 0 : index
    %c31 = arith.constant 31 : index
    %c0_375 = arith.constant 0 : index
    %1182 = vector.load %arg1[%c0_374, %c31, %c0_375] : memref<8x32x384xbf16, #tpu.memory_space<vmem>>, vector<8x1x384xbf16>
    %1183 = vector.shape_cast %1182 : vector<8x1x384xbf16> to vector<8x384xbf16>
    %1184 = arith.extf %1183 : vector<8x384xbf16> to vector<8x384xf32>
    %c0_376 = arith.constant 0 : index
    %c0_377 = arith.constant 0 : index
    %1185 = vector.load %arg2[%c0_376, %c0_377] : memref<128x384xf32, #tpu.memory_space<vmem>>, vector<128x384xf32>
    %cst_378 = arith.constant dense<0.000000e+00> : vector<8x384xf32>
    %1186 = tpu.matmul %1181, %1185, %cst_378 {dimension_numbers = #tpu.dot_dimension_numbers<[1], [0], [0], [1], [0, 0, 1, 1], [], []>} : vector<8x128xf32>, vector<128x384xf32>, vector<8x384xf32> -> vector<8x384xf32>
    %c0_379 = arith.constant 0 : index
    %c0_380 = arith.constant 0 : index
    %1187 = vector.load %arg3[%c0_379, %c0_380] : memref<1x384xf32, #tpu.memory_space<vmem>>, vector<1x384xf32>
    %1188 = vector.broadcast %1187 : vector<1x384xf32> to vector<8x384xf32>
    %1189 = arith.addf %1186, %1188 : vector<8x384xf32>
    %1190 = vector.extract_strided_slice %1184 {offsets = [0, 0], sizes = [8, 128], strides = [1, 1]} : vector<8x384xf32> to vector<8x128xf32>
    %1191 = vector.extract_strided_slice %1189 {offsets = [0, 0], sizes = [8, 128], strides = [1, 1]} : vector<8x384xf32> to vector<8x128xf32>
    %1192 = arith.addf %1190, %1191 : vector<8x128xf32>
    %1193 = arith.negf %1192 : vector<8x128xf32>
    %1194 = math.exp %1193 : vector<8x128xf32>
    %cst_381 = arith.constant 1.000000e+00 : f32
    %1195 = vector.broadcast %cst_381 : f32 to vector<8x128xf32>
    %1196 = arith.addf %1195, %1194 : vector<8x128xf32>
    %1197 = arith.divf %1195, %1196 : vector<8x128xf32>
    %1198 = vector.extract_strided_slice %1184 {offsets = [0, 128], sizes = [8, 128], strides = [1, 1]} : vector<8x384xf32> to vector<8x128xf32>
    %1199 = vector.extract_strided_slice %1189 {offsets = [0, 128], sizes = [8, 128], strides = [1, 1]} : vector<8x384xf32> to vector<8x128xf32>
    %1200 = arith.addf %1198, %1199 : vector<8x128xf32>
    %1201 = arith.negf %1200 : vector<8x128xf32>
    %1202 = math.exp %1201 : vector<8x128xf32>
    %cst_382 = arith.constant 1.000000e+00 : f32
    %1203 = vector.broadcast %cst_382 : f32 to vector<8x128xf32>
    %1204 = arith.addf %1203, %1202 : vector<8x128xf32>
    %1205 = arith.divf %1203, %1204 : vector<8x128xf32>
    %1206 = vector.extract_strided_slice %1184 {offsets = [0, 256], sizes = [8, 128], strides = [1, 1]} : vector<8x384xf32> to vector<8x128xf32>
    %1207 = vector.extract_strided_slice %1189 {offsets = [0, 256], sizes = [8, 128], strides = [1, 1]} : vector<8x384xf32> to vector<8x128xf32>
    %1208 = arith.mulf %1197, %1207 : vector<8x128xf32>
    %1209 = arith.addf %1206, %1208 : vector<8x128xf32>
    %1210 = math.tanh %1209 : vector<8x128xf32>
    %cst_383 = arith.constant 1.000000e+00 : f32
    %1211 = vector.broadcast %cst_383 : f32 to vector<8x128xf32>
    %1212 = arith.subf %1211, %1205 : vector<8x128xf32>
    %1213 = arith.mulf %1212, %1210 : vector<8x128xf32>
    %1214 = arith.mulf %1205, %1181 : vector<8x128xf32>
    %1215 = arith.addf %1213, %1214 : vector<8x128xf32>
    %c32_i32_384 = arith.constant 32 : i32
    %1216 = arith.muli %arg0, %c32_i32_384 : i32
    %c31_i32 = arith.constant 31 : i32
    %1217 = arith.addi %1216, %c31_i32 : i32
    %c2_i32_385 = arith.constant 2 : i32
    %1218 = arith.cmpi slt, %1217, %c2_i32_385 : i32
    %1219 = arith.select %1218, %1215, %1181 : vector<8x128xf32>
    %c0_386 = arith.constant 0 : index
    %c0_387 = arith.constant 0 : index
    %1220 = vector.load %arg4[%c0_386, %c0_387] : memref<8x128xf32, #tpu.memory_space<vmem>>, vector<8x128xf32>
    tpu.vector_store %arg4[%c0_386, %c0_387], %1219 {strides = array<i32>} : memref<8x128xf32, #tpu.memory_space<vmem>>, vector<8x128xf32>,
    return
  }
  func.func @transform_0(%arg0: i32) -> (i32, i32, i32) {
    %c0_i32 = arith.constant 0 : i32
    %c0_i32_0 = arith.constant 0 : i32
    %c0_i32_1 = arith.constant 0 : i32
    return %c0_i32, %arg0, %c0_i32_0 : i32, i32, i32
  }
  func.func @transform_1(%arg0: i32) -> (i32, i32) {
    %c0_i32 = arith.constant 0 : i32
    %c0_i32_0 = arith.constant 0 : i32
    %c0_i32_1 = arith.constant 0 : i32
    return %c0_i32, %c0_i32_0 : i32, i32
  }
  func.func @transform_2(%arg0: i32) -> (i32, i32) {
    %c0_i32 = arith.constant 0 : i32
    %c0_i32_0 = arith.constant 0 : i32
    %c0_i32_1 = arith.constant 0 : i32
    return %c0_i32, %c0_i32_0 : i32, i32
  }
  func.func @transform_3(%arg0: i32) -> (i32, i32) {
    %c0_i32 = arith.constant 0 : i32
    %c0_i32_0 = arith.constant 0 : i32
    %c0_i32_1 = arith.constant 0 : i32
    return %c0_i32, %c0_i32_0 : i32, i32
  }
}

</mosaic_0001>

<bundles_post_ra>
// kernel: reference_encoder_forward.9
= control target key start
LH: loop header
LB: loop body
LE: loop exit
PB: predicated region body
PF: predicated region fallthrough
CT: control target
= control target key end

     0   :  { %vm172_vm0 = vcmask 27648   ;;  %s416_s0 = inlined_call_operand.vmem [shape: bf16[128,4], index: 0, kind: input, shape index: {}]   ;;  %s417_s1 = inlined_call_operand.vmem [shape: f32[1,4], index: 1, kind: input, shape index: {}]   ;;  %s418_s2 = inlined_call_operand.vmem [shape: f32[1,4], index: 2, kind: input, shape index: {}]   ;;  %s419_s3 = inlined_call_operand.vmem [shape: bf16[128,4], index: 3, kind: output, shape index: {}]  }
   0x1   :  { %v228_v0 = vld [vmem:[%s416_s0] sm:$0xff]   ;;  %v259_v4 = vld [vmem:[%s416_s0 + $0x8] sm:$0xff]   ;;  %v260_v5 = vld [vmem:[%s416_s0 + $0x10] sm:$0xff]  }
   0x2   :  { %v292_v1 = vld [vmem:[%s417_s1] ss:$0 sm:$0xff]  ;;  %v229_v2 = vunpack.c.l.bf16 %v228_v0  ;;  %v230_v3 = vunpack.c.h.bf16 %v228_v0  ;;  %v261_v6 = vld [vmem:[%s416_s0 + $0x18] sm:$0xff]   ;;  %v233_v8 = vunpack.c.l.bf16 %v259_v4  ;;  %v234_v9 = vunpack.c.h.bf16 %v259_v4  ;;  %v263_v41 = vld [vmem:[%s416_s0 + $0x28] sm:$0xff]  }
   0x3   :  { %v306_v7 = vld [vmem:[%s418_s2] ss:$0 sm:$0xff]  ;;  %v237_v10 = vunpack.c.l.bf16 %v260_v5  ;;  %v238_v11 = vunpack.c.h.bf16 %v260_v5  ;;  %v241_v14 = vunpack.c.l.bf16 %v261_v6  ;;  %v242_v15 = vunpack.c.h.bf16 %v261_v6  ;;  %v264_v42 = vld [vmem:[%s416_s0 + $0x30] sm:$0xff]   ;;  %v265_v47 = vld [vmem:[%s416_s0 + $0x38] sm:$0xff]  }
   0x4   :  { %v53_v12 = vmul.f32 %v229_v2, %v292_v1  ;;  %v54_v13 = vmul.f32 %v230_v3, %v292_v1  ;;  %v55_v16 = vmul.f32 %v233_v8, %v292_v1  ;;  %v56_v17 = vmul.f32 %v234_v9, %v292_v1  ;;  %v262_v36 = vld [vmem:[%s416_s0 + $0x20] sm:$0xff]  }
   0x5   :  { %v57_v18 = vmul.f32 %v237_v10, %v292_v1  ;;  %v58_v19 = vmul.f32 %v238_v11, %v292_v1  ;;  %v59_v22 = vmul.f32 %v241_v14, %v292_v1  ;;  %v60_v23 = vmul.f32 %v242_v15, %v292_v1 }
   0x6   :  { %v76_v20 = vadd.f32 %v306_v7, %v53_v12  ;;  %v77_v21 = vadd.f32 %v306_v7, %v54_v13  ;;  %v78_v24 = vadd.f32 %v306_v7, %v55_v16  ;;  %v79_v25 = vadd.f32 %v306_v7, %v56_v17 }
   0x7   :  { %v80_v26 = vadd.f32 %v306_v7, %v57_v18  ;;  %v81_v27 = vadd.f32 %v306_v7, %v58_v19  ;;  %v82_v30 = vadd.f32 %v306_v7, %v59_v22  ;;  %v83_v31 = vadd.f32 %v306_v7, %v60_v23 }
   0x8   :  { %v92_v28 = vmax.f32 %v76_v20, 0.0  ;;  %v93_v29 = vmax.f32 %v77_v21, 0.0  ;;  %v94_v32 = vmax.f32 %v78_v24, 0.0  ;;  %v95_v33 = vmax.f32 %v79_v25, 0.0 }
   0x9   :  { %v96_v34 = vmax.f32 %v80_v26, 0.0  ;;  %v97_v35 = vmax.f32 %v81_v27, 0.0  ;;  %v98_v39 = vmax.f32 %v82_v30, 0.0  ;;  %v99_v40 = vmax.f32 %v83_v31, 0.0 }
   0xa   :  { %v211_v37 = vpack.c.bf16 %v92_v28, %v92_v28  ;;  %v212_v38 = vpack.c.bf16 %v93_v29, %v93_v29  ;;  %v213_v43 = vpack.c.bf16 %v94_v32, %v94_v32  ;;  %v214_v44 = vpack.c.bf16 %v95_v33, %v95_v33 }
   0xb   :  { %v215_v45 = vpack.c.bf16 %v96_v34, %v96_v34  ;;  %v216_v46 = vpack.c.bf16 %v97_v35, %v97_v35  ;;  %v217_v48 = vpack.c.bf16 %v98_v39, %v98_v39  ;;  %v218_v49 = vpack.c.bf16 %v99_v40, %v99_v40 }
   0xc   :  { %173 = vst.msk [vmem:[%s419_s3] sm:$0xf] %vm172_vm0, %v211_v37  ;;  %174 = vst.msk [vmem:[%s419_s3 + $0x4] sm:$0xf] %vm172_vm0, %v212_v38  ;;  %v245_v50 = vunpack.c.l.bf16 %v262_v36  ;;  %v246_v51 = vunpack.c.h.bf16 %v262_v36  ;;  %v249_v52 = vunpack.c.l.bf16 %v263_v41  ;;  %v250_v53 = vunpack.c.h.bf16 %v263_v41 }
   0xd   :  { %175 = vst.msk [vmem:[%s419_s3 + $0x8] sm:$0xf] %vm172_vm0, %v213_v43  ;;  %176 = vst.msk [vmem:[%s419_s3 + $0xc] sm:$0xf] %vm172_vm0, %v214_v44  ;;  %v253_v54 = vunpack.c.l.bf16 %v264_v42  ;;  %v254_v55 = vunpack.c.h.bf16 %v264_v42  ;;  %v257_v58 = vunpack.c.l.bf16 %v265_v47  ;;  %v258_v59 = vunpack.c.h.bf16 %v265_v47 }
   0xe   :  { %177 = vst.msk [vmem:[%s419_s3 + $0x10] sm:$0xf] %vm172_vm0, %v215_v45  ;;  %178 = vst.msk [vmem:[%s419_s3 + $0x14] sm:$0xf] %vm172_vm0, %v216_v46  ;;  %v61_v56 = vmul.f32 %v245_v50, %v292_v1  ;;  %v62_v57 = vmul.f32 %v246_v51, %v292_v1  ;;  %v63_v60 = vmul.f32 %v249_v52, %v292_v1 }
   0xf   :  { %179 = vst.msk [vmem:[%s419_s3 + $0x18] sm:$0xf] %vm172_vm0, %v217_v48  ;;  %180 = vst.msk [vmem:[%s419_s3 + $0x1c] sm:$0xf] %vm172_vm0, %v218_v49  ;;  %v64_v61 = vmul.f32 %v250_v53, %v292_v1  ;;  %v65_v62 = vmul.f32 %v253_v54, %v292_v1  ;;  %v66_v63 = vmul.f32 %v254_v55, %v292_v1 }
  0x10   :  { %v84_v0 = vadd.f32 %v306_v7, %v61_v56  ;;  %v85_v2 = vadd.f32 %v306_v7, %v62_v57  ;;  %v67_v3 = vmul.f32 %v257_v58, %v292_v1  ;;  %v68_v4 = vmul.f32 %v258_v59, %v292_v1 }
  0x11   :  { %v86_v5 = vadd.f32 %v306_v7, %v63_v60  ;;  %v87_v6 = vadd.f32 %v306_v7, %v64_v61  ;;  %v88_v8 = vadd.f32 %v306_v7, %v65_v62  ;;  %v89_v9 = vadd.f32 %v306_v7, %v66_v63 }
  0x12   :  { %v100_v10 = vmax.f32 %v84_v0, 0.0  ;;  %v101_v11 = vmax.f32 %v85_v2, 0.0  ;;  %v90_v12 = vadd.f32 %v306_v7, %v67_v3  ;;  %v91_v13 = vadd.f32 %v306_v7, %v68_v4 }
  0x13   :  { %v102_v14 = vmax.f32 %v86_v5, 0.0  ;;  %v103_v15 = vmax.f32 %v87_v6, 0.0  ;;  %v104_v16 = vmax.f32 %v88_v8, 0.0  ;;  %v105_v17 = vmax.f32 %v89_v9, 0.0 }
  0x14   :  { %v219_v18 = vpack.c.bf16 %v100_v10, %v100_v10  ;;  %v220_v1 = vpack.c.bf16 %v101_v11, %v101_v11  ;;  %v106_v19 = vmax.f32 %v90_v12, 0.0  ;;  %v107_v20 = vmax.f32 %v91_v13, 0.0 }
  0x15   :  { %v221_v21 = vpack.c.bf16 %v102_v14, %v102_v14  ;;  %v222_v22 = vpack.c.bf16 %v103_v15, %v103_v15  ;;  %v223_v23 = vpack.c.bf16 %v104_v16, %v104_v16  ;;  %v224_v24 = vpack.c.bf16 %v105_v17, %v105_v17 }
  0x16   :  { %181 = vst.msk [vmem:[%s419_s3 + $0x20] sm:$0xf] %vm172_vm0, %v219_v18  ;;  %182 = vst.msk [vmem:[%s419_s3 + $0x24] sm:$0xf] %vm172_vm0, %v220_v1  ;;  %v225_v7 = vpack.c.bf16 %v106_v19, %v106_v19  ;;  %v226_v25 = vpack.c.bf16 %v107_v20, %v107_v20 }
  0x17   :  { %183 = vst.msk [vmem:[%s419_s3 + $0x28] sm:$0xf] %vm172_vm0, %v221_v21  ;;  %184 = vst.msk [vmem:[%s419_s3 + $0x2c] sm:$0xf] %vm172_vm0, %v222_v22 }
  0x18   :  { %185 = vst.msk [vmem:[%s419_s3 + $0x30] sm:$0xf] %vm172_vm0, %v223_v23  ;;  %186 = vst.msk [vmem:[%s419_s3 + $0x34] sm:$0xf] %vm172_vm0, %v224_v24 }
  0x19   :  { %187 = vst.msk [vmem:[%s419_s3 + $0x38] sm:$0xf] %vm172_vm0, %v225_v7  ;;  %188 = vst.msk [vmem:[%s419_s3 + $0x3c] sm:$0xf] %vm172_vm0, %v226_v25 }

// kernel: reference_encoder_forward.8
= control target key start
LH: loop header
LB: loop body
LE: loop exit
PB: predicated region body
PF: predicated region fallthrough
CT: control target
= control target key end

     0   :  { %vm102_vm0 = vcmask 1043456   ;;  %vm103_vm1 = vcmask 1044480   ;;  %vm77_vm2 = vcmask 72704   ;;  %v477_v1 = vmov 65535   ;;  %s677_s1 = inlined_call_operand.vmem [shape: bf16[9,4], index: 1, kind: input, shape index: {}]   ;;  %s678_s0 = inlined_call_operand.vmem [shape: bf16[128,9], index: 0, kind: input, shape index: {}]   ;;  %s679_s2 = inlined_call_operand.vmem [shape: bf16[128,4], index: 2, kind: output, shape index: {0}]   ;;  %s680_s3 = inlined_call_operand.vmem [shape: f32[1,2,4], index: 3, kind: output, shape index: {1}]  }
   0x1   :  { %v468_v0 = vld [vmem:[%s677_s1] sm:$0x1f]   ;;  %v104_v2 = vsel %vm102_vm0, 4294967295, %v477_v1  ;;  %v470_v6 = vld [vmem:[%s678_s0 + $0x8] sm:$0xff]   ;;  %v471_v7 = vld [vmem:[%s678_s0 + $0x10] sm:$0xff]   ;;  %vm270_vm3 = vcmask 27648  }
   0x2   :  { %v469_v3 = vld [vmem:[%s678_s0] sm:$0xff]   ;;  %v105_v4 = vsel %vm103_vm1, %v104_v2, 0  ;;  %v474_v9 = vld [vmem:[%s678_s0 + $0x28] sm:$0xff]   ;;  %v475_v10 = vld [vmem:[%s678_s0 + $0x30] sm:$0xff]   ;;  %vm287_vm4 = vcmask 31744   ;;  %vm325_vm5 = vcmask 24576  }
   0x3   :  { %v107_v5 = vand.u32 %v468_v0, %v105_v4  ;;  %449 = vmatprep.mubr.msk.bf16.mxu0 %vm77_vm2, %v469_v3  ;;  %v473_v8 = vld [vmem:[%s678_s0 + $0x20] sm:$0xff]   ;;  %v472_v11 = vld [vmem:[%s678_s0 + $0x18] sm:$0xff]  }
   0x4   :  { %457 = vmatprep.mubr.msk.bf16.mxu1 %vm77_vm2, %v473_v8  ;;  %v476_v12 = vld [vmem:[%s678_s0 + $0x38] sm:$0xff]  }
   0x5   :  { %447 = vmatprep.subr.bf16.mxu0 %v107_v5  ;;  %465 = vmatprep.subr.bf16.mxu1 %v107_v5 }
   0x6   :  { %448 = vmatpush3.bf16.msra.mxu0 %v107_v5  ;;  %466 = vmatpush3.bf16.msra.mxu1 %v107_v5 }
   0x9   :  { %450 = vmatmul.mubr.msk.bf16.vlgmr.msra.gmra.mrb[0].mxu0 %vm77_vm2, %v470_v6  ;;  %458 = vmatmul.mubr.msk.bf16.vlgmr.msra.gmra.mrb[0].mxu1 %vm77_vm2, %v474_v9 }
   0xa   :  { %453 = vmatprep.mubr.msk.bf16.mxu0 %vm77_vm2, %v471_v7  ;;  %461 = vmatprep.mubr.msk.bf16.mxu1 %vm77_vm2, %v475_v10 }
  0x11   :  { %454 = vmatmul.mubr.msk.bf16.gmra.mrb[4].mxu0 %vm77_vm2, %v472_v11  ;;  %462 = vmatmul.mubr.msk.bf16.gmra.mrb[4].mxu1 %vm77_vm2, %v476_v12 }
  0xdc   :  { %v451_v13 = vpop.f32.mrb[0].mxu0  ;;  %v533_v14 = vpop.f32.mrb[0].mxu1 }
  0xdd   :  { %v424_v15 = vpack.c.bf16 %v451_v13, %v451_v13  ;;  %v143_v16 = vpop.f32.mrb[1].mxu0  ;;  %v432_v17 = vpack.c.bf16 %v533_v14, %v533_v14  ;;  %v537_v18 = vpop.f32.mrb[1].mxu1  ;;  %v329_v23 = vmul.f32 %v451_v13, %v451_v13  ;;  %v291_v34 = vsel %vm287_vm4, %v451_v13, 0.0 }
  0xde   :  { %v422_v19 = vpack.c.bf16 %v143_v16, %v143_v16  ;;  %v327_v20 = vmul.f32 %v143_v16, %v143_v16  ;;  %v452_v21 = vpop.f32.mrb[2].mxu0  ;;  %v539_v22 = vpop.f32.mrb[2].mxu1  ;;  %v288_v27 = vsel %vm287_vm4, %v143_v16, 0.0  ;;  %v430_v33 = vpack.c.bf16 %v537_v18, %v537_v18 }
  0xdf   :  { %273 = vst.msk [vmem:[%s679_s2 + $0x8] sm:$0xf] %vm270_vm3, %v424_v15  ;;  %v425_v24 = vpack.c.bf16 %v452_v21, %v452_v21  ;;  %v146_v25 = vpop.f32.mrb[3].mxu0  ;;  %281 = vst.msk [vmem:[%s679_s2 + $0x28] sm:$0xf] %vm270_vm3, %v432_v17  ;;  %v549_v26 = vpop.f32.mrb[3].mxu1  ;;  %v330_v31 = vmul.f32 %v452_v21, %v452_v21  ;;  %v433_v37 = vpack.c.bf16 %v539_v22, %v539_v22 }
  0xe0   :  { %271 = vst.msk [vmem:[%s679_s2] sm:$0xf] %vm270_vm3, %v422_v19  ;;  %v423_v28 = vpack.c.bf16 %v146_v25, %v146_v25  ;;  %v289_v29 = vsel %vm287_vm4, %v146_v25, 0.0  ;;  %v328_v30 = vmul.f32 %v146_v25, %v146_v25  ;;  %v343_v35 = vsel %vm287_vm4, %v327_v20, 0.0  ;;  %279 = vst.msk [vmem:[%s679_s2 + $0x20] sm:$0xf] %vm270_vm3, %v430_v33 }
  0xe1   :  { %274 = vst.msk [vmem:[%s679_s2 + $0xc] sm:$0xf] %vm270_vm3, %v425_v24  ;;  %v290_v32 = vadd.f32 %v289_v29, %v288_v27  ;;  %v346_v40 = vsel %vm287_vm4, %v329_v23, 0.0  ;;  %282 = vst.msk [vmem:[%s679_s2 + $0x2c] sm:$0xf] %vm270_vm3, %v433_v37  ;;  %v431_v42 = vpack.c.bf16 %v549_v26, %v549_v26  ;;  %v293_v44 = vsel %vm287_vm4, %v452_v21, 0.0 }
  0xe2   :  { %272 = vst.msk [vmem:[%s679_s2 + $0x4] sm:$0xf] %vm270_vm3, %v423_v28  ;;  %v344_v36 = vsel %vm287_vm4, %v328_v30, 0.0  ;;  %v348_v45 = vsel %vm287_vm4, %v330_v31, 0.0  ;;  %v335_v4 = vmul.f32 %v537_v18, %v537_v18  ;;  %v303_v15 = vsel %vm287_vm4, %v537_v18, 0.0 }
  0xe3   :  { %v292_v38 = vadd.f32 %v291_v34, %v290_v32  ;;  %v345_v39 = vadd.f32 %v344_v36, %v343_v35  ;;  %280 = vst.msk [vmem:[%s679_s2 + $0x24] sm:$0xf] %vm270_vm3, %v431_v42  ;;  %v336_v24 = vmul.f32 %v549_v26, %v549_v26  ;;  %v337_v27 = vmul.f32 %v533_v14, %v533_v14 }
  0xe4   :  { %v455_v41 = vpop.f32.mrb[4].mxu0  ;;  %v583_v43 = vpop.f32.mrb[4].mxu1  ;;  %v358_v23 = vsel %vm287_vm4, %v335_v4, 0.0  ;;  %v305_v28 = vsel %vm287_vm4, %v549_v26, 0.0  ;;  %v307_v31 = vsel %vm287_vm4, %v533_v14, 0.0  ;;  %v338_v32 = vmul.f32 %v539_v22, %v539_v22 }
  0xe5   :  { %v347_v46 = vadd.f32 %v346_v40, %v345_v39  ;;  %v428_v47 = vpack.c.bf16 %v455_v41, %v455_v41  ;;  %v159_v48 = vpop.f32.mrb[5].mxu0  ;;  %v191_v49 = vpop.f32.mrb[5].mxu1  ;;  %v294_v51 = vadd.f32 %v293_v44, %v292_v38  ;;  %v333_v63 = vmul.f32 %v455_v41, %v455_v41 }
  0xe6   :  { %v426_v50 = vpack.c.bf16 %v159_v48, %v159_v48  ;;  %v295_v52 = vsel %vm287_vm4, %v159_v48, 0.0  ;;  %v331_v53 = vmul.f32 %v159_v48, %v159_v48  ;;  %v456_v54 = vpop.f32.mrb[6].mxu0  ;;  %v592_v55 = vpop.f32.mrb[6].mxu1  ;;  %v436_v5 = vpack.c.bf16 %v583_v43, %v583_v43 }
  0xe7   :  { %277 = vst.msk [vmem:[%s679_s2 + $0x18] sm:$0xf] %vm270_vm3, %v428_v47  ;;  %v349_v56 = vadd.f32 %v348_v45, %v347_v46  ;;  %v429_v57 = vpack.c.bf16 %v456_v54, %v456_v54  ;;  %v162_v58 = vpop.f32.mrb[7].mxu0  ;;  %v194_v59 = vpop.f32.mrb[7].mxu1  ;;  %v296_v60 = vadd.f32 %v295_v52, %v294_v51  ;;  %v299_v6 = vsel %vm287_vm4, %v455_v41, 0.0 }
  0xe8   :  { %275 = vst.msk [vmem:[%s679_s2 + $0x10] sm:$0xf] %vm270_vm3, %v426_v50  ;;  %v350_v61 = vsel %vm287_vm4, %v331_v53, 0.0  ;;  %v427_v62 = vpack.c.bf16 %v162_v58, %v162_v58  ;;  %v297_v1 = vsel %vm287_vm4, %v162_v58, 0.0  ;;  %v332_v2 = vmul.f32 %v162_v58, %v162_v58  ;;  %285 = vst.msk [vmem:[%s679_s2 + $0x38] sm:$0xf] %vm270_vm3, %v436_v5 }
  0xe9   :  { %v351_v0 = vadd.f32 %v350_v61, %v349_v56  ;;  %278 = vst.msk [vmem:[%s679_s2 + $0x1c] sm:$0xf] %vm270_vm3, %v429_v57  ;;  %v298_v3 = vadd.f32 %v297_v1, %v296_v60  ;;  %v334_v7 = vmul.f32 %v456_v54, %v456_v54  ;;  %v434_v9 = vpack.c.bf16 %v191_v49, %v191_v49 }
  0xea   :  { %276 = vst.msk [vmem:[%s679_s2 + $0x14] sm:$0xf] %vm270_vm3, %v427_v62  ;;  %v352_v8 = vsel %vm287_vm4, %v332_v2, 0.0  ;;  %v354_v12 = vsel %vm287_vm4, %v333_v63, 0.0  ;;  %v301_v13 = vsel %vm287_vm4, %v456_v54, 0.0  ;;  %v437_v16 = vpack.c.bf16 %v592_v55, %v592_v55 }
  0xeb   :  { %v300_v10 = vadd.f32 %v299_v6, %v298_v3  ;;  %v353_v11 = vadd.f32 %v352_v8, %v351_v0  ;;  %283 = vst.msk [vmem:[%s679_s2 + $0x30] sm:$0xf] %vm270_vm3, %v434_v9  ;;  %v435_v20 = vpack.c.bf16 %v194_v59, %v194_v59  ;;  %v356_v21 = vsel %vm287_vm4, %v334_v7, 0.0 }
  0xec   :  { %286 = vst.msk [vmem:[%s679_s2 + $0x3c] sm:$0xf] %vm270_vm3, %v437_v16  ;;  %v360_v33 = vsel %vm287_vm4, %v336_v24, 0.0  ;;  %v339_v34 = vmul.f32 %v191_v49, %v191_v49  ;;  %v362_v37 = vsel %vm287_vm4, %v337_v27, 0.0  ;;  %v309_v38 = vsel %vm287_vm4, %v539_v22, 0.0 }
  0xed   :  { %v355_v17 = vadd.f32 %v354_v12, %v353_v11  ;;  %v302_v19 = vadd.f32 %v301_v13, %v300_v10  ;;  %284 = vst.msk [vmem:[%s679_s2 + $0x34] sm:$0xf] %vm270_vm3, %v435_v20  ;;  %v311_v26 = vsel %vm287_vm4, %v191_v49, 0.0  ;;  %v364_v41 = vsel %vm287_vm4, %v338_v32, 0.0 }
  0xee   :  { %v366_v14 = vsel %vm287_vm4, %v339_v34, 0.0  ;;  %v340_v42 = vmul.f32 %v194_v59, %v194_v59  ;;  %v341_v46 = vmul.f32 %v583_v43, %v583_v43  ;;  %v313_v47 = vsel %vm287_vm4, %v194_v59, 0.0 }
  0xef   :  { %v304_v18 = vadd.f32 %v303_v15, %v302_v19  ;;  %v357_v25 = vadd.f32 %v356_v21, %v355_v17  ;;  %v315_v22 = vsel %vm287_vm4, %v583_v43, 0.0  ;;  %v342_v49 = vmul.f32 %v592_v55, %v592_v55 }
  0xf0   :  { %v368_v51 = vsel %vm287_vm4, %v340_v42, 0.0  ;;  %v370_v54 = vsel %vm287_vm4, %v341_v46, 0.0  ;;  %v317_v56 = vsel %vm287_vm4, %v592_v55, 0.0 }
  0xf1   :  { %v359_v29 = vadd.f32 %v358_v23, %v357_v25  ;;  %v306_v30 = vadd.f32 %v305_v28, %v304_v18  ;;  %v372_v59 = vsel %vm287_vm4, %v342_v49, 0.0 }
  0xf3   :  { %v308_v35 = vadd.f32 %v307_v31, %v306_v30  ;;  %v361_v36 = vadd.f32 %v360_v33, %v359_v29 }
  0xf5   :  { %v363_v39 = vadd.f32 %v362_v37, %v361_v36  ;;  %v310_v40 = vadd.f32 %v309_v38, %v308_v35 }
  0xf7   :  { %v312_v44 = vadd.f32 %v311_v26, %v310_v40  ;;  %v365_v45 = vadd.f32 %v364_v41, %v363_v39 }
  0xf9   :  { %v367_v48 = vadd.f32 %v366_v14, %v365_v45  ;;  %v314_v50 = vadd.f32 %v313_v47, %v312_v44 }
  0xfb   :  { %v316_v52 = vadd.f32 %v315_v22, %v314_v50  ;;  %v369_v53 = vadd.f32 %v368_v51, %v367_v48 }
  0xfd   :  { %v318_v57 = vadd.f32 %v317_v56, %v316_v52  ;;  %v371_v58 = vadd.f32 %v370_v54, %v369_v53 }
  0xff   :  { %v319_v60 = vrot.slane %v318_v57, 4  ;;  %v373_v61 = vadd.f32 %v372_v59, %v371_v58 }
 0x101   :  { %v320_v62 = vadd.f32 %v319_v60, %v318_v57  ;;  %v374_v43 = vrot.slane %v373_v61, 4 }
 0x103   :  { %v321_v63 = vrot.slane %v320_v62, 2  ;;  %v375_v0 = vadd.f32 %v374_v43, %v373_v61 }
 0x105   :  { %v322_v1 = vadd.f32 %v321_v63, %v320_v62  ;;  %v376_v2 = vrot.slane %v375_v0, 2 }
 0x107   :  { %v323_v3 = vrot.slane %v322_v1, 1  ;;  %v377_v4 = vadd.f32 %v376_v2, %v375_v0 }
 0x109   :  { %v324_v5 = vadd.f32 %v323_v3, %v322_v1  ;;  %v378_v6 = vrot.slane %v377_v4, 1 }
 0x10b   :  { %326 = vst.msk [vmem:[%s680_s3] sm:$0x1] %vm325_vm5, %v324_v5  ;;  %v379_v55 = vadd.f32 %v378_v6, %v377_v4 }
 0x10d   :  { %380 = vst.msk [vmem:[%s680_s3 + $0x1] sm:$0x1] %vm325_vm5, %v379_v55 }

// kernel: reference_encoder_forward.10
= control target key start
LH: loop header
LB: loop body
LE: loop exit
PB: predicated region body
PF: predicated region fallthrough
CT: control target
= control target key end

     0   :  { %vm48_vm0 = vcmask 293888   ;;  %vm55_vm1 = vcmask 1041408   ;;  %vm124_vm2 = vcmask 60416   ;;  %vm129_vm3 = vcmask 64512   ;;  %s272_s1 = inlined_call_operand.vmem [shape: bf16[36,8], index: 1, kind: input, shape index: {}]   ;;  %s273_s0 = inlined_call_operand.vmem [shape: bf16[32,36], index: 0, kind: input, shape index: {}]   ;;  %s274_s2 = inlined_call_operand.vmem [shape: bf16[32,8], index: 2, kind: output, shape index: {0}]   ;;  %s275_s3 = inlined_call_operand.vmem [shape: f32[1,2,8], index: 3, kind: output, shape index: {1}]  }
   0x1   :  { %v202_v0 = vld [vmem:[%s272_s1] sm:$0xff]   ;;  %v203_v1 = vld [vmem:[%s272_s1 + $0x8] sm:$0xff]   ;;  %v204_v3 = vld [vmem:[%s272_s1 + $0x10] ss:$0 sps:$4 sm:$0x33]   ;;  %vm143_vm4 = vcmask 57344  }
   0x2   :  { %191 = vmatprep.subr.bf16.mxu0 %v202_v0  ;;  %v205_v2 = vld [vmem:[%s273_s0] sm:$0xff]   ;;  %v57_v4 = vsel %vm55_vm1, %v204_v3, 0  ;;  %v206_v5 = vld [vmem:[%s273_s0 + $0x8] sm:$0xff]  }
   0x3   :  { %192 = vmatpush3.bf16.msra.mxu0 %v202_v0  ;;  %197 = vmatprep.mubr.msk.bf16.mxu0 %vm48_vm0, %v205_v2 }
   0x4   :  { %193 = vmatprep.subr.bf16.mxu0 %v203_v1 }
   0x7   :  { %194 = vmatpush3.bf16.msra.mxu0 %v203_v1 }
   0x8   :  { %201 = vmatprep.subr.msk.bf16.mxu0 %vm55_vm1, %v204_v3 }
   0xb   :  { %196 = vmatpush3.bf16.msra.mxu0 %v57_v4 }
   0xe   :  { %198 = vmatmul.mubr.msk.bf16.vlgmr.msra.gmra.mrb[0].mxu0 %vm48_vm0, %v206_v5 }
  0xe1   :  { %v199_v6 = vpop.f32.mrb[0].mxu0 }
  0xe2   :  { %v184_v7 = vpack.c.bf16 %v199_v6, %v199_v6  ;;  %v93_v8 = vpop.f32.mrb[1].mxu0  ;;  %v147_v12 = vmul.f32 %v199_v6, %v199_v6  ;;  %v133_v20 = vsel %vm129_vm3, %v199_v6, 0.0 }
  0xe3   :  { %v182_v9 = vpack.c.bf16 %v93_v8, %v93_v8  ;;  %v145_v10 = vmul.f32 %v93_v8, %v93_v8  ;;  %v200_v11 = vpop.f32.mrb[2].mxu0  ;;  %v130_v15 = vsel %vm129_vm3, %v93_v8, 0.0 }
  0xe4   :  { %127 = vst.msk [vmem:[%s274_s2 + $0x8] sm:$0xf] %vm124_vm2, %v184_v7  ;;  %v185_v13 = vpack.c.bf16 %v200_v11, %v200_v11  ;;  %v96_v14 = vpop.f32.mrb[3].mxu0  ;;  %v148_v22 = vmul.f32 %v200_v11, %v200_v11  ;;  %v152_v26 = vsel %vm129_vm3, %v147_v12, 0.0  ;;  %v135_v27 = vsel %vm129_vm3, %v200_v11, 0.0 }
  0xe5   :  { %125 = vst.msk [vmem:[%s274_s2] sm:$0xf] %vm124_vm2, %v182_v9  ;;  %v183_v16 = vpack.c.bf16 %v96_v14, %v96_v14  ;;  %v131_v17 = vsel %vm129_vm3, %v96_v14, 0.0  ;;  %v146_v18 = vmul.f32 %v96_v14, %v96_v14  ;;  %v149_v21 = vsel %vm129_vm3, %v145_v10, 0.0 }
  0xe6   :  { %128 = vst.msk [vmem:[%s274_s2 + $0xc] sm:$0xf] %vm124_vm2, %v185_v13  ;;  %v132_v19 = vadd.f32 %v131_v17, %v130_v15  ;;  %v154_v30 = vsel %vm129_vm3, %v148_v22, 0.0 }
  0xe7   :  { %126 = vst.msk [vmem:[%s274_s2 + $0x4] sm:$0xf] %vm124_vm2, %v183_v16  ;;  %v150_v23 = vsel %vm129_vm3, %v146_v18, 0.0 }
  0xe8   :  { %v134_v24 = vadd.f32 %v133_v20, %v132_v19  ;;  %v151_v25 = vadd.f32 %v150_v23, %v149_v21 }
  0xea   :  { %v136_v28 = vadd.f32 %v135_v27, %v134_v24  ;;  %v153_v29 = vadd.f32 %v152_v26, %v151_v25 }
  0xec   :  { %v137_v31 = vrot.slane %v136_v28, 4  ;;  %v155_v32 = vadd.f32 %v154_v30, %v153_v29 }
  0xee   :  { %v138_v33 = vadd.f32 %v137_v31, %v136_v28  ;;  %v156_v34 = vrot.slane %v155_v32, 4 }
  0xf0   :  { %v139_v35 = vrot.slane %v138_v33, 2  ;;  %v157_v36 = vadd.f32 %v156_v34, %v155_v32 }
  0xf2   :  { %v140_v37 = vadd.f32 %v139_v35, %v138_v33  ;;  %v158_v38 = vrot.slane %v157_v36, 2 }
  0xf4   :  { %v141_v39 = vrot.slane %v140_v37, 1  ;;  %v159_v40 = vadd.f32 %v158_v38, %v157_v36 }
  0xf6   :  { %v142_v41 = vadd.f32 %v141_v39, %v140_v37  ;;  %v160_v42 = vrot.slane %v159_v40, 1 }
  0xf8   :  { %144 = vst.msk [vmem:[%s275_s3] sm:$0x1] %vm143_vm4, %v142_v41  ;;  %v161_v43 = vadd.f32 %v160_v42, %v159_v40 }
  0xfa   :  { %162 = vst.msk [vmem:[%s275_s3 + $0x1] sm:$0x1] %vm143_vm4, %v161_v43 }

// kernel: reference_encoder_forward.11
= control target key start
LH: loop header
LB: loop body
LE: loop exit
PB: predicated region body
PF: predicated region fallthrough
CT: control target
= control target key end

     0   :  { %vm64_vm0 = vcmask 60416   ;;  %s136_s0 = inlined_call_operand.vmem [shape: bf16[32,8], index: 0, kind: input, shape index: {}]   ;;  %s137_s1 = inlined_call_operand.vmem [shape: f32[1,8], index: 1, kind: input, shape index: {}]   ;;  %s138_s2 = inlined_call_operand.vmem [shape: f32[1,8], index: 2, kind: input, shape index: {}]   ;;  %s139_s3 = inlined_call_operand.vmem [shape: bf16[32,8], index: 3, kind: output, shape index: {}]  }
   0x1   :  { %v84_v0 = vld [vmem:[%s136_s0] sm:$0xff]   ;;  %v91_v4 = vld [vmem:[%s136_s0 + $0x8] sm:$0xff]  }
   0x2   :  { %v73_v1 = vld [vmem:[%s137_s1] ss:$0 sm:$0xff]  ;;  %v85_v2 = vunpack.c.l.bf16 %v84_v0  ;;  %v86_v3 = vunpack.c.h.bf16 %v84_v0  ;;  %v89_v6 = vunpack.c.l.bf16 %v91_v4  ;;  %v90_v7 = vunpack.c.h.bf16 %v91_v4 }
   0x3   :  { %v74_v5 = vld [vmem:[%s138_s2] ss:$0 sm:$0xff] }
   0x4   :  { %v29_v8 = vmul.f32 %v85_v2, %v73_v1  ;;  %v30_v9 = vmul.f32 %v86_v3, %v73_v1  ;;  %v31_v10 = vmul.f32 %v89_v6, %v73_v1  ;;  %v32_v11 = vmul.f32 %v90_v7, %v73_v1 }
   0x6   :  { %v40_v12 = vadd.f32 %v74_v5, %v29_v8  ;;  %v41_v13 = vadd.f32 %v74_v5, %v30_v9  ;;  %v42_v14 = vadd.f32 %v74_v5, %v31_v10  ;;  %v43_v15 = vadd.f32 %v74_v5, %v32_v11 }
   0x8   :  { %v44_v16 = vmax.f32 %v40_v12, 0.0  ;;  %v45_v17 = vmax.f32 %v41_v13, 0.0  ;;  %v46_v18 = vmax.f32 %v42_v14, 0.0  ;;  %v47_v19 = vmax.f32 %v43_v15, 0.0 }
   0xa   :  { %v79_v20 = vpack.c.bf16 %v44_v16, %v44_v16  ;;  %v80_v21 = vpack.c.bf16 %v45_v17, %v45_v17  ;;  %v81_v22 = vpack.c.bf16 %v46_v18, %v46_v18  ;;  %v82_v23 = vpack.c.bf16 %v47_v19, %v47_v19 }
   0xc   :  { %65 = vst.msk [vmem:[%s139_s3] sm:$0xf] %vm64_vm0, %v79_v20  ;;  %66 = vst.msk [vmem:[%s139_s3 + $0x4] sm:$0xf] %vm64_vm0, %v80_v21 }
   0xd   :  { %67 = vst.msk [vmem:[%s139_s3 + $0x8] sm:$0xf] %vm64_vm0, %v81_v22  ;;  %68 = vst.msk [vmem:[%s139_s3 + $0xc] sm:$0xf] %vm64_vm0, %v82_v23 }

// kernel: reference_encoder_forward.13
= control target key start
LH: loop header
LB: loop body
LE: loop exit
PB: predicated region body
PF: predicated region fallthrough
CT: control target
= control target key end

     0   :  { %vm34_vm0 = vcmask 125952   ;;  %s74_s0 = inlined_call_operand.vmem [shape: bf16[8,16], index: 0, kind: input, shape index: {}]   ;;  %s75_s1 = inlined_call_operand.vmem [shape: f32[1,16], index: 1, kind: input, shape index: {}]   ;;  %s76_s2 = inlined_call_operand.vmem [shape: f32[1,16], index: 2, kind: input, shape index: {}]   ;;  %s77_s3 = inlined_call_operand.vmem [shape: bf16[8,16], index: 3, kind: output, shape index: {}]  }
   0x1   :  { %v14_v0 = vld [vmem:[%s74_s0] sm:$0xf] }
   0x2   :  { %v40_v1 = vld [vmem:[%s75_s1] ss:$0 sm:$0xff]  ;;  %v15_v2 = vunpack.c.l.bf16 %v14_v0 }
   0x3   :  { %v41_v3 = vld [vmem:[%s76_s2] ss:$0 sm:$0xff] }
   0x4   :  { %v23_v4 = vmul.f32 %v40_v1, %v15_v2 }
   0x6   :  { %v31_v5 = vadd.f32 %v41_v3, %v23_v4 }
   0x8   :  { %v32_v6 = vmax.f32 %v31_v5, 0.0 }
   0xa   :  { %v33_v7 = vpack.c.bf16 %v32_v6, %v32_v6 }
   0xc   :  { %35 = vst.msk [vmem:[%s77_s3] sm:$0xf] %vm34_vm0, %v33_v7 }

// kernel: reference_encoder_forward.12
= control target key start
LH: loop header
LB: loop body
LE: loop exit
PB: predicated region body
PF: predicated region fallthrough
CT: control target
= control target key end

     0   :  { %v162_v0 = vmov 0.0   ;;  %vm163_vm0 = vmmov 0   ;;  %vm55_vm1 = vcmask 1043456   ;;  %vm51_vm2 = vcmask 588800   ;;  %s211_s1 = inlined_call_operand.vmem [shape: bf16[72,16], index: 1, kind: input, shape index: {}]   ;;  %s212_s0 = inlined_call_operand.vmem [shape: bf16[8,72], index: 0, kind: input, shape index: {}]   ;;  %s213_s2 = inlined_call_operand.vmem [shape: bf16[8,16], index: 2, kind: output, shape index: {0}]   ;;  %s214_s3 = inlined_call_operand.vmem [shape: f32[1,2,16], index: 3, kind: output, shape index: {1}]  }
   0x1   :  { %141 = vmatprep.subr.bf16.mxu0 %v162_v0  ;;  %v157_v1 = vld [vmem:[%s211_s1] sm:$0xff]   ;;  %151 = vmatprep.mubr.msk.bf16.mxu0 %vm163_vm0, %v162_v0  ;;  %v158_v2 = vld [vmem:[%s211_s1 + $0x8] sm:$0xff]   ;;  %v159_v3 = vld [vmem:[%s211_s1 + $0x10] sm:$0xff]   ;;  %vm102_vm3 = vcmask 130048   ;;  %vm100_vm4 = vcmask 125952   ;;  %vm110_vm5 = vcmask 122880  }
   0x2   :  { %142 = vmatpush3.bf16.msra.mxu0 %v157_v1  ;;  %v160_v4 = vld [vmem:[%s211_s1 + $0x18] sm:$0xff]   ;;  %v161_v5 = vld [vmem:[%s211_s1 + $0x20] ss:$0 sps:$4 sm:$0xff]  }
   0x3   :  { %143 = vmatprep.subr.bf16.mxu0 %v162_v0  ;;  %v57_v6 = vsel %vm55_vm1, %v161_v5, 0  ;;  %v14_v7 = vld [vmem:[%s212_s0] sm:$0xf] }
   0x6   :  { %144 = vmatpush3.bf16.msra.mxu0 %v158_v2 }
   0x7   :  { %145 = vmatprep.subr.bf16.mxu0 %v162_v0 }
   0xa   :  { %146 = vmatpush3.bf16.msra.mxu0 %v159_v3 }
   0xb   :  { %147 = vmatprep.subr.bf16.mxu0 %v162_v0 }
   0xe   :  { %148 = vmatpush3.bf16.msra.mxu0 %v160_v4 }
   0xf   :  { %149 = vmatprep.subr.bf16.mxu0 %v162_v0 }
  0x12   :  { %150 = vmatpush3.bf16.msra.mxu0 %v57_v6 }
  0x15   :  { %152 = vmatmul.mubr.msk.bf16.vlgmr.msra.gmra.mrb[0].mxu0 %vm51_vm2, %v14_v7 }
  0xe8   :  { %v93_v8 = vpop.f32.mrb[0].mxu0 }
  0xe9   :  { %v99_v9 = vpack.c.bf16 %v93_v8, %v93_v8  ;;  %v103_v10 = vsel %vm102_vm3, %v93_v8, 0.0  ;;  %v112_v11 = vmul.f32 %v93_v8, %v93_v8  ;;  %v153_v12 = vpop.f32.mrb[1].mxu0 }
  0xea   :  { %v104_v13 = vrot.slane %v103_v10, 4  ;;  %v96_v14 = vpop.f32.mrb[2].mxu0 }
  0xeb   :  { %101 = vst.msk [vmem:[%s213_s2] sm:$0xf] %vm100_vm4, %v99_v9  ;;  %v113_v15 = vsel %vm102_vm3, %v112_v11, 0.0  ;;  %v154_v16 = vpop.f32.mrb[3].mxu0 }
  0xec   :  { %v105_v17 = vadd.f32 %v104_v13, %v103_v10  ;;  %v114_v18 = vrot.slane %v113_v15, 4 }
  0xee   :  { %v106_v19 = vrot.slane %v105_v17, 2  ;;  %v115_v20 = vadd.f32 %v114_v18, %v113_v15 }
  0xf0   :  { %v107_v21 = vadd.f32 %v106_v19, %v105_v17  ;;  %v116_v22 = vrot.slane %v115_v20, 2 }
  0xf2   :  { %v108_v23 = vrot.slane %v107_v21, 1  ;;  %v117_v24 = vadd.f32 %v116_v22, %v115_v20 }
  0xf4   :  { %v109_v25 = vadd.f32 %v108_v23, %v107_v21  ;;  %v118_v26 = vrot.slane %v117_v24, 1 }
  0xf6   :  { %111 = vst.msk [vmem:[%s214_s3] sm:$0x1] %vm110_vm5, %v109_v25  ;;  %v119_v27 = vadd.f32 %v118_v26, %v117_v24 }
  0xf8   :  { %120 = vst.msk [vmem:[%s214_s3 + $0x1] sm:$0x1] %vm110_vm5, %v119_v27 }

// kernel: reference_encoder_forward.14
= control target key start
LH: loop header
LB: loop body
LE: loop exit
PB: predicated region body
PF: predicated region fallthrough
CT: control target
= control target key end

     0   :  { %v1240_v1 = vmov 0   ;;  %vm184_vm0 = vcmask 261120   ;;  %v57_v23 = vlaneseq  ;;  %s1682_s1 = inlined_call_operand.vmem [shape: bf16[32,384], index: 1, kind: input, shape index: {}]   ;;  %s1683_s0 = inlined_call_operand.vmem [shape: bf16[256,32], index: 0, kind: input, shape index: {}]   ;;  %s1684_s2 = inlined_call_operand.vmem [shape: f32[1,384], index: 2, kind: input, shape index: {}]   ;;  %s1685_s3 = inlined_call_operand.vmem [shape: bf16[256,384], index: 3, kind: output, shape index: {}]  }
   0x1   :  { %v1216_v0 = vld [vmem:[%s1682_s1 + $0x4] ss:$12 sps:$4 sm:$0xff]   ;;  %265 = vmatprep.mubr.bf16.mxu0 %v1240_v1  ;;  %385 = vmatprep.mubr.bf16.mxu1 %v1240_v1  ;;  %v1218_v2 = vld [vmem:[%s1682_s1] ss:$12 sps:$4 sm:$0xff]   ;;  %v1219_v3 = vld [vmem:[%s1682_s1 + $0x1c] ss:$12 sps:$4 sm:$0xff]  }
   0x2   :  { %233 = vmatprep.subr.bf16.mxu0 %v1216_v0  ;;  %1211 = vmatprep.subr.bf16.mxu1 %v1216_v0  ;;  %v1221_v4 = vld [vmem:[%s1682_s1 + $0x18] ss:$12 sps:$4 sm:$0xff]   ;;  %v1224_v6 = vld [vmem:[%s1682_s1 + $0x8] ss:$12 sps:$4 sm:$0xff]   ;;  %v1229_v8 = vld [vmem:[%s1682_s1 + $0x20] ss:$12 sps:$4 sm:$0xff]  }
   0x3   :  { %234 = vmatpush1.bf16.msra.mxu0 %v1218_v2  ;;  %1213 = vmatpush1.bf16.msra.mxu1 %v1218_v2  ;;  %v1222_v5 = vld [vmem:[%s1683_s0] sm:$0xff]   ;;  %v1225_v9 = vld [vmem:[%s1683_s0 + $0x8] sm:$0xff]   ;;  %v1227_v11 = vld [vmem:[%s1683_s0 + $0x10] sm:$0xff]   ;;  %v1375_v24 = vshrl.u32 %v57_v23, 7 }
   0x4   :  { %235 = vmatprep.subr.bf16.mxu0 %v1219_v3  ;;  %1212 = vmatprep.subr.bf16.mxu1 %v1219_v3  ;;  %v1223_v7 = vld [vmem:[%s1683_s0 + $0x60] sm:$0xff]   ;;  %v1226_v10 = vld [vmem:[%s1683_s0 + $0x68] sm:$0xff]   ;;  %v1228_v12 = vld [vmem:[%s1683_s0 + $0x70] sm:$0xff]  }
   0x5   :  { %v1230_v13 = vld [vmem:[%s1683_s0 + $0x18] sm:$0xff]   ;;  %v1232_v15 = vld [vmem:[%s1683_s0 + $0x20] sm:$0xff]   ;;  %v1233_v16 = vld [vmem:[%s1683_s0 + $0x28] sm:$0xff]   ;;  %v59_v25 = vsub.s32 0, %v1375_v24  ;;  %v63_v27 = vsub.s32 1, %v1375_v24 }
   0x6   :  { %v1231_v14 = vld [vmem:[%s1683_s0 + $0x78] sm:$0xff]   ;;  %v1234_v17 = vld [vmem:[%s1683_s0 + $0x30] sm:$0xff]   ;;  %v1236_v19 = vld [vmem:[%s1683_s0 + $0x40] sm:$0xff]  }
   0x7   :  { %236 = vmatpush1.bf16.msra.mxu0 %v1221_v4  ;;  %1214 = vmatpush1.bf16.msra.mxu1 %v1221_v4  ;;  %v1235_v18 = vld [vmem:[%s1683_s0 + $0x38] sm:$0xff]   ;;  %v1237_v20 = vld [vmem:[%s1683_s0 + $0x48] sm:$0xff]   ;;  %v1238_v21 = vld [vmem:[%s1683_s0 + $0x50] sm:$0xff]  }
   0x8   :  { %1175 = vmatprep.subr.bf16.mxu1 %v1224_v6  ;;  %v1239_v22 = vld [vmem:[%s1683_s0 + $0x58] sm:$0xff]   ;;  %v1381_v26 = vld [vmem:[%s1684_s2] sm:$0x7] }
   0x9   :  { %v1385_v28 = vrot.slane %v1381_v26, %v59_v25  ;;  %v1388_v29 = vrot.slane %v1381_v26, %v63_v27 }
   0xa   :  { %997 = vmatmul.mubr.msk.bf16.vlgmr.msra.gmra.mrb[0].mxu0 %vm184_vm0, %v1222_v5  ;;  %1009 = vmatmul.mubr.msk.bf16.vlgmr.msra.gmra.mrb[0].mxu1 %vm184_vm0, %v1223_v7 }
   0xb   :  { %1176 = vmatpush3.bf16.msra.mxu1 %v1224_v6  ;;  %275 = vmatprep.mubr.bf16.mxu0 %v1240_v1 }
   0xc   :  { %395 = vmatprep.mubr.bf16.mxu1 %v1240_v1  ;;  %1177 = vmatprep.subr.bf16.mxu1 %v1229_v8 }
   0xf   :  { %1178 = vmatpush3.bf16.msra.mxu1 %v1229_v8 }
  0x12   :  { %998 = vmatmul.mubr.msk.bf16.gmra.mrb[4].mxu0 %vm184_vm0, %v1225_v9  ;;  %1010 = vmatmul.mubr.msk.bf16.gmra.mrb[4].mxu1 %vm184_vm0, %v1226_v10 }
  0x13   :  { %285 = vmatprep.mubr.bf16.mxu0 %v1240_v1  ;;  %405 = vmatprep.mubr.bf16.mxu1 %v1240_v1 }
  0x1a   :  { %999 = vmatmul.mubr.msk.bf16.gmra.mrb[8].mxu0 %vm184_vm0, %v1227_v11  ;;  %1011 = vmatmul.mubr.msk.bf16.gmra.mrb[8].mxu1 %vm184_vm0, %v1228_v12 }
  0x1b   :  { %295 = vmatprep.mubr.bf16.mxu0 %v1240_v1  ;;  %415 = vmatprep.mubr.bf16.mxu1 %v1240_v1 }
  0x22   :  { %1000 = vmatmul.mubr.msk.bf16.gmra.mrb[12].mxu0 %vm184_vm0, %v1230_v13  ;;  %1012 = vmatmul.mubr.msk.bf16.gmra.mrb[12].mxu1 %vm184_vm0, %v1231_v14 }
  0x23   :  { %305 = vmatprep.mubr.bf16.mxu0 %v1240_v1  ;;  %1179 = vmatprep.mubr.msk.bf16.mxu1 %vm184_vm0, %v1222_v5 }
  0x2a   :  { %1001 = vmatmul.mubr.msk.bf16.gmra.mrb[16].mxu0 %vm184_vm0, %v1232_v15  ;;  %1180 = vmatmul.mubr.msk.bf16.vlgmr.msra.gmra.mrb[16].mxu1 %vm184_vm0, %v1225_v9 }
  0x2b   :  { %315 = vmatprep.mubr.bf16.mxu0 %v1240_v1  ;;  %1183 = vmatprep.mubr.msk.bf16.mxu1 %vm184_vm0, %v1227_v11 }
  0x32   :  { %1002 = vmatmul.mubr.msk.bf16.gmra.mrb[20].mxu0 %vm184_vm0, %v1233_v16  ;;  %1184 = vmatmul.mubr.msk.bf16.gmra.mrb[20].mxu1 %vm184_vm0, %v1230_v13 }
  0x33   :  { %325 = vmatprep.mubr.bf16.mxu0 %v1240_v1  ;;  %1187 = vmatprep.mubr.msk.bf16.mxu1 %vm184_vm0, %v1232_v15 }
  0x3a   :  { %1003 = vmatmul.mubr.msk.bf16.gmra.mrb[24].mxu0 %vm184_vm0, %v1234_v17  ;;  %1188 = vmatmul.mubr.msk.bf16.gmra.mrb[24].mxu1 %vm184_vm0, %v1233_v16 }
  0x3b   :  { %335 = vmatprep.mubr.bf16.mxu0 %v1240_v1  ;;  %1191 = vmatprep.mubr.msk.bf16.mxu1 %vm184_vm0, %v1234_v17 }
  0x42   :  { %1004 = vmatmul.mubr.msk.bf16.gmra.mrb[28].mxu0 %vm184_vm0, %v1235_v18  ;;  %1192 = vmatmul.mubr.msk.bf16.gmra.mrb[28].mxu1 %vm184_vm0, %v1235_v18 }
  0x43   :  { %345 = vmatprep.mubr.bf16.mxu0 %v1240_v1  ;;  %1195 = vmatprep.mubr.msk.bf16.mxu1 %vm184_vm0, %v1236_v19 }
  0x4a   :  { %1005 = vmatmul.mubr.msk.bf16.gmra.mrb[32].mxu0 %vm184_vm0, %v1236_v19  ;;  %1196 = vmatmul.mubr.msk.bf16.gmra.mrb[32].mxu1 %vm184_vm0, %v1237_v20 }
  0x4b   :  { %355 = vmatprep.mubr.bf16.mxu0 %v1240_v1  ;;  %1199 = vmatprep.mubr.msk.bf16.mxu1 %vm184_vm0, %v1238_v21 }
  0x52   :  { %1006 = vmatmul.mubr.msk.bf16.gmra.mrb[36].mxu0 %vm184_vm0, %v1237_v20  ;;  %1200 = vmatmul.mubr.msk.bf16.gmra.mrb[36].mxu1 %vm184_vm0, %v1239_v22 }
  0x53   :  { %365 = vmatprep.mubr.bf16.mxu0 %v1240_v1  ;;  %1203 = vmatprep.mubr.msk.bf16.mxu1 %vm184_vm0, %v1223_v7 }
  0x5a   :  { %1007 = vmatmul.mubr.msk.bf16.gmra.mrb[40].mxu0 %vm184_vm0, %v1238_v21  ;;  %1204 = vmatmul.mubr.msk.bf16.gmra.mrb[40].mxu1 %vm184_vm0, %v1226_v10 }
  0x5b   :  { %375 = vmatprep.mubr.bf16.mxu0 %v1240_v1  ;;  %1207 = vmatprep.mubr.msk.bf16.mxu1 %vm184_vm0, %v1228_v12 }
  0x62   :  { %1008 = vmatmul.mubr.msk.bf16.gmra.mrb[44].mxu0 %vm184_vm0, %v1239_v22  ;;  %1208 = vmatmul.mubr.msk.bf16.gmra.mrb[44].mxu1 %vm184_vm0, %v1231_v14 }
  0xdd   :  { %v267_v30 = vpop.f32.mrb[0].mxu0  ;;  %v387_v31 = vpop.f32.mrb[0].mxu1 }
  0xde   :  { %v268_v32 = vadd.f32 %v267_v30, %v1385_v28  ;;  %v388_v33 = vadd.f32 %v387_v31, %v1385_v28  ;;  %v269_v34 = vpop.f32.mrb[1].mxu0  ;;  %v389_v35 = vpop.f32.mrb[1].mxu1 }
  0xdf   :  { %v270_v36 = vadd.f32 %v269_v34, %v1388_v29  ;;  %v390_v37 = vadd.f32 %v389_v35, %v1388_v29  ;;  %v271_v38 = vpop.f32.mrb[2].mxu0  ;;  %v391_v39 = vpop.f32.mrb[2].mxu1 }
  0xe0   :  { %v272_v40 = vadd.f32 %v271_v38, %v1385_v28  ;;  %v392_v41 = vadd.f32 %v391_v39, %v1385_v28  ;;  %v273_v42 = vpop.f32.mrb[3].mxu0  ;;  %v393_v43 = vpop.f32.mrb[3].mxu1 }
  0xe1   :  { %v1093_v44 = vpack.c.bf16 %v270_v36, %v268_v32  ;;  %v1141_v45 = vpack.c.bf16 %v390_v37, %v388_v33  ;;  %v274_v46 = vadd.f32 %v273_v42, %v1388_v29  ;;  %v394_v47 = vadd.f32 %v393_v43, %v1388_v29 }
  0xe2   :  { %v67_v36 = vsub.s32 2, %v1375_v24 }
  0xe3   :  { %907 = vst [vmem:[%s1685_s3] sm:$0xff] %v1093_v44  ;;  %955 = vst [vmem:[%s1685_s3 + $0x120] sm:$0xff] %v1141_v45  ;;  %v1095_v48 = vpack.c.bf16 %v274_v46, %v272_v40  ;;  %v1143_v49 = vpack.c.bf16 %v394_v47, %v392_v41 }
  0xe4   :  { %v1460_v24 = vrot.slane %v1381_v26, %v67_v36 }
  0xe5   :  { %909 = vst [vmem:[%s1685_s3 + $0xc] sm:$0xff] %v1095_v48  ;;  %957 = vst [vmem:[%s1685_s3 + $0x12c] sm:$0xff] %v1143_v49  ;;  %v277_v50 = vpop.f32.mrb[4].mxu0  ;;  %v397_v51 = vpop.f32.mrb[4].mxu1 }
  0xe6   :  { %v278_v52 = vadd.f32 %v277_v50, %v1385_v28  ;;  %v398_v53 = vadd.f32 %v397_v51, %v1385_v28  ;;  %v279_v54 = vpop.f32.mrb[5].mxu0  ;;  %v399_v55 = vpop.f32.mrb[5].mxu1 }
  0xe7   :  { %v280_v56 = vadd.f32 %v279_v54, %v1388_v29  ;;  %v400_v57 = vadd.f32 %v399_v55, %v1388_v29  ;;  %v281_v58 = vpop.f32.mrb[6].mxu0  ;;  %v401_v59 = vpop.f32.mrb[6].mxu1 }
  0xe8   :  { %v282_v60 = vadd.f32 %v281_v58, %v1385_v28  ;;  %v402_v61 = vadd.f32 %v401_v59, %v1385_v28  ;;  %v283_v62 = vpop.f32.mrb[7].mxu0  ;;  %v403_v63 = vpop.f32.mrb[7].mxu1 }
  0xe9   :  { %v1097_v0 = vpack.c.bf16 %v280_v56, %v278_v52  ;;  %v1145_v1 = vpack.c.bf16 %v400_v57, %v398_v53  ;;  %v284_v2 = vadd.f32 %v283_v62, %v1388_v29  ;;  %v404_v3 = vadd.f32 %v403_v63, %v1388_v29 }
  0xeb   :  { %911 = vst [vmem:[%s1685_s3 + $0x18] sm:$0xff] %v1097_v0  ;;  %959 = vst [vmem:[%s1685_s3 + $0x138] sm:$0xff] %v1145_v1  ;;  %v1099_v4 = vpack.c.bf16 %v284_v2, %v282_v60  ;;  %v1147_v5 = vpack.c.bf16 %v404_v3, %v402_v61 }
  0xed   :  { %913 = vst [vmem:[%s1685_s3 + $0x24] sm:$0xff] %v1099_v4  ;;  %961 = vst [vmem:[%s1685_s3 + $0x144] sm:$0xff] %v1147_v5  ;;  %v287_v6 = vpop.f32.mrb[8].mxu0  ;;  %v407_v7 = vpop.f32.mrb[8].mxu1 }
  0xee   :  { %v288_v8 = vadd.f32 %v287_v6, %v1385_v28  ;;  %v408_v9 = vadd.f32 %v407_v7, %v1385_v28  ;;  %v289_v10 = vpop.f32.mrb[9].mxu0  ;;  %v409_v11 = vpop.f32.mrb[9].mxu1 }
  0xef   :  { %v290_v12 = vadd.f32 %v289_v10, %v1388_v29  ;;  %v410_v13 = vadd.f32 %v409_v11, %v1388_v29  ;;  %v291_v14 = vpop.f32.mrb[10].mxu0  ;;  %v411_v15 = vpop.f32.mrb[10].mxu1 }
  0xf0   :  { %v292_v16 = vadd.f32 %v291_v14, %v1385_v28  ;;  %v412_v17 = vadd.f32 %v411_v15, %v1385_v28  ;;  %v293_v18 = vpop.f32.mrb[11].mxu0  ;;  %v413_v19 = vpop.f32.mrb[11].mxu1 }
  0xf1   :  { %v1101_v20 = vpack.c.bf16 %v290_v12, %v288_v8  ;;  %v1149_v21 = vpack.c.bf16 %v410_v13, %v408_v9  ;;  %v294_v22 = vadd.f32 %v293_v18, %v1388_v29  ;;  %v414_v23 = vadd.f32 %v413_v19, %v1388_v29 }
  0xf3   :  { %915 = vst [vmem:[%s1685_s3 + $0x30] sm:$0xff] %v1101_v20  ;;  %963 = vst [vmem:[%s1685_s3 + $0x150] sm:$0xff] %v1149_v21  ;;  %v1103_v25 = vpack.c.bf16 %v294_v22, %v292_v16  ;;  %v1151_v27 = vpack.c.bf16 %v414_v23, %v412_v17 }
  0xf5   :  { %917 = vst [vmem:[%s1685_s3 + $0x3c] sm:$0xff] %v1103_v25  ;;  %965 = vst [vmem:[%s1685_s3 + $0x15c] sm:$0xff] %v1151_v27  ;;  %v297_v30 = vpop.f32.mrb[12].mxu0  ;;  %v417_v31 = vpop.f32.mrb[12].mxu1 }
  0xf6   :  { %v298_v32 = vadd.f32 %v297_v30, %v1385_v28  ;;  %v418_v33 = vadd.f32 %v417_v31, %v1385_v28  ;;  %v299_v34 = vpop.f32.mrb[13].mxu0  ;;  %v419_v35 = vpop.f32.mrb[13].mxu1 }
  0xf7   :  { %v300_v37 = vadd.f32 %v299_v34, %v1388_v29  ;;  %v420_v38 = vadd.f32 %v419_v35, %v1388_v29  ;;  %v301_v39 = vpop.f32.mrb[14].mxu0  ;;  %v421_v40 = vpop.f32.mrb[14].mxu1 }
  0xf8   :  { %v302_v41 = vadd.f32 %v301_v39, %v1385_v28  ;;  %v422_v42 = vadd.f32 %v421_v40, %v1385_v28  ;;  %v303_v43 = vpop.f32.mrb[15].mxu0  ;;  %v423_v44 = vpop.f32.mrb[15].mxu1 }
  0xf9   :  { %v1105_v45 = vpack.c.bf16 %v300_v37, %v298_v32  ;;  %v1153_v46 = vpack.c.bf16 %v420_v38, %v418_v33  ;;  %v304_v47 = vadd.f32 %v303_v43, %v1388_v29  ;;  %v424_v48 = vadd.f32 %v423_v44, %v1388_v29 }
  0xfb   :  { %919 = vst [vmem:[%s1685_s3 + $0x48] sm:$0xff] %v1105_v45  ;;  %967 = vst [vmem:[%s1685_s3 + $0x168] sm:$0xff] %v1153_v46  ;;  %v1107_v49 = vpack.c.bf16 %v304_v47, %v302_v41  ;;  %v1155_v50 = vpack.c.bf16 %v424_v48, %v422_v42 }
  0xfd   :  { %921 = vst [vmem:[%s1685_s3 + $0x54] sm:$0xff] %v1107_v49  ;;  %969 = vst [vmem:[%s1685_s3 + $0x174] sm:$0xff] %v1155_v50  ;;  %v307_v26 = vpop.f32.mrb[16].mxu0  ;;  %v1181_v51 = vpop.f32.mrb[16].mxu1 }
  0xfe   :  { %v308_v52 = vadd.f32 %v307_v26, %v1385_v28  ;;  %v469_v53 = vadd.f32 %v1181_v51, %v1460_v24  ;;  %v309_v54 = vpop.f32.mrb[17].mxu0  ;;  %v460_v55 = vpop.f32.mrb[17].mxu1 }
  0xff   :  { %v310_v56 = vadd.f32 %v309_v54, %v1388_v29  ;;  %v461_v57 = vadd.f32 %v460_v55, %v1460_v24  ;;  %v311_v58 = vpop.f32.mrb[18].mxu0  ;;  %v1182_v59 = vpop.f32.mrb[18].mxu1 }
 0x100   :  { %v1098_v60 = vpack.c.bf16 %v469_v53, %v469_v53  ;;  %v312_v61 = vadd.f32 %v311_v58, %v1385_v28  ;;  %v472_v62 = vadd.f32 %v1182_v59, %v1460_v24  ;;  %v313_v63 = vpop.f32.mrb[19].mxu0  ;;  %v463_v0 = vpop.f32.mrb[19].mxu1 }
 0x101   :  { %v1109_v1 = vpack.c.bf16 %v310_v56, %v308_v52  ;;  %v1094_v2 = vpack.c.bf16 %v461_v57, %v461_v57  ;;  %v314_v3 = vadd.f32 %v313_v63, %v1388_v29  ;;  %v464_v4 = vadd.f32 %v463_v0, %v1460_v24 }
 0x102   :  { %912 = vst [vmem:[%s1685_s3 + $0x20] sm:$0xf] %v1098_v60  ;;  %v1100_v5 = vpack.c.bf16 %v472_v62, %v472_v62 }
 0x103   :  { %923 = vst [vmem:[%s1685_s3 + $0x60] sm:$0xff] %v1109_v1  ;;  %908 = vst [vmem:[%s1685_s3 + $0x8] sm:$0xf] %v1094_v2  ;;  %v1111_v6 = vpack.c.bf16 %v314_v3, %v312_v61  ;;  %v1096_v7 = vpack.c.bf16 %v464_v4, %v464_v4 }
 0x104   :  { %914 = vst [vmem:[%s1685_s3 + $0x2c] sm:$0xf] %v1100_v5 }
 0x105   :  { %925 = vst [vmem:[%s1685_s3 + $0x6c] sm:$0xff] %v1111_v6  ;;  %910 = vst [vmem:[%s1685_s3 + $0x14] sm:$0xf] %v1096_v7  ;;  %v317_v8 = vpop.f32.mrb[20].mxu0  ;;  %v1185_v9 = vpop.f32.mrb[20].mxu1 }
 0x106   :  { %v318_v10 = vadd.f32 %v317_v8, %v1385_v28  ;;  %v485_v11 = vadd.f32 %v1185_v9, %v1460_v24  ;;  %v319_v12 = vpop.f32.mrb[21].mxu0  ;;  %v476_v13 = vpop.f32.mrb[21].mxu1 }
 0x107   :  { %v320_v14 = vadd.f32 %v319_v12, %v1388_v29  ;;  %v477_v15 = vadd.f32 %v476_v13, %v1460_v24  ;;  %v321_v16 = vpop.f32.mrb[22].mxu0  ;;  %v1186_v17 = vpop.f32.mrb[22].mxu1 }
 0x108   :  { %v1106_v18 = vpack.c.bf16 %v485_v11, %v485_v11  ;;  %v322_v19 = vadd.f32 %v321_v16, %v1385_v28  ;;  %v488_v20 = vadd.f32 %v1186_v17, %v1460_v24  ;;  %v323_v21 = vpop.f32.mrb[23].mxu0  ;;  %v479_v22 = vpop.f32.mrb[23].mxu1 }
 0x109   :  { %v1113_v23 = vpack.c.bf16 %v320_v14, %v318_v10  ;;  %v1102_v25 = vpack.c.bf16 %v477_v15, %v477_v15  ;;  %v324_v27 = vadd.f32 %v323_v21, %v1388_v29  ;;  %v480_v30 = vadd.f32 %v479_v22, %v1460_v24 }
 0x10a   :  { %920 = vst [vmem:[%s1685_s3 + $0x50] sm:$0xf] %v1106_v18  ;;  %v1108_v31 = vpack.c.bf16 %v488_v20, %v488_v20 }
 0x10b   :  { %927 = vst [vmem:[%s1685_s3 + $0x78] sm:$0xff] %v1113_v23  ;;  %916 = vst [vmem:[%s1685_s3 + $0x38] sm:$0xf] %v1102_v25  ;;  %v1115_v32 = vpack.c.bf16 %v324_v27, %v322_v19  ;;  %v1104_v33 = vpack.c.bf16 %v480_v30, %v480_v30 }
 0x10c   :  { %922 = vst [vmem:[%s1685_s3 + $0x5c] sm:$0xf] %v1108_v31 }
 0x10d   :  { %929 = vst [vmem:[%s1685_s3 + $0x84] sm:$0xff] %v1115_v32  ;;  %918 = vst [vmem:[%s1685_s3 + $0x44] sm:$0xf] %v1104_v33  ;;  %v327_v34 = vpop.f32.mrb[24].mxu0  ;;  %v1189_v35 = vpop.f32.mrb[24].mxu1 }
 0x10e   :  { %v328_v36 = vadd.f32 %v327_v34, %v1385_v28  ;;  %v501_v37 = vadd.f32 %v1189_v35, %v1460_v24  ;;  %v329_v38 = vpop.f32.mrb[25].mxu0  ;;  %v492_v39 = vpop.f32.mrb[25].mxu1 }
 0x10f   :  { %v330_v40 = vadd.f32 %v329_v38, %v1388_v29  ;;  %v493_v41 = vadd.f32 %v492_v39, %v1460_v24  ;;  %v331_v42 = vpop.f32.mrb[26].mxu0  ;;  %v1190_v43 = vpop.f32.mrb[26].mxu1 }
 0x110   :  { %v1114_v44 = vpack.c.bf16 %v501_v37, %v501_v37  ;;  %v332_v45 = vadd.f32 %v331_v42, %v1385_v28  ;;  %v504_v46 = vadd.f32 %v1190_v43, %v1460_v24  ;;  %v333_v47 = vpop.f32.mrb[27].mxu0  ;;  %v495_v48 = vpop.f32.mrb[27].mxu1 }
 0x111   :  { %v1117_v49 = vpack.c.bf16 %v330_v40, %v328_v36  ;;  %v1110_v50 = vpack.c.bf16 %v493_v41, %v493_v41  ;;  %v334_v26 = vadd.f32 %v333_v47, %v1388_v29  ;;  %v496_v51 = vadd.f32 %v495_v48, %v1460_v24 }
 0x112   :  { %928 = vst [vmem:[%s1685_s3 + $0x80] sm:$0xf] %v1114_v44  ;;  %v1116_v52 = vpack.c.bf16 %v504_v46, %v504_v46 }
 0x113   :  { %931 = vst [vmem:[%s1685_s3 + $0x90] sm:$0xff] %v1117_v49  ;;  %924 = vst [vmem:[%s1685_s3 + $0x68] sm:$0xf] %v1110_v50  ;;  %v1119_v53 = vpack.c.bf16 %v334_v26, %v332_v45  ;;  %v1112_v54 = vpack.c.bf16 %v496_v51, %v496_v51 }
 0x114   :  { %930 = vst [vmem:[%s1685_s3 + $0x8c] sm:$0xf] %v1116_v52 }
 0x115   :  { %933 = vst [vmem:[%s1685_s3 + $0x9c] sm:$0xff] %v1119_v53  ;;  %926 = vst [vmem:[%s1685_s3 + $0x74] sm:$0xf] %v1112_v54  ;;  %v337_v55 = vpop.f32.mrb[28].mxu0  ;;  %v1193_v56 = vpop.f32.mrb[28].mxu1 }
 0x116   :  { %v338_v57 = vadd.f32 %v337_v55, %v1385_v28  ;;  %v517_v58 = vadd.f32 %v1193_v56, %v1460_v24  ;;  %v339_v59 = vpop.f32.mrb[29].mxu0  ;;  %v508_v60 = vpop.f32.mrb[29].mxu1 }
 0x117   :  { %v340_v61 = vadd.f32 %v339_v59, %v1388_v29  ;;  %v509_v62 = vadd.f32 %v508_v60, %v1460_v24  ;;  %v341_v63 = vpop.f32.mrb[30].mxu0  ;;  %v1194_v0 = vpop.f32.mrb[30].mxu1 }
 0x118   :  { %v1122_v1 = vpack.c.bf16 %v517_v58, %v517_v58  ;;  %v342_v2 = vadd.f32 %v341_v63, %v1385_v28  ;;  %v520_v3 = vadd.f32 %v1194_v0, %v1460_v24  ;;  %v343_v4 = vpop.f32.mrb[31].mxu0  ;;  %v511_v5 = vpop.f32.mrb[31].mxu1 }
 0x119   :  { %v1121_v6 = vpack.c.bf16 %v340_v61, %v338_v57  ;;  %v1118_v7 = vpack.c.bf16 %v509_v62, %v509_v62  ;;  %v344_v8 = vadd.f32 %v343_v4, %v1388_v29  ;;  %v512_v9 = vadd.f32 %v511_v5, %v1460_v24 }
 0x11a   :  { %936 = vst [vmem:[%s1685_s3 + $0xb0] sm:$0xf] %v1122_v1  ;;  %v1124_v10 = vpack.c.bf16 %v520_v3, %v520_v3 }
 0x11b   :  { %935 = vst [vmem:[%s1685_s3 + $0xa8] sm:$0xff] %v1121_v6  ;;  %932 = vst [vmem:[%s1685_s3 + $0x98] sm:$0xf] %v1118_v7  ;;  %v1123_v11 = vpack.c.bf16 %v344_v8, %v342_v2  ;;  %v1120_v12 = vpack.c.bf16 %v512_v9, %v512_v9 }
 0x11c   :  { %938 = vst [vmem:[%s1685_s3 + $0xbc] sm:$0xf] %v1124_v10 }
 0x11d   :  { %937 = vst [vmem:[%s1685_s3 + $0xb4] sm:$0xff] %v1123_v11  ;;  %934 = vst [vmem:[%s1685_s3 + $0xa4] sm:$0xf] %v1120_v12  ;;  %v347_v13 = vpop.f32.mrb[32].mxu0  ;;  %v1197_v14 = vpop.f32.mrb[32].mxu1 }
 0x11e   :  { %v348_v15 = vadd.f32 %v347_v13, %v1385_v28  ;;  %v533_v16 = vadd.f32 %v1197_v14, %v1460_v24  ;;  %v349_v17 = vpop.f32.mrb[33].mxu0  ;;  %v524_v18 = vpop.f32.mrb[33].mxu1 }
 0x11f   :  { %v350_v19 = vadd.f32 %v349_v17, %v1388_v29  ;;  %v525_v20 = vadd.f32 %v524_v18, %v1460_v24  ;;  %v351_v21 = vpop.f32.mrb[34].mxu0  ;;  %v1198_v22 = vpop.f32.mrb[34].mxu1 }
 0x120   :  { %v1130_v23 = vpack.c.bf16 %v533_v16, %v533_v16  ;;  %v352_v25 = vadd.f32 %v351_v21, %v1385_v28  ;;  %v536_v27 = vadd.f32 %v1198_v22, %v1460_v24  ;;  %v353_v30 = vpop.f32.mrb[35].mxu0  ;;  %v527_v31 = vpop.f32.mrb[35].mxu1 }
 0x121   :  { %v1125_v32 = vpack.c.bf16 %v350_v19, %v348_v15  ;;  %v1126_v33 = vpack.c.bf16 %v525_v20, %v525_v20  ;;  %v354_v34 = vadd.f32 %v353_v30, %v1388_v29  ;;  %v528_v35 = vadd.f32 %v527_v31, %v1460_v24 }
 0x122   :  { %944 = vst [vmem:[%s1685_s3 + $0xe0] sm:$0xf] %v1130_v23  ;;  %v1132_v36 = vpack.c.bf16 %v536_v27, %v536_v27 }
 0x123   :  { %939 = vst [vmem:[%s1685_s3 + $0xc0] sm:$0xff] %v1125_v32  ;;  %940 = vst [vmem:[%s1685_s3 + $0xc8] sm:$0xf] %v1126_v33  ;;  %v1127_v37 = vpack.c.bf16 %v354_v34, %v352_v25  ;;  %v1128_v38 = vpack.c.bf16 %v528_v35, %v528_v35 }
 0x124   :  { %946 = vst [vmem:[%s1685_s3 + $0xec] sm:$0xf] %v1132_v36 }
 0x125   :  { %941 = vst [vmem:[%s1685_s3 + $0xcc] sm:$0xff] %v1127_v37  ;;  %942 = vst [vmem:[%s1685_s3 + $0xd4] sm:$0xf] %v1128_v38  ;;  %v357_v39 = vpop.f32.mrb[36].mxu0  ;;  %v1201_v40 = vpop.f32.mrb[36].mxu1 }
 0x126   :  { %v358_v41 = vadd.f32 %v357_v39, %v1385_v28  ;;  %v549_v42 = vadd.f32 %v1201_v40, %v1460_v24  ;;  %v359_v43 = vpop.f32.mrb[37].mxu0  ;;  %v540_v44 = vpop.f32.mrb[37].mxu1 }
 0x127   :  { %v360_v45 = vadd.f32 %v359_v43, %v1388_v29  ;;  %v541_v46 = vadd.f32 %v540_v44, %v1460_v24  ;;  %v361_v47 = vpop.f32.mrb[38].mxu0  ;;  %v1202_v48 = vpop.f32.mrb[38].mxu1 }
 0x128   :  { %v1138_v49 = vpack.c.bf16 %v549_v42, %v549_v42  ;;  %v362_v50 = vadd.f32 %v361_v47, %v1385_v28  ;;  %v552_v26 = vadd.f32 %v1202_v48, %v1460_v24  ;;  %v363_v51 = vpop.f32.mrb[39].mxu0  ;;  %v543_v52 = vpop.f32.mrb[39].mxu1 }
 0x129   :  { %v1129_v53 = vpack.c.bf16 %v360_v45, %v358_v41  ;;  %v1134_v54 = vpack.c.bf16 %v541_v46, %v541_v46  ;;  %v364_v55 = vadd.f32 %v363_v51, %v1388_v29  ;;  %v544_v56 = vadd.f32 %v543_v52, %v1460_v24 }
 0x12a   :  { %952 = vst [vmem:[%s1685_s3 + $0x110] sm:$0xf] %v1138_v49  ;;  %v1140_v57 = vpack.c.bf16 %v552_v26, %v552_v26 }
 0x12b   :  { %943 = vst [vmem:[%s1685_s3 + $0xd8] sm:$0xff] %v1129_v53  ;;  %948 = vst [vmem:[%s1685_s3 + $0xf8] sm:$0xf] %v1134_v54  ;;  %v1131_v58 = vpack.c.bf16 %v364_v55, %v362_v50  ;;  %v1136_v59 = vpack.c.bf16 %v544_v56, %v544_v56 }
 0x12c   :  { %954 = vst [vmem:[%s1685_s3 + $0x11c] sm:$0xf] %v1140_v57 }
 0x12d   :  { %945 = vst [vmem:[%s1685_s3 + $0xe4] sm:$0xff] %v1131_v58  ;;  %950 = vst [vmem:[%s1685_s3 + $0x104] sm:$0xf] %v1136_v59  ;;  %v367_v60 = vpop.f32.mrb[40].mxu0  ;;  %v1205_v61 = vpop.f32.mrb[40].mxu1 }
 0x12e   :  { %v368_v62 = vadd.f32 %v367_v60, %v1385_v28  ;;  %v565_v63 = vadd.f32 %v1205_v61, %v1460_v24  ;;  %v369_v0 = vpop.f32.mrb[41].mxu0  ;;  %v556_v1 = vpop.f32.mrb[41].mxu1 }
 0x12f   :  { %v370_v2 = vadd.f32 %v369_v0, %v1388_v29  ;;  %v557_v3 = vadd.f32 %v556_v1, %v1460_v24  ;;  %v371_v4 = vpop.f32.mrb[42].mxu0  ;;  %v1206_v5 = vpop.f32.mrb[42].mxu1 }
 0x130   :  { %v1146_v6 = vpack.c.bf16 %v565_v63, %v565_v63  ;;  %v372_v7 = vadd.f32 %v371_v4, %v1385_v28  ;;  %v568_v8 = vadd.f32 %v1206_v5, %v1460_v24  ;;  %v373_v9 = vpop.f32.mrb[43].mxu0  ;;  %v559_v10 = vpop.f32.mrb[43].mxu1 }
 0x131   :  { %v1133_v11 = vpack.c.bf16 %v370_v2, %v368_v62  ;;  %v1142_v12 = vpack.c.bf16 %v557_v3, %v557_v3  ;;  %v374_v13 = vadd.f32 %v373_v9, %v1388_v29  ;;  %v560_v14 = vadd.f32 %v559_v10, %v1460_v24 }
 0x132   :  { %960 = vst [vmem:[%s1685_s3 + $0x140] sm:$0xf] %v1146_v6  ;;  %v1148_v15 = vpack.c.bf16 %v568_v8, %v568_v8 }
 0x133   :  { %947 = vst [vmem:[%s1685_s3 + $0xf0] sm:$0xff] %v1133_v11  ;;  %956 = vst [vmem:[%s1685_s3 + $0x128] sm:$0xf] %v1142_v12  ;;  %v1135_v16 = vpack.c.bf16 %v374_v13, %v372_v7  ;;  %v1144_v17 = vpack.c.bf16 %v560_v14, %v560_v14 }
 0x134   :  { %962 = vst [vmem:[%s1685_s3 + $0x14c] sm:$0xf] %v1148_v15 }
 0x135   :  { %949 = vst [vmem:[%s1685_s3 + $0xfc] sm:$0xff] %v1135_v16  ;;  %958 = vst [vmem:[%s1685_s3 + $0x134] sm:$0xf] %v1144_v17  ;;  %v377_v18 = vpop.f32.mrb[44].mxu0  ;;  %v1209_v19 = vpop.f32.mrb[44].mxu1 }
 0x136   :  { %v378_v20 = vadd.f32 %v377_v18, %v1385_v28  ;;  %v581_v21 = vadd.f32 %v1209_v19, %v1460_v24  ;;  %v379_v22 = vpop.f32.mrb[45].mxu0  ;;  %v572_v23 = vpop.f32.mrb[45].mxu1 }
 0x137   :  { %v380_v25 = vadd.f32 %v379_v22, %v1388_v29  ;;  %v573_v27 = vadd.f32 %v572_v23, %v1460_v24  ;;  %v381_v30 = vpop.f32.mrb[46].mxu0  ;;  %v1210_v31 = vpop.f32.mrb[46].mxu1 }
 0x138   :  { %v1154_v32 = vpack.c.bf16 %v581_v21, %v581_v21  ;;  %v382_v33 = vadd.f32 %v381_v30, %v1385_v28  ;;  %v584_v34 = vadd.f32 %v1210_v31, %v1460_v24  ;;  %v383_v35 = vpop.f32.mrb[47].mxu0  ;;  %v575_v36 = vpop.f32.mrb[47].mxu1 }
 0x139   :  { %v1137_v37 = vpack.c.bf16 %v380_v25, %v378_v20  ;;  %v1150_v38 = vpack.c.bf16 %v573_v27, %v573_v27  ;;  %v384_v39 = vadd.f32 %v383_v35, %v1388_v29  ;;  %v576_v40 = vadd.f32 %v575_v36, %v1460_v24 }
 0x13a   :  { %968 = vst [vmem:[%s1685_s3 + $0x170] sm:$0xf] %v1154_v32  ;;  %v1156_v41 = vpack.c.bf16 %v584_v34, %v584_v34 }
 0x13b   :  { %951 = vst [vmem:[%s1685_s3 + $0x108] sm:$0xff] %v1137_v37  ;;  %964 = vst [vmem:[%s1685_s3 + $0x158] sm:$0xf] %v1150_v38  ;;  %v1139_v28 = vpack.c.bf16 %v384_v39, %v382_v33  ;;  %v1152_v42 = vpack.c.bf16 %v576_v40, %v576_v40 }
 0x13c   :  { %970 = vst [vmem:[%s1685_s3 + $0x17c] sm:$0xf] %v1156_v41 }
 0x13d   :  { %953 = vst [vmem:[%s1685_s3 + $0x114] sm:$0xff] %v1139_v28  ;;  %966 = vst [vmem:[%s1685_s3 + $0x164] sm:$0xf] %v1152_v42 }

// kernel: reference_encoder_forward.15
= control target key start
LH: loop header
LB: loop body
LE: loop exit
PB: predicated region body
PF: predicated region fallthrough
CT: control target
= control target key end

     0   :  { %v20073_v3 = vmov 0.0|0.0   ;;  %v20076_v4 = vmov 0.0   ;;  %vm17936_vm0 = vmmov 0   ;;  %vm520_vm1 = vcmask 1041409   ;;  %s20069_s1 = inlined_call_operand.vmem [shape: f32[128,384], index: 1, kind: input, shape index: {}]   ;;  %s20070_s3 = inlined_call_operand.vmem [shape: f32[8,128], index: 3, kind: output, shape index: {}]   ;;  %s20071_s2 = inlined_call_operand.vmem [shape: f32[1,384], index: 2, kind: input, shape index: {}]   ;;  %s20072_s0 = inlined_call_operand.vmem [shape: bf16[8,32,384], index: 0, kind: input, shape index: {}]  }
   0x1   :  { %v61_v0 = vld [vmem:[%s20069_s1 + $0x8] sm:$0xff]  ;;  %v64_v1 = vld [vmem:[%s20069_s1 + $0x20] sm:$0xff]  ;;  %16009 = vmatprep.subr.bf16.mxu1 %v20073_v3  ;;  %189 = vmatprep.mubr.f32.mxu0 %v20076_v4  ;;  %18 = vst [vmem:[%s20070_s3] sm:$0xff] %v20076_v4  ;;  %v63_v6 = vld [vmem:[%s20069_s1 + $0x18] sm:$0xff]  ;;  %vm523_vm2 = vcmask 1042434   ;;  %vm526_vm3 = vcmask 1043459   ;;  %vm529_vm4 = vcmask 1044484  }
   0x2   :  { %v60_v2 = vld [vmem:[%s20069_s1] sm:$0xff]  ;;  %v17972_v5 = vpack.c.bf16 %v64_v1, %v61_v0  ;;  %v67_v7 = vld [vmem:[%s20069_s1 + $0x38] sm:$0xff]  ;;  %v70_v8 = vld [vmem:[%s20069_s1 + $0x50] sm:$0xff]  ;;  %14889 = vmatprep.mubr.msk.f32.mxu1 %vm17936_vm0, %v20076_v4  ;;  %vm532_vm5 = vcmask 1045509   ;;  %vm535_vm6 = vcmask 1046534   ;;  %vm538_vm7 = vcmask 1047559  }
   0x3   :  { %v17985_v9 = vpack.c.bf16 %v63_v6, %v60_v2  ;;  %v17987_v10 = vpack.c.bf16 %v70_v8, %v67_v7  ;;  %v66_v11 = vld [vmem:[%s20069_s1 + $0x30] sm:$0xff]  ;;  %v69_v12 = vld [vmem:[%s20069_s1 + $0x48] sm:$0xff]  ;;  %v76_v14 = vld [vmem:[%s20069_s1 + $0x80] sm:$0xff] }
   0x4   :  { %20126 = vst [vmem:[#allocation2_spill] sm:$0xff] %v17972_v5  ;;  %v73_v13 = vld [vmem:[%s20069_s1 + $0x68] sm:$0xff]  ;;  %15978 = vmatprep.subr.bf16.mxu0 %v17972_v5  ;;  %v18003_v15 = vpack.c.bf16 %v69_v12, %v66_v11  ;;  %v72_v17 = vld [vmem:[%s20069_s1 + $0x60] sm:$0xff]  ;;  %v75_v18 = vld [vmem:[%s20069_s1 + $0x78] sm:$0xff] }
   0x5   :  { %15980 = vmatpush1.bf16.msra.mxu0 %v17985_v9  ;;  %v18006_v16 = vpack.c.bf16 %v76_v14, %v73_v13  ;;  %v79_v19 = vld [vmem:[%s20069_s1 + $0x98] sm:$0xff]  ;;  %v82_v20 = vld [vmem:[%s20069_s1 + $0xb0] sm:$0xff]  ;;  %v18021_v21 = vpack.c.bf16 %v75_v18, %v72_v17  ;;  %v81_v24 = vld [vmem:[%s20069_s1 + $0xa8] sm:$0xff]  ;;  %v110_v17 = vlaneseq }
   0x6   :  { %15982 = vmatprep.subr.bf16.mxu0 %v17987_v10  ;;  %v18024_v22 = vpack.c.bf16 %v82_v20, %v79_v19  ;;  %v78_v23 = vld [vmem:[%s20069_s1 + $0x90] sm:$0xff]  ;;  %v85_v25 = vld [vmem:[%s20069_s1 + $0xc8] sm:$0xff]  ;;  %v88_v26 = vld [vmem:[%s20069_s1 + $0xe0] sm:$0xff] }
   0x7   :  { %v62_v27 = vld [vmem:[%s20069_s1 + $0x10] sm:$0xff]  ;;  %v65_v28 = vld [vmem:[%s20069_s1 + $0x28] sm:$0xff]  ;;  %v68_v30 = vld [vmem:[%s20069_s1 + $0x40] sm:$0xff]  ;;  %v18053_v32 = vpack.c.bf16 %v81_v24, %v78_v23  ;;  %v18056_v33 = vpack.c.bf16 %v88_v26, %v85_v25  ;;  %v18227_v18 = vshrl.u32 %v110_v17, 7 }
   0x8   :  { %v18044_v29 = vpack.c.bf16 %v65_v28, %v62_v27  ;;  %v71_v31 = vld [vmem:[%s20069_s1 + $0x58] sm:$0xff]  ;;  %v84_v34 = vld [vmem:[%s20069_s1 + $0xc0] sm:$0xff]  ;;  %v94_v38 = vld [vmem:[%s20069_s1 + $0x110] sm:$0xff] }
   0x9   :  { %15984 = vmatpush1.bf16.msra.mxu0 %v18003_v15  ;;  %v87_v35 = vld [vmem:[%s20069_s1 + $0xd8] sm:$0xff]  ;;  %v18068_v37 = vpack.c.bf16 %v71_v31, %v68_v30  ;;  %v74_v39 = vld [vmem:[%s20069_s1 + $0x70] sm:$0xff]  ;;  %v77_v40 = vld [vmem:[%s20069_s1 + $0x88] sm:$0xff]  ;;  %v112_v19 = vsub.s32 0, %v18227_v18  ;;  %v116_v23 = vsub.s32 1, %v18227_v18 }
   0xa   :  { %15986 = vmatprep.subr.bf16.mxu0 %v18006_v16  ;;  %v91_v36 = vld [vmem:[%s20069_s1 + $0xf8] sm:$0xff]  ;;  %16011 = vmatpush3.bf16.msra.mxu1 %v18044_v29  ;;  %v18081_v41 = vpack.c.bf16 %v87_v35, %v84_v34  ;;  %v90_v43 = vld [vmem:[%s20069_s1 + $0xf0] sm:$0xff]  ;;  %v93_v44 = vld [vmem:[%s20069_s1 + $0x108] sm:$0xff]  ;;  %v18096_v46 = vpack.c.bf16 %v77_v40, %v74_v39 }
   0xb   :  { %16012 = vmatprep.subr.bf16.mxu1 %v20073_v3  ;;  %v18084_v42 = vpack.c.bf16 %v94_v38, %v91_v36  ;;  %v97_v45 = vld [vmem:[%s20069_s1 + $0x128] sm:$0xff]  ;;  %v100_v47 = vld [vmem:[%s20069_s1 + $0x140] sm:$0xff]  ;;  %v83_v49 = vld [vmem:[%s20069_s1 + $0xb8] sm:$0xff]  ;;  %v18109_v50 = vpack.c.bf16 %v93_v44, %v90_v43 }
   0xc   :  { %v80_v48 = vld [vmem:[%s20069_s1 + $0xa0] sm:$0xff]  ;;  %v18112_v51 = vpack.c.bf16 %v100_v47, %v97_v45  ;;  %v99_v53 = vld [vmem:[%s20069_s1 + $0x138] sm:$0xff]  ;;  %v106_v56 = vld [vmem:[%s20069_s1 + $0x170] sm:$0xff] }
   0xd   :  { %15988 = vmatpush1.bf16.msra.mxu0 %v18021_v21  ;;  %v96_v52 = vld [vmem:[%s20069_s1 + $0x120] sm:$0xff]  ;;  %v103_v54 = vld [vmem:[%s20069_s1 + $0x158] sm:$0xff]  ;;  %v18124_v55 = vpack.c.bf16 %v83_v49, %v80_v48  ;;  %v86_v57 = vld [vmem:[%s20069_s1 + $0xd0] sm:$0xff] }
   0xe   :  { %15990 = vmatprep.subr.bf16.mxu0 %v18024_v22  ;;  %16014 = vmatpush3.bf16.msra.mxu1 %v18068_v37  ;;  %v89_v58 = vld [vmem:[%s20069_s1 + $0xe8] sm:$0xff]  ;;  %v18137_v59 = vpack.c.bf16 %v99_v53, %v96_v52  ;;  %v18140_v60 = vpack.c.bf16 %v106_v56, %v103_v54  ;;  %v102_v61 = vld [vmem:[%s20069_s1 + $0x150] sm:$0xff]  ;;  %v92_v0 = vld [vmem:[%s20069_s1 + $0x100] sm:$0xff] }
   0xf   :  { %16015 = vmatprep.subr.bf16.mxu1 %v20073_v3  ;;  %v105_v62 = vld [vmem:[%s20069_s1 + $0x168] sm:$0xff]  ;;  %v18149_v63 = vpack.c.bf16 %v89_v58, %v86_v57  ;;  %v95_v1 = vld [vmem:[%s20069_s1 + $0x118] sm:$0xff]  ;;  %v98_v7 = vld [vmem:[%s20069_s1 + $0x130] sm:$0xff] }
  0x10   :  { %v18159_v2 = vpack.c.bf16 %v105_v62, %v102_v61  ;;  %v18163_v6 = vpack.c.bf16 %v95_v1, %v92_v0  ;;  %v101_v8 = vld [vmem:[%s20069_s1 + $0x148] sm:$0xff]  ;;  %v104_v12 = vld [vmem:[%s20069_s1 + $0x160] sm:$0xff]  ;;  %v107_v13 = vld [vmem:[%s20069_s1 + $0x178] sm:$0xff] }
  0x11   :  { %15992 = vmatpush1.bf16.msra.mxu0 %v18053_v32  ;;  %v18174_v11 = vpack.c.bf16 %v101_v8, %v98_v7  ;;  %v18188_v14 = vpack.c.bf16 %v107_v13, %v104_v12  ;;  %v18233_v20 = vld [vmem:[%s20071_s2] sm:$0x7]  ;;  %v18244_v25 = vld [vmem:[%s20072_s0 + $0x30] sm:$0x11] }
  0x12   :  { %15994 = vmatprep.subr.bf16.mxu0 %v18056_v33  ;;  %16017 = vmatpush3.bf16.msra.mxu1 %v18096_v46  ;;  %20127 = vst [vmem:[#allocation3_spill] sm:$0xff] %v18159_v2  ;;  %v18239_v24 = vld [vmem:[%s20072_s0] sm:$0x11]  ;;  %v18254_v27 = vld [vmem:[%s20072_s0 + $0x90] sm:$0x11]  ;;  %v18262_v30 = vrot.slane %v18233_v20, %v112_v19  ;;  %v18270_v34 = vrot.slane %v18233_v20, %v116_v23  ;;  %v20092_v38 = vunpack.c.l.bf16 %v18244_v25  ;;  %v20082_v49 = vunpack.c.h.bf16 %v18244_v25 }
  0x13   :  { %16018 = vmatprep.subr.bf16.mxu1 %v20073_v3  ;;  %20128 = vst [vmem:[#allocation4_spill] sm:$0xff] %v18188_v14  ;;  %v18249_v26 = vld [vmem:[%s20072_s0 + $0x60] sm:$0x11]  ;;  %v18267_v31 = vld [vmem:[%s20072_s0 + $0xf0] sm:$0x11]  ;;  %v20075_v35 = vunpack.c.l.bf16 %v18239_v24  ;;  %v20089_v40 = vunpack.c.l.bf16 %v18254_v27  ;;  %v20081_v48 = vunpack.c.h.bf16 %v18239_v24  ;;  %v20087_v56 = vunpack.c.h.bf16 %v18254_v27 }
  0x14   :  { %v18259_v28 = vld [vmem:[%s20072_s0 + $0xc0] sm:$0x11]  ;;  %v20078_v39 = vunpack.c.l.bf16 %v18249_v26  ;;  %v20080_v45 = vunpack.c.l.bf16 %v18267_v31  ;;  %v18289_v53 = vld [vmem:[%s20072_s0 + $0x150] sm:$0x11]  ;;  %v20088_v54 = vunpack.c.h.bf16 %v18249_v26 }
  0x15   :  { %15996 = vmatpush1.bf16.msra.mxu0 %v18081_v41  ;;  %v18276_v36 = vld [vmem:[%s20072_s0 + $0x120] sm:$0x11]  ;;  %v20079_v43 = vunpack.c.l.bf16 %v18259_v28  ;;  %20130 = vst [vmem:[#allocation6_spill] sm:$0xff] %v18289_v53 }
  0x16   :  { %15998 = vmatprep.subr.bf16.mxu0 %v18084_v42  ;;  %16020 = vmatpush3.bf16.msra.mxu1 %v18124_v55  ;;  %20129 = vst [vmem:[#allocation5_spill] sm:$0xff] %v18276_v36 }
  0x17   :  { %16021 = vmatprep.subr.bf16.mxu1 %v20073_v3 }
  0x19   :  { %16000 = vmatpush1.bf16.msra.mxu0 %v18109_v50 }
  0x1a   :  { %16002 = vmatprep.subr.bf16.mxu0 %v18112_v51  ;;  %16023 = vmatpush3.bf16.msra.mxu1 %v18149_v63 }
  0x1b   :  { %16024 = vmatprep.subr.bf16.mxu1 %v20073_v3 }
  0x1d   :  { %16004 = vmatpush1.bf16.msra.mxu0 %v18137_v59 }
  0x1e   :  { %16006 = vmatprep.subr.bf16.mxu0 %v18140_v60  ;;  %16026 = vmatpush3.bf16.msra.mxu1 %v18163_v6 }
  0x1f   :  { %16027 = vmatprep.subr.bf16.mxu1 %v20073_v3 }
  0x21   :  { %16008 = vmatpush1.bf16.msra.mxu0 %v18159_v2 }
  0x22   :  { %16034 = vmatprep.subr.bf16.mxu0 %v17972_v5  ;;  %16029 = vmatpush3.bf16.msra.mxu1 %v18174_v11 }
  0x23   :  { %16030 = vmatprep.subr.bf16.mxu1 %v20073_v3 }
  0x24   :  { %190 = vmatmul.mubr.f32.vlgmr.msra.gmra.mrb[0].mxu0 %v20076_v4 }
  0x25   :  { %16036 = vmatpush1.bf16.msra.mxu0 %v17985_v9  ;;  %605 = vmatprep.mubr.f32.mxu0 %v20076_v4 }
  0x26   :  { %16038 = vmatprep.subr.bf16.mxu0 %v17987_v10  ;;  %16032 = vmatpush3.bf16.msra.mxu1 %v18188_v14 }
  0x27   :  { %16065 = vmatprep.subr.bf16.mxu1 %v20073_v3 }
  0x29   :  { %16040 = vmatpush1.bf16.msra.mxu0 %v18003_v15  ;;  %14890 = vmatmul.mubr.f32.vlgmr.msra.gmra.mrb[0].mxu1 %v20076_v4 }
  0x2a   :  { %16042 = vmatprep.subr.bf16.mxu0 %v18006_v16  ;;  %16067 = vmatpush3.bf16.msra.mxu1 %v18044_v29 }
  0x2b   :  { %16068 = vmatprep.subr.bf16.mxu1 %v20073_v3  ;;  %14924 = vmatprep.mubr.msk.f32.mxu1 %vm17936_vm0, %v20076_v4 }
  0x2d   :  { %16044 = vmatpush1.bf16.msra.mxu0 %v18021_v21 }
  0x2e   :  { %16046 = vmatprep.subr.bf16.mxu0 %v18024_v22  ;;  %16070 = vmatpush3.bf16.msra.mxu1 %v18068_v37 }
  0x2f   :  { %16071 = vmatprep.subr.bf16.mxu1 %v20073_v3 }
  0x31   :  { %16048 = vmatpush1.bf16.msra.mxu0 %v18053_v32 }
  0x32   :  { %16050 = vmatprep.subr.bf16.mxu0 %v18056_v33  ;;  %16073 = vmatpush3.bf16.msra.mxu1 %v18096_v46 }
  0x33   :  { %16074 = vmatprep.subr.bf16.mxu1 %v20073_v3 }
  0x35   :  { %16052 = vmatpush1.bf16.msra.mxu0 %v18081_v41 }
  0x36   :  { %16054 = vmatprep.subr.bf16.mxu0 %v18084_v42  ;;  %16076 = vmatpush3.bf16.msra.mxu1 %v18124_v55 }
  0x37   :  { %16077 = vmatprep.subr.bf16.mxu1 %v20073_v3 }
  0x39   :  { %16056 = vmatpush1.bf16.msra.mxu0 %v18109_v50 }
  0x3a   :  { %16058 = vmatprep.subr.bf16.mxu0 %v18112_v51  ;;  %16079 = vmatpush3.bf16.msra.mxu1 %v18149_v63 }
  0x3b   :  { %16080 = vmatprep.subr.bf16.mxu1 %v20073_v3 }
  0x3d   :  { %16060 = vmatpush1.bf16.msra.mxu0 %v18137_v59 }
  0x3e   :  { %16062 = vmatprep.subr.bf16.mxu0 %v18140_v60  ;;  %16082 = vmatpush3.bf16.msra.mxu1 %v18163_v6 }
  0x3f   :  { %16083 = vmatprep.subr.bf16.mxu1 %v20073_v3 }
  0x41   :  { %16064 = vmatpush1.bf16.msra.mxu0 %v18159_v2 }
  0x42   :  { %16090 = vmatprep.subr.bf16.mxu0 %v17972_v5  ;;  %16085 = vmatpush3.bf16.msra.mxu1 %v18174_v11 }
  0x43   :  { %16086 = vmatprep.subr.bf16.mxu1 %v20073_v3 }
  0x46   :  { %16088 = vmatpush3.bf16.msra.mxu1 %v18188_v14 }
  0x47   :  { %16121 = vmatprep.subr.bf16.mxu1 %v20073_v3 }
  0xf7   :  { %v191_v44 = vpop.f32.mrb[0].mxu0 }
  0xf8   :  { %v192_v47 = vadd.f32 %v191_v44, %v18262_v30  ;;  %v193_v52 = vpop.f32.mrb[1].mxu0 }
  0xf9   :  { %v18294_v57 = vadd.f32 %v193_v52, %v18270_v34 }
  0xfa   :  { %v267_v61 = vrot.slane %v192_v47, 1  ;;  %v268_v62 = vrot.slane %v192_v47, 2  ;;  %v269_v0 = vrot.slane %v192_v47, 3  ;;  %v270_v1 = vrot.slane %v192_v47, 4 }
  0xfb   :  { %v271_v7 = vrot.slane %v192_v47, 5  ;;  %v272_v8 = vrot.slane %v192_v47, 6  ;;  %v282_v12 = vadd.f32 %v192_v47, %v20075_v35  ;;  %v339_v35 = vrot.slane %v18294_v57, 1 }
  0xfc   :  { %v283_v17 = vadd.f32 %v267_v61, %v20092_v38  ;;  %v284_v19 = vadd.f32 %v268_v62, %v20078_v39  ;;  %v285_v23 = vadd.f32 %v269_v0, %v20089_v40  ;;  %v286_v44 = vadd.f32 %v270_v1, %v20079_v43 }
  0xfd   :  { %v287_v52 = vadd.f32 %v271_v7, %v20080_v45  ;;  %v13795_v3 = vmul.f32 -1.442695, %v282_v12  ;;  %v340_v4 = vrot.slane %v18294_v57, 2  ;;  %v354_v62 = vadd.f32 %v18294_v57, %v20081_v48  ;;  %v262_v12 = vpop.f32.mrb[0].mxu1 }
  0xfe   :  { %v13796_v13 = vmul.f32 -1.442695, %v283_v17  ;;  %v13797_v58 = vmul.f32 -1.442695, %v284_v19  ;;  %v13798_v61 = vmul.f32 -1.442695, %v285_v23  ;;  %v355_v7 = vadd.f32 %v339_v35, %v20082_v49 }
  0xff   :  { %v273_v39 = vrot.slane %v192_v47, 7  ;;  %17772 = vpow2.f32 %v13795_v3  ;;  %v13799_v0 = vmul.f32 -1.442695, %v286_v44  ;;  %v341_v1 = vrot.slane %v18294_v57, 3  ;;  %v14891_v47 = vpop.f32.mrb[1].mxu1 }
 0x100   :  { %17774 = vpow2.f32 %v13796_v13  ;;  %v13800_v43 = vmul.f32 -1.442695, %v287_v52  ;;  %v20086_v45 = vunpack.c.h.bf16 %v18259_v28  ;;  %v342_v17 = vrot.slane %v18294_v57, 4 }
 0x101   :  { %17776 = vpow2.f32 %v13797_v58  ;;  %v356_v19 = vadd.f32 %v340_v4, %v20088_v54  ;;  %v13803_v23 = vmul.f32 -1.442695, %v354_v62  ;;  %v357_v3 = vadd.f32 %v341_v1, %v20087_v56  ;;  %v18380_v56 = vld [vmem:[%s20072_s0 + $0xc8] sm:$0x1] }
 0x102   :  { %17778 = vpow2.f32 %v13798_v61  ;;  %v13804_v13 = vmul.f32 -1.442695, %v355_v7  ;;  %v20131_v44 = vunpack.c.l.bf16 %v18276_v36  ;;  %v20132_v48 = vunpack.c.l.bf16 %v18289_v53  ;;  %20138 = vst [vmem:[#allocation12_spill] sm:$0xff] %v18380_v56 }
 0x103   :  { %17780 = vpow2.f32 %v13799_v0  ;;  %v13805_v35 = vmul.f32 -1.442695, %v356_v19  ;;  %v20085_v49 = vunpack.c.h.bf16 %v18267_v31  ;;  %v343_v61 = vrot.slane %v18294_v57, 5 }
 0x104   :  { %v288_v52 = vadd.f32 %v272_v8, %v20131_v44  ;;  %v289_v58 = vadd.f32 %v273_v39, %v20132_v48  ;;  %17782 = vpow2.f32 %v13800_v43  ;;  %v13806_v47 = vmul.f32 -1.442695, %v357_v3 }
 0x105   :  { %17784 = vpow2.f32 %v13803_v23  ;;  %v358_v1 = vadd.f32 %v342_v17, %v20086_v45  ;;  %v20084_v8 = vunpack.c.h.bf16 %v18276_v36  ;;  %v20083_v0 = vunpack.c.h.bf16 %v18289_v53 }
 0x106   :  { %v13801_v4 = vmul.f32 -1.442695, %v288_v52  ;;  %v13802_v62 = vmul.f32 -1.442695, %v289_v58  ;;  %17786 = vpow2.f32 %v13804_v13  ;;  %v344_v39 = vrot.slane %v18294_v57, 6 }
 0x107   :  { %17788 = vpow2.f32 %v13805_v35  ;;  %v120_v43 = vsub.s32 2, %v18227_v18  ;;  %v345_v48 = vrot.slane %v18294_v57, 7  ;;  %v13807_v7 = vmul.f32 -1.442695, %v358_v1 }
 0x108   :  { %17790 = vpow2.f32 %v13801_v4  ;;  %v359_v17 = vadd.f32 %v343_v61, %v20085_v49  ;;  %v360_v52 = vadd.f32 %v344_v39, %v20084_v8 }
 0x109   :  { %v17773_v19 = vpop.eup %17772  ;;  %17792 = vpow2.f32 %v13802_v62  ;;  %v18342_v57 = vrot.slane %v18233_v20, %v120_v43  ;;  %v361_v58 = vadd.f32 %v345_v48, %v20083_v0  ;;  %v18349_v20 = vld [vmem:[%s20072_s0 + $0x8] sm:$0x1] }
 0x10a   :  { %v17775_v23 = vpop.eup %17774  ;;  %v314_v3 = vadd.f32 1.0, %v17773_v19  ;;  %17794 = vpow2.f32 %v13806_v47  ;;  %v13808_v1 = vmul.f32 -1.442695, %v359_v17  ;;  %v13809_v39 = vmul.f32 -1.442695, %v360_v52  ;;  %20134 = vst [vmem:[#allocation8_spill] sm:$0xff] %v18349_v20 }
 0x10b   :  { %v17777_v13 = vpop.eup %17776  ;;  %v315_v44 = vadd.f32 1.0, %v17775_v23  ;;  %17796 = vpow2.f32 %v13807_v7  ;;  %20133 = vst [vmem:[#allocation7_spill] sm:$0xff] %v18342_v57  ;;  %v18352_v43 = vadd.f32 %v262_v12, %v18342_v57  ;;  %v13810_v48 = vmul.f32 -1.442695, %v361_v58  ;;  %v18357_v17 = vld [vmem:[%s20072_s0 + $0x38] sm:$0x1] }
 0x10c   :  { %v17779_v35 = vpop.eup %17778  ;;  %v316_v18 = vadd.f32 1.0, %v17777_v13  ;;  %17798 = vrcp.f32 %v314_v3  ;;  %20135 = vst [vmem:[#allocation9_spill] sm:$0xff] %v18357_v17  ;;  %v20090_v52 = vunpack.c.l.bf16 %v18349_v20 }
 0x10d   :  { %v17781_v4 = vpop.eup %17780  ;;  %v317_v62 = vadd.f32 1.0, %v17779_v35  ;;  %17800 = vrcp.f32 %v315_v44  ;;  %v18363_v35 = vld [vmem:[%s20072_s0 + $0x68] sm:$0x1]  ;;  %v413_v49 = vrot.slane %v18352_v43, 3  ;;  %v414_v45 = vrot.slane %v18352_v43, 4 }
 0x10e   :  { %v17783_v61 = vpop.eup %17782  ;;  %v318_v47 = vadd.f32 1.0, %v17781_v4  ;;  %17802 = vrcp.f32 %v316_v18  ;;  %20136 = vst [vmem:[#allocation10_spill] sm:$0xff] %v18363_v35  ;;  %v411_v4 = vrot.slane %v18352_v43, 1 }
 0x10f   :  { %v17785_v19 = vpop.eup %17784  ;;  %v319_v23 = vadd.f32 1.0, %v17783_v61  ;;  %17804 = vrcp.f32 %v317_v62 }
 0x110   :  { %v17787_v7 = vpop.eup %17786  ;;  %17806 = vrcp.f32 %v318_v47  ;;  %v386_v18 = vadd.f32 1.0, %v17785_v19 }
 0x111   :  { %v17789_v3 = vpop.eup %17788  ;;  %17808 = vrcp.f32 %v319_v23  ;;  %v387_v61 = vadd.f32 1.0, %v17787_v7  ;;  %v20091_v23 = vunpack.c.l.bf16 %v18357_v17  ;;  %v18375_v7 = vld [vmem:[%s20072_s0 + $0x98] sm:$0x1] }
 0x112   :  { %v17791_v13 = vpop.eup %17790  ;;  %17810 = vpow2.f32 %v13808_v1  ;;  %v412_v1 = vrot.slane %v18352_v43, 2  ;;  %v388_v0 = vadd.f32 1.0, %v17789_v3  ;;  %20137 = vst [vmem:[#allocation11_spill] sm:$0xff] %v18375_v7 }
 0x113   :  { %v17793_v44 = vpop.eup %17792  ;;  %v320_v12 = vadd.f32 1.0, %v17791_v13  ;;  %17812 = vpow2.f32 %v13809_v39  ;;  %v20093_v13 = vunpack.c.l.bf16 %v18363_v35 }
 0x114   :  { %v17795_v58 = vpop.eup %17794  ;;  %v321_v62 = vadd.f32 1.0, %v17793_v44  ;;  %17814 = vpow2.f32 %v13810_v48 }
 0x115   :  { %v17797_v47 = vpop.eup %17796  ;;  %17816 = vrcp.f32 %v320_v12  ;;  %v389_v19 = vadd.f32 1.0, %v17795_v58  ;;  %v415_v58 = vrot.slane %v18352_v43, 5 }
 0x116   :  { %v17799_v8 = vpop.eup %17798  ;;  %17818 = vrcp.f32 %v321_v62  ;;  %v390_v44 = vadd.f32 1.0, %v17797_v47  ;;  %v18388_v47 = vld [vmem:[%s20072_s0 + $0xf8] sm:$0x1] }
 0x117   :  { %v17801_v39 = vpop.eup %17800  ;;  %v426_v48 = vmul.f32 %v17799_v8, %v18352_v43  ;;  %17820 = vrcp.f32 %v386_v18  ;;  %20139 = vst [vmem:[#allocation13_spill] sm:$0xff] %v18388_v47 }
 0x118   :  { %v17803_v3 = vpop.eup %17802  ;;  %v427_v12 = vmul.f32 %v17801_v39, %v411_v4  ;;  %17822 = vrcp.f32 %v387_v61  ;;  %v20096_v4 = vunpack.c.l.bf16 %v18375_v7 }
 0x119   :  { %v17805_v62 = vpop.eup %17804  ;;  %v428_v54 = vmul.f32 %v17803_v3, %v412_v1  ;;  %v434_v8 = vadd.f32 %v426_v48, %v20090_v52  ;;  %17824 = vrcp.f32 %v388_v0  ;;  %v18396_v1 = vld [vmem:[%s20072_s0 + $0x128] sm:$0x1] }
 0x11a   :  { %v17807_v18 = vpop.eup %17806  ;;  %17826 = vrcp.f32 %v389_v19  ;;  %v429_v39 = vmul.f32 %v17805_v62, %v413_v49  ;;  %v435_v61 = vadd.f32 %v427_v12, %v20091_v23  ;;  %20140 = vst [vmem:[#allocation14_spill] sm:$0xff] %v18396_v1  ;;  %v18404_v49 = vld [vmem:[%s20072_s0 + $0x158] sm:$0x1]  ;;  %v416_v12 = vrot.slane %v18352_v43, 6 }
 0x11b   :  { %v17809_v40 = vpop.eup %17808  ;;  %17828 = vrcp.f32 %v390_v44  ;;  %v430_v3 = vmul.f32 %v17807_v18, %v414_v45  ;;  %v436_v0 = vadd.f32 %v428_v54, %v20093_v13  ;;  %20141 = vst [vmem:[#allocation15_spill] sm:$0xff] %v18404_v49  ;;  %v417_v44 = vrot.slane %v18352_v43, 7 }
 0x11c   :  { %v17811_v52 = vpop.eup %17810  ;;  %v431_v62 = vmul.f32 %v17809_v40, %v415_v58  ;;  %17830 = vtanh.f32 %v434_v8  ;;  %v437_v13 = vadd.f32 %v429_v39, %v20096_v4  ;;  %v20097_v19 = vunpack.c.l.bf16 %v18404_v49 }
 0x11d   :  { %v17813_v23 = vpop.eup %17812  ;;  %v391_v38 = vadd.f32 1.0, %v17811_v52  ;;  %17832 = vtanh.f32 %v435_v61  ;;  %v20142_v40 = vunpack.c.l.bf16 %v18380_v56  ;;  %v20143_v8 = vunpack.c.l.bf16 %v18388_v47 }
 0x11e   :  { %v17815_v45 = vpop.eup %17814  ;;  %v392_v18 = vadd.f32 1.0, %v17813_v23  ;;  %17834 = vtanh.f32 %v436_v0  ;;  %v20144_v39 = vunpack.c.l.bf16 %v18396_v1 }
 0x11f   :  { %v17817_v48 = vpop.eup %17816  ;;  %v393_v35 = vadd.f32 1.0, %v17815_v45  ;;  %17836 = vrcp.f32 %v391_v38  ;;  %v438_v58 = vadd.f32 %v430_v3, %v20142_v40  ;;  %v439_v61 = vadd.f32 %v431_v62, %v20143_v8 }
 0x120   :  { %v17819_v52 = vpop.eup %17818  ;;  %17838 = vrcp.f32 %v392_v18  ;;  %v432_v43 = vmul.f32 %v17817_v48, %v416_v12  ;;  %v20145_v45 = vmov 0.0  }
 0x121   :  { %v17821_v54 = vpop.eup %17820  ;;  %17840 = vrcp.f32 %v393_v35  ;;  %v433_v23 = vmul.f32 %v17819_v52, %v417_v44  ;;  %v467_v48 = vrot.slane %v20145_v45, 1  ;;  %v468_v35 = vrot.slane %v20145_v45, 2 }
 0x122   :  { %v17823_v7 = vpop.eup %17822  ;;  %v440_v0 = vadd.f32 %v432_v43, %v20144_v39  ;;  %17842 = vtanh.f32 %v437_v13  ;;  %v450_v62 = vsub.f32 1.0, %v17821_v54  ;;  %v482_v43 = vmul.f32 0.0, %v17821_v54 }
 0x123   :  { %v17825_v4 = vpop.eup %17824  ;;  %v441_v38 = vadd.f32 %v433_v23, %v20097_v19  ;;  %17844 = vtanh.f32 %v438_v58  ;;  %v451_v18 = vsub.f32 1.0, %v17823_v7  ;;  %v469_v58 = vrot.slane %v20145_v45, 3 }
 0x124   :  { %v17827_v3 = vpop.eup %17826  ;;  %17846 = vtanh.f32 %v439_v61  ;;  %v452_v52 = vsub.f32 1.0, %v17825_v4  ;;  %v483_v23 = vmul.f32 %v17823_v7, %v467_v48  ;;  %v470_v49 = vrot.slane %v20145_v45, 4 }
 0x125   :  { %v17829_v12 = vpop.eup %17828  ;;  %17848 = vtanh.f32 %v440_v0  ;;  %v484_v0 = vmul.f32 %v17825_v4, %v468_v35  ;;  %v472_v56 = vrot.slane %v20145_v45, 6  ;;  %v485_v4 = vmul.f32 %v17827_v3, %v469_v58 }
 0x126   :  { %v17831_v44 = vpop.eup %17830  ;;  %17850 = vtanh.f32 %v441_v38  ;;  %v471_v38 = vrot.slane %v20145_v45, 5  ;;  %v454_v48 = vsub.f32 1.0, %v17829_v12 }
 0x127   :  { %v17833_v40 = vpop.eup %17832  ;;  %v458_v13 = vmul.f32 %v17831_v44, %v450_v62  ;;  %v473_v62 = vrot.slane %v20145_v45, 7 }
 0x128   :  { %v17835_v8 = vpop.eup %17834  ;;  %v459_v39 = vmul.f32 %v17833_v40, %v451_v18  ;;  %v453_v18 = vsub.f32 1.0, %v17827_v3 }
 0x129   :  { %v17837_v61 = vpop.eup %17836  ;;  %v460_v19 = vmul.f32 %v17835_v8, %v452_v52  ;;  %v18425_v1 = vadd.f32 %v482_v43, %v458_v13  ;;  %v486_v8 = vmul.f32 %v17829_v12, %v470_v49 }
 0x12a   :  { %v17839_v47 = vpop.eup %17838  ;;  %v18430_v54 = vadd.f32 %v483_v23, %v459_v39  ;;  %v455_v13 = vsub.f32 1.0, %v17837_v61  ;;  %v487_v57 = vmul.f32 %v17837_v61, %v471_v38 }
 0x12b   :  { %v17841_v44 = vpop.eup %17840  ;;  %v18432_v40 = vadd.f32 %v484_v0, %v460_v19  ;;  %v456_v23 = vsub.f32 1.0, %v17839_v47  ;;  %v488_v12 = vmul.f32 %v17839_v47, %v472_v56 }
 0x12c   :  { %v17843_v7 = vpop.eup %17842  ;;  %v20109_v35 = vrot.slane %v18430_v54, 7  ;;  %v457_v3 = vsub.f32 1.0, %v17841_v44  ;;  %v489_v61 = vmul.f32 %v17841_v44, %v473_v62 }
 0x12d   :  { %v17845_v52 = vpop.eup %17844  ;;  %v461_v43 = vmul.f32 %v17843_v7, %v453_v18  ;;  %v522_v20 = vrot.slane %v18432_v40, 6 }
 0x12e   :  { %v17847_v39 = vpop.eup %17846  ;;  %v462_v17 = vmul.f32 %v17845_v52, %v454_v48  ;;  %v521_v19 = vsel %vm520_vm1, %v20109_v35, %v18425_v1 }
 0x12f   :  { %v17849_v0 = vpop.eup %17848  ;;  %v463_v58 = vmul.f32 %v17847_v39, %v455_v13  ;;  %v18440_v53 = vadd.f32 %v485_v4, %v461_v43  ;;  %v524_v36 = vsel %vm523_vm2, %v522_v20, %v521_v19 }
 0x130   :  { %v17851_v18 = vpop.eup %17850  ;;  %v464_v49 = vmul.f32 %v17849_v0, %v456_v23  ;;  %v18443_v7 = vadd.f32 %v486_v8, %v462_v17 }
 0x131   :  { %v465_v48 = vmul.f32 %v17851_v18, %v457_v3  ;;  %v18445_v38 = vadd.f32 %v487_v57, %v463_v58  ;;  %v525_v52 = vrot.slane %v18440_v53, 5 }
 0x132   :  { %v18448_v35 = vadd.f32 %v488_v12, %v464_v49  ;;  %v528_v13 = vrot.slane %v18443_v7, 4 }
 0x133   :  { %v18451_v4 = vadd.f32 %v489_v61, %v465_v48  ;;  %v527_v20 = vsel %vm526_vm3, %v525_v52, %v524_v36  ;;  %v531_v56 = vrot.slane %v18445_v38, 3  ;;  %v20146_v36 = vmov 0.0|0.0  }
 0x134   :  { %v530_v17 = vsel %vm529_vm4, %v528_v13, %v527_v20  ;;  %v534_v47 = vrot.slane %v18448_v35, 2  ;;  %v20147_v52 = vunpack.c.l.bf16 %v18244_v25  ;;  %v20148_v20 = vunpack.c.l.bf16 %v18239_v24 }
 0x135   :  { %v533_v57 = vsel %vm532_vm5, %v531_v56, %v530_v17  ;;  %v537_v62 = vrot.slane %v18451_v4, 1 }
 0x136   :  { %v536_v44 = vsel %vm535_vm6, %v534_v47, %v533_v57  ;;  %v20150_v47 = vunpack.c.l.bf16 %v18254_v27  ;;  %v20151_v57 = vunpack.c.l.bf16 %v18259_v28 }
 0x137   :  { %v539_v43 = vsel %vm538_vm7, %v537_v62, %v536_v44  ;;  %v20152_v44 = vunpack.c.l.bf16 %v18267_v31 }
 0x138   :  { %606 = vmatmul.mubr.f32.vlgmr.msra.gmra.mrb[2].mxu0 %v539_v43  ;;  %14925 = vmatmul.mubr.f32.vlgmr.msra.gmra.mrb[2].mxu1 %v539_v43 }
 0x139   :  { %16092 = vmatpush1.bf16.msra.mxu0 %v17985_v9  ;;  %16123 = vmatpush3.bf16.msra.mxu1 %v18044_v29 }
 0x13a   :  { %16094 = vmatprep.subr.bf16.mxu0 %v17987_v10  ;;  %16124 = vmatprep.subr.bf16.mxu1 %v20146_v36 }
 0x13b   :  { %1053 = vmatprep.mubr.f32.mxu0 %v20145_v45  ;;  %14959 = vmatprep.mubr.msk.f32.mxu1 %vm17936_vm0, %v20145_v45 }
 0x13d   :  { %16096 = vmatpush1.bf16.msra.mxu0 %v18003_v15  ;;  %16126 = vmatpush3.bf16.msra.mxu1 %v18068_v37 }
 0x13e   :  { %16098 = vmatprep.subr.bf16.mxu0 %v18006_v16  ;;  %16127 = vmatprep.subr.bf16.mxu1 %v20146_v36 }
 0x141   :  { %16100 = vmatpush1.bf16.msra.mxu0 %v18021_v21  ;;  %16129 = vmatpush3.bf16.msra.mxu1 %v18096_v46 }
 0x142   :  { %16102 = vmatprep.subr.bf16.mxu0 %v18024_v22  ;;  %16130 = vmatprep.subr.bf16.mxu1 %v20146_v36 }
 0x145   :  { %16104 = vmatpush1.bf16.msra.mxu0 %v18053_v32  ;;  %16132 = vmatpush3.bf16.msra.mxu1 %v18124_v55 }
 0x146   :  { %16106 = vmatprep.subr.bf16.mxu0 %v18056_v33  ;;  %16133 = vmatprep.subr.bf16.mxu1 %v20146_v36 }
 0x149   :  { %16108 = vmatpush1.bf16.msra.mxu0 %v18081_v41  ;;  %16135 = vmatpush3.bf16.msra.mxu1 %v18149_v63 }
 0x14a   :  { %16110 = vmatprep.subr.bf16.mxu0 %v18084_v42  ;;  %16136 = vmatprep.subr.bf16.mxu1 %v20146_v36 }
 0x14d   :  { %16112 = vmatpush1.bf16.msra.mxu0 %v18109_v50  ;;  %16138 = vmatpush3.bf16.msra.mxu1 %v18163_v6 }
 0x14e   :  { %16114 = vmatprep.subr.bf16.mxu0 %v18112_v51  ;;  %16139 = vmatprep.subr.bf16.mxu1 %v20146_v36 }
 0x151   :  { %16116 = vmatpush1.bf16.msra.mxu0 %v18137_v59  ;;  %16141 = vmatpush3.bf16.msra.mxu1 %v18174_v11 }
 0x152   :  { %16118 = vmatprep.subr.bf16.mxu0 %v18140_v60  ;;  %16142 = vmatprep.subr.bf16.mxu1 %v20146_v36 }
 0x155   :  { %16120 = vmatpush1.bf16.msra.mxu0 %v18159_v2  ;;  %16144 = vmatpush3.bf16.msra.mxu1 %v18188_v14 }
 0x156   :  { %16146 = vmatprep.subr.bf16.mxu0 %v17972_v5  ;;  %16177 = vmatprep.subr.bf16.mxu1 %v20146_v36  ;;  %v20155_v5 = vld [vmem:[#allocation6_spill] sm:$0xff] }
 0x20b   :  { %v607_v45 = vpop.f32.mrb[2].mxu0  ;;  %v18496_v8 = vpop.f32.mrb[2].mxu1 }
 0x20c   :  { %v608_v39 = vadd.f32 %v607_v45, %v18262_v30  ;;  %v609_v23 = vpop.f32.mrb[3].mxu0  ;;  %v14926_v19 = vpop.f32.mrb[3].mxu1  ;;  %v20149_v30 = vunpack.c.l.bf16 %v18249_v26  ;;  %v20153_v45 = vld [vmem:[#allocation5_spill] sm:$0xff] }
 0x20d   :  { %v18500_v0 = vadd.f32 %v609_v23, %v18270_v34  ;;  %v20154_v23 = vunpack.c.l.bf16 %v20153_v45 }
 0x20e   :  { %v683_v3 = vrot.slane %v608_v39, 7  ;;  %v684_v58 = vrot.slane %v608_v39, 1  ;;  %v685_v18 = vrot.slane %v608_v39, 2  ;;  %v686_v49 = vrot.slane %v608_v39, 3 }
 0x20f   :  { %v687_v12 = vrot.slane %v608_v39, 4  ;;  %v688_v48 = vrot.slane %v608_v39, 5  ;;  %v689_v61 = vrot.slane %v608_v39, 6  ;;  %v699_v13 = vadd.f32 %v608_v39, %v20147_v52 }
 0x210   :  { %v698_v56 = vadd.f32 %v683_v3, %v20148_v20  ;;  %v700_v17 = vadd.f32 %v684_v58, %v20149_v30  ;;  %v701_v34 = vadd.f32 %v685_v18, %v20150_v47  ;;  %v702_v62 = vadd.f32 %v686_v49, %v20151_v57 }
 0x211   :  { %v703_v43 = vadd.f32 %v687_v12, %v20152_v44  ;;  %v704_v19 = vadd.f32 %v688_v48, %v20154_v23  ;;  %v20156_v39 = vunpack.c.l.bf16 %v20155_v5  ;;  %v13812_v14 = vmul.f32 -1.442695, %v699_v13 }
 0x212   :  { %v13811_v3 = vmul.f32 -1.442695, %v698_v56  ;;  %v13813_v20 = vmul.f32 -1.442695, %v700_v17  ;;  %v13814_v2 = vmul.f32 -1.442695, %v701_v34  ;;  %v20157_v30 = vunpack.c.h.bf16 %v18244_v25 }
 0x213   :  { %v705_v52 = vadd.f32 %v689_v61, %v20156_v39  ;;  %17852 = vpow2.f32 %v13812_v14  ;;  %v13815_v58 = vmul.f32 -1.442695, %v702_v62  ;;  %v13816_v18 = vmul.f32 -1.442695, %v703_v43 }
 0x214   :  { %17854 = vpow2.f32 %v13811_v3  ;;  %v771_v49 = vadd.f32 %v18500_v0, %v20157_v30  ;;  %v13817_v12 = vmul.f32 -1.442695, %v704_v19  ;;  %v755_v48 = vrot.slane %v18500_v0, 7 }
 0x215   :  { %17856 = vpow2.f32 %v13813_v20  ;;  %v13818_v47 = vmul.f32 -1.442695, %v705_v52  ;;  %v756_v61 = vrot.slane %v18500_v0, 1  ;;  %v757_v13 = vrot.slane %v18500_v0, 2 }
 0x216   :  { %17858 = vpow2.f32 %v13814_v2  ;;  %v758_v56 = vrot.slane %v18500_v0, 3  ;;  %v20158_v14 = vunpack.c.h.bf16 %v18239_v24  ;;  %v20159_v25 = vunpack.c.h.bf16 %v18249_v26 }
 0x217   :  { %17860 = vpow2.f32 %v13815_v58  ;;  %v20160_v57 = vunpack.c.h.bf16 %v18254_v27  ;;  %v13820_v44 = vmul.f32 -1.442695, %v771_v49  ;;  %v20161_v43 = vunpack.c.h.bf16 %v18259_v28 }
 0x218   :  { %v770_v17 = vadd.f32 %v755_v48, %v20158_v14  ;;  %17862 = vpow2.f32 %v13816_v18  ;;  %v772_v34 = vadd.f32 %v756_v61, %v20159_v25  ;;  %v759_v24 = vrot.slane %v18500_v0, 4 }
 0x219   :  { %v773_v62 = vadd.f32 %v757_v13, %v20160_v57  ;;  %17864 = vpow2.f32 %v13817_v12  ;;  %v774_v23 = vadd.f32 %v758_v56, %v20161_v43  ;;  %v760_v26 = vrot.slane %v18500_v0, 5 }
 0x21a   :  { %v13819_v2 = vmul.f32 -1.442695, %v770_v17  ;;  %17866 = vpow2.f32 %v13818_v47  ;;  %v13821_v19 = vmul.f32 -1.442695, %v772_v34  ;;  %v761_v58 = vrot.slane %v18500_v0, 6 }
 0x21b   :  { %v13822_v39 = vmul.f32 -1.442695, %v773_v62  ;;  %v13823_v52 = vmul.f32 -1.442695, %v774_v23  ;;  %v20162_v12 = vunpack.c.h.bf16 %v18267_v31  ;;  %v20163_v13 = vunpack.c.h.bf16 %v20153_v45  ;;  %v20165_v45 = vld [vmem:[#allocation7_spill] sm:$0xff] }
 0x21c   :  { %17868 = vpow2.f32 %v13819_v2  ;;  %v20164_v0 = vunpack.c.h.bf16 %v20155_v5 }
 0x21d   :  { %17870 = vpow2.f32 %v13820_v44  ;;  %v17853_v3 = vpop.eup %17852  ;;  %v775_v47 = vadd.f32 %v759_v24, %v20162_v12  ;;  %v776_v56 = vadd.f32 %v760_v26, %v20163_v13 }
 0x21e   :  { %17872 = vpow2.f32 %v13821_v19  ;;  %v17855_v27 = vpop.eup %17854  ;;  %v731_v20 = vadd.f32 1.0, %v17853_v3  ;;  %v777_v25 = vadd.f32 %v761_v58, %v20164_v0 }
 0x21f   :  { %17874 = vpow2.f32 %v13822_v39  ;;  %v17857_v18 = vpop.eup %17856  ;;  %v730_v28 = vadd.f32 1.0, %v17855_v27  ;;  %v13824_v31 = vmul.f32 -1.442695, %v775_v47  ;;  %v13825_v23 = vmul.f32 -1.442695, %v776_v56 }
 0x220   :  { %17876 = vpow2.f32 %v13823_v52  ;;  %v17859_v30 = vpop.eup %17858  ;;  %v732_v49 = vadd.f32 1.0, %v17857_v18  ;;  %v679_v39 = vadd.f32 %v18496_v8, %v20165_v45  ;;  %v13826_v52 = vmul.f32 -1.442695, %v777_v25  ;;  %v20170_v45 = vld [vmem:[#allocation10_spill] sm:$0xff] }
 0x221   :  { %17878 = vrcp.f32 %v731_v20  ;;  %v17861_v48 = vpop.eup %17860  ;;  %v733_v61 = vadd.f32 1.0, %v17859_v30 }
 0x222   :  { %17880 = vrcp.f32 %v730_v28  ;;  %v17863_v14 = vpop.eup %17862  ;;  %v734_v17 = vadd.f32 1.0, %v17861_v48  ;;  %v827_v18 = vrot.slane %v679_v39, 7  ;;  %v829_v48 = vrot.slane %v679_v39, 2 }
 0x223   :  { %17882 = vrcp.f32 %v732_v49  ;;  %v17865_v34 = vpop.eup %17864  ;;  %v735_v57 = vadd.f32 1.0, %v17863_v14  ;;  %v828_v49 = vrot.slane %v679_v39, 1  ;;  %v830_v56 = vrot.slane %v679_v39, 3 }
 0x224   :  { %17884 = vrcp.f32 %v733_v61  ;;  %v17867_v62 = vpop.eup %17866  ;;  %v736_v44 = vadd.f32 1.0, %v17865_v34 }
 0x225   :  { %17886 = vrcp.f32 %v734_v17  ;;  %v737_v43 = vadd.f32 1.0, %v17867_v62  ;;  %v20166_v17 = vld [vmem:[#allocation9_spill] sm:$0xff] }
 0x226   :  { %v17869_v2 = vpop.eup %17868  ;;  %17888 = vrcp.f32 %v735_v57  ;;  %v20167_v0 = vunpack.c.l.bf16 %v20166_v17  ;;  %v20168_v57 = vld [vmem:[#allocation8_spill] sm:$0xff] }
 0x227   :  { %v17871_v19 = vpop.eup %17870  ;;  %17890 = vrcp.f32 %v736_v44  ;;  %v802_v5 = vadd.f32 1.0, %v17869_v2  ;;  %v20169_v62 = vunpack.c.l.bf16 %v20168_v57 }
 0x228   :  { %v17873_v24 = vpop.eup %17872  ;;  %17892 = vrcp.f32 %v737_v43  ;;  %v803_v26 = vadd.f32 1.0, %v17871_v19 }
 0x229   :  { %v17875_v3 = vpop.eup %17874  ;;  %17894 = vpow2.f32 %v13824_v31  ;;  %v804_v20 = vadd.f32 1.0, %v17873_v24  ;;  %v831_v31 = vrot.slane %v679_v39, 4 }
 0x22a   :  { %v17877_v27 = vpop.eup %17876  ;;  %17896 = vpow2.f32 %v13825_v23  ;;  %v805_v28 = vadd.f32 1.0, %v17875_v3  ;;  %v832_v23 = vrot.slane %v679_v39, 5  ;;  %v833_v3 = vrot.slane %v679_v39, 6 }
 0x22b   :  { %v17879_v58 = vpop.eup %17878  ;;  %17898 = vpow2.f32 %v13826_v52  ;;  %v806_v47 = vadd.f32 1.0, %v17877_v27  ;;  %v20171_v52 = vunpack.c.l.bf16 %v20170_v45  ;;  %v20172_v27 = vld [vmem:[#allocation11_spill] sm:$0xff] }
 0x22c   :  { %v17881_v30 = vpop.eup %17880  ;;  %v843_v12 = vmul.f32 %v17879_v58, %v679_v39  ;;  %17900 = vrcp.f32 %v802_v5  ;;  %v20173_v58 = vunpack.c.l.bf16 %v20172_v27  ;;  %v882_v39 = vrot.slane %v18425_v1, 7 }
 0x22d   :  { %v17883_v8 = vpop.eup %17882  ;;  %v842_v61 = vmul.f32 %v17881_v30, %v827_v18  ;;  %17902 = vrcp.f32 %v803_v26 }
 0x22e   :  { %v17885_v13 = vpop.eup %17884  ;;  %v844_v14 = vmul.f32 %v17883_v8, %v828_v49  ;;  %v851_v25 = vadd.f32 %v843_v12, %v20167_v0  ;;  %17904 = vrcp.f32 %v804_v20  ;;  %v20174_v49 = vld [vmem:[#allocation12_spill] sm:$0xff] }
 0x22f   :  { %v17887_v34 = vpop.eup %17886  ;;  %v850_v44 = vadd.f32 %v842_v61, %v20169_v62  ;;  %17906 = vrcp.f32 %v805_v28  ;;  %v845_v2 = vmul.f32 %v17885_v13, %v829_v48  ;;  %v20175_v28 = vunpack.c.l.bf16 %v20174_v49  ;;  %v20178_v62 = vld [vmem:[#allocation14_spill] sm:$0xff] }
 0x230   :  { %v17889_v43 = vpop.eup %17888  ;;  %17908 = vrcp.f32 %v806_v47  ;;  %v846_v19 = vmul.f32 %v17887_v34, %v830_v56  ;;  %v852_v24 = vadd.f32 %v844_v14, %v20171_v52  ;;  %v20176_v14 = vld [vmem:[#allocation13_spill] sm:$0xff]  ;;  %v884_v52 = vrot.slane %v18440_v53, 7 }
 0x231   :  { %v17891_v5 = vpop.eup %17890  ;;  %v847_v26 = vmul.f32 %v17889_v43, %v831_v31  ;;  %v853_v20 = vadd.f32 %v845_v2, %v20173_v58  ;;  %17910 = vtanh.f32 %v850_v44  ;;  %v20177_v17 = vunpack.c.l.bf16 %v20176_v14  ;;  %v20180_v43 = vld [vmem:[#allocation15_spill] sm:$0xff] }
 0x232   :  { %v17893_v18 = vpop.eup %17892  ;;  %v848_v30 = vmul.f32 %v17891_v5, %v832_v23  ;;  %v854_v12 = vadd.f32 %v846_v19, %v20175_v28  ;;  %17912 = vtanh.f32 %v851_v25  ;;  %v20179_v44 = vunpack.c.l.bf16 %v20178_v62 }
 0x233   :  { %v17895_v8 = vpop.eup %17894  ;;  %v849_v47 = vmul.f32 %v17893_v18, %v833_v3  ;;  %17914 = vtanh.f32 %v852_v24  ;;  %v855_v0 = vadd.f32 %v847_v26, %v20177_v17  ;;  %v883_v2 = vrot.slane %v18432_v40, 7 }
 0x234   :  { %v17897_v48 = vpop.eup %17896  ;;  %v807_v61 = vadd.f32 1.0, %v17895_v8  ;;  %17916 = vtanh.f32 %v853_v20  ;;  %v856_v25 = vadd.f32 %v848_v30, %v20179_v44  ;;  %v20181_v23 = vunpack.c.l.bf16 %v20180_v43 }
 0x235   :  { %v17899_v13 = vpop.eup %17898  ;;  %v808_v56 = vadd.f32 1.0, %v17897_v48  ;;  %17918 = vtanh.f32 %v854_v12  ;;  %v885_v5 = vrot.slane %v18443_v7, 7  ;;  %v887_v17 = vrot.slane %v18448_v35, 7 }
 0x236   :  { %v17901_v34 = vpop.eup %17900  ;;  %v809_v57 = vadd.f32 1.0, %v17899_v13  ;;  %17920 = vrcp.f32 %v807_v61  ;;  %v857_v19 = vadd.f32 %v849_v47, %v20181_v23  ;;  %v20182_v47 = vrot.slane %v18430_v54, 7 }
 0x237   :  { %v17903_v31 = vpop.eup %17902  ;;  %17922 = vrcp.f32 %v808_v56  ;;  %v897_v45 = vmul.f32 %v17901_v34, %v882_v39  ;;  %v866_v27 = vsub.f32 1.0, %v17901_v34  ;;  %v886_v61 = vrot.slane %v18445_v38, 7 }
 0x238   :  { %v17905_v1 = vpop.eup %17904  ;;  %17924 = vrcp.f32 %v809_v57  ;;  %v867_v40 = vsub.f32 1.0, %v17903_v31  ;;  %v898_v48 = vmul.f32 %v17903_v31, %v20182_v47 }
 0x239   :  { %v17907_v24 = vpop.eup %17906  ;;  %17926 = vtanh.f32 %v855_v0  ;;  %v899_v3 = vmul.f32 %v17905_v1, %v883_v2  ;;  %v868_v49 = vsub.f32 1.0, %v17905_v1  ;;  %v888_v0 = vrot.slane %v18451_v4, 7 }
 0x23a   :  { %v17909_v26 = vpop.eup %17908  ;;  %17928 = vtanh.f32 %v856_v25  ;;  %v900_v58 = vmul.f32 %v17907_v24, %v884_v52  ;;  %v869_v8 = vsub.f32 1.0, %v17907_v24 }
 0x23b   :  { %v17911_v20 = vpop.eup %17910  ;;  %17930 = vtanh.f32 %v857_v19  ;;  %v901_v18 = vmul.f32 %v17909_v26, %v885_v5  ;;  %v870_v13 = vsub.f32 1.0, %v17909_v26 }
 0x23c   :  { %v17913_v30 = vpop.eup %17912  ;;  %v874_v28 = vmul.f32 %v17911_v20, %v866_v27 }
 0x23d   :  { %v17915_v12 = vpop.eup %17914  ;;  %v875_v53 = vmul.f32 %v17913_v30, %v867_v40 }
 0x23e   :  { %v17917_v7 = vpop.eup %17916  ;;  %v876_v39 = vmul.f32 %v17915_v12, %v868_v49  ;;  %v905_v56 = vadd.f32 %v897_v45, %v874_v28 }
 0x23f   :  { %v17919_v14 = vpop.eup %17918  ;;  %v877_v34 = vmul.f32 %v17917_v7, %v869_v8  ;;  %v906_v57 = vadd.f32 %v898_v48, %v875_v53 }
 0x240   :  { %v17921_v62 = vpop.eup %17920  ;;  %v878_v44 = vmul.f32 %v17919_v14, %v870_v13  ;;  %v907_v25 = vadd.f32 %v899_v3, %v876_v39  ;;  %v974_v2 = vrot.slane %v905_v56, 1  ;;  %v1330_v43 = vrot.slane %v905_v56, 7 }
 0x241   :  { %v17923_v54 = vpop.eup %17922  ;;  %v871_v31 = vsub.f32 1.0, %v17921_v62  ;;  %v902_v23 = vmul.f32 %v17921_v62, %v886_v61  ;;  %v908_v19 = vadd.f32 %v900_v58, %v877_v34  ;;  %v1331_v38 = vrot.slane %v906_v57, 7 }
 0x242   :  { %v17925_v1 = vpop.eup %17924  ;;  %v872_v52 = vsub.f32 1.0, %v17923_v54  ;;  %v903_v45 = vmul.f32 %v17923_v54, %v887_v17  ;;  %v909_v24 = vadd.f32 %v901_v18, %v878_v44  ;;  %v975_v35 = vsel %vm520_vm1, %v906_v57, %v974_v2 }
 0x243   :  { %v17927_v5 = vpop.eup %17926  ;;  %v873_v4 = vsub.f32 1.0, %v17925_v1  ;;  %v904_v26 = vmul.f32 %v17925_v1, %v888_v0  ;;  %v18570_v27 = vrot.slane %v907_v25, 7  ;;  %v978_v20 = vrot.slane %v908_v19, 6 }
 0x244   :  { %v17929_v3 = vpop.eup %17928  ;;  %v879_v40 = vmul.f32 %v17927_v5, %v871_v31  ;;  %v980_v30 = vrot.slane %v909_v24, 5  ;;  %v1332_v49 = vrot.slane %v908_v19, 7  ;;  %v1333_v28 = vrot.slane %v909_v24, 7 }
 0x245   :  { %v17931_v12 = vpop.eup %17930  ;;  %v880_v58 = vmul.f32 %v17929_v3, %v872_v52  ;;  %v977_v8 = vsel %vm523_vm2, %v18570_v27, %v975_v35  ;;  %v1382_v53 = vrot.slane %v1330_v43, 2  ;;  %v1383_v18 = vrot.slane %v1331_v38, 1 }
 0x246   :  { %v881_v47 = vmul.f32 %v17931_v12, %v873_v4  ;;  %v910_v48 = vadd.f32 %v902_v23, %v879_v40  ;;  %v979_v7 = vsel %vm526_vm3, %v978_v20, %v977_v8  ;;  %v18575_v61 = vrot.slane %v1332_v49, 7  ;;  %v18602_v8 = vld [vmem:[%s20070_s3] sm:$0xff] }
 0x247   :  { %v911_v13 = vadd.f32 %v903_v45, %v880_v58  ;;  %v981_v39 = vsel %vm529_vm4, %v980_v30, %v979_v7  ;;  %v1384_v56 = vsel %vm520_vm1, %v1383_v18, %v1382_v53  ;;  %v1388_v14 = vrot.slane %v1333_v28, 6 }
 0x248   :  { %v912_v17 = vadd.f32 %v904_v26, %v881_v47  ;;  %v982_v0 = vrot.slane %v910_v48, 4  ;;  %v1334_v34 = vrot.slane %v910_v48, 7  ;;  %v1385_v57 = vsel %vm523_vm2, %v18570_v27, %v1384_v56 }
 0x249   :  { %v984_v62 = vrot.slane %v911_v13, 3  ;;  %v1335_v44 = vrot.slane %v911_v13, 7  ;;  %v1387_v25 = vsel %vm526_vm3, %v18575_v61, %v1385_v57  ;;  %v1738_v2 = vrot.slane %v1330_v43, 7 }
 0x24a   :  { %v983_v54 = vsel %vm532_vm5, %v982_v0, %v981_v39  ;;  %v986_v31 = vrot.slane %v912_v17, 2  ;;  %v1336_v23 = vrot.slane %v912_v17, 7  ;;  %v1389_v19 = vsel %vm529_vm4, %v1388_v14, %v1387_v25 }
 0x24b   :  { %v985_v1 = vsel %vm535_vm6, %v984_v62, %v983_v54  ;;  %v1390_v52 = vrot.slane %v1334_v34, 5  ;;  %v1392_v45 = vrot.slane %v1335_v44, 4  ;;  %v1739_v24 = vrot.slane %v1331_v38, 7 }
 0x24c   :  { %v987_v35 = vsel %vm538_vm7, %v986_v31, %v985_v1  ;;  %v1394_v5 = vrot.slane %v1336_v23, 3  ;;  %v1740_v4 = vrot.slane %v18570_v27, 7  ;;  %v1741_v26 = vrot.slane %v1333_v28, 7 }
 0x24d   :  { %1054 = vmatmul.mubr.f32.vlgmr.msra.gmra.mrb[4].mxu0 %v987_v35  ;;  %14960 = vmatmul.mubr.f32.vlgmr.msra.gmra.mrb[4].mxu1 %v987_v35  ;;  %v1391_v43 = vsel %vm532_vm5, %v1390_v52, %v1389_v19  ;;  %v1742_v20 = vrot.slane %v1334_v34, 7  ;;  %v1743_v3 = vrot.slane %v1335_v44, 7  ;;  %v1744_v40 = vrot.slane %v1336_v23, 7 }
 0x24e   :  { %16148 = vmatpush1.bf16.msra.mxu0 %v17985_v9  ;;  %16179 = vmatpush3.bf16.msra.mxu1 %v18044_v29  ;;  %v1393_v30 = vsel %vm535_vm6, %v1392_v45, %v1391_v43  ;;  %v1830_v38 = vrot.slane %v1738_v2, 3  ;;  %v1831_v49 = vrot.slane %v1739_v24, 2  ;;  %v1833_v12 = vrot.slane %v1740_v4, 1 }
 0x24f   :  { %16150 = vmatprep.subr.bf16.mxu0 %v17987_v10  ;;  %16180 = vmatprep.subr.bf16.mxu1 %v20146_v36  ;;  %v18595_v27 = vsel %vm538_vm7, %v1394_v5, %v1393_v30  ;;  %v18597_v28 = vrot.slane %v1741_v26, 7  ;;  %v1838_v58 = vrot.slane %v1742_v20, 6  ;;  %v1840_v18 = vrot.slane %v1743_v3, 5 }
 0x250   :  { %1461 = vmatprep.mubr.f32.mxu0 %v18602_v8  ;;  %14994 = vmatprep.mubr.msk.f32.mxu1 %vm17936_vm0, %v18602_v8  ;;  %v1832_v53 = vsel %vm520_vm1, %v1831_v49, %v1830_v38  ;;  %v2186_v47 = vrot.slane %v1738_v2, 7  ;;  %v2187_v48 = vrot.slane %v1739_v24, 7  ;;  %v2188_v13 = vrot.slane %v1740_v4, 7 }
 0x251   :  { %v1834_v7 = vsel %vm523_vm2, %v1833_v12, %v1832_v53  ;;  %v2189_v39 = vrot.slane %v18575_v61, 7  ;;  %v2190_v56 = vrot.slane %v1742_v20, 7  ;;  %v1842_v17 = vrot.slane %v1744_v40, 4 }
 0x252   :  { %16152 = vmatpush1.bf16.msra.mxu0 %v18003_v15  ;;  %16182 = vmatpush3.bf16.msra.mxu1 %v18068_v37  ;;  %v1835_v14 = vsel %vm526_vm3, %v18575_v61, %v1834_v7  ;;  %v2191_v0 = vrot.slane %v1743_v3, 7  ;;  %v2238_v34 = vrot.slane %v2186_v47, 4  ;;  %v2192_v62 = vrot.slane %v1744_v40, 7 }
 0x253   :  { %16154 = vmatprep.subr.bf16.mxu0 %v18006_v16  ;;  %16183 = vmatprep.subr.bf16.mxu1 %v20146_v36  ;;  %v1837_v57 = vsel %vm529_vm4, %v18597_v28, %v1835_v14  ;;  %v2239_v44 = vrot.slane %v2187_v48, 3  ;;  %v2241_v25 = vrot.slane %v2188_v13, 2  ;;  %v2243_v54 = vrot.slane %v2189_v39, 1 }
 0x254   :  { %v1839_v2 = vsel %vm532_vm5, %v1838_v58, %v1837_v57  ;;  %v18619_v31 = vrot.slane %v2190_v56, 7  ;;  %v2248_v23 = vrot.slane %v2191_v0, 6  ;;  %v2594_v1 = vrot.slane %v2186_v47, 7 }
 0x255   :  { %v1841_v61 = vsel %vm535_vm6, %v1840_v18, %v1839_v2  ;;  %v2240_v19 = vsel %vm520_vm1, %v2239_v44, %v2238_v34  ;;  %v2595_v52 = vrot.slane %v2187_v48, 7  ;;  %v2596_v35 = vrot.slane %v2188_v13, 7 }
 0x256   :  { %16156 = vmatpush1.bf16.msra.mxu0 %v18021_v21  ;;  %16185 = vmatpush3.bf16.msra.mxu1 %v18096_v46  ;;  %v18626_v45 = vsel %vm538_vm7, %v1842_v17, %v1841_v61  ;;  %v2242_v24 = vsel %vm523_vm2, %v2241_v25, %v2240_v19  ;;  %v2597_v5 = vrot.slane %v2189_v39, 7  ;;  %v2250_v26 = vrot.slane %v2192_v62, 5 }
 0x257   :  { %16158 = vmatprep.subr.bf16.mxu0 %v18024_v22  ;;  %16186 = vmatprep.subr.bf16.mxu1 %v20146_v36  ;;  %v2244_v4 = vsel %vm526_vm3, %v2243_v54, %v2242_v24  ;;  %v2598_v43 = vrot.slane %v18597_v28, 7  ;;  %v2599_v20 = vrot.slane %v2191_v0, 7  ;;  %v2686_v40 = vrot.slane %v2594_v1, 5 }
 0x258   :  { %v2245_v3 = vsel %vm529_vm4, %v18597_v28, %v2244_v4  ;;  %v2687_v30 = vrot.slane %v2595_v52, 4  ;;  %v2689_v38 = vrot.slane %v2596_v35, 3  ;;  %v2600_v12 = vrot.slane %v2192_v62, 7 }
 0x259   :  { %v2247_v49 = vsel %vm532_vm5, %v18619_v31, %v2245_v3  ;;  %v2691_v58 = vrot.slane %v2597_v5, 2  ;;  %v2693_v53 = vrot.slane %v2598_v43, 1  ;;  %v18641_v48 = vrot.slane %v2599_v20, 7 }
 0x25a   :  { %16160 = vmatpush1.bf16.msra.mxu0 %v18053_v32  ;;  %16188 = vmatpush3.bf16.msra.mxu1 %v18124_v55  ;;  %v2249_v18 = vsel %vm535_vm6, %v2248_v23, %v2247_v49  ;;  %v2688_v47 = vsel %vm520_vm1, %v2687_v30, %v2686_v40  ;;  %v3042_v28 = vrot.slane %v2594_v1, 7  ;;  %v3043_v39 = vrot.slane %v2595_v52, 7 }
 0x25b   :  { %16162 = vmatprep.subr.bf16.mxu0 %v18056_v33  ;;  %16189 = vmatprep.subr.bf16.mxu1 %v20146_v36  ;;  %v18646_v7 = vsel %vm538_vm7, %v2250_v26, %v2249_v18  ;;  %v2690_v13 = vsel %vm523_vm2, %v2689_v38, %v2688_v47  ;;  %v3044_v56 = vrot.slane %v2596_v35, 7  ;;  %v3045_v17 = vrot.slane %v2597_v5, 7 }
 0x25c   :  { %v2692_v14 = vsel %vm526_vm3, %v2691_v58, %v2690_v13  ;;  %v3046_v0 = vrot.slane %v2598_v43, 7  ;;  %v3047_v34 = vrot.slane %v18619_v31, 7  ;;  %v2698_v62 = vrot.slane %v2600_v12, 6 }
 0x25d   :  { %v2694_v57 = vsel %vm529_vm4, %v2693_v53, %v2692_v14  ;;  %v3094_v44 = vrot.slane %v3042_v28, 6  ;;  %v3095_v25 = vrot.slane %v3043_v39, 5  ;;  %v3048_v54 = vrot.slane %v2600_v12, 7 }
 0x25e   :  { %16164 = vmatpush1.bf16.msra.mxu0 %v18081_v41  ;;  %16191 = vmatpush3.bf16.msra.mxu1 %v18149_v63  ;;  %v2695_v2 = vsel %vm532_vm5, %v18619_v31, %v2694_v57  ;;  %v3097_v23 = vrot.slane %v3044_v56, 4  ;;  %v3099_v61 = vrot.slane %v3045_v17, 3  ;;  %v3101_v52 = vrot.slane %v3046_v0, 2 }
 0x25f   :  { %16166 = vmatprep.subr.bf16.mxu0 %v18084_v42  ;;  %16192 = vmatprep.subr.bf16.mxu1 %v20146_v36  ;;  %v2697_v19 = vsel %vm535_vm6, %v18641_v48, %v2695_v2  ;;  %v3096_v1 = vsel %vm520_vm1, %v3095_v25, %v3094_v44  ;;  %v3103_v24 = vrot.slane %v3047_v34, 1  ;;  %v3450_v31 = vrot.slane %v3042_v28, 7 }
 0x260   :  { %v18662_v35 = vsel %vm538_vm7, %v2698_v62, %v2697_v19  ;;  %v3098_v5 = vsel %vm523_vm2, %v3097_v23, %v3096_v1  ;;  %v3451_v4 = vrot.slane %v3043_v39, 7  ;;  %v3452_v43 = vrot.slane %v3044_v56, 7 }
 0x261   :  { %v3100_v26 = vsel %vm526_vm3, %v3099_v61, %v3098_v5  ;;  %v3453_v20 = vrot.slane %v3045_v17, 7  ;;  %v3454_v3 = vrot.slane %v3046_v0, 7  ;;  %v18669_v30 = vrot.slane %v3048_v54, 7 }
 0x262   :  { %16168 = vmatpush1.bf16.msra.mxu0 %v18109_v50  ;;  %16194 = vmatpush3.bf16.msra.mxu1 %v18163_v6  ;;  %v3102_v40 = vsel %vm529_vm4, %v3101_v52, %v3100_v26  ;;  %v3455_v38 = vrot.slane %v3047_v34, 7  ;;  %v18671_v49 = vrot.slane %v3450_v31, 7  ;;  %v3456_v58 = vrot.slane %v18641_v48, 7  ;;  %v20184_v26 = vld [vmem:[#allocation4_spill] sm:$0xff] }
 0x263   :  { %16170 = vmatprep.subr.bf16.mxu0 %v18112_v51  ;;  %16195 = vmatprep.subr.bf16.mxu1 %v20146_v36  ;;  %v3104_v12 = vsel %vm532_vm5, %v3103_v24, %v3102_v40  ;;  %v3543_v53 = vrot.slane %v3451_v4, 6  ;;  %v3545_v18 = vrot.slane %v3452_v43, 5  ;;  %v3547_v28 = vrot.slane %v3453_v20, 4 }
 0x264   :  { %v3105_v47 = vsel %vm535_vm6, %v18641_v48, %v3104_v12  ;;  %v3549_v13 = vrot.slane %v3454_v3, 3  ;;  %v3551_v39 = vrot.slane %v3455_v38, 2  ;;  %v3898_v17 = vrot.slane %v3451_v4, 7  ;;  %v20183_v4 = vld [vmem:[#allocation3_spill] sm:$0xff] }
 0x265   :  { %v18681_v56 = vsel %vm538_vm7, %v18669_v30, %v3105_v47  ;;  %v3544_v14 = vsel %vm520_vm1, %v3543_v53, %v18671_v49  ;;  %v3899_v0 = vrot.slane %v3452_v43, 7  ;;  %v3900_v57 = vrot.slane %v3453_v20, 7 }
 0x266   :  { %16172 = vmatpush1.bf16.msra.mxu0 %v18137_v59  ;;  %16197 = vmatpush3.bf16.msra.mxu1 %v18174_v11  ;;  %v3546_v34 = vsel %vm523_vm2, %v3545_v18, %v3544_v14  ;;  %v3901_v48 = vrot.slane %v3454_v3, 7  ;;  %v3902_v62 = vrot.slane %v3455_v38, 7  ;;  %v3553_v25 = vrot.slane %v3456_v58, 1  ;;  %v20185_v38 = vld [vmem:[#allocation2_spill] sm:$0xff] }
 0x267   :  { %16174 = vmatprep.subr.bf16.mxu0 %v18140_v60  ;;  %16198 = vmatprep.subr.bf16.mxu1 %v20146_v36  ;;  %v3548_v44 = vsel %vm526_vm3, %v3547_v28, %v3546_v34  ;;  %v3903_v2 = vrot.slane %v3456_v58, 7  ;;  %v18691_v54 = vrot.slane %v3898_v17, 7  ;;  %v3904_v61 = vrot.slane %v18669_v30, 7 }
 0x268   :  { %v3550_v23 = vsel %vm529_vm4, %v3549_v13, %v3548_v44  ;;  %v3952_v19 = vrot.slane %v3899_v0, 6  ;;  %v3954_v1 = vrot.slane %v3900_v57, 5  ;;  %v3956_v5 = vrot.slane %v3901_v48, 4 }
 0x269   :  { %v3552_v52 = vsel %vm532_vm5, %v3551_v39, %v3550_v23  ;;  %v3951_v24 = vsel %vm520_vm1, %v18691_v54, %v18671_v49  ;;  %v3958_v31 = vrot.slane %v3902_v62, 3  ;;  %v3960_v3 = vrot.slane %v3903_v2, 2 }
 0x26a   :  { %16176 = vmatpush1.bf16.msra.mxu0 %v20183_v4  ;;  %16200 = vmatpush3.bf16.msra.mxu1 %v20184_v26  ;;  %v3554_v43 = vsel %vm535_vm6, %v3553_v25, %v3552_v52  ;;  %v3953_v20 = vsel %vm523_vm2, %v3952_v19, %v3951_v24  ;;  %v4306_v40 = vrot.slane %v18671_v49, 7  ;;  %v4307_v53 = vrot.slane %v3899_v0, 7 }
 0x26b   :  { %16202 = vmatprep.subr.bf16.mxu0 %v20185_v38  ;;  %16233 = vmatprep.subr.bf16.mxu1 %v20146_v36  ;;  %v18708_v12 = vsel %vm538_vm7, %v18669_v30, %v3554_v43  ;;  %v3955_v58 = vsel %vm526_vm3, %v3954_v1, %v3953_v20  ;;  %v4308_v18 = vrot.slane %v3900_v57, 7  ;;  %v4309_v28 = vrot.slane %v3901_v48, 7 }
 0x26c   :  { %v3957_v47 = vsel %vm529_vm4, %v3956_v5, %v3955_v58  ;;  %v4310_v13 = vrot.slane %v3902_v62, 7  ;;  %v4311_v39 = vrot.slane %v3903_v2, 7  ;;  %v3962_v14 = vrot.slane %v3904_v61, 1 }
 0x26d   :  { %1462 = vmatmul.mubr.f32.vlgmr.msra.gmra.mrb[6].mxu0 %v18595_v27  ;;  %14995 = vmatmul.mubr.f32.vlgmr.msra.gmra.mrb[6].mxu1 %v18595_v27  ;;  %v3959_v49 = vsel %vm532_vm5, %v3958_v31, %v3957_v47  ;;  %v4398_v17 = vrot.slane %v4306_v40, 1  ;;  %v18715_v34 = vrot.slane %v4307_v53, 7  ;;  %v4312_v0 = vrot.slane %v3904_v61, 7 }
 0x26e   :  { %16204 = vmatpush1.bf16.msra.mxu0 %v17985_v9  ;;  %16235 = vmatpush3.bf16.msra.mxu1 %v18044_v29  ;;  %v3961_v30 = vsel %vm535_vm6, %v3960_v3, %v3959_v49  ;;  %v4402_v57 = vrot.slane %v4308_v18, 6  ;;  %v4404_v48 = vrot.slane %v4309_v28, 5  ;;  %v4406_v44 = vrot.slane %v4310_v13, 4 }
 0x26f   :  { %16206 = vmatprep.subr.bf16.mxu0 %v17987_v10  ;;  %16236 = vmatprep.subr.bf16.mxu1 %v20146_v36  ;;  %v18723_v27 = vsel %vm538_vm7, %v3962_v14, %v3961_v30  ;;  %v4399_v62 = vsel %vm520_vm1, %v18691_v54, %v4398_v17  ;;  %v4408_v25 = vrot.slane %v4311_v39, 3  ;;  %v4754_v23 = vrot.slane %v4306_v40, 7 }
 0x270   :  { %1909 = vmatprep.mubr.f32.mxu0 %v18602_v8  ;;  %15029 = vmatprep.mubr.msk.f32.mxu1 %vm17936_vm0, %v18602_v8  ;;  %v4401_v2 = vsel %vm523_vm2, %v18715_v34, %v4399_v62  ;;  %v4755_v61 = vrot.slane %v18691_v54, 7  ;;  %v4756_v19 = vrot.slane %v4308_v18, 7  ;;  %v4757_v52 = vrot.slane %v4309_v28, 7 }
 0x271   :  { %v4403_v1 = vsel %vm526_vm3, %v4402_v57, %v4401_v2  ;;  %v4758_v24 = vrot.slane %v4310_v13, 7  ;;  %v4759_v5 = vrot.slane %v4311_v39, 7  ;;  %v4410_v43 = vrot.slane %v4312_v0, 2 }
 0x272   :  { %16208 = vmatpush1.bf16.msra.mxu0 %v18003_v15  ;;  %16238 = vmatpush3.bf16.msra.mxu1 %v18068_v37  ;;  %v4405_v31 = vsel %vm529_vm4, %v4404_v48, %v4403_v1  ;;  %v4806_v20 = vrot.slane %v4754_v23, 2  ;;  %v4807_v3 = vrot.slane %v4755_v61, 1  ;;  %v4760_v40 = vrot.slane %v4312_v0, 7 }
 0x273   :  { %16210 = vmatprep.subr.bf16.mxu0 %v18006_v16  ;;  %16239 = vmatprep.subr.bf16.mxu1 %v20146_v36  ;;  %v4407_v54 = vsel %vm532_vm5, %v4406_v44, %v4405_v31  ;;  %v18740_v58 = vrot.slane %v4756_v19, 7  ;;  %v4812_v53 = vrot.slane %v4757_v52, 6  ;;  %v4814_v28 = vrot.slane %v4758_v24, 5 }
 0x274   :  { %v4409_v18 = vsel %vm535_vm6, %v4408_v25, %v4407_v54  ;;  %v4808_v47 = vsel %vm520_vm1, %v4807_v3, %v4806_v20  ;;  %v4816_v13 = vrot.slane %v4759_v5, 4  ;;  %v5162_v14 = vrot.slane %v4754_v23, 7 }
 0x275   :  { %v18745_v39 = vsel %vm538_vm7, %v4410_v43, %v4409_v18  ;;  %v4809_v49 = vsel %vm523_vm2, %v18715_v34, %v4808_v47  ;;  %v5163_v17 = vrot.slane %v4755_v61, 7  ;;  %v5164_v0 = vrot.slane %v18715_v34, 7 }
 0x276   :  { %16212 = vmatpush1.bf16.msra.mxu0 %v18021_v21  ;;  %16241 = vmatpush3.bf16.msra.mxu1 %v18096_v46  ;;  %v4811_v30 = vsel %vm526_vm3, %v18740_v58, %v4809_v49  ;;  %v5165_v57 = vrot.slane %v4757_v52, 7  ;;  %v5166_v48 = vrot.slane %v4758_v24, 7  ;;  %v4818_v44 = vrot.slane %v4760_v40, 3 }
 0x277   :  { %16214 = vmatprep.subr.bf16.mxu0 %v18024_v22  ;;  %16242 = vmatprep.subr.bf16.mxu1 %v20146_v36  ;;  %v4813_v62 = vsel %vm529_vm4, %v4812_v53, %v4811_v30  ;;  %v5167_v25 = vrot.slane %v4759_v5, 7  ;;  %v5254_v2 = vrot.slane %v5162_v14, 3  ;;  %v5168_v61 = vrot.slane %v4760_v40, 7 }
 0x278   :  { %v4815_v23 = vsel %vm532_vm5, %v4814_v28, %v4813_v62  ;;  %v5255_v19 = vrot.slane %v5163_v17, 2  ;;  %v5257_v1 = vrot.slane %v5164_v0, 1  ;;  %v18759_v43 = vrot.slane %v5165_v57, 7 }
 0x279   :  { %v4817_v31 = vsel %vm535_vm6, %v4816_v13, %v4815_v23  ;;  %v5262_v34 = vrot.slane %v5166_v48, 6  ;;  %v5264_v52 = vrot.slane %v5167_v25, 5  ;;  %v5610_v20 = vrot.slane %v5162_v14, 7 }
 0x27a   :  { %16216 = vmatpush1.bf16.msra.mxu0 %v18053_v32  ;;  %16244 = vmatpush3.bf16.msra.mxu1 %v18124_v55  ;;  %v18764_v24 = vsel %vm538_vm7, %v4818_v44, %v4817_v31  ;;  %v5256_v5 = vsel %vm520_vm1, %v5255_v19, %v5254_v2  ;;  %v5611_v3 = vrot.slane %v5163_v17, 7  ;;  %v5612_v40 = vrot.slane %v5164_v0, 7 }
 0x27b   :  { %16218 = vmatprep.subr.bf16.mxu0 %v18056_v33  ;;  %16245 = vmatprep.subr.bf16.mxu1 %v20146_v36  ;;  %v5258_v54 = vsel %vm523_vm2, %v5257_v1, %v5256_v5  ;;  %v5613_v53 = vrot.slane %v18740_v58, 7  ;;  %v5614_v18 = vrot.slane %v5166_v48, 7  ;;  %v5266_v28 = vrot.slane %v5168_v61, 4 }
 0x27c   :  { %v5259_v47 = vsel %vm526_vm3, %v18740_v58, %v5258_v54  ;;  %v5615_v13 = vrot.slane %v5167_v25, 7  ;;  %v5662_v49 = vrot.slane %v5610_v20, 4  ;;  %v5616_v17 = vrot.slane %v5168_v61, 7 }
 0x27d   :  { %v5261_v14 = vsel %vm529_vm4, %v18759_v43, %v5259_v47  ;;  %v5663_v30 = vrot.slane %v5611_v3, 3  ;;  %v5665_v57 = vrot.slane %v5612_v40, 2  ;;  %v5667_v62 = vrot.slane %v5613_v53, 1 }
 0x27e   :  { %16220 = vmatpush1.bf16.msra.mxu0 %v18081_v41  ;;  %16247 = vmatpush3.bf16.msra.mxu1 %v18149_v63  ;;  %v5263_v0 = vsel %vm532_vm5, %v5262_v34, %v5261_v14  ;;  %v18778_v48 = vrot.slane %v5614_v18, 7  ;;  %v5672_v44 = vrot.slane %v5615_v13, 6  ;;  %v6018_v2 = vrot.slane %v5610_v20, 7 }
 0x27f   :  { %16222 = vmatprep.subr.bf16.mxu0 %v18084_v42  ;;  %16248 = vmatprep.subr.bf16.mxu1 %v20146_v36  ;;  %v5265_v58 = vsel %vm535_vm6, %v5264_v52, %v5263_v0  ;;  %v5664_v25 = vsel %vm520_vm1, %v5663_v30, %v5662_v49  ;;  %v6019_v23 = vrot.slane %v5611_v3, 7  ;;  %v6020_v1 = vrot.slane %v5612_v40, 7 }
 0x280   :  { %v18785_v61 = vsel %vm538_vm7, %v5266_v28, %v5265_v58  ;;  %v5666_v19 = vsel %vm523_vm2, %v5665_v57, %v5664_v25  ;;  %v6021_v31 = vrot.slane %v5613_v53, 7  ;;  %v5674_v5 = vrot.slane %v5616_v17, 5 }
 0x281   :  { %v5668_v34 = vsel %vm526_vm3, %v5667_v62, %v5666_v19  ;;  %v6022_v54 = vrot.slane %v18759_v43, 7  ;;  %v6023_v18 = vrot.slane %v5615_v13, 7  ;;  %v6110_v20 = vrot.slane %v6018_v2, 5 }
 0x282   :  { %16224 = vmatpush1.bf16.msra.mxu0 %v18109_v50  ;;  %16250 = vmatpush3.bf16.msra.mxu1 %v18163_v6  ;;  %v5669_v52 = vsel %vm529_vm4, %v18759_v43, %v5668_v34  ;;  %v6111_v3 = vrot.slane %v6019_v23, 4  ;;  %v6113_v47 = vrot.slane %v6020_v1, 3  ;;  %v6024_v53 = vrot.slane %v5616_v17, 7 }
 0x283   :  { %16226 = vmatprep.subr.bf16.mxu0 %v18112_v51  ;;  %16251 = vmatprep.subr.bf16.mxu1 %v20146_v36  ;;  %v5671_v40 = vsel %vm532_vm5, %v18778_v48, %v5669_v52  ;;  %v6115_v28 = vrot.slane %v6021_v31, 2  ;;  %v6117_v13 = vrot.slane %v6022_v54, 1  ;;  %v18800_v30 = vrot.slane %v6023_v18, 7 }
 0x284   :  { %v5673_v49 = vsel %vm535_vm6, %v5672_v44, %v5671_v40  ;;  %v6112_v14 = vsel %vm520_vm1, %v6111_v3, %v6110_v20  ;;  %v6466_v43 = vrot.slane %v6018_v2, 7  ;;  %v6467_v62 = vrot.slane %v6019_v23, 7 }
 0x285   :  { %v18803_v57 = vsel %vm538_vm7, %v5674_v5, %v5673_v49  ;;  %v6114_v0 = vsel %vm523_vm2, %v6113_v47, %v6112_v14  ;;  %v6468_v58 = vrot.slane %v6020_v1, 7  ;;  %v6469_v25 = vrot.slane %v6021_v31, 7 }
 0x286   :  { %16228 = vmatpush1.bf16.msra.mxu0 %v18137_v59  ;;  %16253 = vmatpush3.bf16.msra.mxu1 %v18174_v11  ;;  %v6116_v17 = vsel %vm526_vm3, %v6115_v28, %v6114_v0  ;;  %v6470_v44 = vrot.slane %v6022_v54, 7  ;;  %v6471_v19 = vrot.slane %v18778_v48, 7  ;;  %v6122_v34 = vrot.slane %v6024_v53, 6 }
 0x287   :  { %16230 = vmatprep.subr.bf16.mxu0 %v18140_v60  ;;  %16254 = vmatprep.subr.bf16.mxu1 %v20146_v36  ;;  %v6118_v2 = vsel %vm529_vm4, %v6117_v13, %v6116_v17  ;;  %v6518_v5 = vrot.slane %v6466_v43, 6  ;;  %v6519_v23 = vrot.slane %v6467_v62, 5  ;;  %v6472_v18 = vrot.slane %v6024_v53, 7 }
 0x288   :  { %v6119_v1 = vsel %vm532_vm5, %v18778_v48, %v6118_v2  ;;  %v6521_v52 = vrot.slane %v6468_v58, 4  ;;  %v6523_v20 = vrot.slane %v6469_v25, 3  ;;  %v6525_v3 = vrot.slane %v6470_v44, 2 }
 0x289   :  { %v6121_v31 = vsel %vm535_vm6, %v18800_v30, %v6119_v1  ;;  %v6520_v54 = vsel %vm520_vm1, %v6519_v23, %v6518_v5  ;;  %v6527_v47 = vrot.slane %v6471_v19, 1  ;;  %v6874_v48 = vrot.slane %v6466_v43, 7 }
 0x28a   :  { %16232 = vmatpush1.bf16.msra.mxu0 %v20183_v4  ;;  %16256 = vmatpush3.bf16.msra.mxu1 %v20184_v26  ;;  %v18821_v40 = vsel %vm538_vm7, %v6122_v34, %v6121_v31  ;;  %v6522_v28 = vsel %vm523_vm2, %v6521_v52, %v6520_v54  ;;  %v6875_v53 = vrot.slane %v6467_v62, 7  ;;  %v6876_v49 = vrot.slane %v6468_v58, 7 }
 0x28b   :  { %16258 = vmatprep.subr.bf16.mxu0 %v20185_v38  ;;  %16289 = vmatprep.subr.bf16.mxu1 %v20146_v36  ;;  %v6524_v13 = vsel %vm526_vm3, %v6523_v20, %v6522_v28  ;;  %v6877_v14 = vrot.slane %v6469_v25, 7  ;;  %v6878_v0 = vrot.slane %v6470_v44, 7  ;;  %v18828_v2 = vrot.slane %v6472_v18, 7 }
 0x28c   :  { %v6526_v17 = vsel %vm529_vm4, %v6525_v3, %v6524_v13  ;;  %v6879_v5 = vrot.slane %v6471_v19, 7  ;;  %v18830_v34 = vrot.slane %v6874_v48, 7  ;;  %v6880_v62 = vrot.slane %v18800_v30, 7 }
 0x28d   :  { %1910 = vmatmul.mubr.f32.vlgmr.msra.gmra.mrb[8].mxu0 %v18626_v45  ;;  %15030 = vmatmul.mubr.f32.vlgmr.msra.gmra.mrb[8].mxu1 %v18626_v45  ;;  %v6528_v43 = vsel %vm532_vm5, %v6527_v47, %v6526_v17  ;;  %v6967_v23 = vrot.slane %v6875_v53, 6  ;;  %v6969_v1 = vrot.slane %v6876_v49, 5  ;;  %v6971_v25 = vrot.slane %v6877_v14, 4 }
 0x28e   :  { %16260 = vmatpush1.bf16.msra.mxu0 %v17985_v9  ;;  %16291 = vmatpush3.bf16.msra.mxu1 %v18044_v29  ;;  %v6529_v58 = vsel %vm535_vm6, %v18800_v30, %v6528_v43  ;;  %v6973_v44 = vrot.slane %v6878_v0, 3  ;;  %v6975_v19 = vrot.slane %v6879_v5, 2  ;;  %v7322_v52 = vrot.slane %v6875_v53, 7 }
 0x28f   :  { %16262 = vmatprep.subr.bf16.mxu0 %v17987_v10  ;;  %16292 = vmatprep.subr.bf16.mxu1 %v20146_v36  ;;  %v18844_v45 = vsel %vm538_vm7, %v18828_v2, %v6529_v58  ;;  %v6968_v18 = vsel %vm520_vm1, %v6967_v23, %v18830_v34  ;;  %v7323_v20 = vrot.slane %v6876_v49, 7  ;;  %v7324_v31 = vrot.slane %v6877_v14, 7 }
 0x290   :  { %2317 = vmatprep.mubr.f32.mxu0 %v18602_v8  ;;  %15064 = vmatprep.mubr.msk.f32.mxu1 %vm17936_vm0, %v18602_v8  ;;  %v6970_v30 = vsel %vm523_vm2, %v6969_v1, %v6968_v18  ;;  %v7325_v54 = vrot.slane %v6878_v0, 7  ;;  %v7326_v3 = vrot.slane %v6879_v5, 7  ;;  %v6977_v28 = vrot.slane %v6880_v62, 1 }
 0x291   :  { %v6972_v47 = vsel %vm526_vm3, %v6971_v25, %v6970_v30  ;;  %v7327_v48 = vrot.slane %v6880_v62, 7  ;;  %v18853_v13 = vrot.slane %v7322_v52, 7  ;;  %v7328_v49 = vrot.slane %v18828_v2, 7 }
 0x292   :  { %16264 = vmatpush1.bf16.msra.mxu0 %v18003_v15  ;;  %16294 = vmatpush3.bf16.msra.mxu1 %v18068_v37  ;;  %v6974_v53 = vsel %vm529_vm4, %v6973_v44, %v6972_v47  ;;  %v7376_v17 = vrot.slane %v7323_v20, 6  ;;  %v7378_v43 = vrot.slane %v7324_v31, 5  ;;  %v7380_v5 = vrot.slane %v7325_v54, 4 }
 0x293   :  { %16266 = vmatprep.subr.bf16.mxu0 %v18006_v16  ;;  %16295 = vmatprep.subr.bf16.mxu1 %v20146_v36  ;;  %v6976_v14 = vsel %vm532_vm5, %v6975_v19, %v6974_v53  ;;  %v7375_v0 = vsel %vm520_vm1, %v18853_v13, %v18830_v34  ;;  %v7382_v62 = vrot.slane %v7326_v3, 3  ;;  %v7384_v58 = vrot.slane %v7327_v48, 2 }
 0x294   :  { %v6978_v23 = vsel %vm535_vm6, %v6977_v28, %v6976_v14  ;;  %v7377_v1 = vsel %vm523_vm2, %v7376_v17, %v7375_v0  ;;  %v7730_v25 = vrot.slane %v18830_v34, 7  ;;  %v7731_v19 = vrot.slane %v7323_v20, 7 }
 0x295   :  { %v18870_v44 = vsel %vm538_vm7, %v18828_v2, %v6978_v23  ;;  %v7379_v18 = vsel %vm526_vm3, %v7378_v43, %v7377_v1  ;;  %v7732_v52 = vrot.slane %v7324_v31, 7  ;;  %v7733_v47 = vrot.slane %v7325_v54, 7 }
 0x296   :  { %16268 = vmatpush1.bf16.msra.mxu0 %v18021_v21  ;;  %16297 = vmatpush3.bf16.msra.mxu1 %v18096_v46  ;;  %v7381_v30 = vsel %vm529_vm4, %v7380_v5, %v7379_v18  ;;  %v7734_v28 = vrot.slane %v7326_v3, 7  ;;  %v7735_v53 = vrot.slane %v7327_v48, 7  ;;  %v7386_v34 = vrot.slane %v7328_v49, 1 }
 0x297   :  { %16270 = vmatprep.subr.bf16.mxu0 %v18024_v22  ;;  %16298 = vmatprep.subr.bf16.mxu1 %v20146_v36  ;;  %v7383_v2 = vsel %vm532_vm5, %v7382_v62, %v7381_v30  ;;  %v7822_v17 = vrot.slane %v7730_v25, 1  ;;  %v18879_v43 = vrot.slane %v7731_v19, 7  ;;  %v7736_v31 = vrot.slane %v7328_v49, 7 }
 0x298   :  { %v7385_v20 = vsel %vm535_vm6, %v7384_v58, %v7383_v2  ;;  %v7826_v14 = vrot.slane %v7732_v52, 6  ;;  %v7828_v0 = vrot.slane %v7733_v47, 5  ;;  %v7830_v3 = vrot.slane %v7734_v28, 4 }
 0x299   :  { %v18883_v5 = vsel %vm538_vm7, %v7386_v34, %v7385_v20  ;;  %v7823_v54 = vsel %vm520_vm1, %v18853_v13, %v7822_v17  ;;  %v7832_v48 = vrot.slane %v7735_v53, 3  ;;  %v8178_v23 = vrot.slane %v7730_v25, 7 }
 0x29a   :  { %20186 = vst [vmem:[#allocation5_spill] sm:$0xff] %v18883_v5  ;;  %16272 = vmatpush1.bf16.msra.mxu0 %v18053_v32  ;;  %16300 = vmatpush3.bf16.msra.mxu1 %v18124_v55  ;;  %v7825_v62 = vsel %vm523_vm2, %v18879_v43, %v7823_v54  ;;  %v8179_v49 = vrot.slane %v18853_v13, 7  ;;  %v8180_v1 = vrot.slane %v7732_v52, 7  ;;  %v8181_v18 = vrot.slane %v7733_v47, 7 }
 0x29b   :  { %16274 = vmatprep.subr.bf16.mxu0 %v18056_v33  ;;  %16301 = vmatprep.subr.bf16.mxu1 %v20146_v36  ;;  %v7827_v58 = vsel %vm526_vm3, %v7826_v14, %v7825_v62  ;;  %v8182_v19 = vrot.slane %v7734_v28, 7  ;;  %v8183_v30 = vrot.slane %v7735_v53, 7  ;;  %v7834_v34 = vrot.slane %v7736_v31, 2 }
 0x29c   :  { %v7829_v2 = vsel %vm529_vm4, %v7828_v0, %v7827_v58  ;;  %v8230_v17 = vrot.slane %v8178_v23, 2  ;;  %v8231_v20 = vrot.slane %v8179_v49, 1  ;;  %v8184_v25 = vrot.slane %v7736_v31, 7 }
 0x29d   :  { %v7831_v54 = vsel %vm532_vm5, %v7830_v3, %v7829_v2  ;;  %v18897_v5 = vrot.slane %v8180_v1, 7  ;;  %v8236_v13 = vrot.slane %v8181_v18, 6  ;;  %v8238_v28 = vrot.slane %v8182_v19, 5 }
 0x29e   :  { %16276 = vmatpush1.bf16.msra.mxu0 %v18081_v41  ;;  %16303 = vmatpush3.bf16.msra.mxu1 %v18149_v63  ;;  %v7833_v52 = vsel %vm535_vm6, %v7832_v48, %v7831_v54  ;;  %v8232_v47 = vsel %vm520_vm1, %v8231_v20, %v8230_v17  ;;  %v8240_v53 = vrot.slane %v8183_v30, 4  ;;  %v8586_v0 = vrot.slane %v8178_v23, 7 }
 0x29f   :  { %16278 = vmatprep.subr.bf16.mxu0 %v18084_v42  ;;  %16304 = vmatprep.subr.bf16.mxu1 %v20146_v36  ;;  %v18906_v14 = vsel %vm538_vm7, %v7834_v34, %v7833_v52  ;;  %v8233_v31 = vsel %vm523_vm2, %v18879_v43, %v8232_v47  ;;  %v8587_v3 = vrot.slane %v8179_v49, 7  ;;  %v8588_v48 = vrot.slane %v18879_v43, 7 }
 0x2a0   :  { %20187 = vst [vmem:[#allocation6_spill] sm:$0xff] %v18906_v14  ;;  %v8235_v62 = vsel %vm526_vm3, %v18897_v5, %v8233_v31  ;;  %v8589_v1 = vrot.slane %v8181_v18, 7  ;;  %v8590_v58 = vrot.slane %v8182_v19, 7  ;;  %v8242_v17 = vrot.slane %v8184_v25, 3 }
 0x2a1   :  { %v8237_v2 = vsel %vm529_vm4, %v8236_v13, %v8235_v62  ;;  %v8591_v20 = vrot.slane %v8183_v30, 7  ;;  %v8678_v54 = vrot.slane %v8586_v0, 3  ;;  %v8592_v23 = vrot.slane %v8184_v25, 7 }
 0x2a2   :  { %16280 = vmatpush1.bf16.msra.mxu0 %v18109_v50  ;;  %16306 = vmatpush3.bf16.msra.mxu1 %v18163_v6  ;;  %v8239_v34 = vsel %vm532_vm5, %v8238_v28, %v8237_v2  ;;  %v8679_v49 = vrot.slane %v8587_v3, 2  ;;  %v8681_v52 = vrot.slane %v8588_v48, 1  ;;  %v18920_v18 = vrot.slane %v8589_v1, 7 }
 0x2a3   :  { %16282 = vmatprep.subr.bf16.mxu0 %v18112_v51  ;;  %16307 = vmatprep.subr.bf16.mxu1 %v20146_v36  ;;  %v8241_v43 = vsel %vm535_vm6, %v8240_v53, %v8239_v34  ;;  %v8686_v19 = vrot.slane %v8590_v58, 6  ;;  %v8688_v30 = vrot.slane %v8591_v20, 5  ;;  %v9034_v31 = vrot.slane %v8586_v0, 7 }
 0x2a4   :  { %v18923_v13 = vsel %vm538_vm7, %v8242_v17, %v8241_v43  ;;  %v8680_v47 = vsel %vm520_vm1, %v8679_v49, %v8678_v54  ;;  %v9035_v28 = vrot.slane %v8587_v3, 7  ;;  %v9036_v62 = vrot.slane %v8588_v48, 7 }
 0x2a5   :  { %v8682_v25 = vsel %vm523_vm2, %v8681_v52, %v8680_v47  ;;  %v9037_v2 = vrot.slane %v18897_v5, 7  ;;  %v9038_v14 = vrot.slane %v8590_v58, 7  ;;  %v8690_v1 = vrot.slane %v8592_v23, 4 }
 0x2a6   :  { %16284 = vmatpush1.bf16.msra.mxu0 %v18137_v59  ;;  %16309 = vmatpush3.bf16.msra.mxu1 %v18174_v11  ;;  %v8683_v53 = vsel %vm526_vm3, %v18897_v5, %v8682_v25  ;;  %v9039_v17 = vrot.slane %v8591_v20, 7  ;;  %v9086_v34 = vrot.slane %v9034_v31, 4  ;;  %v9040_v3 = vrot.slane %v8592_v23, 7 }
 0x2a7   :  { %16286 = vmatprep.subr.bf16.mxu0 %v18140_v60  ;;  %16310 = vmatprep.subr.bf16.mxu1 %v20146_v36  ;;  %v8685_v0 = vsel %vm529_vm4, %v18920_v18, %v8683_v53  ;;  %v9087_v48 = vrot.slane %v9035_v28, 3  ;;  %v9089_v58 = vrot.slane %v9036_v62, 2  ;;  %v9091_v49 = vrot.slane %v9037_v2, 1 }
 0x2a8   :  { %v8687_v54 = vsel %vm532_vm5, %v8686_v19, %v8685_v0  ;;  %v18937_v52 = vrot.slane %v9038_v14, 7  ;;  %v9096_v43 = vrot.slane %v9039_v17, 6  ;;  %v9442_v47 = vrot.slane %v9034_v31, 7 }
 0x2a9   :  { %v8689_v5 = vsel %vm535_vm6, %v8688_v30, %v8687_v54  ;;  %v9088_v20 = vsel %vm520_vm1, %v9087_v48, %v9086_v34  ;;  %v9443_v25 = vrot.slane %v9035_v28, 7  ;;  %v9444_v19 = vrot.slane %v9036_v62, 7 }
 0x2aa   :  { %16288 = vmatpush1.bf16.msra.mxu0 %v20183_v4  ;;  %16312 = vmatpush3.bf16.msra.mxu1 %v20184_v26  ;;  %v18944_v23 = vsel %vm538_vm7, %v8690_v1, %v8689_v5  ;;  %v9090_v53 = vsel %vm523_vm2, %v9089_v58, %v9088_v20  ;;  %v9445_v0 = vrot.slane %v9037_v2, 7  ;;  %v9098_v30 = vrot.slane %v9040_v3, 5 }
 0x2ab   :  { %20188 = vst [vmem:[#allocation7_spill] sm:$0xff] %v18944_v23  ;;  %16314 = vmatprep.subr.bf16.mxu0 %v20185_v38  ;;  %16345 = vmatprep.subr.bf16.mxu1 %v20146_v36  ;;  %v9092_v14 = vsel %vm526_vm3, %v9091_v49, %v9090_v53  ;;  %v9446_v31 = vrot.slane %v18920_v18, 7  ;;  %v9447_v28 = vrot.slane %v9039_v17, 7  ;;  %v9534_v48 = vrot.slane %v9442_v47, 5 }
 0x2ac   :  { %v9093_v34 = vsel %vm529_vm4, %v18920_v18, %v9092_v14  ;;  %v9535_v1 = vrot.slane %v9443_v25, 4  ;;  %v9537_v54 = vrot.slane %v9444_v19, 3  ;;  %v9448_v2 = vrot.slane %v9040_v3, 7 }
 0x2ad   :  { %2318 = vmatmul.mubr.f32.vlgmr.msra.gmra.mrb[10].mxu0 %v18646_v7  ;;  %15065 = vmatmul.mubr.f32.vlgmr.msra.gmra.mrb[10].mxu1 %v18646_v7  ;;  %v9095_v62 = vsel %vm532_vm5, %v18937_v52, %v9093_v34  ;;  %v9539_v58 = vrot.slane %v9445_v0, 2  ;;  %v9541_v49 = vrot.slane %v9446_v31, 1  ;;  %v18961_v5 = vrot.slane %v9447_v28, 7 }
 0x2ae   :  { %16316 = vmatpush1.bf16.msra.mxu0 %v17985_v9  ;;  %16347 = vmatpush3.bf16.msra.mxu1 %v18044_v29  ;;  %v9097_v17 = vsel %vm535_vm6, %v9096_v43, %v9095_v62  ;;  %v9536_v18 = vsel %vm520_vm1, %v9535_v1, %v9534_v48  ;;  %v9890_v20 = vrot.slane %v9442_v47, 7  ;;  %v9891_v53 = vrot.slane %v9443_v25, 7 }
 0x2af   :  { %16318 = vmatprep.subr.bf16.mxu0 %v17987_v10  ;;  %16348 = vmatprep.subr.bf16.mxu1 %v20146_v36  ;;  %v18966_v7 = vsel %vm538_vm7, %v9098_v30, %v9097_v17  ;;  %v9538_v3 = vsel %vm523_vm2, %v9537_v54, %v9536_v18  ;;  %v9892_v14 = vrot.slane %v9444_v19, 7  ;;  %v9893_v28 = vrot.slane %v9445_v0, 7 }
 0x2b0   :  { %20189 = vst [vmem:[#allocation9_spill] sm:$0xff] %v18966_v7  ;;  %2765 = vmatprep.mubr.f32.mxu0 %v18602_v8  ;;  %15099 = vmatprep.mubr.msk.f32.mxu1 %vm17936_vm0, %v18602_v8  ;;  %v9540_v43 = vsel %vm526_vm3, %v9539_v58, %v9538_v3  ;;  %v9894_v47 = vrot.slane %v9446_v31, 7  ;;  %v9895_v34 = vrot.slane %v18937_v52, 7  ;;  %v9546_v1 = vrot.slane %v9448_v2, 6 }
 0x2b1   :  { %v9542_v48 = vsel %vm529_vm4, %v9541_v49, %v9540_v43  ;;  %v9942_v30 = vrot.slane %v9890_v20, 6  ;;  %v9943_v62 = vrot.slane %v9891_v53, 5  ;;  %v9896_v19 = vrot.slane %v9448_v2, 7 }
 0x2b2   :  { %16320 = vmatpush1.bf16.msra.mxu0 %v18003_v15  ;;  %16350 = vmatpush3.bf16.msra.mxu1 %v18068_v37  ;;  %v9543_v25 = vsel %vm532_vm5, %v18937_v52, %v9542_v48  ;;  %v9945_v8 = vrot.slane %v9892_v14, 4  ;;  %v9947_v54 = vrot.slane %v9893_v28, 3  ;;  %v9949_v58 = vrot.slane %v9894_v47, 2 }
 0x2b3   :  { %16322 = vmatprep.subr.bf16.mxu0 %v18006_v16  ;;  %16351 = vmatprep.subr.bf16.mxu1 %v20146_v36  ;;  %v9545_v0 = vsel %vm535_vm6, %v18961_v5, %v9543_v25  ;;  %v9944_v31 = vsel %vm520_vm1, %v9943_v62, %v9942_v30  ;;  %v9951_v49 = vrot.slane %v9895_v34, 1  ;;  %v10298_v52 = vrot.slane %v9890_v20, 7 }
 0x2b4   :  { %v18985_v17 = vsel %vm538_vm7, %v9546_v1, %v9545_v0  ;;  %v9946_v18 = vsel %vm523_vm2, %v9945_v8, %v9944_v31  ;;  %v10299_v2 = vrot.slane %v9891_v53, 7  ;;  %v10300_v43 = vrot.slane %v9892_v14, 7 }
 0x2b5   :  { %20190 = vst [vmem:[#allocation8_spill] sm:$0xff] %v18985_v17  ;;  %v9948_v3 = vsel %vm526_vm3, %v9947_v54, %v9946_v18  ;;  %v10301_v48 = vrot.slane %v9893_v28, 7  ;;  %v10302_v7 = vrot.slane %v9894_v47, 7  ;;  %v9954_v62 = vrot.slane %v9896_v19, 7 }
 0x2b6   :  { %16324 = vmatpush1.bf16.msra.mxu0 %v18021_v21  ;;  %16353 = vmatpush3.bf16.msra.mxu1 %v18096_v46  ;;  %v9950_v30 = vsel %vm529_vm4, %v9949_v58, %v9948_v3  ;;  %v10303_v25 = vrot.slane %v9895_v34, 7  ;;  %v18992_v23 = vrot.slane %v10298_v52, 7  ;;  %v10304_v53 = vrot.slane %v18961_v5, 7 }
 0x2b7   :  { %16326 = vmatprep.subr.bf16.mxu0 %v18024_v22  ;;  %16354 = vmatprep.subr.bf16.mxu1 %v20146_v36  ;;  %v9952_v20 = vsel %vm532_vm5, %v9951_v49, %v9950_v30  ;;  %v10391_v14 = vrot.slane %v10299_v2, 6  ;;  %v10393_v28 = vrot.slane %v10300_v43, 5  ;;  %v10395_v1 = vrot.slane %v10301_v48, 4 }
 0x2b8   :  { %v9953_v47 = vsel %vm535_vm6, %v18961_v5, %v9952_v20  ;;  %v10397_v8 = vrot.slane %v10302_v7, 3  ;;  %v10399_v54 = vrot.slane %v10303_v25, 2  ;;  %v10746_v0 = vrot.slane %v10299_v2, 7 }
 0x2b9   :  { %v19001_v34 = vsel %vm538_vm7, %v9954_v62, %v9953_v47  ;;  %v10392_v19 = vsel %vm520_vm1, %v10391_v14, %v18992_v23  ;;  %v10747_v31 = vrot.slane %v10300_v43, 7  ;;  %v10748_v49 = vrot.slane %v10301_v48, 7 }
 0x2ba   :  { %20191 = vst [vmem:[#allocation10_spill] sm:$0xff] %v19001_v34  ;;  %16328 = vmatpush1.bf16.msra.mxu0 %v18053_v32  ;;  %16356 = vmatpush3.bf16.msra.mxu1 %v18124_v55  ;;  %v10394_v58 = vsel %vm523_vm2, %v10393_v28, %v10392_v19  ;;  %v10749_v18 = vrot.slane %v10302_v7, 7  ;;  %v10750_v5 = vrot.slane %v10303_v25, 7  ;;  %v10401_v3 = vrot.slane %v10304_v53, 1 }
 0x2bb   :  { %16330 = vmatprep.subr.bf16.mxu0 %v18056_v33  ;;  %16357 = vmatprep.subr.bf16.mxu1 %v20146_v36  ;;  %v10396_v52 = vsel %vm526_vm3, %v10395_v1, %v10394_v58  ;;  %v10751_v30 = vrot.slane %v10304_v53, 7  ;;  %v19011_v20 = vrot.slane %v10746_v0, 7  ;;  %v10752_v43 = vrot.slane %v9954_v62, 7 }
 0x2bc   :  { %v10398_v2 = vsel %vm529_vm4, %v10397_v8, %v10396_v52  ;;  %v10800_v14 = vrot.slane %v10747_v31, 6  ;;  %v10802_v47 = vrot.slane %v10748_v49, 5  ;;  %v10804_v48 = vrot.slane %v10749_v18, 4 }
 0x2bd   :  { %v10400_v28 = vsel %vm532_vm5, %v10399_v54, %v10398_v2  ;;  %v10799_v7 = vsel %vm520_vm1, %v19011_v20, %v18992_v23  ;;  %v10806_v25 = vrot.slane %v10750_v5, 3  ;;  %v10808_v8 = vrot.slane %v10751_v30, 2 }
 0x2be   :  { %16332 = vmatpush1.bf16.msra.mxu0 %v18081_v41  ;;  %16359 = vmatpush3.bf16.msra.mxu1 %v18149_v63  ;;  %v10402_v53 = vsel %vm535_vm6, %v10401_v3, %v10400_v28  ;;  %v10801_v1 = vsel %vm523_vm2, %v10800_v14, %v10799_v7  ;;  %v11154_v19 = vrot.slane %v18992_v23, 7  ;;  %v11155_v58 = vrot.slane %v10747_v31, 7 }
 0x2bf   :  { %16334 = vmatprep.subr.bf16.mxu0 %v18084_v42  ;;  %16360 = vmatprep.subr.bf16.mxu1 %v20146_v36  ;;  %v19026_v54 = vsel %vm538_vm7, %v9954_v62, %v10402_v53  ;;  %v10803_v0 = vsel %vm526_vm3, %v10802_v47, %v10801_v1  ;;  %v11156_v52 = vrot.slane %v10748_v49, 7  ;;  %v11157_v34 = vrot.slane %v10749_v18, 7 }
 0x2c0   :  { %20192 = vst [vmem:[#allocation11_spill] sm:$0xff] %v19026_v54  ;;  %v10805_v2 = vsel %vm529_vm4, %v10804_v48, %v10803_v0  ;;  %v11158_v3 = vrot.slane %v10750_v5, 7  ;;  %v11159_v28 = vrot.slane %v10751_v30, 7  ;;  %v10810_v7 = vrot.slane %v10752_v43, 1 }
 0x2c1   :  { %v10807_v14 = vsel %vm532_vm5, %v10806_v25, %v10805_v2  ;;  %v11246_v23 = vrot.slane %v11154_v19, 1  ;;  %v19031_v17 = vrot.slane %v11155_v58, 7  ;;  %v11160_v47 = vrot.slane %v10752_v43, 7 }
 0x2c2   :  { %16336 = vmatpush1.bf16.msra.mxu0 %v18109_v50  ;;  %16362 = vmatpush3.bf16.msra.mxu1 %v18163_v6  ;;  %v10809_v62 = vsel %vm535_vm6, %v10808_v8, %v10807_v14  ;;  %v11250_v31 = vrot.slane %v11156_v52, 6  ;;  %v11252_v49 = vrot.slane %v11157_v34, 5  ;;  %v11254_v30 = vrot.slane %v11158_v3, 4 }
 0x2c3   :  { %16338 = vmatprep.subr.bf16.mxu0 %v18112_v51  ;;  %16363 = vmatprep.subr.bf16.mxu1 %v20146_v36  ;;  %v19039_v18 = vsel %vm538_vm7, %v10810_v7, %v10809_v62  ;;  %v11247_v5 = vsel %vm520_vm1, %v19011_v20, %v11246_v23  ;;  %v11256_v48 = vrot.slane %v11159_v28, 3  ;;  %v11602_v53 = vrot.slane %v11154_v19, 7 }
 0x2c4   :  { %20193 = vst [vmem:[#allocation12_spill] sm:$0xff] %v19039_v18  ;;  %v11249_v25 = vsel %vm523_vm2, %v19031_v17, %v11247_v5  ;;  %v11603_v43 = vrot.slane %v19011_v20, 7  ;;  %v11604_v1 = vrot.slane %v11156_v52, 7  ;;  %v11605_v0 = vrot.slane %v11157_v34, 7 }
 0x2c5   :  { %v11251_v8 = vsel %vm526_vm3, %v11250_v31, %v11249_v25  ;;  %v11606_v58 = vrot.slane %v11158_v3, 7  ;;  %v19047_v2 = vrot.slane %v11159_v28, 7  ;;  %v11258_v7 = vrot.slane %v11160_v47, 2 }
 0x2c6   :  { %16340 = vmatpush1.bf16.msra.mxu0 %v18137_v59  ;;  %16365 = vmatpush3.bf16.msra.mxu1 %v18174_v11  ;;  %v11253_v14 = vsel %vm529_vm4, %v11252_v49, %v11251_v8  ;;  %v11654_v23 = vrot.slane %v11602_v53, 2  ;;  %v11655_v62 = vrot.slane %v11603_v43, 1  ;;  %v11608_v19 = vrot.slane %v11160_v47, 7 }
 0x2c7   :  { %16342 = vmatprep.subr.bf16.mxu0 %v18140_v60  ;;  %16366 = vmatprep.subr.bf16.mxu1 %v20146_v36  ;;  %v11255_v20 = vsel %vm532_vm5, %v11254_v30, %v11253_v14  ;;  %v19055_v34 = vrot.slane %v11604_v1, 7  ;;  %v11660_v52 = vrot.slane %v11605_v0, 6  ;;  %v11662_v31 = vrot.slane %v11606_v58, 5 }
 0x2c8   :  { %v11257_v3 = vsel %vm535_vm6, %v11256_v48, %v11255_v20  ;;  %v11656_v28 = vsel %vm520_vm1, %v11655_v62, %v11654_v23  ;;  %v11664_v49 = vrot.slane %v19047_v2, 4  ;;  %v12010_v8 = vrot.slane %v11602_v53, 7 }
 0x2c9   :  { %v19061_v5 = vsel %vm538_vm7, %v11258_v7, %v11257_v3  ;;  %v11657_v25 = vsel %vm523_vm2, %v19031_v17, %v11656_v28  ;;  %v12011_v18 = vrot.slane %v11603_v43, 7  ;;  %v12012_v30 = vrot.slane %v19031_v17, 7 }
 0x2ca   :  { %20194 = vst [vmem:[#allocation13_spill] sm:$0xff] %v19061_v5  ;;  %16344 = vmatpush1.bf16.msra.mxu0 %v20183_v4  ;;  %16368 = vmatpush3.bf16.msra.mxu1 %v20184_v26  ;;  %v11659_v47 = vsel %vm526_vm3, %v19055_v34, %v11657_v25  ;;  %v12013_v48 = vrot.slane %v11605_v0, 7  ;;  %v12014_v1 = vrot.slane %v11606_v58, 7  ;;  %v11666_v7 = vrot.slane %v11608_v19, 3 }
 0x2cb   :  { %16370 = vmatprep.subr.bf16.mxu0 %v20185_v38  ;;  %16401 = vmatprep.subr.bf16.mxu1 %v20146_v36  ;;  %v11661_v14 = vsel %vm529_vm4, %v11660_v52, %v11659_v47  ;;  %v12015_v53 = vrot.slane %v19047_v2, 7  ;;  %v12102_v43 = vrot.slane %v12010_v8, 3  ;;  %v12016_v62 = vrot.slane %v11608_v19, 7  ;;  %v19093_v47 = vld [vmem:[%s20070_s3] sm:$0xff] }
 0x2cc   :  { %v11663_v23 = vsel %vm532_vm5, %v11662_v31, %v11661_v14  ;;  %v12103_v20 = vrot.slane %v12011_v18, 2  ;;  %v12105_v3 = vrot.slane %v12012_v30, 1  ;;  %v19078_v0 = vrot.slane %v12013_v48, 7 }
 0x2cd   :  { %2766 = vmatmul.mubr.f32.vlgmr.msra.gmra.mrb[12].mxu0 %v18662_v35  ;;  %15100 = vmatmul.mubr.f32.vlgmr.msra.gmra.mrb[12].mxu1 %v18662_v35  ;;  %v11665_v17 = vsel %vm535_vm6, %v11664_v49, %v11663_v23  ;;  %v12110_v58 = vrot.slane %v12014_v1, 6  ;;  %v12458_v52 = vrot.slane %v12010_v8, 7  ;;  %v12459_v28 = vrot.slane %v12011_v18, 7 }
 0x2ce   :  { %16372 = vmatpush1.bf16.msra.mxu0 %v17985_v9  ;;  %16403 = vmatpush3.bf16.msra.mxu1 %v18044_v29  ;;  %v19083_v2 = vsel %vm538_vm7, %v11666_v7, %v11665_v17  ;;  %v12104_v19 = vsel %vm520_vm1, %v12103_v20, %v12102_v43  ;;  %v12460_v31 = vrot.slane %v12012_v30, 7  ;;  %v12461_v49 = vrot.slane %v19055_v34, 7 }
 0x2cf   :  { %20195 = vst [vmem:[#allocation14_spill] sm:$0xff] %v19083_v2  ;;  %16374 = vmatprep.subr.bf16.mxu0 %v17987_v10  ;;  %16404 = vmatprep.subr.bf16.mxu1 %v20146_v36  ;;  %v12106_v35 = vsel %vm523_vm2, %v12105_v3, %v12104_v19  ;;  %v12462_v25 = vrot.slane %v12014_v1, 7  ;;  %v12112_v8 = vrot.slane %v12015_v53, 5  ;;  %v12114_v48 = vrot.slane %v12016_v62, 4 }
 0x2d0   :  { %3173 = vmatprep.mubr.f32.mxu0 %v19093_v47  ;;  %15134 = vmatprep.mubr.msk.f32.mxu1 %vm17936_vm0, %v19093_v47  ;;  %v12107_v18 = vsel %vm526_vm3, %v19055_v34, %v12106_v35  ;;  %v12510_v14 = vrot.slane %v12458_v52, 4  ;;  %v12463_v1 = vrot.slane %v12015_v53, 7  ;;  %v12511_v7 = vrot.slane %v12459_v28, 3 }
 0x2d1   :  { %v12109_v30 = vsel %vm529_vm4, %v19078_v0, %v12107_v18  ;;  %v12513_v43 = vrot.slane %v12460_v31, 2  ;;  %v12464_v20 = vrot.slane %v12016_v62, 7  ;;  %v12515_v3 = vrot.slane %v12461_v49, 1 }
 0x2d2   :  { %16376 = vmatpush1.bf16.msra.mxu0 %v18003_v15  ;;  %16406 = vmatpush3.bf16.msra.mxu1 %v18068_v37  ;;  %v12111_v23 = vsel %vm532_vm5, %v12110_v58, %v12109_v30  ;;  %v19105_v17 = vrot.slane %v12462_v25, 7  ;;  %v12512_v53 = vsel %vm520_vm1, %v12511_v7, %v12510_v14  ;;  %v12866_v19 = vrot.slane %v12458_v52, 7 }
 0x2d3   :  { %16378 = vmatprep.subr.bf16.mxu0 %v18006_v16  ;;  %16407 = vmatprep.subr.bf16.mxu1 %v20146_v36  ;;  %v12113_v34 = vsel %vm535_vm6, %v12112_v8, %v12111_v23  ;;  %v12867_v35 = vrot.slane %v12459_v28, 7  ;;  %v12514_v2 = vsel %vm523_vm2, %v12513_v43, %v12512_v53  ;;  %v12868_v58 = vrot.slane %v12460_v31, 7 }
 0x2d4   :  { %v19112_v18 = vsel %vm538_vm7, %v12114_v48, %v12113_v34  ;;  %v12869_v62 = vrot.slane %v12461_v49, 7  ;;  %v12516_v25 = vsel %vm526_vm3, %v12515_v3, %v12514_v2  ;;  %v12520_v30 = vrot.slane %v12463_v1, 6 }
 0x2d5   :  { %v12870_v5 = vrot.slane %v19078_v0, 7  ;;  %v12871_v54 = vrot.slane %v12463_v1, 7  ;;  %v12517_v52 = vsel %vm529_vm4, %v19078_v0, %v12516_v25  ;;  %v12958_v28 = vrot.slane %v12866_v19, 5 }
 0x2d6   :  { %16380 = vmatpush1.bf16.msra.mxu0 %v18021_v21  ;;  %16409 = vmatpush3.bf16.msra.mxu1 %v18096_v46  ;;  %v12959_v8 = vrot.slane %v12867_v35, 4  ;;  %v12961_v48 = vrot.slane %v12868_v58, 3  ;;  %v12519_v2 = vsel %vm532_vm5, %v19105_v17, %v12517_v52  ;;  %v12522_v31 = vrot.slane %v12464_v20, 5 }
 0x2d7   :  { %16382 = vmatprep.subr.bf16.mxu0 %v18024_v22  ;;  %16410 = vmatprep.subr.bf16.mxu1 %v20146_v36  ;;  %v12872_v49 = vrot.slane %v12464_v20, 7  ;;  %v12963_v14 = vrot.slane %v12869_v62, 2  ;;  %v12521_v1 = vsel %vm535_vm6, %v12520_v30, %v12519_v2  ;;  %v12965_v43 = vrot.slane %v12870_v5, 1 }
 0x2d8   :  { %v12960_v7 = vsel %vm520_vm1, %v12959_v8, %v12958_v28  ;;  %v13314_v23 = vrot.slane %v12866_v19, 7  ;;  %v19128_v0 = vsel %vm538_vm7, %v12522_v31, %v12521_v1  ;;  %v12968_v34 = vrot.slane %v12871_v54, 7 }
 0x2d9   :  { %v12962_v3 = vsel %vm523_vm2, %v12961_v48, %v12960_v7  ;;  %v13315_v53 = vrot.slane %v12867_v35, 7  ;;  %v13316_v25 = vrot.slane %v12868_v58, 7  ;;  %v13317_v52 = vrot.slane %v12869_v62, 7 }
 0x2da   :  { %16384 = vmatpush1.bf16.msra.mxu0 %v18053_v32  ;;  %16412 = vmatpush3.bf16.msra.mxu1 %v18124_v55  ;;  %v12964_v20 = vsel %vm526_vm3, %v12963_v14, %v12962_v3  ;;  %v13318_v30 = vrot.slane %v12870_v5, 7  ;;  %v12970_v28 = vrot.slane %v12872_v49, 6  ;;  %v13319_v8 = vrot.slane %v19105_v17, 7 }
 0x2db   :  { %16386 = vmatprep.subr.bf16.mxu0 %v18056_v33  ;;  %16413 = vmatprep.subr.bf16.mxu1 %v20146_v36  ;;  %v12966_v19 = vsel %vm529_vm4, %v12965_v43, %v12964_v20  ;;  %v13366_v54 = vrot.slane %v13314_v23, 6  ;;  %v13320_v48 = vrot.slane %v12872_v49, 7  ;;  %v13367_v2 = vrot.slane %v13315_v53, 5 }
 0x2dc   :  { %v12967_v35 = vsel %vm532_vm5, %v19105_v17, %v12966_v19  ;;  %v13369_v31 = vrot.slane %v13316_v25, 4  ;;  %v13371_v62 = vrot.slane %v13317_v52, 3  ;;  %v13373_v1 = vrot.slane %v13318_v30, 2 }
 0x2dd   :  { %v12969_v58 = vsel %vm535_vm6, %v12968_v34, %v12967_v35  ;;  %v13368_v14 = vsel %vm520_vm1, %v13367_v2, %v13366_v54  ;;  %v13722_v7 = vrot.slane %v13314_v23, 7  ;;  %v14307_v49 = vrot.slane %v13315_v53, 14 }
 0x2de   :  { %16388 = vmatpush1.bf16.msra.mxu0 %v18081_v41  ;;  %16415 = vmatpush3.bf16.msra.mxu1 %v18149_v63  ;;  %v19144_v5 = vsel %vm538_vm7, %v12970_v28, %v12969_v58  ;;  %v13370_v17 = vsel %vm523_vm2, %v13369_v31, %v13368_v14  ;;  %v14308_v43 = vrot.slane %v13316_v25, 13  ;;  %v14309_v3 = vrot.slane %v13317_v52, 12 }
 0x2df   :  { %16390 = vmatprep.subr.bf16.mxu0 %v18084_v42  ;;  %16416 = vmatprep.subr.bf16.mxu1 %v20146_v36  ;;  %v13372_v20 = vsel %vm526_vm3, %v13371_v62, %v13370_v17  ;;  %v13375_v19 = vrot.slane %v13319_v8, 1  ;;  %v13378_v35 = vrot.slane %v13320_v48, 7  ;;  %13789 = vst [vmem:[%s20070_s3 - $0x7] sm:$0x80] %v13722_v7  ;;  %v14310_v54 = vrot.slane %v13318_v30, 11 }
 0x2e0   :  { %v13374_v28 = vsel %vm529_vm4, %v13373_v1, %v13372_v20  ;;  %v13776_v23 = vsel %vm520_vm1, %v14308_v43, %v14307_v49  ;;  %v14311_v52 = vrot.slane %v13319_v8, 10  ;;  %v14312_v48 = vrot.slane %v12968_v34, 9 }
 0x2e1   :  { %v13376_v53 = vsel %vm532_vm5, %v13375_v19, %v13374_v28  ;;  %v13778_v25 = vsel %vm523_vm2, %v14309_v3, %v13776_v23  ;;  %v13785_v62 = vrot.slane %v13378_v35, 1 }
 0x2e2   :  { %16392 = vmatpush1.bf16.msra.mxu0 %v18109_v50  ;;  %16418 = vmatpush3.bf16.msra.mxu1 %v18163_v6  ;;  %v13377_v2 = vsel %vm535_vm6, %v12968_v34, %v13376_v53  ;;  %v13780_v31 = vsel %vm526_vm3, %v14310_v54, %v13778_v25 }
 0x2e3   :  { %16394 = vmatprep.subr.bf16.mxu0 %v18112_v51  ;;  %16419 = vmatprep.subr.bf16.mxu1 %v20146_v36  ;;  %v19165_v30 = vsel %vm538_vm7, %v13378_v35, %v13377_v2  ;;  %v13782_v58 = vsel %vm529_vm4, %v14311_v52, %v13780_v31 }
 0x2e4   :  { %v13784_v14 = vsel %vm532_vm5, %v14312_v48, %v13782_v58 }
 0x2e5   :  { %v13786_v8 = vsel %vm535_vm6, %v13785_v62, %v13784_v14 }
 0x2e6   :  { %16396 = vmatpush1.bf16.msra.mxu0 %v18137_v59  ;;  %16421 = vmatpush3.bf16.msra.mxu1 %v18174_v11  ;;  %13790 = vst [vmem:[%s20070_s3 + $0x1] sm:$0x7f] %v13786_v8 }
 0x2e7   :  { %16398 = vmatprep.subr.bf16.mxu0 %v18140_v60  ;;  %16422 = vmatprep.subr.bf16.mxu1 %v20146_v36 }
 0x2ea   :  { %16400 = vmatpush1.bf16.msra.mxu0 %v20183_v4  ;;  %16424 = vmatpush3.bf16.msra.mxu1 %v20184_v26 }
 0x2eb   :  { %16426 = vmatprep.subr.bf16.mxu0 %v20185_v38  ;;  %16457 = vmatprep.subr.bf16.mxu1 %v20146_v36 }
 0x2ed   :  { %3174 = vmatmul.mubr.f32.vlgmr.msra.gmra.mrb[14].mxu0 %v18681_v56  ;;  %15135 = vmatmul.mubr.f32.vlgmr.msra.gmra.mrb[14].mxu1 %v18681_v56 }
 0x2ee   :  { %16428 = vmatpush1.bf16.msra.mxu0 %v17985_v9  ;;  %16459 = vmatpush3.bf16.msra.mxu1 %v18044_v29 }
 0x2ef   :  { %16430 = vmatprep.subr.bf16.mxu0 %v17987_v10  ;;  %16460 = vmatprep.subr.bf16.mxu1 %v20146_v36 }
 0x2f0   :  { %3621 = vmatprep.mubr.f32.mxu0 %v19093_v47  ;;  %15169 = vmatprep.mubr.msk.f32.mxu1 %vm17936_vm0, %v19093_v47 }
 0x2f2   :  { %16432 = vmatpush1.bf16.msra.mxu0 %v18003_v15  ;;  %16462 = vmatpush3.bf16.msra.mxu1 %v18068_v37 }
 0x2f3   :  { %16434 = vmatprep.subr.bf16.mxu0 %v18006_v16  ;;  %16463 = vmatprep.subr.bf16.mxu1 %v20146_v36 }
 0x2f6   :  { %16436 = vmatpush1.bf16.msra.mxu0 %v18021_v21  ;;  %16465 = vmatpush3.bf16.msra.mxu1 %v18096_v46 }
 0x2f7   :  { %16438 = vmatprep.subr.bf16.mxu0 %v18024_v22  ;;  %16466 = vmatprep.subr.bf16.mxu1 %v20146_v36 }
 0x2fa   :  { %16440 = vmatpush1.bf16.msra.mxu0 %v18053_v32  ;;  %16468 = vmatpush3.bf16.msra.mxu1 %v18124_v55 }
 0x2fb   :  { %16442 = vmatprep.subr.bf16.mxu0 %v18056_v33  ;;  %16469 = vmatprep.subr.bf16.mxu1 %v20146_v36 }
 0x2fe   :  { %16444 = vmatpush1.bf16.msra.mxu0 %v18081_v41  ;;  %16471 = vmatpush3.bf16.msra.mxu1 %v18149_v63 }
 0x2ff   :  { %16446 = vmatprep.subr.bf16.mxu0 %v18084_v42  ;;  %16472 = vmatprep.subr.bf16.mxu1 %v20146_v36 }
 0x302   :  { %16448 = vmatpush1.bf16.msra.mxu0 %v18109_v50  ;;  %16474 = vmatpush3.bf16.msra.mxu1 %v18163_v6 }
 0x303   :  { %16450 = vmatprep.subr.bf16.mxu0 %v18112_v51  ;;  %16475 = vmatprep.subr.bf16.mxu1 %v20146_v36 }
 0x306   :  { %16452 = vmatpush1.bf16.msra.mxu0 %v18137_v59  ;;  %16477 = vmatpush3.bf16.msra.mxu1 %v18174_v11 }
 0x307   :  { %16454 = vmatprep.subr.bf16.mxu0 %v18140_v60  ;;  %16478 = vmatprep.subr.bf16.mxu1 %v20146_v36 }
 0x30a   :  { %16456 = vmatpush1.bf16.msra.mxu0 %v20183_v4  ;;  %16480 = vmatpush3.bf16.msra.mxu1 %v20184_v26 }
 0x30b   :  { %16482 = vmatprep.subr.bf16.mxu0 %v20185_v38  ;;  %16513 = vmatprep.subr.bf16.mxu1 %v20146_v36 }
 0x30d   :  { %3622 = vmatmul.mubr.f32.vlgmr.msra.gmra.mrb[16].mxu0 %v18708_v12  ;;  %15170 = vmatmul.mubr.f32.vlgmr.msra.gmra.mrb[16].mxu1 %v18708_v12 }
 0x30e   :  { %16484 = vmatpush1.bf16.msra.mxu0 %v17985_v9  ;;  %16515 = vmatpush3.bf16.msra.mxu1 %v18044_v29 }
 0x30f   :  { %16486 = vmatprep.subr.bf16.mxu0 %v17987_v10  ;;  %16516 = vmatprep.subr.bf16.mxu1 %v20146_v36 }
 0x310   :  { %4029 = vmatprep.mubr.f32.mxu0 %v19093_v47  ;;  %15204 = vmatprep.mubr.msk.f32.mxu1 %vm17936_vm0, %v19093_v47 }
 0x312   :  { %16488 = vmatpush1.bf16.msra.mxu0 %v18003_v15  ;;  %16518 = vmatpush3.bf16.msra.mxu1 %v18068_v37 }
 0x313   :  { %16490 = vmatprep.subr.bf16.mxu0 %v18006_v16  ;;  %16519 = vmatprep.subr.bf16.mxu1 %v20146_v36 }
 0x316   :  { %16492 = vmatpush1.bf16.msra.mxu0 %v18021_v21  ;;  %16521 = vmatpush3.bf16.msra.mxu1 %v18096_v46 }
 0x317   :  { %16494 = vmatprep.subr.bf16.mxu0 %v18024_v22  ;;  %16522 = vmatprep.subr.bf16.mxu1 %v20146_v36 }
 0x31a   :  { %16496 = vmatpush1.bf16.msra.mxu0 %v18053_v32  ;;  %16524 = vmatpush3.bf16.msra.mxu1 %v18124_v55 }
 0x31b   :  { %16498 = vmatprep.subr.bf16.mxu0 %v18056_v33  ;;  %16525 = vmatprep.subr.bf16.mxu1 %v20146_v36 }
 0x31e   :  { %16500 = vmatpush1.bf16.msra.mxu0 %v18081_v41  ;;  %16527 = vmatpush3.bf16.msra.mxu1 %v18149_v63 }
 0x31f   :  { %16502 = vmatprep.subr.bf16.mxu0 %v18084_v42  ;;  %16528 = vmatprep.subr.bf16.mxu1 %v20146_v36 }
 0x320   :  { %v1055_v56 = vpop.f32.mrb[4].mxu0  ;;  %v1126_v12 = vpop.f32.mrb[4].mxu1 }
 0x321   :  { %v1057_v34 = vpop.f32.mrb[5].mxu0  ;;  %v14961_v1 = vpop.f32.mrb[5].mxu1 }
 0x322   :  { %16504 = vmatpush1.bf16.msra.mxu0 %v18109_v50  ;;  %16530 = vmatpush3.bf16.msra.mxu1 %v18163_v6  ;;  %v20196_v1 = vld [vmem:[#allocation5_spill] sm:$0xff] }
 0x323   :  { %16506 = vmatprep.subr.bf16.mxu0 %v18112_v51  ;;  %16531 = vmatprep.subr.bf16.mxu1 %v20146_v36 }
 0x326   :  { %16508 = vmatpush1.bf16.msra.mxu0 %v18137_v59  ;;  %16533 = vmatpush3.bf16.msra.mxu1 %v18174_v11 }
 0x327   :  { %16510 = vmatprep.subr.bf16.mxu0 %v18140_v60  ;;  %16534 = vmatprep.subr.bf16.mxu1 %v20146_v36 }
 0x32a   :  { %16512 = vmatpush1.bf16.msra.mxu0 %v20183_v4  ;;  %16536 = vmatpush3.bf16.msra.mxu1 %v20184_v26 }
 0x32b   :  { %16538 = vmatprep.subr.bf16.mxu0 %v20185_v38  ;;  %16569 = vmatprep.subr.bf16.mxu1 %v20146_v36 }
 0x32d   :  { %4030 = vmatmul.mubr.f32.vlgmr.msra.gmra.mrb[18].mxu0 %v18723_v27  ;;  %15205 = vmatmul.mubr.f32.vlgmr.msra.gmra.mrb[18].mxu1 %v18723_v27 }
 0x32e   :  { %16540 = vmatpush1.bf16.msra.mxu0 %v17985_v9  ;;  %16571 = vmatpush3.bf16.msra.mxu1 %v18044_v29 }
 0x32f   :  { %16542 = vmatprep.subr.bf16.mxu0 %v17987_v10  ;;  %16572 = vmatprep.subr.bf16.mxu1 %v20146_v36 }
 0x330   :  { %4477 = vmatprep.mubr.f32.mxu0 %v19093_v47  ;;  %15239 = vmatprep.mubr.msk.f32.mxu1 %vm17936_vm0, %v19093_v47 }
 0x332   :  { %16544 = vmatpush1.bf16.msra.mxu0 %v18003_v15  ;;  %16574 = vmatpush3.bf16.msra.mxu1 %v18068_v37 }
 0x333   :  { %16546 = vmatprep.subr.bf16.mxu0 %v18006_v16  ;;  %16575 = vmatprep.subr.bf16.mxu1 %v20146_v36 }
 0x336   :  { %16548 = vmatpush1.bf16.msra.mxu0 %v18021_v21  ;;  %16577 = vmatpush3.bf16.msra.mxu1 %v18096_v46 }
 0x337   :  { %16550 = vmatprep.subr.bf16.mxu0 %v18024_v22  ;;  %16578 = vmatprep.subr.bf16.mxu1 %v20146_v36 }
 0x33a   :  { %16552 = vmatpush1.bf16.msra.mxu0 %v18053_v32  ;;  %16580 = vmatpush3.bf16.msra.mxu1 %v18124_v55 }
 0x33b   :  { %16554 = vmatprep.subr.bf16.mxu0 %v18056_v33  ;;  %16581 = vmatprep.subr.bf16.mxu1 %v20146_v36 }
 0x33e   :  { %16556 = vmatpush1.bf16.msra.mxu0 %v18081_v41  ;;  %16583 = vmatpush3.bf16.msra.mxu1 %v18149_v63 }
 0x33f   :  { %16558 = vmatprep.subr.bf16.mxu0 %v18084_v42  ;;  %16584 = vmatprep.subr.bf16.mxu1 %v20146_v36 }
 0x340   :  { %v1463_v27 = vpop.f32.mrb[6].mxu0  ;;  %v1534_v7 = vpop.f32.mrb[6].mxu1 }
 0x341   :  { %v1465_v17 = vpop.f32.mrb[7].mxu0  ;;  %v14996_v49 = vpop.f32.mrb[7].mxu1 }
 0x342   :  { %16560 = vmatpush1.bf16.msra.mxu0 %v18109_v50  ;;  %16586 = vmatpush3.bf16.msra.mxu1 %v18163_v6 }
 0x343   :  { %16562 = vmatprep.subr.bf16.mxu0 %v18112_v51  ;;  %16587 = vmatprep.subr.bf16.mxu1 %v20146_v36 }
 0x346   :  { %16564 = vmatpush1.bf16.msra.mxu0 %v18137_v59  ;;  %16589 = vmatpush3.bf16.msra.mxu1 %v18174_v11 }
 0x347   :  { %16566 = vmatprep.subr.bf16.mxu0 %v18140_v60  ;;  %16590 = vmatprep.subr.bf16.mxu1 %v20146_v36 }
 0x34a   :  { %16568 = vmatpush1.bf16.msra.mxu0 %v20183_v4  ;;  %16592 = vmatpush3.bf16.msra.mxu1 %v20184_v26 }
 0x34b   :  { %16594 = vmatprep.subr.bf16.mxu0 %v20185_v38  ;;  %16625 = vmatprep.subr.bf16.mxu1 %v20146_v36 }
 0x34d   :  { %4478 = vmatmul.mubr.f32.vlgmr.msra.gmra.mrb[20].mxu0 %v18745_v39  ;;  %15240 = vmatmul.mubr.f32.vlgmr.msra.gmra.mrb[20].mxu1 %v18745_v39 }
 0x34e   :  { %16596 = vmatpush1.bf16.msra.mxu0 %v17985_v9  ;;  %16627 = vmatpush3.bf16.msra.mxu1 %v18044_v29 }
 0x34f   :  { %16598 = vmatprep.subr.bf16.mxu0 %v17987_v10  ;;  %16628 = vmatprep.subr.bf16.mxu1 %v20146_v36 }
 0x350   :  { %4885 = vmatprep.mubr.f32.mxu0 %v19093_v47  ;;  %15274 = vmatprep.mubr.msk.f32.mxu1 %vm17936_vm0, %v19093_v47 }
 0x352   :  { %16600 = vmatpush1.bf16.msra.mxu0 %v18003_v15  ;;  %16630 = vmatpush3.bf16.msra.mxu1 %v18068_v37 }
 0x353   :  { %16602 = vmatprep.subr.bf16.mxu0 %v18006_v16  ;;  %16631 = vmatprep.subr.bf16.mxu1 %v20146_v36 }
 0x356   :  { %16604 = vmatpush1.bf16.msra.mxu0 %v18021_v21  ;;  %16633 = vmatpush3.bf16.msra.mxu1 %v18096_v46 }
 0x357   :  { %16606 = vmatprep.subr.bf16.mxu0 %v18024_v22  ;;  %16634 = vmatprep.subr.bf16.mxu1 %v20146_v36 }
 0x35a   :  { %16608 = vmatpush1.bf16.msra.mxu0 %v18053_v32  ;;  %16636 = vmatpush3.bf16.msra.mxu1 %v18124_v55 }
 0x35b   :  { %16610 = vmatprep.subr.bf16.mxu0 %v18056_v33  ;;  %16637 = vmatprep.subr.bf16.mxu1 %v20146_v36 }
 0x35e   :  { %16612 = vmatpush1.bf16.msra.mxu0 %v18081_v41  ;;  %16639 = vmatpush3.bf16.msra.mxu1 %v18149_v63 }
 0x35f   :  { %16614 = vmatprep.subr.bf16.mxu0 %v18084_v42  ;;  %16640 = vmatprep.subr.bf16.mxu1 %v20146_v36 }
 0x360   :  { %v1911_v39 = vpop.f32.mrb[8].mxu0  ;;  %v1982_v43 = vpop.f32.mrb[8].mxu1 }
 0x361   :  { %v1913_v3 = vpop.f32.mrb[9].mxu0  ;;  %v15031_v20 = vpop.f32.mrb[9].mxu1  ;;  %v20197_v39 = vld [vmem:[#allocation6_spill] sm:$0xff] }
 0x362   :  { %16616 = vmatpush1.bf16.msra.mxu0 %v18109_v50  ;;  %16642 = vmatpush3.bf16.msra.mxu1 %v18163_v6 }
 0x363   :  { %16618 = vmatprep.subr.bf16.mxu0 %v18112_v51  ;;  %16643 = vmatprep.subr.bf16.mxu1 %v20146_v36 }
 0x366   :  { %16620 = vmatpush1.bf16.msra.mxu0 %v18137_v59  ;;  %16645 = vmatpush3.bf16.msra.mxu1 %v18174_v11 }
 0x367   :  { %16622 = vmatprep.subr.bf16.mxu0 %v18140_v60  ;;  %16646 = vmatprep.subr.bf16.mxu1 %v20146_v36 }
 0x36a   :  { %16624 = vmatpush1.bf16.msra.mxu0 %v20183_v4  ;;  %16648 = vmatpush3.bf16.msra.mxu1 %v20184_v26 }
 0x36b   :  { %16650 = vmatprep.subr.bf16.mxu0 %v20185_v38  ;;  %16681 = vmatprep.subr.bf16.mxu1 %v20146_v36 }
 0x36d   :  { %4886 = vmatmul.mubr.f32.vlgmr.msra.gmra.mrb[22].mxu0 %v18764_v24  ;;  %15275 = vmatmul.mubr.f32.vlgmr.msra.gmra.mrb[22].mxu1 %v18764_v24 }
 0x36e   :  { %16652 = vmatpush1.bf16.msra.mxu0 %v17985_v9  ;;  %16683 = vmatpush3.bf16.msra.mxu1 %v18044_v29 }
 0x36f   :  { %16654 = vmatprep.subr.bf16.mxu0 %v17987_v10  ;;  %16684 = vmatprep.subr.bf16.mxu1 %v20146_v36 }
 0x370   :  { %5333 = vmatprep.mubr.f32.mxu0 %v19093_v47  ;;  %15309 = vmatprep.mubr.msk.f32.mxu1 %vm17936_vm0, %v19093_v47 }
 0x372   :  { %16656 = vmatpush1.bf16.msra.mxu0 %v18003_v15  ;;  %16686 = vmatpush3.bf16.msra.mxu1 %v18068_v37 }
 0x373   :  { %16658 = vmatprep.subr.bf16.mxu0 %v18006_v16  ;;  %16687 = vmatprep.subr.bf16.mxu1 %v20146_v36 }
 0x376   :  { %16660 = vmatpush1.bf16.msra.mxu0 %v18021_v21  ;;  %16689 = vmatpush3.bf16.msra.mxu1 %v18096_v46 }
 0x377   :  { %16662 = vmatprep.subr.bf16.mxu0 %v18024_v22  ;;  %16690 = vmatprep.subr.bf16.mxu1 %v20146_v36 }
 0x37a   :  { %16664 = vmatpush1.bf16.msra.mxu0 %v18053_v32  ;;  %16692 = vmatpush3.bf16.msra.mxu1 %v18124_v55 }
 0x37b   :  { %16666 = vmatprep.subr.bf16.mxu0 %v18056_v33  ;;  %16693 = vmatprep.subr.bf16.mxu1 %v20146_v36 }
 0x37e   :  { %16668 = vmatpush1.bf16.msra.mxu0 %v18081_v41  ;;  %16695 = vmatpush3.bf16.msra.mxu1 %v18149_v63 }
 0x37f   :  { %16670 = vmatprep.subr.bf16.mxu0 %v18084_v42  ;;  %16696 = vmatprep.subr.bf16.mxu1 %v20146_v36 }
 0x380   :  { %v2319_v24 = vpop.f32.mrb[10].mxu0  ;;  %v2390_v19 = vpop.f32.mrb[10].mxu1 }
 0x381   :  { %v2321_v35 = vpop.f32.mrb[11].mxu0  ;;  %v15066_v28 = vpop.f32.mrb[11].mxu1 }
 0x382   :  { %16672 = vmatpush1.bf16.msra.mxu0 %v18109_v50  ;;  %16698 = vmatpush3.bf16.msra.mxu1 %v18163_v6 }
 0x383   :  { %16674 = vmatprep.subr.bf16.mxu0 %v18112_v51  ;;  %16699 = vmatprep.subr.bf16.mxu1 %v20146_v36 }
 0x386   :  { %16676 = vmatpush1.bf16.msra.mxu0 %v18137_v59  ;;  %16701 = vmatpush3.bf16.msra.mxu1 %v18174_v11 }
 0x387   :  { %16678 = vmatprep.subr.bf16.mxu0 %v18140_v60  ;;  %16702 = vmatprep.subr.bf16.mxu1 %v20146_v36 }
 0x38a   :  { %16680 = vmatpush1.bf16.msra.mxu0 %v20183_v4  ;;  %16704 = vmatpush3.bf16.msra.mxu1 %v20184_v26 }
 0x38b   :  { %16706 = vmatprep.subr.bf16.mxu0 %v20185_v38  ;;  %16737 = vmatprep.subr.bf16.mxu1 %v20146_v36 }
 0x38d   :  { %5334 = vmatmul.mubr.f32.vlgmr.msra.gmra.mrb[24].mxu0 %v18785_v61  ;;  %15310 = vmatmul.mubr.f32.vlgmr.msra.gmra.mrb[24].mxu1 %v18785_v61 }
 0x38e   :  { %16708 = vmatpush1.bf16.msra.mxu0 %v17985_v9  ;;  %16739 = vmatpush3.bf16.msra.mxu1 %v18044_v29 }
 0x38f   :  { %16710 = vmatprep.subr.bf16.mxu0 %v17987_v10  ;;  %16740 = vmatprep.subr.bf16.mxu1 %v20146_v36 }
 0x390   :  { %5741 = vmatprep.mubr.f32.mxu0 %v19093_v47  ;;  %15344 = vmatprep.mubr.msk.f32.mxu1 %vm17936_vm0, %v19093_v47 }
 0x392   :  { %16712 = vmatpush1.bf16.msra.mxu0 %v18003_v15  ;;  %16742 = vmatpush3.bf16.msra.mxu1 %v18068_v37 }
 0x393   :  { %16714 = vmatprep.subr.bf16.mxu0 %v18006_v16  ;;  %16743 = vmatprep.subr.bf16.mxu1 %v20146_v36 }
 0x396   :  { %16716 = vmatpush1.bf16.msra.mxu0 %v18021_v21  ;;  %16745 = vmatpush3.bf16.msra.mxu1 %v18096_v46 }
 0x397   :  { %16718 = vmatprep.subr.bf16.mxu0 %v18024_v22  ;;  %16746 = vmatprep.subr.bf16.mxu1 %v20146_v36 }
 0x39a   :  { %16720 = vmatpush1.bf16.msra.mxu0 %v18053_v32  ;;  %16748 = vmatpush3.bf16.msra.mxu1 %v18124_v55 }
 0x39b   :  { %16722 = vmatprep.subr.bf16.mxu0 %v18056_v33  ;;  %16749 = vmatprep.subr.bf16.mxu1 %v20146_v36 }
 0x39e   :  { %16724 = vmatpush1.bf16.msra.mxu0 %v18081_v41  ;;  %16751 = vmatpush3.bf16.msra.mxu1 %v18149_v63 }
 0x39f   :  { %16726 = vmatprep.subr.bf16.mxu0 %v18084_v42  ;;  %16752 = vmatprep.subr.bf16.mxu1 %v20146_v36 }
 0x3a0   :  { %v2767_v61 = vpop.f32.mrb[12].mxu0  ;;  %v2838_v23 = vpop.f32.mrb[12].mxu1 }
 0x3a1   :  { %v2769_v54 = vpop.f32.mrb[13].mxu0  ;;  %v15101_v53 = vpop.f32.mrb[13].mxu1  ;;  %v20198_v61 = vld [vmem:[#allocation7_spill] sm:$0xff] }
 0x3a2   :  { %16728 = vmatpush1.bf16.msra.mxu0 %v18109_v50  ;;  %16754 = vmatpush3.bf16.msra.mxu1 %v18163_v6 }
 0x3a3   :  { %16730 = vmatprep.subr.bf16.mxu0 %v18112_v51  ;;  %16755 = vmatprep.subr.bf16.mxu1 %v20146_v36 }
 0x3a6   :  { %16732 = vmatpush1.bf16.msra.mxu0 %v18137_v59  ;;  %16757 = vmatpush3.bf16.msra.mxu1 %v18174_v11 }
 0x3a7   :  { %16734 = vmatprep.subr.bf16.mxu0 %v18140_v60  ;;  %16758 = vmatprep.subr.bf16.mxu1 %v20146_v36 }
 0x3aa   :  { %16736 = vmatpush1.bf16.msra.mxu0 %v20183_v4  ;;  %16760 = vmatpush3.bf16.msra.mxu1 %v20184_v26 }
 0x3ab   :  { %16762 = vmatprep.subr.bf16.mxu0 %v20185_v38  ;;  %16793 = vmatprep.subr.bf16.mxu1 %v20146_v36 }
 0x3ad   :  { %5742 = vmatmul.mubr.f32.vlgmr.msra.gmra.mrb[26].mxu0 %v18803_v57  ;;  %15345 = vmatmul.mubr.f32.vlgmr.msra.gmra.mrb[26].mxu1 %v18803_v57 }
 0x3ae   :  { %16764 = vmatpush1.bf16.msra.mxu0 %v17985_v9  ;;  %16795 = vmatpush3.bf16.msra.mxu1 %v18044_v29 }
 0x3af   :  { %16766 = vmatprep.subr.bf16.mxu0 %v17987_v10  ;;  %16796 = vmatprep.subr.bf16.mxu1 %v20146_v36 }
 0x3b0   :  { %6189 = vmatprep.mubr.f32.mxu0 %v19093_v47  ;;  %15379 = vmatprep.mubr.msk.f32.mxu1 %vm17936_vm0, %v19093_v47 }
 0x3b2   :  { %16768 = vmatpush1.bf16.msra.mxu0 %v18003_v15  ;;  %16798 = vmatpush3.bf16.msra.mxu1 %v18068_v37 }
 0x3b3   :  { %16770 = vmatprep.subr.bf16.mxu0 %v18006_v16  ;;  %16799 = vmatprep.subr.bf16.mxu1 %v20146_v36 }
 0x3b6   :  { %16772 = vmatpush1.bf16.msra.mxu0 %v18021_v21  ;;  %16801 = vmatpush3.bf16.msra.mxu1 %v18096_v46 }
 0x3b7   :  { %16774 = vmatprep.subr.bf16.mxu0 %v18024_v22  ;;  %16802 = vmatprep.subr.bf16.mxu1 %v20146_v36 }
 0x3ba   :  { %16776 = vmatpush1.bf16.msra.mxu0 %v18053_v32  ;;  %16804 = vmatpush3.bf16.msra.mxu1 %v18124_v55 }
 0x3bb   :  { %16778 = vmatprep.subr.bf16.mxu0 %v18056_v33  ;;  %16805 = vmatprep.subr.bf16.mxu1 %v20146_v36 }
 0x3be   :  { %16780 = vmatpush1.bf16.msra.mxu0 %v18081_v41  ;;  %16807 = vmatpush3.bf16.msra.mxu1 %v18149_v63 }
 0x3bf   :  { %16782 = vmatprep.subr.bf16.mxu0 %v18084_v42  ;;  %16808 = vmatprep.subr.bf16.mxu1 %v20146_v36 }
 0x3c0   :  { %v3175_v57 = vpop.f32.mrb[14].mxu0  ;;  %v3246_v25 = vpop.f32.mrb[14].mxu1 }
 0x3c1   :  { %v3177_v52 = vpop.f32.mrb[15].mxu0  ;;  %v15136_v48 = vpop.f32.mrb[15].mxu1  ;;  %v20199_v25 = vld [vmem:[#allocation9_spill] sm:$0xff] }
 0x3c2   :  { %16784 = vmatpush1.bf16.msra.mxu0 %v18109_v50  ;;  %16810 = vmatpush3.bf16.msra.mxu1 %v18163_v6 }
 0x3c3   :  { %16786 = vmatprep.subr.bf16.mxu0 %v18112_v51  ;;  %16811 = vmatprep.subr.bf16.mxu1 %v20146_v36 }
 0x3c6   :  { %16788 = vmatpush1.bf16.msra.mxu0 %v18137_v59  ;;  %16813 = vmatpush3.bf16.msra.mxu1 %v18174_v11 }
 0x3c7   :  { %16790 = vmatprep.subr.bf16.mxu0 %v18140_v60  ;;  %16814 = vmatprep.subr.bf16.mxu1 %v20146_v36 }
 0x3ca   :  { %16792 = vmatpush1.bf16.msra.mxu0 %v20183_v4  ;;  %16816 = vmatpush3.bf16.msra.mxu1 %v20184_v26 }
 0x3cb   :  { %16818 = vmatprep.subr.bf16.mxu0 %v20185_v38  ;;  %16849 = vmatprep.subr.bf16.mxu1 %v20146_v36 }
 0x3cd   :  { %6190 = vmatmul.mubr.f32.vlgmr.msra.gmra.mrb[28].mxu0 %v18821_v40  ;;  %15380 = vmatmul.mubr.f32.vlgmr.msra.gmra.mrb[28].mxu1 %v18821_v40 }
 0x3ce   :  { %16820 = vmatpush1.bf16.msra.mxu0 %v17985_v9  ;;  %16851 = vmatpush3.bf16.msra.mxu1 %v18044_v29 }
 0x3cf   :  { %16822 = vmatprep.subr.bf16.mxu0 %v17987_v10  ;;  %16852 = vmatprep.subr.bf16.mxu1 %v20146_v36 }
 0x3d0   :  { %6597 = vmatprep.mubr.f32.mxu0 %v19093_v47  ;;  %15414 = vmatprep.mubr.msk.f32.mxu1 %vm17936_vm0, %v19093_v47 }
 0x3d2   :  { %16824 = vmatpush1.bf16.msra.mxu0 %v18003_v15  ;;  %16854 = vmatpush3.bf16.msra.mxu1 %v18068_v37 }
 0x3d3   :  { %16826 = vmatprep.subr.bf16.mxu0 %v18006_v16  ;;  %16855 = vmatprep.subr.bf16.mxu1 %v20146_v36 }
 0x3d6   :  { %16828 = vmatpush1.bf16.msra.mxu0 %v18021_v21  ;;  %16857 = vmatpush3.bf16.msra.mxu1 %v18096_v46 }
 0x3d7   :  { %16830 = vmatprep.subr.bf16.mxu0 %v18024_v22  ;;  %16858 = vmatprep.subr.bf16.mxu1 %v20146_v36 }
 0x3da   :  { %16832 = vmatpush1.bf16.msra.mxu0 %v18053_v32  ;;  %16860 = vmatpush3.bf16.msra.mxu1 %v18124_v55 }
 0x3db   :  { %16834 = vmatprep.subr.bf16.mxu0 %v18056_v33  ;;  %16861 = vmatprep.subr.bf16.mxu1 %v20146_v36 }
 0x3de   :  { %16836 = vmatpush1.bf16.msra.mxu0 %v18081_v41  ;;  %16863 = vmatpush3.bf16.msra.mxu1 %v18149_v63 }
 0x3df   :  { %16838 = vmatprep.subr.bf16.mxu0 %v18084_v42  ;;  %16864 = vmatprep.subr.bf16.mxu1 %v20146_v36 }
 0x3e0   :  { %v3623_v40 = vpop.f32.mrb[16].mxu0  ;;  %v3694_v2 = vpop.f32.mrb[16].mxu1 }
 0x3e1   :  { %v3625_v31 = vpop.f32.mrb[17].mxu0  ;;  %v15171_v58 = vpop.f32.mrb[17].mxu1 }
 0x3e2   :  { %16840 = vmatpush1.bf16.msra.mxu0 %v18109_v50  ;;  %16866 = vmatpush3.bf16.msra.mxu1 %v18163_v6  ;;  %v20200_v31 = vld [vmem:[#allocation8_spill] sm:$0xff] }
 0x3e3   :  { %16842 = vmatprep.subr.bf16.mxu0 %v18112_v51  ;;  %16867 = vmatprep.subr.bf16.mxu1 %v20146_v36 }
 0x3e6   :  { %16844 = vmatpush1.bf16.msra.mxu0 %v18137_v59  ;;  %16869 = vmatpush3.bf16.msra.mxu1 %v18174_v11 }
 0x3e7   :  { %16846 = vmatprep.subr.bf16.mxu0 %v18140_v60  ;;  %16870 = vmatprep.subr.bf16.mxu1 %v20146_v36 }
 0x3ea   :  { %16848 = vmatpush1.bf16.msra.mxu0 %v20183_v4  ;;  %16872 = vmatpush3.bf16.msra.mxu1 %v20184_v26 }
 0x3eb   :  { %16874 = vmatprep.subr.bf16.mxu0 %v20185_v38  ;;  %16905 = vmatprep.subr.bf16.mxu1 %v20146_v36 }
 0x3ed   :  { %6598 = vmatmul.mubr.f32.vlgmr.msra.gmra.mrb[30].mxu0 %v18844_v45  ;;  %15415 = vmatmul.mubr.f32.vlgmr.msra.gmra.mrb[30].mxu1 %v18844_v45 }
 0x3ee   :  { %16876 = vmatpush1.bf16.msra.mxu0 %v17985_v9  ;;  %16907 = vmatpush3.bf16.msra.mxu1 %v18044_v29 }
 0x3ef   :  { %16878 = vmatprep.subr.bf16.mxu0 %v17987_v10  ;;  %16908 = vmatprep.subr.bf16.mxu1 %v20146_v36 }
 0x3f0   :  { %7045 = vmatprep.mubr.f32.mxu0 %v19093_v47  ;;  %15449 = vmatprep.mubr.msk.f32.mxu1 %vm17936_vm0, %v19093_v47 }
 0x3f2   :  { %16880 = vmatpush1.bf16.msra.mxu0 %v18003_v15  ;;  %16910 = vmatpush3.bf16.msra.mxu1 %v18068_v37 }
 0x3f3   :  { %16882 = vmatprep.subr.bf16.mxu0 %v18006_v16  ;;  %16911 = vmatprep.subr.bf16.mxu1 %v20146_v36 }
 0x3f6   :  { %16884 = vmatpush1.bf16.msra.mxu0 %v18021_v21  ;;  %16913 = vmatpush3.bf16.msra.mxu1 %v18096_v46 }
 0x3f7   :  { %16886 = vmatprep.subr.bf16.mxu0 %v18024_v22  ;;  %16914 = vmatprep.subr.bf16.mxu1 %v20146_v36 }
 0x3fa   :  { %16888 = vmatpush1.bf16.msra.mxu0 %v18053_v32  ;;  %16916 = vmatpush3.bf16.msra.mxu1 %v18124_v55 }
 0x3fb   :  { %16890 = vmatprep.subr.bf16.mxu0 %v18056_v33  ;;  %16917 = vmatprep.subr.bf16.mxu1 %v20146_v36 }
 0x3fe   :  { %16892 = vmatpush1.bf16.msra.mxu0 %v18081_v41  ;;  %16919 = vmatpush3.bf16.msra.mxu1 %v18149_v63 }
 0x3ff   :  { %16894 = vmatprep.subr.bf16.mxu0 %v18084_v42  ;;  %16920 = vmatprep.subr.bf16.mxu1 %v20146_v36 }
 0x400   :  { %v4031_v45 = vpop.f32.mrb[18].mxu0  ;;  %v4102_v62 = vpop.f32.mrb[18].mxu1 }
 0x401   :  { %v4033_v14 = vpop.f32.mrb[19].mxu0  ;;  %v15206_v8 = vpop.f32.mrb[19].mxu1 }
 0x402   :  { %16896 = vmatpush1.bf16.msra.mxu0 %v18109_v50  ;;  %16922 = vmatpush3.bf16.msra.mxu1 %v18163_v6  ;;  %v20201_v8 = vld [vmem:[#allocation10_spill] sm:$0xff] }
 0x403   :  { %16898 = vmatprep.subr.bf16.mxu0 %v18112_v51  ;;  %16923 = vmatprep.subr.bf16.mxu1 %v20146_v36 }
 0x406   :  { %16900 = vmatpush1.bf16.msra.mxu0 %v18137_v59  ;;  %16925 = vmatpush3.bf16.msra.mxu1 %v18174_v11 }
 0x407   :  { %16902 = vmatprep.subr.bf16.mxu0 %v18140_v60  ;;  %16926 = vmatprep.subr.bf16.mxu1 %v20146_v36 }
 0x40a   :  { %16904 = vmatpush1.bf16.msra.mxu0 %v20183_v4  ;;  %16928 = vmatpush3.bf16.msra.mxu1 %v20184_v26 }
 0x40b   :  { %16930 = vmatprep.subr.bf16.mxu0 %v20185_v38  ;;  %16961 = vmatprep.subr.bf16.mxu1 %v20146_v36 }
 0x40d   :  { %7046 = vmatmul.mubr.f32.vlgmr.msra.gmra.mrb[32].mxu0 %v18870_v44  ;;  %15450 = vmatmul.mubr.f32.vlgmr.msra.gmra.mrb[32].mxu1 %v18870_v44 }
 0x40e   :  { %16932 = vmatpush1.bf16.msra.mxu0 %v17985_v9  ;;  %16963 = vmatpush3.bf16.msra.mxu1 %v18044_v29 }
 0x40f   :  { %16934 = vmatprep.subr.bf16.mxu0 %v17987_v10  ;;  %16964 = vmatprep.subr.bf16.mxu1 %v20146_v36 }
 0x410   :  { %7453 = vmatprep.mubr.f32.mxu0 %v19093_v47  ;;  %15484 = vmatprep.mubr.msk.f32.mxu1 %vm17936_vm0, %v19093_v47 }
 0x412   :  { %16936 = vmatpush1.bf16.msra.mxu0 %v18003_v15  ;;  %16966 = vmatpush3.bf16.msra.mxu1 %v18068_v37 }
 0x413   :  { %16938 = vmatprep.subr.bf16.mxu0 %v18006_v16  ;;  %16967 = vmatprep.subr.bf16.mxu1 %v20146_v36 }
 0x416   :  { %16940 = vmatpush1.bf16.msra.mxu0 %v18021_v21  ;;  %16969 = vmatpush3.bf16.msra.mxu1 %v18096_v46 }
 0x417   :  { %16942 = vmatprep.subr.bf16.mxu0 %v18024_v22  ;;  %16970 = vmatprep.subr.bf16.mxu1 %v20146_v36 }
 0x41a   :  { %16944 = vmatpush1.bf16.msra.mxu0 %v18053_v32  ;;  %16972 = vmatpush3.bf16.msra.mxu1 %v18124_v55 }
 0x41b   :  { %16946 = vmatprep.subr.bf16.mxu0 %v18056_v33  ;;  %16973 = vmatprep.subr.bf16.mxu1 %v20146_v36 }
 0x41e   :  { %16948 = vmatpush1.bf16.msra.mxu0 %v18081_v41  ;;  %16975 = vmatpush3.bf16.msra.mxu1 %v18149_v63 }
 0x41f   :  { %16950 = vmatprep.subr.bf16.mxu0 %v18084_v42  ;;  %16976 = vmatprep.subr.bf16.mxu1 %v20146_v36 }
 0x420   :  { %v4479_v44 = vpop.f32.mrb[20].mxu0  ;;  %v4550_v56 = vpop.f32.mrb[20].mxu1 }
 0x421   :  { %v4481_v12 = vpop.f32.mrb[21].mxu0  ;;  %v15241_v34 = vpop.f32.mrb[21].mxu1 }
 0x422   :  { %16952 = vmatpush1.bf16.msra.mxu0 %v18109_v50  ;;  %16978 = vmatpush3.bf16.msra.mxu1 %v18163_v6 }
 0x423   :  { %16954 = vmatprep.subr.bf16.mxu0 %v18112_v51  ;;  %16979 = vmatprep.subr.bf16.mxu1 %v20146_v36 }
 0x426   :  { %16956 = vmatpush1.bf16.msra.mxu0 %v18137_v59  ;;  %16981 = vmatpush3.bf16.msra.mxu1 %v18174_v11 }
 0x427   :  { %16958 = vmatprep.subr.bf16.mxu0 %v18140_v60  ;;  %16982 = vmatprep.subr.bf16.mxu1 %v20146_v36 }
 0x42a   :  { %16960 = vmatpush1.bf16.msra.mxu0 %v20183_v4  ;;  %16984 = vmatpush3.bf16.msra.mxu1 %v20184_v26 }
 0x42b   :  { %16986 = vmatprep.subr.bf16.mxu0 %v20185_v38  ;;  %17017 = vmatprep.subr.bf16.mxu1 %v20146_v36 }
 0x42d   :  { %7454 = vmatmul.mubr.f32.vlgmr.msra.gmra.mrb[34].mxu0 %v20196_v1  ;;  %15485 = vmatmul.mubr.f32.vlgmr.msra.gmra.mrb[34].mxu1 %v20196_v1  ;;  %v20202_v1 = vld [vmem:[#allocation11_spill] sm:$0xff] }
 0x42e   :  { %16988 = vmatpush1.bf16.msra.mxu0 %v17985_v9  ;;  %17019 = vmatpush3.bf16.msra.mxu1 %v18044_v29 }
 0x42f   :  { %16990 = vmatprep.subr.bf16.mxu0 %v17987_v10  ;;  %17020 = vmatprep.subr.bf16.mxu1 %v20146_v36 }
 0x430   :  { %7901 = vmatprep.mubr.f32.mxu0 %v19093_v47  ;;  %15519 = vmatprep.mubr.msk.f32.mxu1 %vm17936_vm0, %v19093_v47 }
 0x432   :  { %16992 = vmatpush1.bf16.msra.mxu0 %v18003_v15  ;;  %17022 = vmatpush3.bf16.msra.mxu1 %v18068_v37 }
 0x433   :  { %16994 = vmatprep.subr.bf16.mxu0 %v18006_v16  ;;  %17023 = vmatprep.subr.bf16.mxu1 %v20146_v36 }
 0x436   :  { %16996 = vmatpush1.bf16.msra.mxu0 %v18021_v21  ;;  %17025 = vmatpush3.bf16.msra.mxu1 %v18096_v46 }
 0x437   :  { %16998 = vmatprep.subr.bf16.mxu0 %v18024_v22  ;;  %17026 = vmatprep.subr.bf16.mxu1 %v20146_v36 }
 0x43a   :  { %17000 = vmatpush1.bf16.msra.mxu0 %v18053_v32  ;;  %17028 = vmatpush3.bf16.msra.mxu1 %v18124_v55 }
 0x43b   :  { %17002 = vmatprep.subr.bf16.mxu0 %v18056_v33  ;;  %17029 = vmatprep.subr.bf16.mxu1 %v20146_v36 }
 0x43e   :  { %17004 = vmatpush1.bf16.msra.mxu0 %v18081_v41  ;;  %17031 = vmatpush3.bf16.msra.mxu1 %v18149_v63 }
 0x43f   :  { %17006 = vmatprep.subr.bf16.mxu0 %v18084_v42  ;;  %17032 = vmatprep.subr.bf16.mxu1 %v20146_v36 }
 0x440   :  { %v4887_v27 = vpop.f32.mrb[22].mxu0  ;;  %v4958_v7 = vpop.f32.mrb[22].mxu1 }
 0x441   :  { %v4889_v17 = vpop.f32.mrb[23].mxu0  ;;  %v15276_v49 = vpop.f32.mrb[23].mxu1 }
 0x442   :  { %17008 = vmatpush1.bf16.msra.mxu0 %v18109_v50  ;;  %17034 = vmatpush3.bf16.msra.mxu1 %v18163_v6 }
 0x443   :  { %17010 = vmatprep.subr.bf16.mxu0 %v18112_v51  ;;  %17035 = vmatprep.subr.bf16.mxu1 %v20146_v36 }
 0x446   :  { %17012 = vmatpush1.bf16.msra.mxu0 %v18137_v59  ;;  %17037 = vmatpush3.bf16.msra.mxu1 %v18174_v11 }
 0x447   :  { %17014 = vmatprep.subr.bf16.mxu0 %v18140_v60  ;;  %17038 = vmatprep.subr.bf16.mxu1 %v20146_v36 }
 0x44a   :  { %17016 = vmatpush1.bf16.msra.mxu0 %v20183_v4  ;;  %17040 = vmatpush3.bf16.msra.mxu1 %v20184_v26 }
 0x44b   :  { %17042 = vmatprep.subr.bf16.mxu0 %v20185_v38  ;;  %17073 = vmatprep.subr.bf16.mxu1 %v20146_v36 }
 0x44d   :  { %7902 = vmatmul.mubr.f32.vlgmr.msra.gmra.mrb[36].mxu0 %v20197_v39  ;;  %15520 = vmatmul.mubr.f32.vlgmr.msra.gmra.mrb[36].mxu1 %v20197_v39  ;;  %v20203_v39 = vld [vmem:[#allocation12_spill] sm:$0xff] }
 0x44e   :  { %17044 = vmatpush1.bf16.msra.mxu0 %v17985_v9  ;;  %17075 = vmatpush3.bf16.msra.mxu1 %v18044_v29 }
 0x44f   :  { %17046 = vmatprep.subr.bf16.mxu0 %v17987_v10  ;;  %17076 = vmatprep.subr.bf16.mxu1 %v20146_v36 }
 0x450   :  { %8309 = vmatprep.mubr.f32.mxu0 %v19093_v47  ;;  %15554 = vmatprep.mubr.msk.f32.mxu1 %vm17936_vm0, %v19093_v47 }
 0x452   :  { %17048 = vmatpush1.bf16.msra.mxu0 %v18003_v15  ;;  %17078 = vmatpush3.bf16.msra.mxu1 %v18068_v37 }
 0x453   :  { %17050 = vmatprep.subr.bf16.mxu0 %v18006_v16  ;;  %17079 = vmatprep.subr.bf16.mxu1 %v20146_v36 }
 0x456   :  { %17052 = vmatpush1.bf16.msra.mxu0 %v18021_v21  ;;  %17081 = vmatpush3.bf16.msra.mxu1 %v18096_v46 }
 0x457   :  { %17054 = vmatprep.subr.bf16.mxu0 %v18024_v22  ;;  %17082 = vmatprep.subr.bf16.mxu1 %v20146_v36 }
 0x45a   :  { %17056 = vmatpush1.bf16.msra.mxu0 %v18053_v32  ;;  %17084 = vmatpush3.bf16.msra.mxu1 %v18124_v55 }
 0x45b   :  { %17058 = vmatprep.subr.bf16.mxu0 %v18056_v33  ;;  %17085 = vmatprep.subr.bf16.mxu1 %v20146_v36 }
 0x45e   :  { %17060 = vmatpush1.bf16.msra.mxu0 %v18081_v41  ;;  %17087 = vmatpush3.bf16.msra.mxu1 %v18149_v63 }
 0x45f   :  { %17062 = vmatprep.subr.bf16.mxu0 %v18084_v42  ;;  %17088 = vmatprep.subr.bf16.mxu1 %v20146_v36 }
 0x460   :  { %v5335_v43 = vpop.f32.mrb[24].mxu0  ;;  %v5406_v3 = vpop.f32.mrb[24].mxu1 }
 0x461   :  { %v5337_v20 = vpop.f32.mrb[25].mxu0  ;;  %v15311_v24 = vpop.f32.mrb[25].mxu1 }
 0x462   :  { %17064 = vmatpush1.bf16.msra.mxu0 %v18109_v50  ;;  %17090 = vmatpush3.bf16.msra.mxu1 %v18163_v6 }
 0x463   :  { %17066 = vmatprep.subr.bf16.mxu0 %v18112_v51  ;;  %17091 = vmatprep.subr.bf16.mxu1 %v20146_v36 }
 0x466   :  { %17068 = vmatpush1.bf16.msra.mxu0 %v18137_v59  ;;  %17093 = vmatpush3.bf16.msra.mxu1 %v18174_v11 }
 0x467   :  { %17070 = vmatprep.subr.bf16.mxu0 %v18140_v60  ;;  %17094 = vmatprep.subr.bf16.mxu1 %v20146_v36 }
 0x46a   :  { %17072 = vmatpush1.bf16.msra.mxu0 %v20183_v4  ;;  %17096 = vmatpush3.bf16.msra.mxu1 %v20184_v26 }
 0x46b   :  { %17098 = vmatprep.subr.bf16.mxu0 %v20185_v38  ;;  %17129 = vmatprep.subr.bf16.mxu1 %v20146_v36 }
 0x46d   :  { %8310 = vmatmul.mubr.f32.vlgmr.msra.gmra.mrb[38].mxu0 %v18923_v13  ;;  %15555 = vmatmul.mubr.f32.vlgmr.msra.gmra.mrb[38].mxu1 %v18923_v13 }
 0x46e   :  { %17100 = vmatpush1.bf16.msra.mxu0 %v17985_v9  ;;  %17131 = vmatpush3.bf16.msra.mxu1 %v18044_v29 }
 0x46f   :  { %17102 = vmatprep.subr.bf16.mxu0 %v17987_v10  ;;  %17132 = vmatprep.subr.bf16.mxu1 %v20146_v36 }
 0x470   :  { %8757 = vmatprep.mubr.f32.mxu0 %v19093_v47  ;;  %15589 = vmatprep.mubr.msk.f32.mxu1 %vm17936_vm0, %v19093_v47 }
 0x472   :  { %17104 = vmatpush1.bf16.msra.mxu0 %v18003_v15  ;;  %17134 = vmatpush3.bf16.msra.mxu1 %v18068_v37 }
 0x473   :  { %17106 = vmatprep.subr.bf16.mxu0 %v18006_v16  ;;  %17135 = vmatprep.subr.bf16.mxu1 %v20146_v36 }
 0x476   :  { %17108 = vmatpush1.bf16.msra.mxu0 %v18021_v21  ;;  %17137 = vmatpush3.bf16.msra.mxu1 %v18096_v46 }
 0x477   :  { %17110 = vmatprep.subr.bf16.mxu0 %v18024_v22  ;;  %17138 = vmatprep.subr.bf16.mxu1 %v20146_v36 }
 0x47a   :  { %17112 = vmatpush1.bf16.msra.mxu0 %v18053_v32  ;;  %17140 = vmatpush3.bf16.msra.mxu1 %v18124_v55 }
 0x47b   :  { %17114 = vmatprep.subr.bf16.mxu0 %v18056_v33  ;;  %17141 = vmatprep.subr.bf16.mxu1 %v20146_v36 }
 0x47e   :  { %17116 = vmatpush1.bf16.msra.mxu0 %v18081_v41  ;;  %17143 = vmatpush3.bf16.msra.mxu1 %v18149_v63 }
 0x47f   :  { %17118 = vmatprep.subr.bf16.mxu0 %v18084_v42  ;;  %17144 = vmatprep.subr.bf16.mxu1 %v20146_v36 }
 0x480   :  { %v5743_v13 = vpop.f32.mrb[26].mxu0  ;;  %v5814_v19 = vpop.f32.mrb[26].mxu1 }
 0x481   :  { %v5745_v35 = vpop.f32.mrb[27].mxu0  ;;  %v15346_v28 = vpop.f32.mrb[27].mxu1  ;;  %v20204_v13 = vld [vmem:[#allocation13_spill] sm:$0xff] }
 0x482   :  { %17120 = vmatpush1.bf16.msra.mxu0 %v18109_v50  ;;  %17146 = vmatpush3.bf16.msra.mxu1 %v18163_v6 }
 0x483   :  { %17122 = vmatprep.subr.bf16.mxu0 %v18112_v51  ;;  %17147 = vmatprep.subr.bf16.mxu1 %v20146_v36 }
 0x486   :  { %17124 = vmatpush1.bf16.msra.mxu0 %v18137_v59  ;;  %17149 = vmatpush3.bf16.msra.mxu1 %v18174_v11 }
 0x487   :  { %17126 = vmatprep.subr.bf16.mxu0 %v18140_v60  ;;  %17150 = vmatprep.subr.bf16.mxu1 %v20146_v36 }
 0x48a   :  { %17128 = vmatpush1.bf16.msra.mxu0 %v20183_v4  ;;  %17152 = vmatpush3.bf16.msra.mxu1 %v20184_v26 }
 0x48b   :  { %17154 = vmatprep.subr.bf16.mxu0 %v20185_v38  ;;  %17185 = vmatprep.subr.bf16.mxu1 %v20146_v36 }
 0x48d   :  { %8758 = vmatmul.mubr.f32.vlgmr.msra.gmra.mrb[40].mxu0 %v20198_v61  ;;  %15590 = vmatmul.mubr.f32.vlgmr.msra.gmra.mrb[40].mxu1 %v20198_v61 }
 0x48e   :  { %17156 = vmatpush1.bf16.msra.mxu0 %v17985_v9  ;;  %17187 = vmatpush3.bf16.msra.mxu1 %v18044_v29 }
 0x48f   :  { %17158 = vmatprep.subr.bf16.mxu0 %v17987_v10  ;;  %17188 = vmatprep.subr.bf16.mxu1 %v20146_v36 }
 0x490   :  { %9165 = vmatprep.mubr.f32.mxu0 %v19093_v47  ;;  %15624 = vmatprep.mubr.msk.f32.mxu1 %vm17936_vm0, %v19093_v47 }
 0x492   :  { %17160 = vmatpush1.bf16.msra.mxu0 %v18003_v15  ;;  %17190 = vmatpush3.bf16.msra.mxu1 %v18068_v37 }
 0x493   :  { %17162 = vmatprep.subr.bf16.mxu0 %v18006_v16  ;;  %17191 = vmatprep.subr.bf16.mxu1 %v20146_v36 }
 0x496   :  { %17164 = vmatpush1.bf16.msra.mxu0 %v18021_v21  ;;  %17193 = vmatpush3.bf16.msra.mxu1 %v18096_v46 }
 0x497   :  { %17166 = vmatprep.subr.bf16.mxu0 %v18024_v22  ;;  %17194 = vmatprep.subr.bf16.mxu1 %v20146_v36 }
 0x49a   :  { %17168 = vmatpush1.bf16.msra.mxu0 %v18053_v32  ;;  %17196 = vmatpush3.bf16.msra.mxu1 %v18124_v55 }
 0x49b   :  { %17170 = vmatprep.subr.bf16.mxu0 %v18056_v33  ;;  %17197 = vmatprep.subr.bf16.mxu1 %v20146_v36 }
 0x49e   :  { %17172 = vmatpush1.bf16.msra.mxu0 %v18081_v41  ;;  %17199 = vmatpush3.bf16.msra.mxu1 %v18149_v63 }
 0x49f   :  { %17174 = vmatprep.subr.bf16.mxu0 %v18084_v42  ;;  %17200 = vmatprep.subr.bf16.mxu1 %v20146_v36 }
 0x4a0   :  { %v6191_v23 = vpop.f32.mrb[28].mxu0  ;;  %v6262_v54 = vpop.f32.mrb[28].mxu1 }
 0x4a1   :  { %v6193_v53 = vpop.f32.mrb[29].mxu0  ;;  %v15381_v57 = vpop.f32.mrb[29].mxu1  ;;  %v20205_v23 = vld [vmem:[#allocation14_spill] sm:$0xff] }
 0x4a2   :  { %17176 = vmatpush1.bf16.msra.mxu0 %v18109_v50  ;;  %17202 = vmatpush3.bf16.msra.mxu1 %v18163_v6 }
 0x4a3   :  { %17178 = vmatprep.subr.bf16.mxu0 %v18112_v51  ;;  %17203 = vmatprep.subr.bf16.mxu1 %v20146_v36 }
 0x4a6   :  { %17180 = vmatpush1.bf16.msra.mxu0 %v18137_v59  ;;  %17205 = vmatpush3.bf16.msra.mxu1 %v18174_v11 }
 0x4a7   :  { %17182 = vmatprep.subr.bf16.mxu0 %v18140_v60  ;;  %17206 = vmatprep.subr.bf16.mxu1 %v20146_v36 }
 0x4aa   :  { %17184 = vmatpush1.bf16.msra.mxu0 %v20183_v4  ;;  %17208 = vmatpush3.bf16.msra.mxu1 %v20184_v26 }
 0x4ab   :  { %17210 = vmatprep.subr.bf16.mxu0 %v20185_v38  ;;  %17241 = vmatprep.subr.bf16.mxu1 %v20146_v36 }
 0x4ad   :  { %9166 = vmatmul.mubr.f32.vlgmr.msra.gmra.mrb[42].mxu0 %v20199_v25  ;;  %15625 = vmatmul.mubr.f32.vlgmr.msra.gmra.mrb[42].mxu1 %v20199_v25 }
 0x4ae   :  { %17212 = vmatpush1.bf16.msra.mxu0 %v17985_v9  ;;  %17243 = vmatpush3.bf16.msra.mxu1 %v18044_v29 }
 0x4af   :  { %17214 = vmatprep.subr.bf16.mxu0 %v17987_v10  ;;  %17244 = vmatprep.subr.bf16.mxu1 %v20146_v36 }
 0x4b0   :  { %9613 = vmatprep.mubr.f32.mxu0 %v19093_v47  ;;  %15659 = vmatprep.mubr.msk.f32.mxu1 %vm17936_vm0, %v19093_v47 }
 0x4b2   :  { %17216 = vmatpush1.bf16.msra.mxu0 %v18003_v15  ;;  %17246 = vmatpush3.bf16.msra.mxu1 %v18068_v37 }
 0x4b3   :  { %17218 = vmatprep.subr.bf16.mxu0 %v18006_v16  ;;  %17247 = vmatprep.subr.bf16.mxu1 %v20146_v36 }
 0x4b6   :  { %17220 = vmatpush1.bf16.msra.mxu0 %v18021_v21  ;;  %17249 = vmatpush3.bf16.msra.mxu1 %v18096_v46 }
 0x4b7   :  { %17222 = vmatprep.subr.bf16.mxu0 %v18024_v22  ;;  %17250 = vmatprep.subr.bf16.mxu1 %v20146_v36 }
 0x4ba   :  { %17224 = vmatpush1.bf16.msra.mxu0 %v18053_v32  ;;  %17252 = vmatpush3.bf16.msra.mxu1 %v18124_v55 }
 0x4bb   :  { %17226 = vmatprep.subr.bf16.mxu0 %v18056_v33  ;;  %17253 = vmatprep.subr.bf16.mxu1 %v20146_v36 }
 0x4be   :  { %17228 = vmatpush1.bf16.msra.mxu0 %v18081_v41  ;;  %17255 = vmatpush3.bf16.msra.mxu1 %v18149_v63 }
 0x4bf   :  { %17230 = vmatprep.subr.bf16.mxu0 %v18084_v42  ;;  %17256 = vmatprep.subr.bf16.mxu1 %v20146_v36 }
 0x4c0   :  { %v6599_v52 = vpop.f32.mrb[30].mxu0  ;;  %v6670_v48 = vpop.f32.mrb[30].mxu1 }
 0x4c1   :  { %v6601_v40 = vpop.f32.mrb[31].mxu0  ;;  %v15416_v2 = vpop.f32.mrb[31].mxu1 }
 0x4c2   :  { %17232 = vmatpush1.bf16.msra.mxu0 %v18109_v50  ;;  %17258 = vmatpush3.bf16.msra.mxu1 %v18163_v6 }
 0x4c3   :  { %17234 = vmatprep.subr.bf16.mxu0 %v18112_v51  ;;  %17259 = vmatprep.subr.bf16.mxu1 %v20146_v36 }
 0x4c6   :  { %17236 = vmatpush1.bf16.msra.mxu0 %v18137_v59  ;;  %17261 = vmatpush3.bf16.msra.mxu1 %v18174_v11 }
 0x4c7   :  { %17238 = vmatprep.subr.bf16.mxu0 %v18140_v60  ;;  %17262 = vmatprep.subr.bf16.mxu1 %v20146_v36 }
 0x4ca   :  { %17240 = vmatpush1.bf16.msra.mxu0 %v20183_v4  ;;  %17264 = vmatpush3.bf16.msra.mxu1 %v20184_v26 }
 0x4cb   :  { %17266 = vmatprep.subr.bf16.mxu0 %v20185_v38  ;;  %17297 = vmatprep.subr.bf16.mxu1 %v20146_v36 }
 0x4cd   :  { %9614 = vmatmul.mubr.f32.vlgmr.msra.gmra.mrb[44].mxu0 %v20200_v31  ;;  %15660 = vmatmul.mubr.f32.vlgmr.msra.gmra.mrb[44].mxu1 %v20200_v31 }
 0x4ce   :  { %17268 = vmatpush1.bf16.msra.mxu0 %v17985_v9  ;;  %17299 = vmatpush3.bf16.msra.mxu1 %v18044_v29 }
 0x4cf   :  { %17270 = vmatprep.subr.bf16.mxu0 %v17987_v10  ;;  %17300 = vmatprep.subr.bf16.mxu1 %v20146_v36 }
 0x4d0   :  { %10021 = vmatprep.mubr.f32.mxu0 %v19093_v47  ;;  %15694 = vmatprep.mubr.msk.f32.mxu1 %vm17936_vm0, %v19093_v47 }
 0x4d2   :  { %17272 = vmatpush1.bf16.msra.mxu0 %v18003_v15  ;;  %17302 = vmatpush3.bf16.msra.mxu1 %v18068_v37 }
 0x4d3   :  { %17274 = vmatprep.subr.bf16.mxu0 %v18006_v16  ;;  %17303 = vmatprep.subr.bf16.mxu1 %v20146_v36 }
 0x4d6   :  { %17276 = vmatpush1.bf16.msra.mxu0 %v18021_v21  ;;  %17305 = vmatpush3.bf16.msra.mxu1 %v18096_v46 }
 0x4d7   :  { %17278 = vmatprep.subr.bf16.mxu0 %v18024_v22  ;;  %17306 = vmatprep.subr.bf16.mxu1 %v20146_v36 }
 0x4da   :  { %17280 = vmatpush1.bf16.msra.mxu0 %v18053_v32  ;;  %17308 = vmatpush3.bf16.msra.mxu1 %v18124_v55 }
 0x4db   :  { %17282 = vmatprep.subr.bf16.mxu0 %v18056_v33  ;;  %17309 = vmatprep.subr.bf16.mxu1 %v20146_v36 }
 0x4de   :  { %17284 = vmatpush1.bf16.msra.mxu0 %v18081_v41  ;;  %17311 = vmatpush3.bf16.msra.mxu1 %v18149_v63 }
 0x4df   :  { %17286 = vmatprep.subr.bf16.mxu0 %v18084_v42  ;;  %17312 = vmatprep.subr.bf16.mxu1 %v20146_v36 }
 0x4e0   :  { %v7047_v58 = vpop.f32.mrb[32].mxu0  ;;  %v7118_v45 = vpop.f32.mrb[32].mxu1 }
 0x4e1   :  { %v7049_v62 = vpop.f32.mrb[33].mxu0  ;;  %v15451_v14 = vpop.f32.mrb[33].mxu1 }
 0x4e2   :  { %17288 = vmatpush1.bf16.msra.mxu0 %v18109_v50  ;;  %17314 = vmatpush3.bf16.msra.mxu1 %v18163_v6 }
 0x4e3   :  { %17290 = vmatprep.subr.bf16.mxu0 %v18112_v51  ;;  %17315 = vmatprep.subr.bf16.mxu1 %v20146_v36 }
 0x4e6   :  { %17292 = vmatpush1.bf16.msra.mxu0 %v18137_v59  ;;  %17317 = vmatpush3.bf16.msra.mxu1 %v18174_v11 }
 0x4e7   :  { %17294 = vmatprep.subr.bf16.mxu0 %v18140_v60  ;;  %17318 = vmatprep.subr.bf16.mxu1 %v20146_v36 }
 0x4ea   :  { %17296 = vmatpush1.bf16.msra.mxu0 %v20183_v4  ;;  %17320 = vmatpush3.bf16.msra.mxu1 %v20184_v26 }
 0x4eb   :  { %17322 = vmatprep.subr.bf16.mxu0 %v20185_v38  ;;  %17353 = vmatprep.subr.bf16.mxu1 %v20146_v36 }
 0x4ed   :  { %10022 = vmatmul.mubr.f32.vlgmr.msra.gmra.mrb[46].mxu0 %v20201_v8  ;;  %15695 = vmatmul.mubr.f32.vlgmr.msra.gmra.mrb[46].mxu1 %v20201_v8 }
 0x4ee   :  { %17324 = vmatpush1.bf16.msra.mxu0 %v17985_v9  ;;  %17355 = vmatpush3.bf16.msra.mxu1 %v18044_v29 }
 0x4ef   :  { %17326 = vmatprep.subr.bf16.mxu0 %v17987_v10  ;;  %17356 = vmatprep.subr.bf16.mxu1 %v20146_v36 }
 0x4f0   :  { %10469 = vmatprep.mubr.f32.mxu0 %v19093_v47  ;;  %15729 = vmatprep.mubr.msk.f32.mxu1 %vm17936_vm0, %v19093_v47 }
 0x4f2   :  { %17328 = vmatpush1.bf16.msra.mxu0 %v18003_v15  ;;  %17358 = vmatpush3.bf16.msra.mxu1 %v18068_v37 }
 0x4f3   :  { %17330 = vmatprep.subr.bf16.mxu0 %v18006_v16  ;;  %17359 = vmatprep.subr.bf16.mxu1 %v20146_v36 }
 0x4f6   :  { %17332 = vmatpush1.bf16.msra.mxu0 %v18021_v21  ;;  %17361 = vmatpush3.bf16.msra.mxu1 %v18096_v46 }
 0x4f7   :  { %17334 = vmatprep.subr.bf16.mxu0 %v18024_v22  ;;  %17362 = vmatprep.subr.bf16.mxu1 %v20146_v36 }
 0x4fa   :  { %17336 = vmatpush1.bf16.msra.mxu0 %v18053_v32  ;;  %17364 = vmatpush3.bf16.msra.mxu1 %v18124_v55 }
 0x4fb   :  { %17338 = vmatprep.subr.bf16.mxu0 %v18056_v33  ;;  %17365 = vmatprep.subr.bf16.mxu1 %v20146_v36 }
 0x4fe   :  { %17340 = vmatpush1.bf16.msra.mxu0 %v18081_v41  ;;  %17367 = vmatpush3.bf16.msra.mxu1 %v18149_v63 }
 0x4ff   :  { %17342 = vmatprep.subr.bf16.mxu0 %v18084_v42  ;;  %17368 = vmatprep.subr.bf16.mxu1 %v20146_v36 }
 0x500   :  { %v7455_v44 = vpop.f32.mrb[34].mxu0  ;;  %v7526_v56 = vpop.f32.mrb[34].mxu1 }
 0x501   :  { %v7457_v12 = vpop.f32.mrb[35].mxu0  ;;  %v15486_v34 = vpop.f32.mrb[35].mxu1 }
 0x502   :  { %17344 = vmatpush1.bf16.msra.mxu0 %v18109_v50  ;;  %17370 = vmatpush3.bf16.msra.mxu1 %v18163_v6 }
 0x503   :  { %17346 = vmatprep.subr.bf16.mxu0 %v18112_v51  ;;  %17371 = vmatprep.subr.bf16.mxu1 %v20146_v36 }
 0x506   :  { %17348 = vmatpush1.bf16.msra.mxu0 %v18137_v59  ;;  %17373 = vmatpush3.bf16.msra.mxu1 %v18174_v11 }
 0x507   :  { %17350 = vmatprep.subr.bf16.mxu0 %v18140_v60  ;;  %17374 = vmatprep.subr.bf16.mxu1 %v20146_v36 }
 0x50a   :  { %17352 = vmatpush1.bf16.msra.mxu0 %v20183_v4  ;;  %17376 = vmatpush3.bf16.msra.mxu1 %v20184_v26 }
 0x50b   :  { %17378 = vmatprep.subr.bf16.mxu0 %v20185_v38  ;;  %17409 = vmatprep.subr.bf16.mxu1 %v20146_v36 }
 0x50d   :  { %10470 = vmatmul.mubr.f32.vlgmr.msra.gmra.mrb[48].mxu0 %v20202_v1  ;;  %15730 = vmatmul.mubr.f32.vlgmr.msra.gmra.mrb[48].mxu1 %v20202_v1 }
 0x50e   :  { %17380 = vmatpush1.bf16.msra.mxu0 %v17985_v9  ;;  %17411 = vmatpush3.bf16.msra.mxu1 %v18044_v29 }
 0x50f   :  { %17382 = vmatprep.subr.bf16.mxu0 %v17987_v10  ;;  %17412 = vmatprep.subr.bf16.mxu1 %v20146_v36 }
 0x510   :  { %10877 = vmatprep.mubr.f32.mxu0 %v19093_v47  ;;  %15764 = vmatprep.mubr.msk.f32.mxu1 %vm17936_vm0, %v19093_v47 }
 0x512   :  { %17384 = vmatpush1.bf16.msra.mxu0 %v18003_v15  ;;  %17414 = vmatpush3.bf16.msra.mxu1 %v18068_v37 }
 0x513   :  { %17386 = vmatprep.subr.bf16.mxu0 %v18006_v16  ;;  %17415 = vmatprep.subr.bf16.mxu1 %v20146_v36 }
 0x516   :  { %17388 = vmatpush1.bf16.msra.mxu0 %v18021_v21  ;;  %17417 = vmatpush3.bf16.msra.mxu1 %v18096_v46 }
 0x517   :  { %17390 = vmatprep.subr.bf16.mxu0 %v18024_v22  ;;  %17418 = vmatprep.subr.bf16.mxu1 %v20146_v36 }
 0x51a   :  { %17392 = vmatpush1.bf16.msra.mxu0 %v18053_v32  ;;  %17420 = vmatpush3.bf16.msra.mxu1 %v18124_v55 }
 0x51b   :  { %17394 = vmatprep.subr.bf16.mxu0 %v18056_v33  ;;  %17421 = vmatprep.subr.bf16.mxu1 %v20146_v36 }
 0x51e   :  { %17396 = vmatpush1.bf16.msra.mxu0 %v18081_v41  ;;  %17423 = vmatpush3.bf16.msra.mxu1 %v18149_v63 }
 0x51f   :  { %17398 = vmatprep.subr.bf16.mxu0 %v18084_v42  ;;  %17424 = vmatprep.subr.bf16.mxu1 %v20146_v36 }
 0x520   :  { %v7903_v27 = vpop.f32.mrb[36].mxu0  ;;  %v7974_v7 = vpop.f32.mrb[36].mxu1 }
 0x521   :  { %v7905_v17 = vpop.f32.mrb[37].mxu0  ;;  %v15521_v49 = vpop.f32.mrb[37].mxu1 }
 0x522   :  { %17400 = vmatpush1.bf16.msra.mxu0 %v18109_v50  ;;  %17426 = vmatpush3.bf16.msra.mxu1 %v18163_v6 }
 0x523   :  { %17402 = vmatprep.subr.bf16.mxu0 %v18112_v51  ;;  %17427 = vmatprep.subr.bf16.mxu1 %v20146_v36 }
 0x526   :  { %17404 = vmatpush1.bf16.msra.mxu0 %v18137_v59  ;;  %17429 = vmatpush3.bf16.msra.mxu1 %v18174_v11 }
 0x527   :  { %17406 = vmatprep.subr.bf16.mxu0 %v18140_v60  ;;  %17430 = vmatprep.subr.bf16.mxu1 %v20146_v36 }
 0x52a   :  { %17408 = vmatpush1.bf16.msra.mxu0 %v20183_v4  ;;  %17432 = vmatpush3.bf16.msra.mxu1 %v20184_v26 }
 0x52b   :  { %17434 = vmatprep.subr.bf16.mxu0 %v20185_v38  ;;  %17465 = vmatprep.subr.bf16.mxu1 %v20146_v36 }
 0x52d   :  { %10878 = vmatmul.mubr.f32.vlgmr.msra.gmra.mrb[50].mxu0 %v20203_v39  ;;  %15765 = vmatmul.mubr.f32.vlgmr.msra.gmra.mrb[50].mxu1 %v20203_v39 }
 0x52e   :  { %17436 = vmatpush1.bf16.msra.mxu0 %v17985_v9  ;;  %17467 = vmatpush3.bf16.msra.mxu1 %v18044_v29 }
 0x52f   :  { %17438 = vmatprep.subr.bf16.mxu0 %v17987_v10  ;;  %17468 = vmatprep.subr.bf16.mxu1 %v20146_v36 }
 0x530   :  { %11325 = vmatprep.mubr.f32.mxu0 %v19093_v47  ;;  %15799 = vmatprep.mubr.msk.f32.mxu1 %vm17936_vm0, %v19093_v47 }
 0x532   :  { %17440 = vmatpush1.bf16.msra.mxu0 %v18003_v15  ;;  %17470 = vmatpush3.bf16.msra.mxu1 %v18068_v37 }
 0x533   :  { %17442 = vmatprep.subr.bf16.mxu0 %v18006_v16  ;;  %17471 = vmatprep.subr.bf16.mxu1 %v20146_v36 }
 0x536   :  { %17444 = vmatpush1.bf16.msra.mxu0 %v18021_v21  ;;  %17473 = vmatpush3.bf16.msra.mxu1 %v18096_v46 }
 0x537   :  { %17446 = vmatprep.subr.bf16.mxu0 %v18024_v22  ;;  %17474 = vmatprep.subr.bf16.mxu1 %v20146_v36 }
 0x53a   :  { %17448 = vmatpush1.bf16.msra.mxu0 %v18053_v32  ;;  %17476 = vmatpush3.bf16.msra.mxu1 %v18124_v55 }
 0x53b   :  { %17450 = vmatprep.subr.bf16.mxu0 %v18056_v33  ;;  %17477 = vmatprep.subr.bf16.mxu1 %v20146_v36 }
 0x53e   :  { %17452 = vmatpush1.bf16.msra.mxu0 %v18081_v41  ;;  %17479 = vmatpush3.bf16.msra.mxu1 %v18149_v63 }
 0x53f   :  { %17454 = vmatprep.subr.bf16.mxu0 %v18084_v42  ;;  %17480 = vmatprep.subr.bf16.mxu1 %v20146_v36 }
 0x540   :  { %v8311_v43 = vpop.f32.mrb[38].mxu0  ;;  %v8382_v3 = vpop.f32.mrb[38].mxu1 }
 0x541   :  { %v8313_v20 = vpop.f32.mrb[39].mxu0  ;;  %v15556_v24 = vpop.f32.mrb[39].mxu1 }
 0x542   :  { %17456 = vmatpush1.bf16.msra.mxu0 %v18109_v50  ;;  %17482 = vmatpush3.bf16.msra.mxu1 %v18163_v6 }
 0x543   :  { %17458 = vmatprep.subr.bf16.mxu0 %v18112_v51  ;;  %17483 = vmatprep.subr.bf16.mxu1 %v20146_v36 }
 0x546   :  { %17460 = vmatpush1.bf16.msra.mxu0 %v18137_v59  ;;  %17485 = vmatpush3.bf16.msra.mxu1 %v18174_v11 }
 0x547   :  { %17462 = vmatprep.subr.bf16.mxu0 %v18140_v60  ;;  %17486 = vmatprep.subr.bf16.mxu1 %v20146_v36 }
 0x54a   :  { %17464 = vmatpush1.bf16.msra.mxu0 %v20183_v4  ;;  %17488 = vmatpush3.bf16.msra.mxu1 %v20184_v26 }
 0x54b   :  { %17490 = vmatprep.subr.bf16.mxu0 %v20185_v38  ;;  %17521 = vmatprep.subr.bf16.mxu1 %v20146_v36 }
 0x54d   :  { %11326 = vmatmul.mubr.f32.vlgmr.msra.gmra.mrb[52].mxu0 %v20204_v13  ;;  %15800 = vmatmul.mubr.f32.vlgmr.msra.gmra.mrb[52].mxu1 %v20204_v13 }
 0x54e   :  { %17492 = vmatpush1.bf16.msra.mxu0 %v17985_v9  ;;  %17523 = vmatpush3.bf16.msra.mxu1 %v18044_v29 }
 0x54f   :  { %17494 = vmatprep.subr.bf16.mxu0 %v17987_v10  ;;  %17524 = vmatprep.subr.bf16.mxu1 %v20146_v36 }
 0x550   :  { %11733 = vmatprep.mubr.f32.mxu0 %v19093_v47  ;;  %15834 = vmatprep.mubr.msk.f32.mxu1 %vm17936_vm0, %v19093_v47 }
 0x552   :  { %17496 = vmatpush1.bf16.msra.mxu0 %v18003_v15  ;;  %17526 = vmatpush3.bf16.msra.mxu1 %v18068_v37 }
 0x553   :  { %17498 = vmatprep.subr.bf16.mxu0 %v18006_v16  ;;  %17527 = vmatprep.subr.bf16.mxu1 %v20146_v36 }
 0x556   :  { %17500 = vmatpush1.bf16.msra.mxu0 %v18021_v21  ;;  %17529 = vmatpush3.bf16.msra.mxu1 %v18096_v46 }
 0x557   :  { %17502 = vmatprep.subr.bf16.mxu0 %v18024_v22  ;;  %17530 = vmatprep.subr.bf16.mxu1 %v20146_v36 }
 0x55a   :  { %17504 = vmatpush1.bf16.msra.mxu0 %v18053_v32  ;;  %17532 = vmatpush3.bf16.msra.mxu1 %v18124_v55 }
 0x55b   :  { %17506 = vmatprep.subr.bf16.mxu0 %v18056_v33  ;;  %17533 = vmatprep.subr.bf16.mxu1 %v20146_v36 }
 0x55e   :  { %17508 = vmatpush1.bf16.msra.mxu0 %v18081_v41  ;;  %17535 = vmatpush3.bf16.msra.mxu1 %v18149_v63 }
 0x55f   :  { %17510 = vmatprep.subr.bf16.mxu0 %v18084_v42  ;;  %17536 = vmatprep.subr.bf16.mxu1 %v20146_v36 }
 0x560   :  { %v8759_v19 = vpop.f32.mrb[40].mxu0  ;;  %v8830_v35 = vpop.f32.mrb[40].mxu1 }
 0x561   :  { %v8761_v28 = vpop.f32.mrb[41].mxu0  ;;  %v15591_v61 = vpop.f32.mrb[41].mxu1 }
 0x562   :  { %17512 = vmatpush1.bf16.msra.mxu0 %v18109_v50  ;;  %17538 = vmatpush3.bf16.msra.mxu1 %v18163_v6 }
 0x563   :  { %17514 = vmatprep.subr.bf16.mxu0 %v18112_v51  ;;  %17539 = vmatprep.subr.bf16.mxu1 %v20146_v36 }
 0x566   :  { %17516 = vmatpush1.bf16.msra.mxu0 %v18137_v59  ;;  %17541 = vmatpush3.bf16.msra.mxu1 %v18174_v11 }
 0x567   :  { %17518 = vmatprep.subr.bf16.mxu0 %v18140_v60  ;;  %17542 = vmatprep.subr.bf16.mxu1 %v20146_v36 }
 0x56a   :  { %17520 = vmatpush1.bf16.msra.mxu0 %v20183_v4  ;;  %17544 = vmatpush3.bf16.msra.mxu1 %v20184_v26 }
 0x56b   :  { %17546 = vmatprep.subr.bf16.mxu0 %v20185_v38  ;;  %17577 = vmatprep.subr.bf16.mxu1 %v20146_v36 }
 0x56d   :  { %11734 = vmatmul.mubr.f32.vlgmr.msra.gmra.mrb[54].mxu0 %v20205_v23  ;;  %15835 = vmatmul.mubr.f32.vlgmr.msra.gmra.mrb[54].mxu1 %v20205_v23 }
 0x56e   :  { %17548 = vmatpush1.bf16.msra.mxu0 %v17985_v9  ;;  %17579 = vmatpush3.bf16.msra.mxu1 %v18044_v29 }
 0x56f   :  { %17550 = vmatprep.subr.bf16.mxu0 %v17987_v10  ;;  %17580 = vmatprep.subr.bf16.mxu1 %v20146_v36 }
 0x570   :  { %12181 = vmatprep.mubr.f32.mxu0 %v19093_v47  ;;  %15869 = vmatprep.mubr.msk.f32.mxu1 %vm17936_vm0, %v19093_v47 }
 0x572   :  { %17552 = vmatpush1.bf16.msra.mxu0 %v18003_v15  ;;  %17582 = vmatpush3.bf16.msra.mxu1 %v18068_v37 }
 0x573   :  { %17554 = vmatprep.subr.bf16.mxu0 %v18006_v16  ;;  %17583 = vmatprep.subr.bf16.mxu1 %v20146_v36 }
 0x576   :  { %17556 = vmatpush1.bf16.msra.mxu0 %v18021_v21  ;;  %17585 = vmatpush3.bf16.msra.mxu1 %v18096_v46 }
 0x577   :  { %17558 = vmatprep.subr.bf16.mxu0 %v18024_v22  ;;  %17586 = vmatprep.subr.bf16.mxu1 %v20146_v36 }
 0x57a   :  { %17560 = vmatpush1.bf16.msra.mxu0 %v18053_v32  ;;  %17588 = vmatpush3.bf16.msra.mxu1 %v18124_v55 }
 0x57b   :  { %17562 = vmatprep.subr.bf16.mxu0 %v18056_v33  ;;  %17589 = vmatprep.subr.bf16.mxu1 %v20146_v36 }
 0x57e   :  { %17564 = vmatpush1.bf16.msra.mxu0 %v18081_v41  ;;  %17591 = vmatpush3.bf16.msra.mxu1 %v18149_v63 }
 0x57f   :  { %17566 = vmatprep.subr.bf16.mxu0 %v18084_v42  ;;  %17592 = vmatprep.subr.bf16.mxu1 %v20146_v36 }
 0x580   :  { %v9167_v54 = vpop.f32.mrb[42].mxu0  ;;  %v9238_v53 = vpop.f32.mrb[42].mxu1 }
 0x581   :  { %v9169_v57 = vpop.f32.mrb[43].mxu0  ;;  %v15626_v25 = vpop.f32.mrb[43].mxu1 }
 0x582   :  { %17568 = vmatpush1.bf16.msra.mxu0 %v18109_v50  ;;  %17594 = vmatpush3.bf16.msra.mxu1 %v18163_v6 }
 0x583   :  { %17570 = vmatprep.subr.bf16.mxu0 %v18112_v51  ;;  %17595 = vmatprep.subr.bf16.mxu1 %v20146_v36 }
 0x586   :  { %17572 = vmatpush1.bf16.msra.mxu0 %v18137_v59  ;;  %17597 = vmatpush3.bf16.msra.mxu1 %v18174_v11 }
 0x587   :  { %17574 = vmatprep.subr.bf16.mxu0 %v18140_v60  ;;  %17598 = vmatprep.subr.bf16.mxu1 %v20146_v36 }
 0x58a   :  { %17576 = vmatpush1.bf16.msra.mxu0 %v20183_v4  ;;  %17600 = vmatpush3.bf16.msra.mxu1 %v20184_v26 }
 0x58b   :  { %17602 = vmatprep.subr.bf16.mxu0 %v20185_v38  ;;  %17633 = vmatprep.subr.bf16.mxu1 %v20146_v36 }
 0x58d   :  { %12182 = vmatmul.mubr.f32.vlgmr.msra.gmra.mrb[56].mxu0 %v19112_v18  ;;  %15870 = vmatmul.mubr.f32.vlgmr.msra.gmra.mrb[56].mxu1 %v19112_v18 }
 0x58e   :  { %17604 = vmatpush1.bf16.msra.mxu0 %v17985_v9  ;;  %17635 = vmatpush3.bf16.msra.mxu1 %v18044_v29 }
 0x58f   :  { %17606 = vmatprep.subr.bf16.mxu0 %v17987_v10  ;;  %17636 = vmatprep.subr.bf16.mxu1 %v20146_v36 }
 0x590   :  { %12589 = vmatprep.mubr.f32.mxu0 %v19093_v47  ;;  %15904 = vmatprep.mubr.msk.f32.mxu1 %vm17936_vm0, %v19093_v47 }
 0x592   :  { %17608 = vmatpush1.bf16.msra.mxu0 %v18003_v15  ;;  %17638 = vmatpush3.bf16.msra.mxu1 %v18068_v37 }
 0x593   :  { %17610 = vmatprep.subr.bf16.mxu0 %v18006_v16  ;;  %17639 = vmatprep.subr.bf16.mxu1 %v20146_v36 }
 0x596   :  { %17612 = vmatpush1.bf16.msra.mxu0 %v18021_v21  ;;  %17641 = vmatpush3.bf16.msra.mxu1 %v18096_v46 }
 0x597   :  { %17614 = vmatprep.subr.bf16.mxu0 %v18024_v22  ;;  %17642 = vmatprep.subr.bf16.mxu1 %v20146_v36 }
 0x59a   :  { %17616 = vmatpush1.bf16.msra.mxu0 %v18053_v32  ;;  %17644 = vmatpush3.bf16.msra.mxu1 %v18124_v55 }
 0x59b   :  { %17618 = vmatprep.subr.bf16.mxu0 %v18056_v33  ;;  %17645 = vmatprep.subr.bf16.mxu1 %v20146_v36 }
 0x59e   :  { %17620 = vmatpush1.bf16.msra.mxu0 %v18081_v41  ;;  %17647 = vmatpush3.bf16.msra.mxu1 %v18149_v63 }
 0x59f   :  { %17622 = vmatprep.subr.bf16.mxu0 %v18084_v42  ;;  %17648 = vmatprep.subr.bf16.mxu1 %v20146_v36 }
 0x5a0   :  { %v9615_v18 = vpop.f32.mrb[44].mxu0  ;;  %v9686_v52 = vpop.f32.mrb[44].mxu1 }
 0x5a1   :  { %v9617_v48 = vpop.f32.mrb[45].mxu0  ;;  %v15661_v40 = vpop.f32.mrb[45].mxu1 }
 0x5a2   :  { %17624 = vmatpush1.bf16.msra.mxu0 %v18109_v50  ;;  %17650 = vmatpush3.bf16.msra.mxu1 %v18163_v6 }
 0x5a3   :  { %17626 = vmatprep.subr.bf16.mxu0 %v18112_v51  ;;  %17651 = vmatprep.subr.bf16.mxu1 %v20146_v36 }
 0x5a6   :  { %17628 = vmatpush1.bf16.msra.mxu0 %v18137_v59  ;;  %17653 = vmatpush3.bf16.msra.mxu1 %v18174_v11 }
 0x5a7   :  { %17630 = vmatprep.subr.bf16.mxu0 %v18140_v60  ;;  %17654 = vmatprep.subr.bf16.mxu1 %v20146_v36 }
 0x5aa   :  { %17632 = vmatpush1.bf16.msra.mxu0 %v20183_v4  ;;  %17656 = vmatpush3.bf16.msra.mxu1 %v20184_v26 }
 0x5ab   :  { %17658 = vmatprep.subr.bf16.mxu0 %v20185_v38  ;;  %17689 = vmatprep.subr.bf16.mxu1 %v20146_v36 }
 0x5ad   :  { %12590 = vmatmul.mubr.f32.vlgmr.msra.gmra.mrb[58].mxu0 %v19128_v0  ;;  %15905 = vmatmul.mubr.f32.vlgmr.msra.gmra.mrb[58].mxu1 %v19128_v0 }
 0x5ae   :  { %17660 = vmatpush1.bf16.msra.mxu0 %v17985_v9  ;;  %17691 = vmatpush3.bf16.msra.mxu1 %v18044_v29 }
 0x5af   :  { %17662 = vmatprep.subr.bf16.mxu0 %v17987_v10  ;;  %17692 = vmatprep.subr.bf16.mxu1 %v20146_v36 }
 0x5b0   :  { %13037 = vmatprep.mubr.f32.mxu0 %v19093_v47  ;;  %15939 = vmatprep.mubr.msk.f32.mxu1 %vm17936_vm0, %v19093_v47 }
 0x5b2   :  { %17664 = vmatpush1.bf16.msra.mxu0 %v18003_v15  ;;  %17694 = vmatpush3.bf16.msra.mxu1 %v18068_v37 }
 0x5b3   :  { %17666 = vmatprep.subr.bf16.mxu0 %v18006_v16  ;;  %17695 = vmatprep.subr.bf16.mxu1 %v20146_v36 }
 0x5b6   :  { %17668 = vmatpush1.bf16.msra.mxu0 %v18021_v21  ;;  %17697 = vmatpush3.bf16.msra.mxu1 %v18096_v46 }
 0x5b7   :  { %17670 = vmatprep.subr.bf16.mxu0 %v18024_v22  ;;  %17698 = vmatprep.subr.bf16.mxu1 %v20146_v36 }
 0x5ba   :  { %17672 = vmatpush1.bf16.msra.mxu0 %v18053_v32  ;;  %17700 = vmatpush3.bf16.msra.mxu1 %v18124_v55 }
 0x5bb   :  { %17674 = vmatprep.subr.bf16.mxu0 %v18056_v33  ;;  %17701 = vmatprep.subr.bf16.mxu1 %v20146_v36 }
 0x5be   :  { %17676 = vmatpush1.bf16.msra.mxu0 %v18081_v41  ;;  %17703 = vmatpush3.bf16.msra.mxu1 %v18149_v63 }
 0x5bf   :  { %17678 = vmatprep.subr.bf16.mxu0 %v18084_v42  ;;  %17704 = vmatprep.subr.bf16.mxu1 %v20146_v36 }
 0x5c0   :  { %v10023_v0 = vpop.f32.mrb[46].mxu0  ;;  %v10094_v2 = vpop.f32.mrb[46].mxu1 }
 0x5c1   :  { %v10025_v31 = vpop.f32.mrb[47].mxu0  ;;  %v15696_v58 = vpop.f32.mrb[47].mxu1 }
 0x5c2   :  { %17680 = vmatpush1.bf16.msra.mxu0 %v18109_v50  ;;  %17706 = vmatpush3.bf16.msra.mxu1 %v18163_v6 }
 0x5c3   :  { %17682 = vmatprep.subr.bf16.mxu0 %v18112_v51  ;;  %17707 = vmatprep.subr.bf16.mxu1 %v20146_v36 }
 0x5c6   :  { %17684 = vmatpush1.bf16.msra.mxu0 %v18137_v59  ;;  %17709 = vmatpush3.bf16.msra.mxu1 %v18174_v11 }
 0x5c7   :  { %17686 = vmatprep.subr.bf16.mxu0 %v18140_v60  ;;  %17710 = vmatprep.subr.bf16.mxu1 %v20146_v36 }
 0x5ca   :  { %17688 = vmatpush1.bf16.msra.mxu0 %v20183_v4  ;;  %17712 = vmatpush3.bf16.msra.mxu1 %v20184_v26 }
 0x5cb   :  { %17714 = vmatprep.subr.bf16.mxu0 %v20185_v38  ;;  %17745 = vmatprep.subr.bf16.mxu1 %v20146_v36 }
 0x5cd   :  { %13038 = vmatmul.mubr.f32.vlgmr.msra.gmra.mrb[60].mxu0 %v19144_v5  ;;  %15940 = vmatmul.mubr.f32.vlgmr.msra.gmra.mrb[60].mxu1 %v19144_v5 }
 0x5ce   :  { %17716 = vmatpush1.bf16.msra.mxu0 %v17985_v9  ;;  %17747 = vmatpush3.bf16.msra.mxu1 %v18044_v29 }
 0x5cf   :  { %17718 = vmatprep.subr.bf16.mxu0 %v17987_v10  ;;  %17748 = vmatprep.subr.bf16.mxu1 %v20146_v36 }
 0x5d0   :  { %13445 = vmatprep.mubr.f32.mxu0 %v19093_v47  ;;  %15974 = vmatprep.mubr.msk.f32.mxu1 %vm17936_vm0, %v19093_v47 }
 0x5d2   :  { %17720 = vmatpush1.bf16.msra.mxu0 %v18003_v15  ;;  %17750 = vmatpush3.bf16.msra.mxu1 %v18068_v37 }
 0x5d3   :  { %17722 = vmatprep.subr.bf16.mxu0 %v18006_v16  ;;  %17751 = vmatprep.subr.bf16.mxu1 %v20146_v36 }
 0x5d6   :  { %17724 = vmatpush1.bf16.msra.mxu0 %v18021_v21  ;;  %17753 = vmatpush3.bf16.msra.mxu1 %v18096_v46 }
 0x5d7   :  { %17726 = vmatprep.subr.bf16.mxu0 %v18024_v22  ;;  %17754 = vmatprep.subr.bf16.mxu1 %v20146_v36 }
 0x5da   :  { %17728 = vmatpush1.bf16.msra.mxu0 %v18053_v32  ;;  %17756 = vmatpush3.bf16.msra.mxu1 %v18124_v55 }
 0x5db   :  { %17730 = vmatprep.subr.bf16.mxu0 %v18056_v33  ;;  %17757 = vmatprep.subr.bf16.mxu1 %v20146_v36 }
 0x5de   :  { %17732 = vmatpush1.bf16.msra.mxu0 %v18081_v41  ;;  %17759 = vmatpush3.bf16.msra.mxu1 %v18149_v63 }
 0x5df   :  { %17734 = vmatprep.subr.bf16.mxu0 %v18084_v42  ;;  %17760 = vmatprep.subr.bf16.mxu1 %v20146_v36 }
 0x5e0   :  { %v10471_v9 = vpop.f32.mrb[48].mxu0  ;;  %v10542_v10 = vpop.f32.mrb[48].mxu1 }
 0x5e1   :  { %v10473_v15 = vpop.f32.mrb[49].mxu0  ;;  %v15731_v16 = vpop.f32.mrb[49].mxu1 }
 0x5e2   :  { %17736 = vmatpush1.bf16.msra.mxu0 %v18109_v50  ;;  %17762 = vmatpush3.bf16.msra.mxu1 %v18163_v6 }
 0x5e3   :  { %17738 = vmatprep.subr.bf16.mxu0 %v18112_v51  ;;  %17763 = vmatprep.subr.bf16.mxu1 %v20146_v36 }
 0x5e6   :  { %17740 = vmatpush1.bf16.msra.mxu0 %v18137_v59  ;;  %17765 = vmatpush3.bf16.msra.mxu1 %v18174_v11 }
 0x5e7   :  { %17742 = vmatprep.subr.bf16.mxu0 %v18140_v60  ;;  %17766 = vmatprep.subr.bf16.mxu1 %v20146_v36 }
 0x5ea   :  { %17744 = vmatpush1.bf16.msra.mxu0 %v20183_v4  ;;  %17768 = vmatpush3.bf16.msra.mxu1 %v20184_v26 }
 0x5ed   :  { %13446 = vmatmul.mubr.f32.vlgmr.msra.gmra.mrb[62].mxu0 %v19165_v30  ;;  %15975 = vmatmul.mubr.f32.vlgmr.msra.gmra.mrb[62].mxu1 %v19165_v30 }
 0x600   :  { %v10879_v21 = vpop.f32.mrb[50].mxu0  ;;  %v10950_v22 = vpop.f32.mrb[50].mxu1 }
 0x601   :  { %v10881_v29 = vpop.f32.mrb[51].mxu0  ;;  %v15766_v32 = vpop.f32.mrb[51].mxu1 }
 0x620   :  { %v11327_v33 = vpop.f32.mrb[52].mxu0  ;;  %v11398_v37 = vpop.f32.mrb[52].mxu1 }
 0x621   :  { %v11329_v41 = vpop.f32.mrb[53].mxu0  ;;  %v15801_v42 = vpop.f32.mrb[53].mxu1 }
 0x640   :  { %v11735_v46 = vpop.f32.mrb[54].mxu0  ;;  %v11806_v50 = vpop.f32.mrb[54].mxu1 }
 0x641   :  { %v11737_v51 = vpop.f32.mrb[55].mxu0  ;;  %v15836_v55 = vpop.f32.mrb[55].mxu1 }
 0x660   :  { %v12183_v59 = vpop.f32.mrb[56].mxu0  ;;  %v12254_v60 = vpop.f32.mrb[56].mxu1 }
 0x661   :  { %v12185_v63 = vpop.f32.mrb[57].mxu0  ;;  %v15871_v6 = vpop.f32.mrb[57].mxu1 }
 0x680   :  { %v12591_v11 = vpop.f32.mrb[58].mxu0  ;;  %v12662_v36 = vpop.f32.mrb[58].mxu1 }
 0x681   :  { %v12593_v4 = vpop.f32.mrb[59].mxu0  ;;  %v15906_v26 = vpop.f32.mrb[59].mxu1 }
 0x6a0   :  { %v13039_v38 = vpop.f32.mrb[60].mxu0  ;;  %v13110_v47 = vpop.f32.mrb[60].mxu1 }
 0x6a1   :  { %v13041_v5 = vpop.f32.mrb[61].mxu0  ;;  %v15941_v30 = vpop.f32.mrb[61].mxu1 }
 0x6c0   :  { %v13447_v45 = vpop.f32.mrb[62].mxu0  ;;  %v13518_v62 = vpop.f32.mrb[62].mxu1 }
 0x6c1   :  { %v13449_v14 = vpop.f32.mrb[63].mxu0  ;;  %v15976_v8 = vpop.f32.mrb[63].mxu1 }

</bundles_post_ra>
